<compile_context>
chip_gen: v7x
topology: tpu7x:2x2x1
jax: 0.10.0
libtpu: 0.0.40
codegen_flags: <defaults>
</compile_context>

<pallas_src>
import jax
import jax.numpy as jnp
from jax.experimental import pallas as pl
from jax.experimental.pallas import tpu as pltpu

LANE = 128  # TPU lane width: channel padding target


def _round_up(n, m):
    return ((n + m - 1) // m) * m


def _store_halo_padded(pad_ref, v_bf16, H, W):
    """Write v (H, W, Cp) bf16 into pad_ref (H+2, W+2, Cp) with a zero 1-px halo.

    Zero-fill + interior slice store: no jnp.concatenate / full-array relayouts.
    The zero-fill is repeated every grid step so each TensorCore's private scratch
    is valid under the "parallel" batch axis (megacore correctness concern).
    """
    pad_ref[...] = jnp.zeros(pad_ref.shape, pad_ref.dtype)
    pad_ref[1:H + 1, 1:W + 1, :] = v_bf16


def _conv3x3_shift_acc(pad_ref, w_ref, H, W, Cp):
    """3x3 conv (stride 1, pad 1) as 9 shift-accumulated MXU matmuls.

    pad_ref: (H+2, W+2, Cp) bf16 zero-haloed activation (VMEM scratch).
    w_ref:   (3, 3, Cp, Cp)  bf16 HWIO weights (BN scale pre-folded).
    Returns (H*W, Cp) f32.
    """
    acc = jnp.zeros((H * W, Cp), jnp.float32)
    for kh in range(3):
        for kw in range(3):
            tap = pad_ref[kh:kh + H, kw:kw + W, :].reshape(H * W, Cp)   # bf16
            acc = acc + jnp.dot(tap, w_ref[kh, kw, :, :],
                                preferred_element_type=jnp.float32)
    return acc


def basic_block_kernel(x_ref, w1_ref, b1_ref, w2_ref, b2_ref, out_ref, xpad, ypad):
    """Fused relu(bn2(conv2(relu(bn1(conv1(x))))) + x); intermediates stay in VMEM."""
    H, W, Cp = out_ref.shape[1], out_ref.shape[2], out_ref.shape[3]

    # conv1 (BN1 scale folded into w1) -> +bias -> relu, f32 accumulation.
    _store_halo_padded(xpad, x_ref[0].astype(jnp.bfloat16), H, W)
    y1 = _conv3x3_shift_acc(xpad, w1_ref, H, W, Cp) + b1_ref[...]
    y1 = jnp.maximum(y1, 0.0)

    # conv2 (BN2 scale folded into w2) -> +bias -> +identity -> relu.
    # The conv1 activation never leaves VMEM (stored bf16 into the halo scratch).
    _store_halo_padded(ypad, y1.reshape(H, W, Cp).astype(jnp.bfloat16), H, W)
    y2 = _conv3x3_shift_acc(ypad, w2_ref, H, W, Cp) + b2_ref[...]
    y2 = y2.reshape(H, W, Cp) + x_ref[0]                 # residual stays in f32
    out_ref[0] = jnp.maximum(y2, 0.0).astype(out_ref.dtype)


def basic_block_forward_padded_nhwc(xp, w1p, b1p, w2p, b2p):
    """Pallas entry on lane-dense, channel-padded NHWC activations (f32).

    Chain BasicBlocks through this function (keeping activations padded-NHWC)
    to avoid per-block transpose/pad HBM round-trips.
    """
    B, H, W, Cp = xp.shape
    return pl.pallas_call(
        basic_block_kernel,
        out_shape=jax.ShapeDtypeStruct((B, H, W, Cp), jnp.float32),
        grid_spec=pltpu.PrefetchScalarGridSpec(
            num_scalar_prefetch=0,
            grid=(B,),
            in_specs=[
                pl.BlockSpec((1, H, W, Cp), lambda b: (b, 0, 0, 0)),   # x / identity
                pl.BlockSpec((3, 3, Cp, Cp), lambda b: (0, 0, 0, 0)),  # w1 bf16 (BN1-scaled)
                pl.BlockSpec((1, Cp), lambda b: (0, 0)),               # bn1 bias (f32)
                pl.BlockSpec((3, 3, Cp, Cp), lambda b: (0, 0, 0, 0)),  # w2 bf16 (BN2-scaled)
                pl.BlockSpec((1, Cp), lambda b: (0, 0)),               # bn2 bias (f32)
            ],
            out_specs=pl.BlockSpec((1, H, W, Cp), lambda b: (b, 0, 0, 0)),
            scratch_shapes=[
                pltpu.VMEM((H + 2, W + 2, Cp), jnp.bfloat16),  # haloed x
                pltpu.VMEM((H + 2, W + 2, Cp), jnp.bfloat16),  # haloed relu(bn1(conv1(x)))
            ],
        ),
        compiler_params=pltpu.CompilerParams(
            dimension_semantics=("parallel",)),   # v7x megacore: one batch elem per TC
    )(xp, w1p, b1p, w2p, b2p)


def _fold_bn(gamma, beta, mean, var, eps=1e-5):
    """Eval-mode BatchNorm folded to per-channel scale/bias (1-D, f32)."""
    scale = gamma / jnp.sqrt(var + eps)
    bias = beta - mean * scale
    return scale.astype(jnp.float32), bias.astype(jnp.float32)


def _prep_params(params, C, Cp):
    """Host-side prep: fold BN scale into conv weights in f32 (then cast to bf16)
    and zero-pad all channel axes to Cp (multiple of 128) for lane-dense layout."""
    s1, b1 = _fold_bn(params["bn1_gamma"], params["bn1_beta"],
                      params["bn1_mean"], params["bn1_var"])
    s2, b2 = _fold_bn(params["bn2_gamma"], params["bn2_beta"],
                      params["bn2_mean"], params["bn2_var"])
    w1 = params["w1"].astype(jnp.float32) * s1[None, None, None, :]   # HWIO, per-Cout scale
    w2 = params["w2"].astype(jnp.float32) * s2[None, None, None, :]
    pad_c = Cp - C
    w1p = jnp.pad(w1, ((0, 0), (0, 0), (0, pad_c), (0, pad_c))).astype(jnp.bfloat16)
    w2p = jnp.pad(w2, ((0, 0), (0, 0), (0, pad_c), (0, pad_c))).astype(jnp.bfloat16)
    b1p = jnp.pad(b1, ((0, pad_c),))[None, :].astype(jnp.float32)
    b2p = jnp.pad(b2, ((0, pad_c),))[None, :].astype(jnp.float32)
    return w1p, b1p, w2p, b2p


@jax.jit
def basic_block_forward(x_nchw, params):
    """BasicBlock forward with the PyTorch NCHW interface."""
    B, C, H, W = x_nchw.shape
    Cp = _round_up(C, LANE)
    w1p, b1p, w2p, b2p = _prep_params(params, C, Cp)
    x = jnp.transpose(x_nchw, (0, 2, 3, 1)).astype(jnp.float32)        # NCHW -> NHWC
    xp = jnp.pad(x, ((0, 0), (0, 0), (0, 0), (0, Cp - C)))             # lane-dense channels
    outp = basic_block_forward_padded_nhwc(xp, w1p, b1p, w2p, b2p)
    return jnp.transpose(outp[..., :C], (0, 3, 1, 2))                  # NHWC -> NCHW


def _reference_forward_f32(x_nchw, params):
    """Pure-f32 reference matching the PyTorch module semantics."""
    def conv3x3(x, w_hwio):
        return jax.lax.conv_general_dilated(
            x, w_hwio, window_strides=(1, 1), padding=((1, 1), (1, 1)),
            dimension_numbers=("NCHW", "HWIO", "NCHW"),
            preferred_element_type=jnp.float32)

    def bn(x, g, b, m, v, eps=1e-5):
        s = g / jnp.sqrt(v + eps)
        return x * s[None, :, None, None] + (b - m * s)[None, :, None, None]

    out = jnp.maximum(bn(conv3x3(x_nchw, params["w1"]), params["bn1_gamma"],
                         params["bn1_beta"], params["bn1_mean"], params["bn1_var"]), 0.0)
    out = bn(conv3x3(out, params["w2"]), params["bn2_gamma"],
             params["bn2_beta"], params["bn2_mean"], params["bn2_var"])
    return jnp.maximum(out + x_nchw, 0.0)


def _reference_forward_matched(x_nchw, params):
    """Precision-matched reference: BN scale folded into f32 weights then bf16 cast,
    bf16 conv operands with f32 accumulation, f32 bias/residual/ReLU epilogue."""
    s1, b1 = _fold_bn(params["bn1_gamma"], params["bn1_beta"],
                      params["bn1_mean"], params["bn1_var"])
    s2, b2 = _fold_bn(params["bn2_gamma"], params["bn2_beta"],
                      params["bn2_mean"], params["bn2_var"])
    w1 = (params["w1"].astype(jnp.float32) * s1[None, None, None, :]).astype(jnp.bfloat16)
    w2 = (params["w2"].astype(jnp.float32) * s2[None, None, None, :]).astype(jnp.bfloat16)

    def conv(x, w):
        return jax.lax.conv_general_dilated(
            x.astype(jnp.bfloat16), w, window_strides=(1, 1), padding=((1, 1), (1, 1)),
            dimension_numbers=("NCHW", "HWIO", "NCHW"),
            preferred_element_type=jnp.float32)

    y1 = jnp.maximum(conv(x_nchw, w1) + b1[None, :, None, None], 0.0)
    y2 = conv(y1, w2) + b2[None, :, None, None]
    return jnp.maximum(y2 + x_nchw, 0.0)


if __name__ == "__main__":
    B, C, H, W = 2, 4, 16, 16        # inplanes = planes = 4
    key = jax.random.PRNGKey(0)
    k = jax.random.split(key, 8)

    x = jax.random.normal(k[0], (B, C, H, W), jnp.float32)

    # PyTorch conv weights are OIHW (Cout, Cin, kH, kW); kernel wants HWIO.
    w1_oihw = jax.random.normal(k[1], (C, C, 3, 3), jnp.float32) * 0.1
    w2_oihw = jax.random.normal(k[2], (C, C, 3, 3), jnp.float32) * 0.1

    params = {
        "w1": jnp.transpose(w1_oihw, (2, 3, 1, 0)),
        "w2": jnp.transpose(w2_oihw, (2, 3, 1, 0)),
        "bn1_gamma": jax.random.uniform(k[3], (C,), jnp.float32, 0.5, 1.5),
        "bn1_beta":  jax.random.normal(k[4], (C,), jnp.float32) * 0.1,
        "bn1_mean":  jax.random.normal(k[5], (C,), jnp.float32) * 0.1,
        "bn1_var":   jax.random.uniform(k[6], (C,), jnp.float32, 0.5, 1.5),
        "bn2_gamma": jax.random.uniform(k[7], (C,), jnp.float32, 0.5, 1.5),
        "bn2_beta":  jnp.zeros((C,), jnp.float32),
        "bn2_mean":  jnp.zeros((C,), jnp.float32),
        "bn2_var":   jnp.ones((C,), jnp.float32),
    }

    out = jax.block_until_ready(basic_block_forward(x, params))
    assert out.shape == (B, C, H, W), out.shape

    # Kernel uses bf16 MXU operands with f32 accumulation and BN-scale-folded weights:
    # compare tightly against a precision-matched reference, and loosely against the
    # pure-f32 module semantics.
    ref_m = jax.block_until_ready(_reference_forward_matched(x, params))
    ref_f = jax.block_until_ready(_reference_forward_f32(x, params))
    err_m = float(jnp.max(jnp.abs(out - ref_m)))
    err_f = float(jnp.max(jnp.abs(out - ref_f)))
    assert err_m < 2e-3, f"precision-matched max abs err {err_m}"
    assert err_f < 1e-1, f"f32 max abs err {err_f}"
    print("KERNEL_OK")
</pallas_src>

<mosaic_0001>
module attributes {stable_mosaic.version = 11 : i64} {
  func.func @basic_block_kernel(%arg0: i32, %arg1: memref<1x16x16x128xf32, #tpu.memory_space<vmem>>, %arg2: memref<3x3x128x128xbf16, #tpu.memory_space<vmem>>, %arg3: memref<1x128xf32, #tpu.memory_space<vmem>>, %arg4: memref<3x3x128x128xbf16, #tpu.memory_space<vmem>>, %arg5: memref<1x128xf32, #tpu.memory_space<vmem>>, %arg6: memref<1x16x16x128xf32, #tpu.memory_space<vmem>>, %arg7: memref<18x18x128xbf16, #tpu.memory_space<vmem>>, %arg8: memref<18x18x128xbf16, #tpu.memory_space<vmem>>) attributes {dimension_semantics = [#tpu.dimension_semantics<parallel>], iteration_bounds = array<i64: 2>, scalar_prefetch = 0 : i64, scratch_operands = 2 : i64, tpu.core_type = #tpu.core_type<tc>, window_params = [{transform_indices = @transform_0, window_bounds = array<i64: 1, 16, 16, 128>}, {pipeline_mode = #tpu.pipeline_mode<synchronous>, transform_indices = @transform_1, window_bounds = array<i64: 3, 3, 128, 128>}, {pipeline_mode = #tpu.pipeline_mode<synchronous>, transform_indices = @transform_2, window_bounds = array<i64: 1, 128>}, {pipeline_mode = #tpu.pipeline_mode<synchronous>, transform_indices = @transform_3, window_bounds = array<i64: 3, 3, 128, 128>}, {pipeline_mode = #tpu.pipeline_mode<synchronous>, transform_indices = @transform_4, window_bounds = array<i64: 1, 128>}, {transform_indices = @transform_5, window_bounds = array<i64: 1, 16, 16, 128>}]} {
    %c0 = arith.constant 0 : index
    %c0_0 = arith.constant 0 : index
    %c0_1 = arith.constant 0 : index
    %c0_2 = arith.constant 0 : index
    %0 = vector.load %arg1[%c0, %c0_0, %c0_1, %c0_2] : memref<1x16x16x128xf32, #tpu.memory_space<vmem>>, vector<1x16x16x128xf32>
    %1 = vector.shape_cast %0 : vector<1x16x16x128xf32> to vector<16x16x128xf32>
    %2 = arith.truncf %1 : vector<16x16x128xf32> to vector<16x16x128xbf16>
    %cst = arith.constant 0.000000e+00 : bf16
    %3 = vector.broadcast %cst : bf16 to vector<18x18x128xbf16>
    %c0_3 = arith.constant 0 : index
    %c0_4 = arith.constant 0 : index
    %c0_5 = arith.constant 0 : index
    %4 = vector.load %arg7[%c0_3, %c0_4, %c0_5] : memref<18x18x128xbf16, #tpu.memory_space<vmem>>, vector<18x18x128xbf16>
    tpu.vector_store %arg7[%c0_3, %c0_4, %c0_5], %3 {strides = array<i32>} : memref<18x18x128xbf16, #tpu.memory_space<vmem>>, vector<18x18x128xbf16>,
    %c1 = arith.constant 1 : index
    %c1_6 = arith.constant 1 : index
    %c0_7 = arith.constant 0 : index
    %5 = vector.load %arg7[%c1, %c1_6, %c0_7] : memref<18x18x128xbf16, #tpu.memory_space<vmem>>, vector<16x16x128xbf16>
    tpu.vector_store %arg7[%c1, %c1_6, %c0_7], %2 {strides = array<i32>} : memref<18x18x128xbf16, #tpu.memory_space<vmem>>, vector<16x16x128xbf16>,
    %cst_8 = arith.constant 0.000000e+00 : f32
    %6 = vector.broadcast %cst_8 : f32 to vector<256x128xf32>
    %c0_9 = arith.constant 0 : index
    %c0_10 = arith.constant 0 : index
    %c0_11 = arith.constant 0 : index
    %7 = vector.load %arg7[%c0_9, %c0_10, %c0_11] : memref<18x18x128xbf16, #tpu.memory_space<vmem>>, vector<16x16x128xbf16>
    %8 = vector.shape_cast %7 : vector<16x16x128xbf16> to vector<256x128xbf16>
    %c0_12 = arith.constant 0 : index
    %c0_13 = arith.constant 0 : index
    %c0_14 = arith.constant 0 : index
    %c0_15 = arith.constant 0 : index
    %9 = vector.load %arg2[%c0_12, %c0_13, %c0_14, %c0_15] : memref<3x3x128x128xbf16, #tpu.memory_space<vmem>>, vector<1x1x128x128xbf16>
    %10 = vector.shape_cast %9 : vector<1x1x128x128xbf16> to vector<128x128xbf16>
    %cst_16 = arith.constant dense<0.000000e+00> : vector<256x128xf32>
    %11 = tpu.matmul %8, %10, %cst_16 {dimension_numbers = #tpu.dot_dimension_numbers<[1], [0], [0], [1], [0, 0, 1, 1], [], []>} : vector<256x128xbf16>, vector<128x128xbf16>, vector<256x128xf32> -> vector<256x128xf32>
    %12 = arith.addf %6, %11 : vector<256x128xf32>
    %c0_17 = arith.constant 0 : index
    %c1_18 = arith.constant 1 : index
    %c0_19 = arith.constant 0 : index
    %13 = vector.load %arg7[%c0_17, %c1_18, %c0_19] : memref<18x18x128xbf16, #tpu.memory_space<vmem>>, vector<16x16x128xbf16>
    %14 = vector.shape_cast %13 : vector<16x16x128xbf16> to vector<256x128xbf16>
    %c0_20 = arith.constant 0 : index
    %c1_21 = arith.constant 1 : index
    %c0_22 = arith.constant 0 : index
    %c0_23 = arith.constant 0 : index
    %15 = vector.load %arg2[%c0_20, %c1_21, %c0_22, %c0_23] : memref<3x3x128x128xbf16, #tpu.memory_space<vmem>>, vector<1x1x128x128xbf16>
    %16 = vector.shape_cast %15 : vector<1x1x128x128xbf16> to vector<128x128xbf16>
    %cst_24 = arith.constant dense<0.000000e+00> : vector<256x128xf32>
    %17 = tpu.matmul %14, %16, %cst_24 {dimension_numbers = #tpu.dot_dimension_numbers<[1], [0], [0], [1], [0, 0, 1, 1], [], []>} : vector<256x128xbf16>, vector<128x128xbf16>, vector<256x128xf32> -> vector<256x128xf32>
    %18 = arith.addf %12, %17 : vector<256x128xf32>
    %c0_25 = arith.constant 0 : index
    %c2 = arith.constant 2 : index
    %c0_26 = arith.constant 0 : index
    %19 = vector.load %arg7[%c0_25, %c2, %c0_26] : memref<18x18x128xbf16, #tpu.memory_space<vmem>>, vector<16x16x128xbf16>
    %20 = vector.shape_cast %19 : vector<16x16x128xbf16> to vector<256x128xbf16>
    %c0_27 = arith.constant 0 : index
    %c2_28 = arith.constant 2 : index
    %c0_29 = arith.constant 0 : index
    %c0_30 = arith.constant 0 : index
    %21 = vector.load %arg2[%c0_27, %c2_28, %c0_29, %c0_30] : memref<3x3x128x128xbf16, #tpu.memory_space<vmem>>, vector<1x1x128x128xbf16>
    %22 = vector.shape_cast %21 : vector<1x1x128x128xbf16> to vector<128x128xbf16>
    %cst_31 = arith.constant dense<0.000000e+00> : vector<256x128xf32>
    %23 = tpu.matmul %20, %22, %cst_31 {dimension_numbers = #tpu.dot_dimension_numbers<[1], [0], [0], [1], [0, 0, 1, 1], [], []>} : vector<256x128xbf16>, vector<128x128xbf16>, vector<256x128xf32> -> vector<256x128xf32>
    %24 = arith.addf %18, %23 : vector<256x128xf32>
    %c1_32 = arith.constant 1 : index
    %c0_33 = arith.constant 0 : index
    %c0_34 = arith.constant 0 : index
    %25 = vector.load %arg7[%c1_32, %c0_33, %c0_34] : memref<18x18x128xbf16, #tpu.memory_space<vmem>>, vector<16x16x128xbf16>
    %26 = vector.shape_cast %25 : vector<16x16x128xbf16> to vector<256x128xbf16>
    %c1_35 = arith.constant 1 : index
    %c0_36 = arith.constant 0 : index
    %c0_37 = arith.constant 0 : index
    %c0_38 = arith.constant 0 : index
    %27 = vector.load %arg2[%c1_35, %c0_36, %c0_37, %c0_38] : memref<3x3x128x128xbf16, #tpu.memory_space<vmem>>, vector<1x1x128x128xbf16>
    %28 = vector.shape_cast %27 : vector<1x1x128x128xbf16> to vector<128x128xbf16>
    %cst_39 = arith.constant dense<0.000000e+00> : vector<256x128xf32>
    %29 = tpu.matmul %26, %28, %cst_39 {dimension_numbers = #tpu.dot_dimension_numbers<[1], [0], [0], [1], [0, 0, 1, 1], [], []>} : vector<256x128xbf16>, vector<128x128xbf16>, vector<256x128xf32> -> vector<256x128xf32>
    %30 = arith.addf %24, %29 : vector<256x128xf32>
    %c1_40 = arith.constant 1 : index
    %c1_41 = arith.constant 1 : index
    %c0_42 = arith.constant 0 : index
    %31 = vector.load %arg7[%c1_40, %c1_41, %c0_42] : memref<18x18x128xbf16, #tpu.memory_space<vmem>>, vector<16x16x128xbf16>
    %32 = vector.shape_cast %31 : vector<16x16x128xbf16> to vector<256x128xbf16>
    %c1_43 = arith.constant 1 : index
    %c1_44 = arith.constant 1 : index
    %c0_45 = arith.constant 0 : index
    %c0_46 = arith.constant 0 : index
    %33 = vector.load %arg2[%c1_43, %c1_44, %c0_45, %c0_46] : memref<3x3x128x128xbf16, #tpu.memory_space<vmem>>, vector<1x1x128x128xbf16>
    %34 = vector.shape_cast %33 : vector<1x1x128x128xbf16> to vector<128x128xbf16>
    %cst_47 = arith.constant dense<0.000000e+00> : vector<256x128xf32>
    %35 = tpu.matmul %32, %34, %cst_47 {dimension_numbers = #tpu.dot_dimension_numbers<[1], [0], [0], [1], [0, 0, 1, 1], [], []>} : vector<256x128xbf16>, vector<128x128xbf16>, vector<256x128xf32> -> vector<256x128xf32>
    %36 = arith.addf %30, %35 : vector<256x128xf32>
    %c1_48 = arith.constant 1 : index
    %c2_49 = arith.constant 2 : index
    %c0_50 = arith.constant 0 : index
    %37 = vector.load %arg7[%c1_48, %c2_49, %c0_50] : memref<18x18x128xbf16, #tpu.memory_space<vmem>>, vector<16x16x128xbf16>
    %38 = vector.shape_cast %37 : vector<16x16x128xbf16> to vector<256x128xbf16>
    %c1_51 = arith.constant 1 : index
    %c2_52 = arith.constant 2 : index
    %c0_53 = arith.constant 0 : index
    %c0_54 = arith.constant 0 : index
    %39 = vector.load %arg2[%c1_51, %c2_52, %c0_53, %c0_54] : memref<3x3x128x128xbf16, #tpu.memory_space<vmem>>, vector<1x1x128x128xbf16>
    %40 = vector.shape_cast %39 : vector<1x1x128x128xbf16> to vector<128x128xbf16>
    %cst_55 = arith.constant dense<0.000000e+00> : vector<256x128xf32>
    %41 = tpu.matmul %38, %40, %cst_55 {dimension_numbers = #tpu.dot_dimension_numbers<[1], [0], [0], [1], [0, 0, 1, 1], [], []>} : vector<256x128xbf16>, vector<128x128xbf16>, vector<256x128xf32> -> vector<256x128xf32>
    %42 = arith.addf %36, %41 : vector<256x128xf32>
    %c2_56 = arith.constant 2 : index
    %c0_57 = arith.constant 0 : index
    %c0_58 = arith.constant 0 : index
    %43 = vector.load %arg7[%c2_56, %c0_57, %c0_58] : memref<18x18x128xbf16, #tpu.memory_space<vmem>>, vector<16x16x128xbf16>
    %44 = vector.shape_cast %43 : vector<16x16x128xbf16> to vector<256x128xbf16>
    %c2_59 = arith.constant 2 : index
    %c0_60 = arith.constant 0 : index
    %c0_61 = arith.constant 0 : index
    %c0_62 = arith.constant 0 : index
    %45 = vector.load %arg2[%c2_59, %c0_60, %c0_61, %c0_62] : memref<3x3x128x128xbf16, #tpu.memory_space<vmem>>, vector<1x1x128x128xbf16>
    %46 = vector.shape_cast %45 : vector<1x1x128x128xbf16> to vector<128x128xbf16>
    %cst_63 = arith.constant dense<0.000000e+00> : vector<256x128xf32>
    %47 = tpu.matmul %44, %46, %cst_63 {dimension_numbers = #tpu.dot_dimension_numbers<[1], [0], [0], [1], [0, 0, 1, 1], [], []>} : vector<256x128xbf16>, vector<128x128xbf16>, vector<256x128xf32> -> vector<256x128xf32>
    %48 = arith.addf %42, %47 : vector<256x128xf32>
    %c2_64 = arith.constant 2 : index
    %c1_65 = arith.constant 1 : index
    %c0_66 = arith.constant 0 : index
    %49 = vector.load %arg7[%c2_64, %c1_65, %c0_66] : memref<18x18x128xbf16, #tpu.memory_space<vmem>>, vector<16x16x128xbf16>
    %50 = vector.shape_cast %49 : vector<16x16x128xbf16> to vector<256x128xbf16>
    %c2_67 = arith.constant 2 : index
    %c1_68 = arith.constant 1 : index
    %c0_69 = arith.constant 0 : index
    %c0_70 = arith.constant 0 : index
    %51 = vector.load %arg2[%c2_67, %c1_68, %c0_69, %c0_70] : memref<3x3x128x128xbf16, #tpu.memory_space<vmem>>, vector<1x1x128x128xbf16>
    %52 = vector.shape_cast %51 : vector<1x1x128x128xbf16> to vector<128x128xbf16>
    %cst_71 = arith.constant dense<0.000000e+00> : vector<256x128xf32>
    %53 = tpu.matmul %50, %52, %cst_71 {dimension_numbers = #tpu.dot_dimension_numbers<[1], [0], [0], [1], [0, 0, 1, 1], [], []>} : vector<256x128xbf16>, vector<128x128xbf16>, vector<256x128xf32> -> vector<256x128xf32>
    %54 = arith.addf %48, %53 : vector<256x128xf32>
    %c2_72 = arith.constant 2 : index
    %c2_73 = arith.constant 2 : index
    %c0_74 = arith.constant 0 : index
    %55 = vector.load %arg7[%c2_72, %c2_73, %c0_74] : memref<18x18x128xbf16, #tpu.memory_space<vmem>>, vector<16x16x128xbf16>
    %56 = vector.shape_cast %55 : vector<16x16x128xbf16> to vector<256x128xbf16>
    %c2_75 = arith.constant 2 : index
    %c2_76 = arith.constant 2 : index
    %c0_77 = arith.constant 0 : index
    %c0_78 = arith.constant 0 : index
    %57 = vector.load %arg2[%c2_75, %c2_76, %c0_77, %c0_78] : memref<3x3x128x128xbf16, #tpu.memory_space<vmem>>, vector<1x1x128x128xbf16>
    %58 = vector.shape_cast %57 : vector<1x1x128x128xbf16> to vector<128x128xbf16>
    %cst_79 = arith.constant dense<0.000000e+00> : vector<256x128xf32>
    %59 = tpu.matmul %56, %58, %cst_79 {dimension_numbers = #tpu.dot_dimension_numbers<[1], [0], [0], [1], [0, 0, 1, 1], [], []>} : vector<256x128xbf16>, vector<128x128xbf16>, vector<256x128xf32> -> vector<256x128xf32>
    %60 = arith.addf %54, %59 : vector<256x128xf32>
    %c0_80 = arith.constant 0 : index
    %c0_81 = arith.constant 0 : index
    %61 = vector.load %arg3[%c0_80, %c0_81] : memref<1x128xf32, #tpu.memory_space<vmem>>, vector<1x128xf32>
    %62 = vector.broadcast %61 : vector<1x128xf32> to vector<256x128xf32>
    %63 = arith.addf %60, %62 : vector<256x128xf32>
    %cst_82 = arith.constant 0.000000e+00 : f32
    %64 = vector.broadcast %cst_82 : f32 to vector<256x128xf32>
    %65 = arith.maximumf %63, %64 : vector<256x128xf32>
    %66 = vector.shape_cast %65 : vector<256x128xf32> to vector<16x16x128xf32>
    %67 = arith.truncf %66 : vector<16x16x128xf32> to vector<16x16x128xbf16>
    %cst_83 = arith.constant 0.000000e+00 : bf16
    %68 = vector.broadcast %cst_83 : bf16 to vector<18x18x128xbf16>
    %c0_84 = arith.constant 0 : index
    %c0_85 = arith.constant 0 : index
    %c0_86 = arith.constant 0 : index
    %69 = vector.load %arg8[%c0_84, %c0_85, %c0_86] : memref<18x18x128xbf16, #tpu.memory_space<vmem>>, vector<18x18x128xbf16>
    tpu.vector_store %arg8[%c0_84, %c0_85, %c0_86], %68 {strides = array<i32>} : memref<18x18x128xbf16, #tpu.memory_space<vmem>>, vector<18x18x128xbf16>,
    %c1_87 = arith.constant 1 : index
    %c1_88 = arith.constant 1 : index
    %c0_89 = arith.constant 0 : index
    %70 = vector.load %arg8[%c1_87, %c1_88, %c0_89] : memref<18x18x128xbf16, #tpu.memory_space<vmem>>, vector<16x16x128xbf16>
    tpu.vector_store %arg8[%c1_87, %c1_88, %c0_89], %67 {strides = array<i32>} : memref<18x18x128xbf16, #tpu.memory_space<vmem>>, vector<16x16x128xbf16>,
    %cst_90 = arith.constant 0.000000e+00 : f32
    %71 = vector.broadcast %cst_90 : f32 to vector<256x128xf32>
    %c0_91 = arith.constant 0 : index
    %c0_92 = arith.constant 0 : index
    %c0_93 = arith.constant 0 : index
    %72 = vector.load %arg8[%c0_91, %c0_92, %c0_93] : memref<18x18x128xbf16, #tpu.memory_space<vmem>>, vector<16x16x128xbf16>
    %73 = vector.shape_cast %72 : vector<16x16x128xbf16> to vector<256x128xbf16>
    %c0_94 = arith.constant 0 : index
    %c0_95 = arith.constant 0 : index
    %c0_96 = arith.constant 0 : index
    %c0_97 = arith.constant 0 : index
    %74 = vector.load %arg4[%c0_94, %c0_95, %c0_96, %c0_97] : memref<3x3x128x128xbf16, #tpu.memory_space<vmem>>, vector<1x1x128x128xbf16>
    %75 = vector.shape_cast %74 : vector<1x1x128x128xbf16> to vector<128x128xbf16>
    %cst_98 = arith.constant dense<0.000000e+00> : vector<256x128xf32>
    %76 = tpu.matmul %73, %75, %cst_98 {dimension_numbers = #tpu.dot_dimension_numbers<[1], [0], [0], [1], [0, 0, 1, 1], [], []>} : vector<256x128xbf16>, vector<128x128xbf16>, vector<256x128xf32> -> vector<256x128xf32>
    %77 = arith.addf %71, %76 : vector<256x128xf32>
    %c0_99 = arith.constant 0 : index
    %c1_100 = arith.constant 1 : index
    %c0_101 = arith.constant 0 : index
    %78 = vector.load %arg8[%c0_99, %c1_100, %c0_101] : memref<18x18x128xbf16, #tpu.memory_space<vmem>>, vector<16x16x128xbf16>
    %79 = vector.shape_cast %78 : vector<16x16x128xbf16> to vector<256x128xbf16>
    %c0_102 = arith.constant 0 : index
    %c1_103 = arith.constant 1 : index
    %c0_104 = arith.constant 0 : index
    %c0_105 = arith.constant 0 : index
    %80 = vector.load %arg4[%c0_102, %c1_103, %c0_104, %c0_105] : memref<3x3x128x128xbf16, #tpu.memory_space<vmem>>, vector<1x1x128x128xbf16>
    %81 = vector.shape_cast %80 : vector<1x1x128x128xbf16> to vector<128x128xbf16>
    %cst_106 = arith.constant dense<0.000000e+00> : vector<256x128xf32>
    %82 = tpu.matmul %79, %81, %cst_106 {dimension_numbers = #tpu.dot_dimension_numbers<[1], [0], [0], [1], [0, 0, 1, 1], [], []>} : vector<256x128xbf16>, vector<128x128xbf16>, vector<256x128xf32> -> vector<256x128xf32>
    %83 = arith.addf %77, %82 : vector<256x128xf32>
    %c0_107 = arith.constant 0 : index
    %c2_108 = arith.constant 2 : index
    %c0_109 = arith.constant 0 : index
    %84 = vector.load %arg8[%c0_107, %c2_108, %c0_109] : memref<18x18x128xbf16, #tpu.memory_space<vmem>>, vector<16x16x128xbf16>
    %85 = vector.shape_cast %84 : vector<16x16x128xbf16> to vector<256x128xbf16>
    %c0_110 = arith.constant 0 : index
    %c2_111 = arith.constant 2 : index
    %c0_112 = arith.constant 0 : index
    %c0_113 = arith.constant 0 : index
    %86 = vector.load %arg4[%c0_110, %c2_111, %c0_112, %c0_113] : memref<3x3x128x128xbf16, #tpu.memory_space<vmem>>, vector<1x1x128x128xbf16>
    %87 = vector.shape_cast %86 : vector<1x1x128x128xbf16> to vector<128x128xbf16>
    %cst_114 = arith.constant dense<0.000000e+00> : vector<256x128xf32>
    %88 = tpu.matmul %85, %87, %cst_114 {dimension_numbers = #tpu.dot_dimension_numbers<[1], [0], [0], [1], [0, 0, 1, 1], [], []>} : vector<256x128xbf16>, vector<128x128xbf16>, vector<256x128xf32> -> vector<256x128xf32>
    %89 = arith.addf %83, %88 : vector<256x128xf32>
    %c1_115 = arith.constant 1 : index
    %c0_116 = arith.constant 0 : index
    %c0_117 = arith.constant 0 : index
    %90 = vector.load %arg8[%c1_115, %c0_116, %c0_117] : memref<18x18x128xbf16, #tpu.memory_space<vmem>>, vector<16x16x128xbf16>
    %91 = vector.shape_cast %90 : vector<16x16x128xbf16> to vector<256x128xbf16>
    %c1_118 = arith.constant 1 : index
    %c0_119 = arith.constant 0 : index
    %c0_120 = arith.constant 0 : index
    %c0_121 = arith.constant 0 : index
    %92 = vector.load %arg4[%c1_118, %c0_119, %c0_120, %c0_121] : memref<3x3x128x128xbf16, #tpu.memory_space<vmem>>, vector<1x1x128x128xbf16>
    %93 = vector.shape_cast %92 : vector<1x1x128x128xbf16> to vector<128x128xbf16>
    %cst_122 = arith.constant dense<0.000000e+00> : vector<256x128xf32>
    %94 = tpu.matmul %91, %93, %cst_122 {dimension_numbers = #tpu.dot_dimension_numbers<[1], [0], [0], [1], [0, 0, 1, 1], [], []>} : vector<256x128xbf16>, vector<128x128xbf16>, vector<256x128xf32> -> vector<256x128xf32>
    %95 = arith.addf %89, %94 : vector<256x128xf32>
    %c1_123 = arith.constant 1 : index
    %c1_124 = arith.constant 1 : index
    %c0_125 = arith.constant 0 : index
    %96 = vector.load %arg8[%c1_123, %c1_124, %c0_125] : memref<18x18x128xbf16, #tpu.memory_space<vmem>>, vector<16x16x128xbf16>
    %97 = vector.shape_cast %96 : vector<16x16x128xbf16> to vector<256x128xbf16>
    %c1_126 = arith.constant 1 : index
    %c1_127 = arith.constant 1 : index
    %c0_128 = arith.constant 0 : index
    %c0_129 = arith.constant 0 : index
    %98 = vector.load %arg4[%c1_126, %c1_127, %c0_128, %c0_129] : memref<3x3x128x128xbf16, #tpu.memory_space<vmem>>, vector<1x1x128x128xbf16>
    %99 = vector.shape_cast %98 : vector<1x1x128x128xbf16> to vector<128x128xbf16>
    %cst_130 = arith.constant dense<0.000000e+00> : vector<256x128xf32>
    %100 = tpu.matmul %97, %99, %cst_130 {dimension_numbers = #tpu.dot_dimension_numbers<[1], [0], [0], [1], [0, 0, 1, 1], [], []>} : vector<256x128xbf16>, vector<128x128xbf16>, vector<256x128xf32> -> vector<256x128xf32>
    %101 = arith.addf %95, %100 : vector<256x128xf32>
    %c1_131 = arith.constant 1 : index
    %c2_132 = arith.constant 2 : index
    %c0_133 = arith.constant 0 : index
    %102 = vector.load %arg8[%c1_131, %c2_132, %c0_133] : memref<18x18x128xbf16, #tpu.memory_space<vmem>>, vector<16x16x128xbf16>
    %103 = vector.shape_cast %102 : vector<16x16x128xbf16> to vector<256x128xbf16>
    %c1_134 = arith.constant 1 : index
    %c2_135 = arith.constant 2 : index
    %c0_136 = arith.constant 0 : index
    %c0_137 = arith.constant 0 : index
    %104 = vector.load %arg4[%c1_134, %c2_135, %c0_136, %c0_137] : memref<3x3x128x128xbf16, #tpu.memory_space<vmem>>, vector<1x1x128x128xbf16>
    %105 = vector.shape_cast %104 : vector<1x1x128x128xbf16> to vector<128x128xbf16>
    %cst_138 = arith.constant dense<0.000000e+00> : vector<256x128xf32>
    %106 = tpu.matmul %103, %105, %cst_138 {dimension_numbers = #tpu.dot_dimension_numbers<[1], [0], [0], [1], [0, 0, 1, 1], [], []>} : vector<256x128xbf16>, vector<128x128xbf16>, vector<256x128xf32> -> vector<256x128xf32>
    %107 = arith.addf %101, %106 : vector<256x128xf32>
    %c2_139 = arith.constant 2 : index
    %c0_140 = arith.constant 0 : index
    %c0_141 = arith.constant 0 : index
    %108 = vector.load %arg8[%c2_139, %c0_140, %c0_141] : memref<18x18x128xbf16, #tpu.memory_space<vmem>>, vector<16x16x128xbf16>
    %109 = vector.shape_cast %108 : vector<16x16x128xbf16> to vector<256x128xbf16>
    %c2_142 = arith.constant 2 : index
    %c0_143 = arith.constant 0 : index
    %c0_144 = arith.constant 0 : index
    %c0_145 = arith.constant 0 : index
    %110 = vector.load %arg4[%c2_142, %c0_143, %c0_144, %c0_145] : memref<3x3x128x128xbf16, #tpu.memory_space<vmem>>, vector<1x1x128x128xbf16>
    %111 = vector.shape_cast %110 : vector<1x1x128x128xbf16> to vector<128x128xbf16>
    %cst_146 = arith.constant dense<0.000000e+00> : vector<256x128xf32>
    %112 = tpu.matmul %109, %111, %cst_146 {dimension_numbers = #tpu.dot_dimension_numbers<[1], [0], [0], [1], [0, 0, 1, 1], [], []>} : vector<256x128xbf16>, vector<128x128xbf16>, vector<256x128xf32> -> vector<256x128xf32>
    %113 = arith.addf %107, %112 : vector<256x128xf32>
    %c2_147 = arith.constant 2 : index
    %c1_148 = arith.constant 1 : index
    %c0_149 = arith.constant 0 : index
    %114 = vector.load %arg8[%c2_147, %c1_148, %c0_149] : memref<18x18x128xbf16, #tpu.memory_space<vmem>>, vector<16x16x128xbf16>
    %115 = vector.shape_cast %114 : vector<16x16x128xbf16> to vector<256x128xbf16>
    %c2_150 = arith.constant 2 : index
    %c1_151 = arith.constant 1 : index
    %c0_152 = arith.constant 0 : index
    %c0_153 = arith.constant 0 : index
    %116 = vector.load %arg4[%c2_150, %c1_151, %c0_152, %c0_153] : memref<3x3x128x128xbf16, #tpu.memory_space<vmem>>, vector<1x1x128x128xbf16>
    %117 = vector.shape_cast %116 : vector<1x1x128x128xbf16> to vector<128x128xbf16>
    %cst_154 = arith.constant dense<0.000000e+00> : vector<256x128xf32>
    %118 = tpu.matmul %115, %117, %cst_154 {dimension_numbers = #tpu.dot_dimension_numbers<[1], [0], [0], [1], [0, 0, 1, 1], [], []>} : vector<256x128xbf16>, vector<128x128xbf16>, vector<256x128xf32> -> vector<256x128xf32>
    %119 = arith.addf %113, %118 : vector<256x128xf32>
    %c2_155 = arith.constant 2 : index
    %c2_156 = arith.constant 2 : index
    %c0_157 = arith.constant 0 : index
    %120 = vector.load %arg8[%c2_155, %c2_156, %c0_157] : memref<18x18x128xbf16, #tpu.memory_space<vmem>>, vector<16x16x128xbf16>
    %121 = vector.shape_cast %120 : vector<16x16x128xbf16> to vector<256x128xbf16>
    %c2_158 = arith.constant 2 : index
    %c2_159 = arith.constant 2 : index
    %c0_160 = arith.constant 0 : index
    %c0_161 = arith.constant 0 : index
    %122 = vector.load %arg4[%c2_158, %c2_159, %c0_160, %c0_161] : memref<3x3x128x128xbf16, #tpu.memory_space<vmem>>, vector<1x1x128x128xbf16>
    %123 = vector.shape_cast %122 : vector<1x1x128x128xbf16> to vector<128x128xbf16>
    %cst_162 = arith.constant dense<0.000000e+00> : vector<256x128xf32>
    %124 = tpu.matmul %121, %123, %cst_162 {dimension_numbers = #tpu.dot_dimension_numbers<[1], [0], [0], [1], [0, 0, 1, 1], [], []>} : vector<256x128xbf16>, vector<128x128xbf16>, vector<256x128xf32> -> vector<256x128xf32>
    %125 = arith.addf %119, %124 : vector<256x128xf32>
    %c0_163 = arith.constant 0 : index
    %c0_164 = arith.constant 0 : index
    %126 = vector.load %arg5[%c0_163, %c0_164] : memref<1x128xf32, #tpu.memory_space<vmem>>, vector<1x128xf32>
    %127 = vector.broadcast %126 : vector<1x128xf32> to vector<256x128xf32>
    %128 = arith.addf %125, %127 : vector<256x128xf32>
    %129 = vector.shape_cast %128 : vector<256x128xf32> to vector<16x16x128xf32>
    %c0_165 = arith.constant 0 : index
    %c0_166 = arith.constant 0 : index
    %c0_167 = arith.constant 0 : index
    %c0_168 = arith.constant 0 : index
    %130 = vector.load %arg1[%c0_165, %c0_166, %c0_167, %c0_168] : memref<1x16x16x128xf32, #tpu.memory_space<vmem>>, vector<1x16x16x128xf32>
    %131 = vector.shape_cast %130 : vector<1x16x16x128xf32> to vector<16x16x128xf32>
    %132 = arith.addf %129, %131 : vector<16x16x128xf32>
    %cst_169 = arith.constant 0.000000e+00 : f32
    %133 = vector.broadcast %cst_169 : f32 to vector<16x16x128xf32>
    %134 = arith.maximumf %132, %133 : vector<16x16x128xf32>
    %c0_170 = arith.constant 0 : index
    %c0_171 = arith.constant 0 : index
    %c0_172 = arith.constant 0 : index
    %c0_173 = arith.constant 0 : index
    %135 = vector.load %arg6[%c0_170, %c0_171, %c0_172, %c0_173] : memref<1x16x16x128xf32, #tpu.memory_space<vmem>>, vector<1x16x16x128xf32>
    %136 = vector.shape_cast %135 : vector<1x16x16x128xf32> to vector<16x16x128xf32>
    %137 = vector.shape_cast %134 : vector<16x16x128xf32> to vector<1x16x16x128xf32>
    tpu.vector_store %arg6[%c0_170, %c0_171, %c0_172, %c0_173], %137 {strides = array<i32>} : memref<1x16x16x128xf32, #tpu.memory_space<vmem>>, vector<1x16x16x128xf32>,
    return
  }
  func.func @transform_0(%arg0: i32) -> (i32, i32, i32, i32) {
    %c0_i32 = arith.constant 0 : i32
    %c0_i32_0 = arith.constant 0 : i32
    %c0_i32_1 = arith.constant 0 : i32
    %c0_i32_2 = arith.constant 0 : i32
    return %arg0, %c0_i32, %c0_i32_0, %c0_i32_1 : i32, i32, i32, i32
  }
  func.func @transform_1(%arg0: i32) -> (i32, i32, i32, i32) {
    %c0_i32 = arith.constant 0 : i32
    %c0_i32_0 = arith.constant 0 : i32
    %c0_i32_1 = arith.constant 0 : i32
    %c0_i32_2 = arith.constant 0 : i32
    %c0_i32_3 = arith.constant 0 : i32
    return %c0_i32, %c0_i32_0, %c0_i32_1, %c0_i32_2 : i32, i32, i32, i32
  }
  func.func @transform_2(%arg0: i32) -> (i32, i32) {
    %c0_i32 = arith.constant 0 : i32
    %c0_i32_0 = arith.constant 0 : i32
    %c0_i32_1 = arith.constant 0 : i32
    return %c0_i32, %c0_i32_0 : i32, i32
  }
  func.func @transform_3(%arg0: i32) -> (i32, i32, i32, i32) {
    %c0_i32 = arith.constant 0 : i32
    %c0_i32_0 = arith.constant 0 : i32
    %c0_i32_1 = arith.constant 0 : i32
    %c0_i32_2 = arith.constant 0 : i32
    %c0_i32_3 = arith.constant 0 : i32
    return %c0_i32, %c0_i32_0, %c0_i32_1, %c0_i32_2 : i32, i32, i32, i32
  }
  func.func @transform_4(%arg0: i32) -> (i32, i32) {
    %c0_i32 = arith.constant 0 : i32
    %c0_i32_0 = arith.constant 0 : i32
    %c0_i32_1 = arith.constant 0 : i32
    return %c0_i32, %c0_i32_0 : i32, i32
  }
  func.func @transform_5(%arg0: i32) -> (i32, i32, i32, i32) {
    %c0_i32 = arith.constant 0 : i32
    %c0_i32_0 = arith.constant 0 : i32
    %c0_i32_1 = arith.constant 0 : i32
    %c0_i32_2 = arith.constant 0 : i32
    return %arg0, %c0_i32, %c0_i32_0, %c0_i32_1 : i32, i32, i32, i32
  }
}

</mosaic_0001>

<bundles_post_ra>
// kernel: basic_block_forward.1
= control target key start
LH: loop header
LB: loop body
LE: loop exit
PB: predicated region body
PF: predicated region fallthrough
CT: control target
= control target key end

     0   :  { %s14429_s18 = smov 0   ;;  %s18103_s0 = inlined_call_operand.vmem [shape: f32[2,16,16,128], index: 0, kind: input, shape index: {}]   ;;  %s18104_s1 = inlined_call_operand.vmem [shape: bf16[3,3,128,128], index: 1, kind: input, shape index: {}]   ;;  %s18105_s2 = inlined_call_operand.vmem [shape: f32[1,128], index: 2, kind: input, shape index: {}]   ;;  %s18106_s3 = inlined_call_operand.vmem [shape: bf16[3,3,128,128], index: 3, kind: input, shape index: {}]   ;;  %s18107_s4 = inlined_call_operand.vmem [shape: f32[1,128], index: 4, kind: input, shape index: {}]   ;;  %s18108_s5 = inlined_call_operand.vmem [shape: f32[2,16,16,128], index: 5, kind: output, shape index: {}]  }
   0x1 LB: > { %s11335_s19 = sadd.s32 4294967295, %s14396_s18   ;;  %p11339_p0 = scmp.ge.s32.totalorder %s14396_s18, 1  ;;  %s14396_s18 = sphi %s14429_s18, %s15_s18  }
   0x2   : > { %p187_p1 = scmp.lt.s32.totalorder %s14396_s18, 3 }
   0x4   : > { %p188_p2 = pnand %p11339_p0, %p187_p1 }
   0x6   : > { %191 = sbr.rel (%p188_p2) target bundleno = 1750 (0x6d6), region = 40 }
   0xd   : > { %v14440_v0 = vld [vmem:[%s18104_s1 + $0x40] sm:$0xff]   ;;  %v14445_v1 = vld [vmem:[%s18104_s1 + $0x48] sm:$0xff]   ;;  %v14398_v2 = vmov 0   ;;  %p215_p3 = scmp.lt.s32.totalorder %s11335_s19, 1  ;;  %v14081_v3 = vld [vmem:[%s18104_s1 + $0x50] sm:$0xff]   ;;  %vm732_vm0 = vcmask 1043456  }
   0xe   : > { %274 = vst [vmem:[#allocation2] sm:$0xf] %v14398_v2  ;;  %275 = vst [vmem:[#allocation2 + $0x4] sm:$0xf] %v14398_v2  ;;  %12694 = vmatprep.subr.bf16.mxu0 %v14440_v0  ;;  %v14082_v4 = vld [vmem:[%s18104_s1 + $0x58] sm:$0xff]   ;;  %vm739_vm3 = vcmask 1040384  }
   0xf   : > { %276 = vst [vmem:[#allocation2 + $0x8] sm:$0x1] %v14398_v2  ;;  %277 = vst [vmem:[#allocation2 + $0xc] sm:$0xf] %v14398_v2  ;;  %12695 = vmatpush3.bf16.msra.mxu0 %v14440_v0  ;;  %s18479_s19 = smov (!%p215_p3, %s11335_s19), 1  ;;  %v14083_v19 = vld [vmem:[%s18104_s1 + $0x60] sm:$0xff]  }
  0x10   : > { %278 = vst [vmem:[#allocation2 + $0x10] sm:$0xf] %v14398_v2  ;;  %279 = vst [vmem:[#allocation2 + $0x14] sm:$0x1] %v14398_v2  ;;  %12696 = vmatprep.subr.bf16.mxu0 %v14445_v1  ;;  %s12196_s26 = sshll.u32 %s18479_s19, 8  ;;  %v18215_v32 = vmov 0 }
  0x11   : > { %280 = vst [vmem:[#allocation2 + $0x18] sm:$0xf] %v14398_v2  ;;  %281 = vst [vmem:[#allocation2 + $0x1c] sm:$0xf] %v14398_v2  ;;  %s14577_s6 = scalar_lea.vmem %s18103_s0, %s12196_s26  ;;  %vm913_vm1 = vsmask.f32 3328  ;;  %s18009_s24 = scalar_lea.vmem %s18108_s5, %s12196_s26 }
  0x12   : > { %282 = vst [vmem:[#allocation2 + $0x20] sm:$0x1] %v14398_v2  ;;  %283 = vst [vmem:[#allocation2 + $0x24] sm:$0xf] %v14398_v2  ;;  %vm914_vm2 = vsmask.f32 7440 }
  0x13   : > { %284 = vst [vmem:[#allocation2 + $0x28] sm:$0xf] %v14398_v2  ;;  %285 = vst [vmem:[#allocation2 + $0x2c] sm:$0x1] %v14398_v2  ;;  %12697 = vmatpush3.bf16.msra.mxu0 %v14445_v1  ;;  %v226_v13 = vld [vmem:[%s14577_s6] sm:$0xff]  ;;  %v227_v14 = vld [vmem:[%s14577_s6 + $0x8] sm:$0xff] }
  0x14   : > { %286 = vst [vmem:[#allocation2 + $0x30] sm:$0xf] %v14398_v2  ;;  %287 = vst [vmem:[#allocation2 + $0x34] sm:$0xf] %v14398_v2  ;;  %12698 = vmatprep.subr.bf16.mxu0 %v14081_v3  ;;  %v12198_v17 = vpack.c.bf16 %v226_v13, %v226_v13  ;;  %v12199_v18 = vpack.c.bf16 %v227_v14, %v227_v14  ;;  %vm408_vm4 = vsmask.f32 256 }
  0x15   : > { %288 = vst [vmem:[#allocation2 + $0x38] sm:$0x1] %v14398_v2  ;;  %289 = vst [vmem:[#allocation2 + $0x3c] sm:$0xf] %v14398_v2  ;;  %v849_v5 = vld [vmem:[#allocation2] sm:$0xf] }
  0x16   : > { %290 = vst [vmem:[#allocation2 + $0x40] sm:$0xf] %v14398_v2  ;;  %291 = vst [vmem:[#allocation2 + $0x44] sm:$0x1] %v14398_v2  ;;  %v850_v6 = vld [vmem:[#allocation2 + $0x4] sm:$0xf] }
  0x17   : > { %292 = vst [vmem:[#allocation2 + $0x48] sm:$0xf] %v14398_v2  ;;  %293 = vst [vmem:[#allocation2 + $0x4c] sm:$0xf] %v14398_v2  ;;  %v897_v7 = vld [vmem:[#allocation2 + $0x8] sm:$0x1]  ;;  %12699 = vmatpush3.bf16.msra.mxu0 %v14081_v3 }
  0x18   : > { %294 = vst [vmem:[#allocation2 + $0x50] sm:$0x1] %v14398_v2  ;;  %295 = vst [vmem:[#allocation2 + $0x54] sm:$0xf] %v14398_v2  ;;  %v917_v8 = vshrl.u32 %v849_v5, 16  ;;  %v920_v9 = vshll.u32 %v849_v5, 16  ;;  %12700 = vmatprep.subr.bf16.mxu0 %v14082_v4 }
  0x19   : > { %296 = vst [vmem:[#allocation2 + $0x58] sm:$0xf] %v14398_v2  ;;  %297 = vst [vmem:[#allocation2 + $0x5c] sm:$0x1] %v14398_v2  ;;  %v926_v10 = vshll.u32 %v850_v6, 16  ;;  %v930_v11 = vshrl.u32 %v850_v6, 16 }
  0x1a   : > { %298 = vst [vmem:[#allocation2 + $0x60] sm:$0xf] %v14398_v2  ;;  %299 = vst [vmem:[#allocation2 + $0x64] sm:$0xf] %v14398_v2  ;;  %v936_v12 = vshll.u32 %v897_v7, 16  ;;  %v919_v15 = vrot.slane %v917_v8, 4 }
  0x1b   : > { %300 = vst [vmem:[#allocation2 + $0x68] sm:$0x1] %v14398_v2  ;;  %301 = vst [vmem:[#allocation2 + $0x6c] sm:$0xf] %v14398_v2  ;;  %v922_v16 = vrot.slane %v920_v9, 5  ;;  %v928_v20 = vrot.slane %v926_v10, 5  ;;  %12701 = vmatpush3.bf16.msra.mxu0 %v14082_v4 }
  0x1c   : > { %302 = vst [vmem:[#allocation2 + $0x70] sm:$0xf] %v14398_v2  ;;  %303 = vst [vmem:[#allocation2 + $0x74] sm:$0x1] %v14398_v2  ;;  %v932_v21 = vrot.slane %v930_v11, 4  ;;  %v938_v22 = vrot.slane %v936_v12, 5  ;;  %12702 = vmatprep.subr.bf16.mxu0 %v14083_v19 }
  0x1d   : > { %304 = vst [vmem:[#allocation2 + $0x78] sm:$0xf] %v14398_v2  ;;  %305 = vst [vmem:[#allocation2 + $0x7c] sm:$0xf] %v14398_v2  ;;  %v923_v23 = vor.u32 %v922_v16, %v919_v15  ;;  %vm409_vm5 = vsmask.f32 4368 }
  0x1e   : > { %306 = vst [vmem:[#allocation2 + $0x80] sm:$0x1] %v14398_v2  ;;  %307 = vst [vmem:[#allocation2 + $0x84] sm:$0xf] %v14398_v2  ;;  %v412_v24 = vshrl.u32 %v12198_v17, 16  ;;  %v415_v25 = vshll.u32 %v12198_v17, 16  ;;  %v933_v27 = vor.u32 %v932_v21, %v928_v20 }
  0x1f   : > { %308 = vst [vmem:[#allocation2 + $0x88] sm:$0xf] %v14398_v2  ;;  %309 = vst [vmem:[#allocation2 + $0x8c] sm:$0x1] %v14398_v2  ;;  %v420_v28 = vshrl.u32 %v12199_v18, 16  ;;  %v423_v29 = vshll.u32 %v12199_v18, 16  ;;  %12703 = vmatpush3.bf16.msra.mxu0 %v14083_v19 }
  0x20   : > { %310 = vst [vmem:[#allocation2 + $0x90] sm:$0xf] %v14398_v2  ;;  %311 = vst [vmem:[#allocation2 + $0x94] sm:$0xf] %v14398_v2  ;;  %vm733_vm7 = vsmask.f32 7938 }
  0x21   : > { %312 = vst [vmem:[#allocation2 + $0x98] sm:$0x1] %v14398_v2  ;;  %313 = vst [vmem:[#allocation2 + $0x9c] sm:$0xf] %v14398_v2  ;;  %v924_v30 = vrot.slane %v923_v23, 4  ;;  %v414_v31 = vrot.slane %v412_v24, 7 }
  0x22   : > { %314 = vst [vmem:[#allocation2 + $0xa0] sm:$0xf] %v14398_v2  ;;  %315 = vst [vmem:[#allocation2 + $0xa4] sm:$0x1] %v14398_v2  ;;  %v228_v33 = vld [vmem:[%s14577_s6 + $0x10] sm:$0xff]  ;;  %v229_v34 = vld [vmem:[%s14577_s6 + $0x18] sm:$0xff] }
  0x23   : > { %316 = vst [vmem:[#allocation2 + $0xa8] sm:$0xf] %v14398_v2  ;;  %317 = vst [vmem:[#allocation2 + $0xac] sm:$0xf] %v14398_v2  ;;  %v14084_v35 = vld [vmem:[%s18104_s1 + $0x68] sm:$0xff]   ;;  %v934_v36 = vrot.slane %v933_v27, 4  ;;  %v12200_v40 = vpack.c.bf16 %v228_v33, %v228_v33  ;;  %v12201_v41 = vpack.c.bf16 %v229_v34, %v229_v34  ;;  %v417_v44 = vor.u32 %v415_v25, %v414_v31 }
  0x24   : > { %318 = vst [vmem:[#allocation2 + $0xb0] sm:$0x1] %v14398_v2  ;;  %319 = vst [vmem:[#allocation2 + $0xb4] sm:$0xf] %v14398_v2  ;;  %v422_v37 = vrot.slane %v420_v28, 7  ;;  %v18218_v38 = vmov 0  ;;  %12704 = vmatprep.subr.bf16.mxu0 %v14084_v35 }
  0x25   : > { %320 = vst [vmem:[#allocation2 + $0xb8] sm:$0xf] %v14398_v2  ;;  %321 = vst [vmem:[#allocation2 + $0xbc] sm:$0x1] %v14398_v2  ;;  %v735_v39 = vld [vmem:[#allocation2 + $0xc] sm:$0xf]  ;;  %12705 = vmatpush3.bf16.msra.mxu0 %v14084_v35 }
  0x26   : > { %322 = vst [vmem:[#allocation2 + $0xc0] sm:$0xf] %v14398_v2  ;;  %323 = vst [vmem:[#allocation2 + $0xc4] sm:$0xf] %v14398_v2  ;;  %v18221_v43 = vmov 0  ;;  %v418_v45 = vrot.slane %v414_v31, 4  ;;  %v425_v48 = vor.u32 %v423_v29, %v422_v37 }
  0x27   : > { %324 = vst [vmem:[#allocation2 + $0xc8] sm:$0x1] %v14398_v2  ;;  %325 = vst [vmem:[#allocation2 + $0xcc] sm:$0xf] %v14398_v2  ;;  %v741_v46 = vld [vmem:[#allocation2 + $0x14] sm:$0x1] }
  0x28   : > { %326 = vst [vmem:[#allocation2 + $0xd0] sm:$0xf] %v14398_v2  ;;  %327 = vst [vmem:[#allocation2 + $0xd4] sm:$0x1] %v14398_v2  ;;  %v427_v49 = vrot.slane %v422_v37, 4  ;;  %v429_v50 = vshrl.u32 %v12200_v40, 16 }
  0x29   : > { %5744 = vst [vmem:[#allocation3] sm:$0xf] %v14398_v2  ;;  %5745 = vst [vmem:[#allocation3 + $0x4] sm:$0xf] %v14398_v2  ;;  %v230_v51 = vld [vmem:[%s14577_s6 + $0x20] sm:$0xff]  ;;  %v231_v52 = vld [vmem:[%s14577_s6 + $0x28] sm:$0xff] }
  0x2a   : > { %5746 = vst [vmem:[#allocation3 + $0x8] sm:$0x1] %v14398_v2  ;;  %5747 = vst [vmem:[#allocation3 + $0xc] sm:$0xf] %v14398_v2  ;;  %v432_v55 = vshll.u32 %v12200_v40, 16  ;;  %v437_v56 = vshrl.u32 %v12201_v41, 16  ;;  %v12202_v3 = vpack.c.bf16 %v230_v51, %v230_v51  ;;  %v12203_v4 = vpack.c.bf16 %v231_v52, %v231_v52 }
  0x2b   : > { %5748 = vst [vmem:[#allocation3 + $0x10] sm:$0xf] %v14398_v2  ;;  %5749 = vst [vmem:[#allocation3 + $0x14] sm:$0x1] %v14398_v2  ;;  %v232_v57 = vld [vmem:[%s14577_s6 + $0x30] sm:$0xff]  ;;  %v431_v61 = vrot.slane %v429_v50, 7 }
  0x2c   : > { %5750 = vst [vmem:[#allocation3 + $0x18] sm:$0xf] %v14398_v2  ;;  %5751 = vst [vmem:[#allocation3 + $0x1c] sm:$0xf] %v14398_v2  ;;  %v14085_v58 = vld [vmem:[%s18104_s1 + $0x70] sm:$0xff]   ;;  %v440_v62 = vshll.u32 %v12201_v41, 16  ;;  %v12204_v5 = vpack.c.bf16 %v232_v57, %v232_v57 }
  0x2d   : > { %5752 = vst [vmem:[#allocation3 + $0x20] sm:$0x1] %v14398_v2  ;;  %5753 = vst [vmem:[#allocation3 + $0x24] sm:$0xf] %v14398_v2  ;;  %v233_v63 = vld [vmem:[%s14577_s6 + $0x38] sm:$0xff]  ;;  %v234_v0 = vld [vmem:[%s14577_s6 + $0x40] sm:$0xff]  ;;  %v434_v6 = vor.u32 %v432_v55, %v431_v61  ;;  %12706 = vmatprep.subr.bf16.mxu0 %v14085_v58 }
  0x2e   : > { %5754 = vst [vmem:[#allocation3 + $0x28] sm:$0xf] %v14398_v2  ;;  %5755 = vst [vmem:[#allocation3 + $0x2c] sm:$0x1] %v14398_v2  ;;  %v439_v1 = vrot.slane %v437_v56, 7  ;;  %v435_v7 = vrot.slane %v431_v61, 4  ;;  %v14630_v9 = vpack.c.bf16 %v233_v63, %v233_v63  ;;  %v14632_v10 = vpack.c.bf16 %v234_v0, %v234_v0  ;;  %12707 = vmatpush3.bf16.msra.mxu0 %v14085_v58 }
  0x2f   : > { %5756 = vst [vmem:[#allocation3 + $0x30] sm:$0xf] %v14398_v2  ;;  %5757 = vst [vmem:[#allocation3 + $0x34] sm:$0xf] %v14398_v2  ;;  %v748_v8 = vld [vmem:[#allocation2 + $0x20] sm:$0x1] }
  0x30   : > { %5758 = vst [vmem:[#allocation3 + $0x38] sm:$0x1] %v14398_v2  ;;  %5759 = vst [vmem:[#allocation3 + $0x3c] sm:$0xf] %v14398_v2  ;;  %v442_v11 = vor.u32 %v440_v62, %v439_v1  ;;  %v444_v12 = vrot.slane %v439_v1, 4  ;;  %v446_v13 = vshrl.u32 %v12202_v3, 16 }
  0x31   : > { %5760 = vst [vmem:[#allocation3 + $0x40] sm:$0xf] %v14398_v2  ;;  %5761 = vst [vmem:[#allocation3 + $0x44] sm:$0x1] %v14398_v2  ;;  %v449_v14 = vshll.u32 %v12202_v3, 16  ;;  %v14086_v15 = vld [vmem:[%s18104_s1 + $0x78] sm:$0xff]  }
  0x32   : > { %5762 = vst [vmem:[#allocation3 + $0x48] sm:$0xf] %v14398_v2  ;;  %5763 = vst [vmem:[#allocation3 + $0x4c] sm:$0xf] %v14398_v2  ;;  %v454_v17 = vshrl.u32 %v12203_v4, 16  ;;  %v457_v18 = vshll.u32 %v12203_v4, 16  ;;  %12708 = vmatprep.subr.bf16.mxu0 %v14086_v15 }
  0x33   : > { %5764 = vst [vmem:[#allocation3 + $0x50] sm:$0x1] %v14398_v2  ;;  %5765 = vst [vmem:[#allocation3 + $0x54] sm:$0xf] %v14398_v2  ;;  %v463_v19 = vshrl.u32 %v12204_v5, 16  ;;  %v466_v23 = vshll.u32 %v12204_v5, 16  ;;  %12709 = vmatpush3.bf16.msra.mxu0 %v14086_v15 }
  0x34   : > { %5766 = vst [vmem:[#allocation3 + $0x58] sm:$0xf] %v14398_v2  ;;  %5767 = vst [vmem:[#allocation3 + $0x5c] sm:$0x1] %v14398_v2  ;;  %v235_v24 = vld [vmem:[%s14577_s6 + $0x48] sm:$0xff]  ;;  %v456_v25 = vrot.slane %v454_v17, 7 }
  0x35   : > { %5768 = vst [vmem:[#allocation3 + $0x60] sm:$0xf] %v14398_v2  ;;  %5769 = vst [vmem:[#allocation3 + $0x64] sm:$0xf] %v14398_v2  ;;  %v751_v27 = vld [vmem:[#allocation2 + $0x24] sm:$0xf] }
  0x36   : > { %5770 = vst [vmem:[#allocation3 + $0x68] sm:$0x1] %v14398_v2  ;;  %5771 = vst [vmem:[#allocation3 + $0x6c] sm:$0xf] %v14398_v2  ;;  %v14644_v28 = vrot.slane %v463_v19, 7  ;;  %v471_v29 = vshrl.u32 %v14630_v9, 16 }
  0x37   : > { %5772 = vst [vmem:[#allocation3 + $0x70] sm:$0xf] %v14398_v2  ;;  %5773 = vst [vmem:[#allocation3 + $0x74] sm:$0x1] %v14398_v2  ;;  %v14650_v31 = vld [vmem:[%s18104_s1] sm:$0xff]   ;;  %v480_v37 = vshrl.u32 %v14632_v10, 16 }
  0x38   : > { %5774 = vst [vmem:[#allocation3 + $0x78] sm:$0xf] %v14398_v2  ;;  %5775 = vst [vmem:[#allocation3 + $0x7c] sm:$0xf] %v14398_v2  ;;  %v755_v35 = vld [vmem:[#allocation2 + $0x2c] sm:$0x1]  ;;  %v468_v50 = vor.u32 %v466_v23, %v14644_v28  ;;  %12742 = vmatprep.subr.bf16.mxu0 %v14650_v31 }
  0x39   : > { %5776 = vst [vmem:[#allocation3 + $0x80] sm:$0x1] %v14398_v2  ;;  %5777 = vst [vmem:[#allocation3 + $0x84] sm:$0xf] %v14398_v2  ;;  %v469_v62 = vrot.slane %v14644_v28, 4  ;;  %v473_v63 = vrot.slane %v471_v29, 7 }
  0x3a   : > { %5778 = vst [vmem:[#allocation3 + $0x88] sm:$0xf] %v14398_v2  ;;  %5779 = vst [vmem:[#allocation3 + $0x8c] sm:$0x1] %v14398_v2  ;;  %v762_v19 = vld [vmem:[#allocation2 + $0x38] sm:$0x1] }
  0x3b   : > { %5780 = vst [vmem:[#allocation3 + $0x90] sm:$0xf] %v14398_v2  ;;  %5781 = vst [vmem:[#allocation3 + $0x94] sm:$0xf] %v14398_v2  ;;  %v478_v23 = vrot.slane %v473_v63, 4  ;;  %v14088_v28 = vld [vmem:[%s18104_s1 + $0x8] sm:$0xff]  }
  0x3c   : > { %5782 = vst [vmem:[#allocation3 + $0x98] sm:$0x1] %v14398_v2  ;;  %5783 = vst [vmem:[#allocation3 + $0x9c] sm:$0xf] %v14398_v2  ;;  %v14676_v29 = vrot.slane %v480_v37, 7  ;;  %vm1943_vm11 = vcmask 1042432  }
  0x3d   : > { %5784 = vst [vmem:[#allocation3 + $0xa0] sm:$0xf] %v14398_v2  ;;  %5785 = vst [vmem:[#allocation3 + $0xa4] sm:$0x1] %v14398_v2  ;;  %vm1944_vm12 = vcmask 1046532  }
  0x3e   : > { %5786 = vst [vmem:[#allocation3 + $0xa8] sm:$0xf] %v14398_v2  ;;  %5787 = vst [vmem:[#allocation3 + $0xac] sm:$0xf] %v14398_v2 }
  0x3f   : > { %5788 = vst [vmem:[#allocation3 + $0xb0] sm:$0x1] %v14398_v2  ;;  %5789 = vst [vmem:[#allocation3 + $0xb4] sm:$0xf] %v14398_v2 }
  0x40   : > { %5790 = vst [vmem:[#allocation3 + $0xb8] sm:$0xf] %v14398_v2  ;;  %5791 = vst [vmem:[#allocation3 + $0xbc] sm:$0x1] %v14398_v2 }
  0x41   : > { %5792 = vst [vmem:[#allocation3 + $0xc0] sm:$0xf] %v14398_v2  ;;  %5793 = vst [vmem:[#allocation3 + $0xc4] sm:$0xf] %v14398_v2 }
  0x42   : > { %5794 = vst [vmem:[#allocation3 + $0xc8] sm:$0x1] %v14398_v2  ;;  %5795 = vst [vmem:[#allocation3 + $0xcc] sm:$0xf] %v14398_v2 }
  0x43   : > { %5796 = vst [vmem:[#allocation3 + $0xd0] sm:$0xf] %v14398_v2  ;;  %5797 = vst [vmem:[#allocation3 + $0xd4] sm:$0x1] %v14398_v2  ;;  %v744_v2 = vld [vmem:[#allocation2 + $0x18] sm:$0xf] }
  0x44   : > { %vm14586_vm6 = vmor %vm913_vm1, %vm914_vm2 }
  0x45   : > { %vm14592_vm8 = vmand %vm739_vm3, %vm408_vm4  ;;  %v929_v42 = vsel %vm14586_vm6, %v924_v30, %v928_v20  ;;  %v939_v47 = vsel %vm14586_vm6, %v934_v36, %v938_v22  ;;  %v448_v22 = vrot.slane %v446_v13, 7  ;;  %v474_v36 = vshll.u32 %v14630_v9, 16 }
  0x46   : > { %v18216_v32 = vsel %vm14592_vm8, 4294967295, %v18215_v32  ;;  %vm14602_vm9 = vmand %vm732_vm0, %vm733_vm7  ;;  %v11392_v53 = vcombine.low %v929_v42, %v939_v47  ;;  %v742_v60 = vsel %vm14592_vm8, %v427_v49, %v741_v46  ;;  %v749_v21 = vsel %vm14592_vm8, %v444_v12, %v748_v8 }
  0x47   : > { %18217 = vst [vmem:[#allocation4_spill] sm:$0xff] %v18216_v32  ;;  %v18219_v38 = vsel %vm14602_vm9, 4294967295, %v18218_v38  ;;  %vm14610_vm10 = vmor %vm408_vm4, %vm409_vm5  ;;  %v736_v54 = vsel %vm14602_vm9, %v417_v44, %v735_v39  ;;  %v745_v16 = vsel %vm14602_vm9, %v434_v6, %v744_v2  ;;  %v451_v33 = vor.u32 %v449_v14, %v448_v22 }
  0x48   : > { %18220 = vst [vmem:[#allocation5_spill] sm:$0xff] %v18219_v38  ;;  %v18222_v43 = vsel %vm14610_vm10, 4294967295, %v18221_v43  ;;  %v426_v59 = vsel %vm14610_vm10, %v418_v45, %v425_v48  ;;  %737 = vst [vmem:[#allocation2 + $0xc] sm:$0xf] %v736_v54  ;;  %12710 = vmatprep.mubr.bf16.mxu0 %v11392_v53  ;;  %v443_v20 = vsel %vm14610_vm10, %v435_v7, %v442_v11  ;;  %v452_v34 = vrot.slane %v448_v22, 4 }
  0x49   : > { %18223 = vst [vmem:[#allocation6_spill] sm:$0xff] %v18222_v43  ;;  %738 = vst [vmem:[#allocation2 + $0x10] sm:$0xf] %v426_v59  ;;  %v459_v44 = vor.u32 %v457_v18, %v456_v25  ;;  %v758_v45 = vld [vmem:[#allocation2 + $0x30] sm:$0xf]  ;;  %v14654_v46 = vpack.c.bf16 %v235_v24, %v235_v24  ;;  %v461_v54 = vrot.slane %v456_v25, 4  ;;  %v752_v58 = vsel %vm14602_vm9, %v451_v33, %v751_v27 }
  0x4a   : > { %743 = vst [vmem:[#allocation2 + $0x14] sm:$0x1] %v742_v60  ;;  %746 = vst [vmem:[#allocation2 + $0x18] sm:$0xf] %v745_v16  ;;  %v759_v5 = vsel %vm14602_vm9, %v468_v50, %v758_v45  ;;  %v476_v14 = vor.u32 %v474_v36, %v473_v63  ;;  %v236_v63 = vld [vmem:[%s14577_s6 + $0x50] sm:$0xff] }
  0x4b   : > { %747 = vst [vmem:[#allocation2 + $0x1c] sm:$0xf] %v443_v20  ;;  %750 = vst [vmem:[#allocation2 + $0x20] sm:$0x1] %v749_v21  ;;  %v460_v53 = vsel %vm14610_vm10, %v452_v34, %v459_v44  ;;  %v756_v61 = vsel %vm14592_vm8, %v461_v54, %v755_v35  ;;  %v765_v54 = vld [vmem:[#allocation2 + $0x3c] sm:$0xf] }
  0x4c   : > { %754 = vst [vmem:[#allocation2 + $0x28] sm:$0xf] %v460_v53  ;;  %753 = vst [vmem:[#allocation2 + $0x24] sm:$0xf] %v752_v58  ;;  %v477_v22 = vsel %vm14610_vm10, %v469_v62, %v476_v14  ;;  %v488_v62 = vshrl.u32 %v14654_v46, 16  ;;  %v12208_v14 = vpack.c.bf16 %v236_v63, %v236_v63 }
  0x4d   : > { %757 = vst [vmem:[#allocation2 + $0x2c] sm:$0x1] %v756_v61  ;;  %760 = vst [vmem:[#allocation2 + $0x30] sm:$0xf] %v759_v5  ;;  %v486_v61 = vrot.slane %v14676_v29, 4 }
  0x4e   : > { %761 = vst [vmem:[#allocation2 + $0x34] sm:$0xf] %v477_v22  ;;  %vm14992_vm13 = vmor %vm1943_vm11, %vm1944_vm12 }
  0x4f   : > { %v851_v30 = vld [vmem:[#allocation2 + $0xc] sm:$0xf] }
  0x50   : > { %v852_v39 = vld [vmem:[#allocation2 + $0x10] sm:$0xf]  ;;  %v941_v41 = vshrl.u32 %v851_v30, 16  ;;  %v944_v42 = vshll.u32 %v851_v30, 16  ;;  %v483_v30 = vshll.u32 %v14632_v10, 16 }
  0x51   : > { %v898_v40 = vld [vmem:[#allocation2 + $0x14] sm:$0x1]  ;;  %v950_v47 = vshll.u32 %v852_v39, 16  ;;  %v954_v48 = vshrl.u32 %v852_v39, 16  ;;  %v853_v60 = vld [vmem:[#allocation2 + $0x18] sm:$0xf]  ;;  %v763_v39 = vsel %vm14592_vm8, %v478_v23, %v762_v19 }
  0x52   : > { %v960_v49 = vshll.u32 %v898_v40, 16  ;;  %v943_v51 = vrot.slane %v941_v41, 4  ;;  %v946_v52 = vrot.slane %v944_v42, 5  ;;  %v854_v1 = vld [vmem:[#allocation2 + $0x1c] sm:$0xf]  ;;  %v965_v3 = vshrl.u32 %v853_v60, 16 }
  0x53   : > { %v952_v55 = vrot.slane %v950_v47, 5  ;;  %v956_v56 = vrot.slane %v954_v48, 4  ;;  %v899_v2 = vld [vmem:[#allocation2 + $0x20] sm:$0x1]  ;;  %v968_v4 = vshll.u32 %v853_v60, 16  ;;  %v974_v7 = vshll.u32 %v854_v1, 16 }
  0x54   : > { %v962_v57 = vrot.slane %v960_v49, 5  ;;  %v947_v59 = vor.u32 %v946_v52, %v943_v51  ;;  %v978_v8 = vshrl.u32 %v854_v1, 16  ;;  %v984_v9 = vshll.u32 %v899_v2, 16  ;;  %v856_v27 = vld [vmem:[#allocation2 + $0x28] sm:$0xf] }
  0x55   : > { %v957_v0 = vor.u32 %v956_v56, %v952_v55  ;;  %v967_v12 = vrot.slane %v965_v3, 4  ;;  %v970_v13 = vrot.slane %v968_v4, 5  ;;  %v976_v16 = vrot.slane %v974_v7, 5  ;;  %v855_v34 = vld [vmem:[#allocation2 + $0x24] sm:$0xf] }
  0x56   : > { %v948_v6 = vrot.slane %v947_v59, 4  ;;  %v980_v17 = vrot.slane %v978_v8, 4  ;;  %v986_v18 = vrot.slane %v984_v9, 5  ;;  %v998_v35 = vshll.u32 %v856_v27, 16  ;;  %v900_v41 = vld [vmem:[#allocation2 + $0x2c] sm:$0x1] }
  0x57   : > { %v958_v11 = vrot.slane %v957_v0, 4  ;;  %v971_v21 = vor.u32 %v970_v13, %v967_v12  ;;  %v1002_v36 = vshrl.u32 %v856_v27, 16  ;;  %v989_v42 = vshrl.u32 %v855_v34, 16  ;;  %764 = vst [vmem:[#allocation2 + $0x38] sm:$0x1] %v763_v39  ;;  %v237_v0 = vld [vmem:[%s14577_s6 + $0x58] sm:$0xff] }
  0x58   : > { %v953_v15 = vsel %vm14586_vm6, %v948_v6, %v952_v55  ;;  %v981_v25 = vor.u32 %v980_v17, %v976_v16  ;;  %v992_v44 = vshll.u32 %v855_v34, 16  ;;  %v485_v45 = vor.u32 %v483_v30, %v14676_v29  ;;  %v857_v49 = vld [vmem:[#allocation2 + $0x30] sm:$0xf]  ;;  %v858_v2 = vld [vmem:[#allocation2 + $0x34] sm:$0xf]  ;;  %v14090_v6 = vld [vmem:[%s18104_s1 + $0x18] sm:$0xff]  }
  0x59   : > { %v963_v20 = vsel %vm14586_vm6, %v958_v11, %v962_v57  ;;  %v972_v33 = vrot.slane %v971_v21, 4  ;;  %v1000_v37 = vrot.slane %v998_v35, 5  ;;  %v1004_v47 = vrot.slane %v1002_v36, 4  ;;  %v238_v21 = vld [vmem:[%s14577_s6 + $0x60] sm:$0xff]  ;;  %v239_v27 = vld [vmem:[%s14577_s6 + $0x68] sm:$0xff]  ;;  %v241_v29 = vld [vmem:[%s14577_s6 + $0x78] sm:$0xff] }
  0x5a   : > { %v11393_v24 = vcombine.low %v953_v15, %v963_v20  ;;  %v982_v40 = vrot.slane %v981_v25, 4  ;;  %v1008_v48 = vshll.u32 %v900_v41, 16  ;;  %v991_v51 = vrot.slane %v989_v42, 4  ;;  %v769_v20 = vld [vmem:[#allocation2 + $0x44] sm:$0x1] }
  0x5b   : > { %v977_v10 = vsel %vm14586_vm6, %v972_v33, %v976_v16  ;;  %v994_v52 = vrot.slane %v992_v44, 5  ;;  %v1013_v53 = vshrl.u32 %v857_v49, 16  ;;  %v1005_v56 = vor.u32 %v1004_v47, %v1000_v37  ;;  %v14091_v36 = vld [vmem:[%s18104_s1 + $0x20] sm:$0xff]  }
  0x5c   : > { %12711 = vmatmul.mubr.bf16.vlgmr.msra.gmra.mrb[0].mxu0 %v11393_v24  ;;  %v987_v50 = vsel %vm14586_vm6, %v982_v40, %v986_v18  ;;  %v1010_v57 = vrot.slane %v1008_v48, 5  ;;  %v1016_v58 = vshll.u32 %v857_v49, 16  ;;  %v491_v4 = vshll.u32 %v14654_v46, 16 }
  0x5d   : > { %12743 = vmatpush3.bf16.msra.mxu0 %v14650_v31  ;;  %v14089_v31 = vld [vmem:[%s18104_s1 + $0x10] sm:$0xff]   ;;  %v11394_v55 = vcombine.low %v977_v10, %v987_v50  ;;  %v995_v59 = vor.u32 %v994_v52, %v991_v51  ;;  %v1015_v60 = vrot.slane %v1013_v53, 4  ;;  %v1006_v1 = vrot.slane %v1005_v56, 4 }
  0x5e   : > { %12744 = vmatprep.subr.bf16.mxu0 %v14088_v28  ;;  %v1018_v3 = vrot.slane %v1016_v58, 5  ;;  %v766_v5 = vsel %vm14602_vm9, %v485_v45, %v765_v54  ;;  %v1022_v8 = vshll.u32 %v858_v2, 16  ;;  %v1026_v9 = vshrl.u32 %v858_v2, 16  ;;  %v901_v13 = vld [vmem:[#allocation2 + $0x38] sm:$0x1] }
  0x5f   : > { %12714 = vmatprep.mubr.bf16.mxu0 %v11394_v55  ;;  %v996_v7 = vrot.slane %v995_v59, 4  ;;  %v490_v11 = vrot.slane %v488_v62, 7  ;;  %767 = vst [vmem:[#allocation2 + $0x3c] sm:$0xf] %v766_v5  ;;  %v1011_v12 = vsel %vm14586_vm6, %v1006_v1, %v1010_v57  ;;  %v12209_v15 = vpack.c.bf16 %v237_v0, %v237_v0  ;;  %v776_v50 = vld [vmem:[#allocation2 + $0x50] sm:$0x1] }
  0x60   : > { %v1019_v46 = vor.u32 %v1018_v3, %v1015_v60  ;;  %v1024_v17 = vrot.slane %v1022_v8, 5  ;;  %v1028_v18 = vrot.slane %v1026_v9, 4  ;;  %v1032_v19 = vshll.u32 %v901_v13, 16  ;;  %v14092_v57 = vld [vmem:[%s18104_s1 + $0x28] sm:$0xff]   ;;  %v242_v62 = vld [vmem:[%s14577_s6 + $0x80] sm:$0xff] }
  0x61   : > { %12745 = vmatpush3.bf16.msra.mxu0 %v14088_v28  ;;  %v1001_v16 = vsel %vm14586_vm6, %v996_v7, %v1000_v37  ;;  %v493_v24 = vor.u32 %v491_v4, %v490_v11  ;;  %v495_v25 = vrot.slane %v490_v11, 4  ;;  %v240_v28 = vld [vmem:[%s14577_s6 + $0x70] sm:$0xff]  ;;  %v497_v34 = vshrl.u32 %v12208_v14, 16  ;;  %v772_v37 = vld [vmem:[#allocation2 + $0x48] sm:$0xf] }
  0x62   : > { %12746 = vmatprep.subr.bf16.mxu0 %v14089_v31  ;;  %v11395_v22 = vcombine.low %v1001_v16, %v1011_v12  ;;  %v1020_v23 = vrot.slane %v1019_v46, 4  ;;  %v1029_v30 = vor.u32 %v1028_v18, %v1024_v17  ;;  %v1034_v33 = vrot.slane %v1032_v19, 5  ;;  %v243_v3 = vld [vmem:[%s14577_s6 + $0x88] sm:$0xff]  ;;  %v779_v12 = vld [vmem:[#allocation2 + $0x54] sm:$0xf] }
  0x63   : > { %v500_v35 = vshll.u32 %v12208_v14, 16  ;;  %v494_v40 = vsel %vm14610_vm10, %v486_v61, %v493_v24  ;;  %v770_v41 = vsel %vm14592_vm8, %v495_v25, %v769_v20  ;;  %v505_v42 = vshrl.u32 %v12209_v15, 16  ;;  %v783_v13 = vld [vmem:[#allocation2 + $0x5c] sm:$0x1]  ;;  %v14093_v14 = vld [vmem:[%s18104_s1 + $0x30] sm:$0xff]  }
  0x64   : > { %12715 = vmatmul.mubr.bf16.gmra.mrb[4].mxu0 %v11395_v22  ;;  %v1025_v39 = vsel %vm14586_vm6, %v1020_v23, %v1024_v17  ;;  %v1030_v44 = vrot.slane %v1029_v30, 4  ;;  %768 = vst [vmem:[#allocation2 + $0x40] sm:$0xf] %v494_v40  ;;  %771 = vst [vmem:[#allocation2 + $0x44] sm:$0x1] %v770_v41  ;;  %v499_v45 = vrot.slane %v497_v34, 7  ;;  %v12210_v47 = vpack.c.bf16 %v238_v21, %v238_v21 }
  0x65   : > { %12747 = vmatpush3.bf16.msra.mxu0 %v14089_v31  ;;  %v508_v10 = vshll.u32 %v12209_v15, 16  ;;  %v507_v49 = vrot.slane %v505_v42, 7  ;;  %v12211_v51 = vpack.c.bf16 %v239_v27, %v239_v27  ;;  %v14717_v52 = vpack.c.bf16 %v240_v28, %v240_v28  ;;  %v244_v25 = vld [vmem:[%s14577_s6 + $0x90] sm:$0xff]  ;;  %v245_v27 = vld [vmem:[%s14577_s6 + $0x98] sm:$0xff] }
  0x66   : > { %12748 = vmatprep.subr.bf16.mxu0 %v14090_v6  ;;  %v859_v48 = vld [vmem:[#allocation2 + $0x3c] sm:$0xf]  ;;  %v14719_v53 = vpack.c.bf16 %v241_v29, %v241_v29  ;;  %v1035_v54 = vsel %vm14586_vm6, %v1030_v44, %v1034_v33  ;;  %v502_v56 = vor.u32 %v500_v35, %v499_v45  ;;  %v503_v59 = vrot.slane %v499_v45, 4 }
  0x67   : > { %v1037_v31 = vshrl.u32 %v859_v48, 16  ;;  %v1040_v55 = vshll.u32 %v859_v48, 16  ;;  %v11396_v58 = vcombine.low %v1025_v39, %v1035_v54  ;;  %v510_v60 = vor.u32 %v508_v10, %v507_v49  ;;  %v14094_v28 = vld [vmem:[%s18104_s1 + $0x38] sm:$0xff]  }
  0x68   : > { %v512_v61 = vrot.slane %v507_v49, 4  ;;  %v773_v1 = vsel %vm14602_vm9, %v502_v56, %v772_v37  ;;  %v514_v2 = vshrl.u32 %v12210_v47, 16  ;;  %v522_v7 = vshrl.u32 %v12211_v51, 16 }
  0x69   : > { %12749 = vmatpush3.bf16.msra.mxu0 %v14090_v6  ;;  %v1039_v63 = vrot.slane %v1037_v31, 4  ;;  %v1042_v0 = vrot.slane %v1040_v55, 5  ;;  %12718 = vmatprep.mubr.bf16.mxu0 %v11396_v58  ;;  %v511_v4 = vsel %vm14610_vm10, %v503_v59, %v510_v60  ;;  %774 = vst [vmem:[#allocation2 + $0x48] sm:$0xf] %v773_v1  ;;  %v517_v6 = vshll.u32 %v12210_v47, 16 }
  0x6a   : > { %12750 = vmatprep.subr.bf16.mxu0 %v14091_v36  ;;  %v777_v5 = vsel %vm14592_vm8, %v512_v61, %v776_v50  ;;  %775 = vst [vmem:[#allocation2 + $0x4c] sm:$0xf] %v511_v4  ;;  %v516_v9 = vrot.slane %v514_v2, 7  ;;  %v525_v11 = vshll.u32 %v12211_v51, 16  ;;  %v531_v46 = vshrl.u32 %v14717_v52, 16  ;;  %v14760_v50 = vld [vmem:[%s18104_s1 + $0x80] sm:$0xff]  }
  0x6b   : > { %v1043_v8 = vor.u32 %v1042_v0, %v1039_v63  ;;  %778 = vst [vmem:[#allocation2 + $0x50] sm:$0x1] %v777_v5  ;;  %v860_v15 = vld [vmem:[#allocation2 + $0x40] sm:$0xf]  ;;  %v902_v16 = vld [vmem:[#allocation2 + $0x44] sm:$0x1]  ;;  %v14739_v19 = vpack.c.bf16 %v242_v62, %v242_v62  ;;  %v14741_v20 = vpack.c.bf16 %v243_v3, %v243_v3  ;;  %v14762_v56 = vpack.c.bf16 %v244_v25, %v244_v25 }
  0x6c   : > { %v524_v17 = vrot.slane %v522_v7, 7  ;;  %v534_v18 = vshll.u32 %v14717_v52, 16  ;;  %v1046_v22 = vshll.u32 %v860_v15, 16  ;;  %v1050_v23 = vshrl.u32 %v860_v15, 16  ;;  %v786_v55 = vld [vmem:[#allocation2 + $0x60] sm:$0xf] }
  0x6d   : > { %12751 = vmatpush3.bf16.msra.mxu0 %v14091_v36  ;;  %v1044_v21 = vrot.slane %v1043_v8, 4  ;;  %v1056_v24 = vshll.u32 %v902_v16, 16  ;;  %v519_v29 = vor.u32 %v517_v6, %v516_v9  ;;  %v520_v30 = vrot.slane %v516_v9, 4  ;;  %v790_v62 = vld [vmem:[#allocation2 + $0x68] sm:$0x1] }
  0x6e   : > { %12752 = vmatprep.subr.bf16.mxu0 %v14092_v57  ;;  %v527_v33 = vor.u32 %v525_v11, %v524_v17  ;;  %v529_v34 = vrot.slane %v524_v17, 4  ;;  %v1048_v35 = vrot.slane %v1046_v22, 5  ;;  %v1052_v36 = vrot.slane %v1050_v23, 4 }
  0x6f   : > { %v1058_v39 = vrot.slane %v1056_v24, 5  ;;  %v533_v40 = vrot.slane %v531_v46, 7  ;;  %v780_v42 = vsel %vm14602_vm9, %v519_v29, %v779_v12  ;;  %v539_v45 = vshrl.u32 %v14719_v53, 16 }
  0x70   : > { %v528_v41 = vsel %vm14610_vm10, %v520_v30, %v527_v33  ;;  %v784_v44 = vsel %vm14592_vm8, %v529_v34, %v783_v13  ;;  %v1049_v10 = vsel %vm14586_vm6, %v1044_v21, %v1048_v35  ;;  %v1053_v37 = vor.u32 %v1052_v36, %v1048_v35  ;;  %v861_v47 = vld [vmem:[#allocation2 + $0x48] sm:$0xf]  ;;  %781 = vst [vmem:[#allocation2 + $0x54] sm:$0xf] %v780_v42 }
  0x71   : > { %12753 = vmatpush3.bf16.msra.mxu0 %v14092_v57  ;;  %782 = vst [vmem:[#allocation2 + $0x58] sm:$0xf] %v528_v41  ;;  %785 = vst [vmem:[#allocation2 + $0x5c] sm:$0x1] %v784_v44  ;;  %v536_v48 = vor.u32 %v534_v18, %v533_v40  ;;  %v537_v49 = vrot.slane %v533_v40, 4  ;;  %v1061_v54 = vshrl.u32 %v861_v47, 16  ;;  %v14764_v57 = vpack.c.bf16 %v245_v27, %v245_v27 }
  0x72   : > { %12754 = vmatprep.subr.bf16.mxu0 %v14093_v14  ;;  %v862_v51 = vld [vmem:[#allocation2 + $0x4c] sm:$0xf]  ;;  %v903_v52 = vld [vmem:[#allocation2 + $0x50] sm:$0x1]  ;;  %v1064_v31 = vshll.u32 %v861_v47, 16  ;;  %v1054_v58 = vrot.slane %v1053_v37, 4 }
  0x73   : > { %v1070_v59 = vshll.u32 %v862_v51, 16  ;;  %v1074_v60 = vshrl.u32 %v862_v51, 16  ;;  %v1080_v61 = vshll.u32 %v903_v52, 16  ;;  %v1063_v63 = vrot.slane %v1061_v54, 4  ;;  %v793_v27 = vld [vmem:[#allocation2 + $0x6c] sm:$0xf] }
  0x74   : > { %v1066_v0 = vrot.slane %v1064_v31, 5  ;;  %v541_v1 = vrot.slane %v539_v45, 7  ;;  %v542_v2 = vshll.u32 %v14719_v53, 16  ;;  %v1059_v3 = vsel %vm14586_vm6, %v1054_v58, %v1058_v39  ;;  %v246_v40 = vld [vmem:[%s14577_s6 + $0xa0] sm:$0xff] }
  0x75   : > { %12755 = vmatpush3.bf16.msra.mxu0 %v14093_v14  ;;  %v1072_v4 = vrot.slane %v1070_v59, 5  ;;  %v1076_v5 = vrot.slane %v1074_v60, 4  ;;  %v1082_v6 = vrot.slane %v1080_v61, 5  ;;  %v11397_v7 = vcombine.low %v1049_v10, %v1059_v3  ;;  %v797_v61 = vld [vmem:[#allocation2 + $0x74] sm:$0x1] }
  0x76   : > { %12756 = vmatprep.subr.bf16.mxu0 %v14094_v28  ;;  %v1067_v8 = vor.u32 %v1066_v0, %v1063_v63  ;;  %v544_v9 = vor.u32 %v542_v2, %v541_v1  ;;  %v546_v11 = vrot.slane %v541_v1, 4  ;;  %v787_v13 = vsel %vm14602_vm9, %v536_v48, %v786_v55 }
  0x77   : > { %v1077_v12 = vor.u32 %v1076_v5, %v1072_v4  ;;  %v548_v46 = vshrl.u32 %v14739_v19, 16  ;;  %v551_v14 = vshll.u32 %v14739_v19, 16  ;;  %12719 = vmatmul.mubr.bf16.gmra.mrb[8].mxu0 %v11397_v7  ;;  %v863_v15 = vld [vmem:[#allocation2 + $0x54] sm:$0xf]  ;;  %788 = vst [vmem:[#allocation2 + $0x60] sm:$0xf] %v787_v13  ;;  %v12218_v2 = vpack.c.bf16 %v246_v40, %v246_v40 }
  0x78   : > { %v1068_v53 = vrot.slane %v1067_v8, 4  ;;  %v864_v16 = vld [vmem:[#allocation2 + $0x58] sm:$0xf]  ;;  %v545_v17 = vsel %vm14610_vm10, %v537_v49, %v544_v9  ;;  %v791_v18 = vsel %vm14592_vm8, %v546_v11, %v790_v62  ;;  %v556_v21 = vshrl.u32 %v14741_v20, 16  ;;  %v904_v23 = vld [vmem:[#allocation2 + $0x5c] sm:$0x1] }
  0x79   : > { %12757 = vmatpush3.bf16.msra.mxu0 %v14094_v28  ;;  %v1078_v22 = vrot.slane %v1077_v12, 4  ;;  %v1085_v24 = vshrl.u32 %v863_v15, 16  ;;  %v1088_v19 = vshll.u32 %v863_v15, 16  ;;  %v1094_v25 = vshll.u32 %v864_v16, 16  ;;  %789 = vst [vmem:[#allocation2 + $0x64] sm:$0xf] %v545_v17 }
  0x7a   : > { %12790 = vmatprep.subr.bf16.mxu0 %v14760_v50  ;;  %792 = vst [vmem:[#allocation2 + $0x68] sm:$0x1] %v791_v18  ;;  %v1073_v28 = vsel %vm14586_vm6, %v1068_v53, %v1072_v4  ;;  %v1098_v29 = vshrl.u32 %v864_v16, 16  ;;  %v1104_v30 = vshll.u32 %v904_v23, 16  ;;  %v550_v33 = vrot.slane %v548_v46, 7  ;;  %v247_v49 = vld [vmem:[%s14577_s6 + $0xa8] sm:$0xff] }
  0x7b   : > { %v1083_v34 = vsel %vm14586_vm6, %v1078_v22, %v1082_v6  ;;  %v1087_v35 = vrot.slane %v1085_v24, 4  ;;  %v1090_v36 = vrot.slane %v1088_v19, 5  ;;  %v1096_v39 = vrot.slane %v1094_v25, 5  ;;  %v800_v23 = vld [vmem:[#allocation2 + $0x78] sm:$0xf]  ;;  %v248_v40 = vld [vmem:[%s14577_s6 + $0xb0] sm:$0xff] }
  0x7c   : > { %v11398_v41 = vcombine.low %v1073_v28, %v1083_v34  ;;  %v1100_v42 = vrot.slane %v1098_v29, 4  ;;  %v1106_v44 = vrot.slane %v1104_v30, 5  ;;  %v553_v45 = vor.u32 %v551_v14, %v550_v33  ;;  %v804_v24 = vld [vmem:[#allocation2 + $0x80] sm:$0x1] }
  0x7d   : > { %v1091_v10 = vor.u32 %v1090_v36, %v1087_v35  ;;  %v554_v37 = vrot.slane %v550_v33, 4  ;;  %v558_v47 = vrot.slane %v556_v21, 7  ;;  %v559_v48 = vshll.u32 %v14741_v20, 16 }
  0x7e   : > { %12722 = vmatprep.mubr.bf16.mxu0 %v11398_v41  ;;  %v1101_v51 = vor.u32 %v1100_v42, %v1096_v39  ;;  %v794_v52 = vsel %vm14602_vm9, %v553_v45, %v793_v27  ;;  %v565_v54 = vshrl.u32 %v14762_v56, 16  ;;  %v568_v31 = vshll.u32 %v14762_v56, 16  ;;  %v865_v58 = vld [vmem:[#allocation2 + $0x60] sm:$0xf]  ;;  %v249_v45 = vld [vmem:[%s14577_s6 + $0xb8] sm:$0xff] }
  0x7f   : > { %v1092_v55 = vrot.slane %v1091_v10, 4  ;;  %v561_v59 = vor.u32 %v559_v48, %v558_v47  ;;  %v563_v60 = vrot.slane %v558_v47, 4  ;;  %795 = vst [vmem:[#allocation2 + $0x6c] sm:$0xf] %v794_v52  ;;  %v573_v62 = vshrl.u32 %v14764_v57, 16 }
  0x80   : > { %v1102_v63 = vrot.slane %v1101_v51, 4  ;;  %v866_v20 = vld [vmem:[#allocation2 + $0x64] sm:$0xf]  ;;  %v1109_v1 = vshrl.u32 %v865_v58, 16  ;;  %v14791_v3 = vpack.c.bf16 %v247_v49, %v247_v49  ;;  %v1112_v5 = vshll.u32 %v865_v58, 16 }
  0x81   : > { %v905_v0 = vld [vmem:[#allocation2 + $0x68] sm:$0x1]  ;;  %v1097_v4 = vsel %vm14586_vm6, %v1092_v55, %v1096_v39  ;;  %v1118_v56 = vshll.u32 %v866_v20, 16  ;;  %v1122_v6 = vshrl.u32 %v866_v20, 16  ;;  %v562_v11 = vsel %vm14610_vm10, %v554_v37, %v561_v59  ;;  %v807_v39 = vld [vmem:[#allocation2 + $0x84] sm:$0xf] }
  0x82   : > { %v1107_v7 = vsel %vm14586_vm6, %v1102_v63, %v1106_v44  ;;  %v1111_v8 = vrot.slane %v1109_v1, 4  ;;  %v1128_v9 = vshll.u32 %v905_v0, 16  ;;  %v1114_v13 = vrot.slane %v1112_v5, 5  ;;  %796 = vst [vmem:[#allocation2 + $0x70] sm:$0xf] %v562_v11 }
  0x83   : > { %v11399_v12 = vcombine.low %v1097_v4, %v1107_v7  ;;  %v1120_v46 = vrot.slane %v1118_v56, 5  ;;  %v1124_v14 = vrot.slane %v1122_v6, 4  ;;  %v798_v15 = vsel %vm14592_vm8, %v563_v60, %v797_v61  ;;  %v250_v56 = vld [vmem:[%s14577_s6 + $0xc0] sm:$0xff] }
  0x84   : > { %v1130_v53 = vrot.slane %v1128_v9, 5  ;;  %v567_v16 = vrot.slane %v565_v54, 7  ;;  %v575_v17 = vrot.slane %v573_v62, 7  ;;  %v1115_v18 = vor.u32 %v1114_v13, %v1111_v8  ;;  %799 = vst [vmem:[#allocation2 + $0x74] sm:$0x1] %v798_v15 }
  0x85   : > { %12723 = vmatmul.mubr.bf16.gmra.mrb[12].mxu0 %v11399_v12  ;;  %v1125_v21 = vor.u32 %v1124_v14, %v1120_v46  ;;  %v576_v22 = vshll.u32 %v14764_v57, 16  ;;  %v582_v19 = vshrl.u32 %v12218_v2, 16  ;;  %v585_v30 = vshll.u32 %v12218_v2, 16  ;;  %v811_v13 = vld [vmem:[#allocation2 + $0x8c] sm:$0x1] }
  0x86   : > { %v14802_v25 = vld [vmem:[#allocation2 + $0x6c] sm:$0xf]  ;;  %v570_v27 = vor.u32 %v568_v31, %v567_v16  ;;  %v571_v28 = vrot.slane %v567_v16, 4  ;;  %v580_v29 = vrot.slane %v575_v17, 4  ;;  %v1116_v33 = vrot.slane %v1115_v18, 4 }
  0x87   : > { %v1126_v34 = vrot.slane %v1125_v21, 4  ;;  %v1133_v35 = vshrl.u32 %v14802_v25, 16  ;;  %v1136_v36 = vshll.u32 %v14802_v25, 16  ;;  %v578_v41 = vor.u32 %v576_v22, %v575_v17 }
  0x88   : > { %v801_v57 = vsel %vm14602_vm9, %v570_v27, %v800_v23  ;;  %v805_v42 = vsel %vm14592_vm8, %v580_v29, %v804_v24  ;;  %v584_v44 = vrot.slane %v582_v19, 7  ;;  %v1121_v10 = vsel %vm14586_vm6, %v1116_v33, %v1120_v46  ;;  %v814_v19 = vld [vmem:[#allocation2 + $0x90] sm:$0xf] }
  0x89   : > { %v1131_v37 = vsel %vm14586_vm6, %v1126_v34, %v1130_v53  ;;  %v1135_v47 = vrot.slane %v1133_v35, 4  ;;  %v1138_v48 = vrot.slane %v1136_v36, 5  ;;  %802 = vst [vmem:[#allocation2 + $0x78] sm:$0xf] %v801_v57  ;;  %806 = vst [vmem:[#allocation2 + $0x80] sm:$0x1] %v805_v42  ;;  %v579_v52 = vsel %vm14610_vm10, %v571_v28, %v578_v41 }
  0x8a   : > { %v11400_v49 = vcombine.low %v1121_v10, %v1131_v37  ;;  %v14816_v51 = vld [vmem:[#allocation2 + $0x70] sm:$0xf]  ;;  %v587_v54 = vor.u32 %v585_v30, %v584_v44  ;;  %v588_v31 = vrot.slane %v584_v44, 4  ;;  %803 = vst [vmem:[#allocation2 + $0x7c] sm:$0xf] %v579_v52  ;;  %v590_v60 = vshrl.u32 %v14791_v3, 16 }
  0x8b   : > { %v1139_v55 = vor.u32 %v1138_v48, %v1135_v47  ;;  %v1142_v58 = vshll.u32 %v14816_v51, 16  ;;  %v1146_v59 = vshrl.u32 %v14816_v51, 16  ;;  %v14823_v61 = vld [vmem:[#allocation2 + $0x74] sm:$0x1]  ;;  %v593_v62 = vshll.u32 %v14791_v3, 16 }
  0x8c   : > { %12726 = vmatprep.mubr.bf16.mxu0 %v11400_v49  ;;  %v808_v63 = vsel %vm14602_vm9, %v587_v54, %v807_v39  ;;  %v12220_v20 = vpack.c.bf16 %v248_v40, %v248_v40  ;;  %v12221_v0 = vpack.c.bf16 %v249_v45, %v249_v45  ;;  %v1152_v5 = vshll.u32 %v14823_v61, 16  ;;  %v251_v45 = vld [vmem:[%s14577_s6 + $0xc8] sm:$0xff]  ;;  %v818_v49 = vld [vmem:[#allocation2 + $0x98] sm:$0x1] }
  0x8d   : > { %v1140_v1 = vrot.slane %v1139_v55, 4  ;;  %v1144_v2 = vrot.slane %v1142_v58, 5  ;;  %v1148_v4 = vrot.slane %v1146_v59, 4  ;;  %809 = vst [vmem:[#allocation2 + $0x84] sm:$0xf] %v808_v63  ;;  %v592_v6 = vrot.slane %v590_v60, 7 }
  0x8e   : > { %v599_v7 = vshrl.u32 %v12220_v20, 16  ;;  %v602_v8 = vshll.u32 %v12220_v20, 16  ;;  %v607_v9 = vshrl.u32 %v12221_v0, 16  ;;  %v1154_v12 = vrot.slane %v1152_v5, 5  ;;  %v252_v58 = vld [vmem:[%s14577_s6 + $0xd0] sm:$0xff]  ;;  %v253_v20 = vld [vmem:[%s14577_s6 + $0xd8] sm:$0xff] }
  0x8f   : > { %v1145_v11 = vsel %vm14586_vm6, %v1140_v1, %v1144_v2  ;;  %v1149_v3 = vor.u32 %v1148_v4, %v1144_v2  ;;  %v610_v46 = vshll.u32 %v12221_v0, 16  ;;  %v595_v15 = vor.u32 %v593_v62, %v592_v6 }
  0x90   : > { %v14832_v14 = vld [vmem:[#allocation2 + $0x78] sm:$0xf]  ;;  %v14834_v53 = vld [vmem:[#allocation2 + $0x80] sm:$0x1]  ;;  %v597_v16 = vrot.slane %v592_v6, 4  ;;  %v601_v17 = vrot.slane %v599_v7, 7  ;;  %v14836_v18 = vpack.c.bf16 %v250_v56, %v250_v56  ;;  %v12223_v63 = vpack.c.bf16 %v251_v45, %v251_v45 }
  0x91   : > { %v1150_v21 = vrot.slane %v1149_v3, 4  ;;  %v1157_v22 = vshrl.u32 %v14832_v14, 16  ;;  %v1160_v23 = vshll.u32 %v14832_v14, 16  ;;  %v1176_v24 = vshll.u32 %v14834_v53, 16  ;;  %v14841_v27 = vld [vmem:[#allocation2 + $0x7c] sm:$0xf] }
  0x92   : > { %v596_v28 = vsel %vm14610_vm10, %v588_v31, %v595_v15  ;;  %v812_v29 = vsel %vm14592_vm8, %v597_v16, %v811_v13  ;;  %v604_v30 = vor.u32 %v602_v8, %v601_v17  ;;  %v605_v33 = vrot.slane %v601_v17, 4  ;;  %v821_v8 = vld [vmem:[#allocation2 + $0x9c] sm:$0xf] }
  0x93   : > { %v1155_v34 = vsel %vm14586_vm6, %v1150_v21, %v1154_v12  ;;  %v1159_v35 = vrot.slane %v1157_v22, 4  ;;  %v1162_v36 = vrot.slane %v1160_v23, 5  ;;  %v1166_v39 = vshll.u32 %v14841_v27, 16  ;;  %810 = vst [vmem:[#allocation2 + $0x88] sm:$0xf] %v596_v28 }
  0x94   : > { %813 = vst [vmem:[#allocation2 + $0x8c] sm:$0x1] %v812_v29  ;;  %v11401_v40 = vcombine.low %v1145_v11, %v1155_v34  ;;  %v1170_v41 = vshrl.u32 %v14841_v27, 16  ;;  %v1178_v57 = vrot.slane %v1176_v24, 5  ;;  %v14851_v42 = vld [vmem:[#allocation2 + $0x84] sm:$0xf]  ;;  %v815_v55 = vsel %vm14602_vm9, %v604_v30, %v814_v19 }
  0x95   : > { %v609_v44 = vrot.slane %v607_v9, 7  ;;  %v1163_v10 = vor.u32 %v1162_v36, %v1159_v35  ;;  %v1168_v37 = vrot.slane %v1166_v39, 5  ;;  %v1181_v47 = vshrl.u32 %v14851_v42, 16  ;;  %816 = vst [vmem:[#allocation2 + $0x90] sm:$0xf] %v815_v55 }
  0x96   : > { %v1184_v48 = vshll.u32 %v14851_v42, 16  ;;  %12727 = vmatmul.mubr.bf16.gmra.mrb[16].mxu0 %v11401_v40  ;;  %v1172_v52 = vrot.slane %v1170_v41, 4  ;;  %v616_v4 = vshrl.u32 %v14836_v18, 16  ;;  %v619_v6 = vshll.u32 %v14836_v18, 16 }
  0x97   : > { %v612_v54 = vor.u32 %v610_v46, %v609_v44  ;;  %v614_v31 = vrot.slane %v609_v44, 4  ;;  %v1164_v59 = vrot.slane %v1163_v10, 4  ;;  %v1183_v60 = vrot.slane %v1181_v47, 4 }
  0x98   : > { %v1186_v62 = vrot.slane %v1184_v48, 5  ;;  %v1173_v0 = vor.u32 %v1172_v52, %v1168_v37  ;;  %v624_v7 = vshrl.u32 %v12223_v63, 16  ;;  %v618_v12 = vrot.slane %v616_v4, 7 }
  0x99   : > { %v613_v1 = vsel %vm14610_vm10, %v605_v33, %v612_v54  ;;  %v819_v2 = vsel %vm14592_vm8, %v614_v31, %v818_v49  ;;  %v1169_v5 = vsel %vm14586_vm6, %v1164_v59, %v1168_v37  ;;  %v12224_v13 = vpack.c.bf16 %v252_v58, %v252_v58  ;;  %v825_v33 = vld [vmem:[#allocation2 + $0xa4] sm:$0x1]  ;;  %v828_v54 = vld [vmem:[#allocation2 + $0xa8] sm:$0xf] }
  0x9a   : > { %v1187_v56 = vor.u32 %v1186_v62, %v1183_v60  ;;  %817 = vst [vmem:[#allocation2 + $0x94] sm:$0xf] %v613_v1  ;;  %820 = vst [vmem:[#allocation2 + $0x98] sm:$0x1] %v819_v2  ;;  %v1174_v9 = vrot.slane %v1173_v0, 4  ;;  %v14872_v46 = vpack.c.bf16 %v253_v20, %v253_v20  ;;  %v621_v22 = vor.u32 %v619_v6, %v618_v12  ;;  %v254_v31 = vld [vmem:[%s14577_s6 + $0xe0] sm:$0xff] }
  0x9b   : > { %v14868_v11 = vld [vmem:[#allocation2 + $0x88] sm:$0xf]  ;;  %v14870_v3 = vld [vmem:[#allocation2 + $0x8c] sm:$0x1]  ;;  %v622_v23 = vrot.slane %v618_v12, 4  ;;  %v626_v24 = vrot.slane %v624_v7, 7 }
  0x9c   : > { %v1188_v15 = vrot.slane %v1187_v56, 4  ;;  %v1190_v16 = vshll.u32 %v14868_v11, 16  ;;  %v1194_v17 = vshrl.u32 %v14868_v11, 16  ;;  %v1200_v21 = vshll.u32 %v14870_v3, 16  ;;  %v14879_v34 = vld [vmem:[#allocation2 + $0x90] sm:$0xf] }
  0x9d   : > { %v1179_v18 = vsel %vm14586_vm6, %v1174_v9, %v1178_v57  ;;  %v627_v35 = vshll.u32 %v12223_v63, 16  ;;  %v631_v36 = vrot.slane %v626_v24, 4  ;;  %v822_v39 = vsel %vm14602_vm9, %v621_v22, %v821_v8  ;;  %v832_v22 = vld [vmem:[#allocation2 + $0xb0] sm:$0x1] }
  0x9e   : > { %v11402_v19 = vcombine.low %v1169_v5, %v1179_v18  ;;  %v1192_v28 = vrot.slane %v1190_v16, 5  ;;  %v1196_v29 = vrot.slane %v1194_v17, 4  ;;  %v1202_v30 = vrot.slane %v1200_v21, 5  ;;  %823 = vst [vmem:[#allocation2 + $0x9c] sm:$0xf] %v822_v39  ;;  %v255_v5 = vld [vmem:[%s14577_s6 + $0xe8] sm:$0xff] }
  0x9f   : > { %v633_v40 = vshrl.u32 %v12224_v13, 16  ;;  %v1205_v44 = vshrl.u32 %v14879_v34, 16  ;;  %v1208_v45 = vshll.u32 %v14879_v34, 16  ;;  %v629_v47 = vor.u32 %v627_v35, %v626_v24 }
  0xa0   : > { %12730 = vmatprep.mubr.bf16.mxu0 %v11402_v19  ;;  %v1193_v41 = vsel %vm14586_vm6, %v1188_v15, %v1192_v28  ;;  %v1197_v57 = vor.u32 %v1196_v29, %v1192_v28  ;;  %v826_v48 = vsel %vm14592_vm8, %v631_v36, %v825_v33  ;;  %v636_v52 = vshll.u32 %v12224_v13, 16 }
  0xa1   : > { %v14887_v10 = vld [vmem:[#allocation2 + $0x94] sm:$0xf]  ;;  %v14889_v37 = vld [vmem:[#allocation2 + $0x98] sm:$0x1]  ;;  %v635_v49 = vrot.slane %v633_v40, 7  ;;  %v1207_v58 = vrot.slane %v1205_v44, 4  ;;  %v630_v20 = vsel %vm14610_vm10, %v622_v23, %v629_v47  ;;  %v12226_v15 = vpack.c.bf16 %v254_v31, %v254_v31 }
  0xa2   : > { %v1198_v55 = vrot.slane %v1197_v57, 4  ;;  %v1210_v59 = vrot.slane %v1208_v45, 5  ;;  %v1214_v60 = vshll.u32 %v14887_v10, 16  ;;  %827 = vst [vmem:[#allocation2 + $0xa4] sm:$0x1] %v826_v48  ;;  %v1218_v62 = vshrl.u32 %v14887_v10, 16 }
  0xa3   : > { %v1224_v63 = vshll.u32 %v14889_v37, 16  ;;  %v638_v0 = vor.u32 %v636_v52, %v635_v49  ;;  %824 = vst [vmem:[#allocation2 + $0xa0] sm:$0xf] %v630_v20  ;;  %v639_v7 = vrot.slane %v635_v49, 4  ;;  %v641_v8 = vshrl.u32 %v14872_v46, 16 }
  0xa4   : > { %v1203_v1 = vsel %vm14586_vm6, %v1198_v55, %v1202_v30  ;;  %v1211_v2 = vor.u32 %v1210_v59, %v1207_v58  ;;  %v1216_v4 = vrot.slane %v1214_v60, 5  ;;  %v1220_v6 = vrot.slane %v1218_v62, 4  ;;  %v835_v44 = vld [vmem:[#allocation2 + $0xb4] sm:$0xf] }
  0xa5   : > { %v11403_v56 = vcombine.low %v1193_v41, %v1203_v1  ;;  %v644_v12 = vshll.u32 %v14872_v46, 16  ;;  %v829_v13 = vsel %vm14602_vm9, %v638_v0, %v828_v54  ;;  %v1226_v17 = vrot.slane %v1224_v63, 5  ;;  %v14906_v21 = vld [vmem:[#allocation2 + $0x9c] sm:$0xf] }
  0xa6   : > { %v1212_v9 = vrot.slane %v1211_v2, 4  ;;  %v1221_v16 = vor.u32 %v1220_v6, %v1216_v4  ;;  %v643_v18 = vrot.slane %v641_v8, 7  ;;  %830 = vst [vmem:[#allocation2 + $0xa8] sm:$0xf] %v829_v13  ;;  %v12227_v23 = vpack.c.bf16 %v255_v5, %v255_v5  ;;  %v839_v63 = vld [vmem:[#allocation2 + $0xbc] sm:$0x1] }
  0xa7   : > { %12731 = vmatmul.mubr.bf16.gmra.mrb[20].mxu0 %v11403_v56  ;;  %v1229_v19 = vshrl.u32 %v14906_v21, 16  ;;  %v1232_v46 = vshll.u32 %v14906_v21, 16  ;;  %v650_v28 = vshrl.u32 %v12226_v15, 16  ;;  %v653_v36 = vshll.u32 %v12226_v15, 16 }
  0xa8   : > { %v1217_v24 = vsel %vm14586_vm6, %v1212_v9, %v1216_v4  ;;  %v1222_v29 = vrot.slane %v1221_v16, 4  ;;  %v646_v33 = vor.u32 %v644_v12, %v643_v18  ;;  %v648_v35 = vrot.slane %v643_v18, 4 }
  0xa9   : > { %v14912_v30 = vld [vmem:[#allocation2 + $0xa4] sm:$0x1]  ;;  %v1231_v39 = vrot.slane %v1229_v19, 4  ;;  %v1234_v40 = vrot.slane %v1232_v46, 5  ;;  %v652_v57 = vrot.slane %v650_v28, 7  ;;  %v658_v52 = vshrl.u32 %v12227_v23, 16 }
  0xaa   : > { %v1248_v41 = vshll.u32 %v14912_v30, 16  ;;  %v1227_v45 = vsel %vm14586_vm6, %v1222_v29, %v1226_v17  ;;  %v14917_v47 = vld [vmem:[#allocation2 + $0xa0] sm:$0xf]  ;;  %v647_v48 = vsel %vm14610_vm10, %v639_v7, %v646_v33  ;;  %v833_v49 = vsel %vm14592_vm8, %v648_v35, %v832_v22 }
  0xab   : > { %v11404_v54 = vcombine.low %v1217_v24, %v1227_v45  ;;  %v1235_v31 = vor.u32 %v1234_v40, %v1231_v39  ;;  %v1238_v55 = vshll.u32 %v14917_v47, 16  ;;  %v1242_v58 = vshrl.u32 %v14917_v47, 16  ;;  %831 = vst [vmem:[#allocation2 + $0xac] sm:$0xf] %v647_v48  ;;  %834 = vst [vmem:[#allocation2 + $0xb0] sm:$0x1] %v833_v49 }
  0xac   : > { %v655_v59 = vor.u32 %v653_v36, %v652_v57  ;;  %v656_v60 = vrot.slane %v652_v57, 4  ;;  %v660_v62 = vrot.slane %v658_v52, 7  ;;  %v661_v4 = vshll.u32 %v12227_v23, 16 }
  0xad   : > { %12734 = vmatprep.mubr.bf16.mxu0 %v11404_v54  ;;  %v1236_v20 = vrot.slane %v1235_v31, 4  ;;  %v1240_v0 = vrot.slane %v1238_v55, 5  ;;  %v1244_v1 = vrot.slane %v1242_v58, 4  ;;  %v14925_v2 = vld [vmem:[#allocation2 + $0xa8] sm:$0xf]  ;;  %v1250_v9 = vrot.slane %v1248_v41, 5 }
  0xae   : > { %v1253_v5 = vshrl.u32 %v14925_v2, 16  ;;  %v1256_v56 = vshll.u32 %v14925_v2, 16  ;;  %v665_v6 = vrot.slane %v660_v62, 4  ;;  %v836_v7 = vsel %vm14602_vm9, %v655_v59, %v835_v44 }
  0xaf   : > { %v1245_v8 = vor.u32 %v1244_v1, %v1240_v0  ;;  %v663_v12 = vor.u32 %v661_v4, %v660_v62  ;;  %837 = vst [vmem:[#allocation2 + $0xb4] sm:$0xf] %v836_v7  ;;  %v1241_v17 = vsel %vm14586_vm6, %v1236_v20, %v1240_v0  ;;  %v11425_v39 = vcombine.low %v14802_v25, %v14816_v51 }
  0xb0   : > { %v1255_v13 = vrot.slane %v1253_v5, 4  ;;  %v1258_v15 = vrot.slane %v1256_v56, 5  ;;  %v840_v16 = vsel %vm14592_vm8, %v665_v6, %v839_v63  ;;  %v11426_v44 = vcombine.low %v14832_v14, %v14841_v27 }
  0xb1   : > { %v1246_v18 = vrot.slane %v1245_v8, 4  ;;  %v664_v22 = vsel %vm14610_vm10, %v656_v60, %v663_v12  ;;  %841 = vst [vmem:[#allocation2 + $0xbc] sm:$0x1] %v840_v16  ;;  %v11427_v48 = vcombine.low %v14851_v42, %v14868_v11  ;;  %v11428_v49 = vcombine.low %v14879_v34, %v14887_v10  ;;  %v1896_v34 = vld [vmem:[#allocation2 + $0xc] sm:$0xe] }
  0xb2   : > { %v14937_v23 = vld [vmem:[#allocation2 + $0xac] sm:$0xf]  ;;  %v14939_v24 = vld [vmem:[#allocation2 + $0xb0] sm:$0x1]  ;;  %v1259_v19 = vor.u32 %v1258_v15, %v1255_v13  ;;  %838 = vst [vmem:[#allocation2 + $0xb8] sm:$0xf] %v664_v22  ;;  %v11429_v52 = vcombine.low %v14906_v21, %v14917_v47 }
  0xb3   : > { %v1251_v46 = vsel %vm14586_vm6, %v1246_v18, %v1250_v9  ;;  %v1262_v28 = vshll.u32 %v14937_v23, 16  ;;  %v1266_v29 = vshrl.u32 %v14937_v23, 16  ;;  %v1272_v33 = vshll.u32 %v14939_v24, 16 }
  0xb4   : > { %v11405_v35 = vcombine.low %v1241_v17, %v1251_v46  ;;  %v1260_v36 = vrot.slane %v1259_v19, 4  ;;  %v11430_v54 = vcombine.low %v14925_v2, %v14937_v23  ;;  %v14319_v19 = vld [vmem:[#allocation2] sm:$0xf]  ;;  %v14979_v46 = vld [vmem:[#allocation2 + $0x4] sm:$0xf] }
  0xb5   : > { %v1264_v40 = vrot.slane %v1262_v28, 5  ;;  %v1268_v41 = vrot.slane %v1266_v29, 4  ;;  %v1274_v57 = vrot.slane %v1272_v33, 5  ;;  %v11416_v28 = vcombine.low %v14319_v19, %v14979_v46  ;;  %v1904_v33 = vld [vmem:[#allocation2 + $0x6c] sm:$0xe] }
  0xb6   : > { %12735 = vmatmul.mubr.bf16.gmra.mrb[24].mxu0 %v11405_v35  ;;  %v14950_v45 = vld [vmem:[#allocation2 + $0xb4] sm:$0xf]  ;;  %v1905_v35 = vld [vmem:[#allocation2 + $0x78] sm:$0xe]  ;;  %v2021_v19 = vrot.slane %v14834_v53, 5 }
  0xb7   : > { %v1269_v31 = vor.u32 %v1268_v41, %v1264_v40  ;;  %v1277_v55 = vshrl.u32 %v14950_v45, 16  ;;  %v1280_v58 = vshll.u32 %v14950_v45, 16  ;;  %v1265_v59 = vsel %vm14586_vm6, %v1260_v36, %v1264_v40  ;;  %v14321_v36 = vld [vmem:[#allocation2 + $0xc] sm:$0xf]  ;;  %v14982_v40 = vld [vmem:[#allocation2 + $0x10] sm:$0xf] }
  0xb8   : > { %v14964_v60 = vld [vmem:[#allocation2 + $0xbc] sm:$0x1]  ;;  %v11417_v41 = vcombine.low %v14321_v36, %v14982_v40  ;;  %v2028_v36 = vrot.slane %v14870_v3, 5  ;;  %v2035_v3 = vrot.slane %v14889_v37, 5  ;;  %v2042_v37 = vrot.slane %v14912_v30, 5 }
  0xb9   : > { %v1270_v62 = vrot.slane %v1269_v31, 4  ;;  %v14966_v63 = vld [vmem:[#allocation2 + $0xb8] sm:$0xf]  ;;  %v1279_v20 = vrot.slane %v1277_v55, 4  ;;  %v1282_v0 = vrot.slane %v1280_v58, 5  ;;  %v1296_v1 = vshll.u32 %v14964_v60, 16 }
  0xba   : > { %v1286_v4 = vshll.u32 %v14966_v63, 16  ;;  %v1290_v5 = vshrl.u32 %v14966_v63, 16  ;;  %v11431_v56 = vcombine.low %v14950_v45, %v14966_v63  ;;  %v14323_v31 = vld [vmem:[#allocation2 + $0x18] sm:$0xf]  ;;  %v14988_v55 = vld [vmem:[#allocation2 + $0x1c] sm:$0xf] }
  0xbb   : > { %v1275_v6 = vsel %vm14586_vm6, %v1270_v62, %v1274_v57  ;;  %v1283_v7 = vor.u32 %v1282_v0, %v1279_v20  ;;  %v1298_v16 = vrot.slane %v1296_v1, 5  ;;  %v14100_v57 = vld [vmem:[%s18104_s1 + $0x88] sm:$0xff]   ;;  %v11418_v58 = vcombine.low %v14323_v31, %v14988_v55  ;;  %v1907_v0 = vld [vmem:[#allocation2 + $0x90] sm:$0xe] }
  0xbc   : > { %v11406_v8 = vcombine.low %v1265_v59, %v1275_v6  ;;  %v1288_v9 = vrot.slane %v1286_v4, 5  ;;  %v1292_v12 = vrot.slane %v1290_v5, 4  ;;  %v1906_v59 = vld [vmem:[#allocation2 + $0x84] sm:$0xe]  ;;  %v11449_v62 = vrot.slane %v1904_v33, 9 }
  0xbd   : > { %v1284_v13 = vrot.slane %v1283_v7, 4  ;;  %v2011_v20 = vrot.slane %v14816_v51, 5  ;;  %v2014_v4 = vrot.slane %v14823_v61, 5  ;;  %v11450_v5 = vrot.slane %v1905_v35, 9  ;;  %v14998_v7 = vld [vmem:[#allocation2 + $0x28] sm:$0xf] }
  0xbe   : > { %12738 = vmatprep.mubr.bf16.mxu0 %v11406_v8  ;;  %v1293_v15 = vor.u32 %v1292_v12, %v1288_v9  ;;  %v2018_v6 = vrot.slane %v14841_v27, 5  ;;  %v14326_v8 = vld [vmem:[#allocation2 + $0x24] sm:$0xf]  ;;  %v15006_v61 = vld [vmem:[#allocation2 + $0x34] sm:$0xf]  ;;  %v11451_v33 = vrot.slane %v1906_v59, 9 }
  0xbf   : > { %v1289_v17 = vsel %vm14586_vm6, %v1284_v13, %v1288_v9  ;;  %v11419_v9 = vcombine.low %v14326_v8, %v14998_v7  ;;  %v15003_v12 = vsel %vm14992_vm13, %v11449_v62, %v2011_v20  ;;  %v2013_v13 = vrot.slane %v2011_v20, 4 }
  0xc0   : > { %v1294_v18 = vrot.slane %v1293_v15, 4  ;;  %v1908_v15 = vld [vmem:[#allocation2 + $0x9c] sm:$0xe]  ;;  %v2025_v35 = vrot.slane %v14868_v11, 5  ;;  %v11452_v31 = vrot.slane %v1907_v0, 9  ;;  %v2039_v8 = vrot.slane %v14917_v47, 5 }
  0xc1   : > { %v11453_v0 = vrot.slane %v1908_v15, 9  ;;  %v11441_v47 = vrot.slane %v1896_v34, 9  ;;  %v1976_v45 = vrot.slane %v15006_v61, 5 }
  0xc2   : > { %v1299_v22 = vsel %vm14586_vm6, %v1294_v18, %v1298_v16  ;;  %v14327_v16 = vld [vmem:[#allocation2 + $0x30] sm:$0xf]  ;;  %v15011_v18 = vsel %vm14992_vm13, %v11450_v5, %v2018_v6  ;;  %v15034_v59 = vsel %vm14992_vm13, %v11451_v33, %v2025_v35  ;;  %v2027_v20 = vrot.slane %v2025_v35, 4 }
  0xc3   : > { %v11407_v29 = vcombine.low %v1289_v17, %v1299_v22  ;;  %v11420_v17 = vcombine.low %v14327_v16, %v15006_v61  ;;  %v2020_v22 = vrot.slane %v2018_v6, 4  ;;  %v15059_v33 = vsel %vm14992_vm13, %v11453_v0, %v2039_v8 }
  0xc4   : > { %v15047_v16 = vsel %vm14992_vm13, %v2027_v20, %v2028_v36  ;;  %v2041_v35 = vrot.slane %v2039_v8, 4  ;;  %v14329_v8 = vld [vmem:[#allocation2 + $0x3c] sm:$0xf] }
  0xc5   : > { %12739 = vmatmul.mubr.bf16.gmra.mrb[28].mxu0 %v11407_v29  ;;  %v14103_v29 = vld [vmem:[%s18104_s1 + $0x90] sm:$0xff]   ;;  %v15027_v53 = vsel %vm14992_vm13, %v2020_v22, %v2021_v19  ;;  %v2046_v22 = vrot.slane %v14937_v23, 5  ;;  %v11483_v19 = vcombine.low %v15034_v59, %v15047_v16  ;;  %v1898_v23 = vld [vmem:[#allocation2 + $0x24] sm:$0xe]  ;;  %v14132_v59 = vld [vmem:[%s18104_s1 + $0x108] sm:$0xff]  }
  0xc6   : > { %12758 = vmatprep.mubr.bf16.mxu0 %v11416_v28  ;;  %v1909_v28 = vld [vmem:[#allocation2 + $0xa8] sm:$0xe]  ;;  %v11482_v62 = vcombine.low %v15011_v18, %v15027_v53  ;;  %v15073_v20 = vsel %vm14992_vm13, %v2041_v35, %v2042_v37  ;;  %v15089_v37 = vld [vmem:[#allocation2 + $0x40] sm:$0xf]  ;;  %v15095_v35 = vld [vmem:[#allocation2 + $0x4c] sm:$0xf] }
  0xc7   : > { %v11485_v0 = vcombine.low %v15059_v33, %v15073_v20  ;;  %v14128_v53 = vld [vmem:[#allocation2 + $0x18] sm:$0xff]   ;;  %v14135_v16 = vld [vmem:[%s18104_s1 + $0x110] sm:$0xff]   ;;  %v2766_v33 = vld [vmem:[#allocation2 + $0xc] sm:$0xf] }
  0xc8   : > { %v15260_v20 = vld [vmem:[#allocation2 + $0x4c] sm:$0xf] }
  0xcd   : > { %12759 = vmatmul.mubr.bf16.vlgmr.msra.gmra.mrb[0].mxu0 %v11417_v41 }
  0xce   : > { %12791 = vmatpush3.bf16.msra.mxu0 %v14760_v50  ;;  %12762 = vmatprep.mubr.bf16.mxu0 %v11418_v58  ;;  %v15019_v50 = vsel %vm14992_vm13, %v2013_v13, %v2014_v4  ;;  %v2032_v58 = vrot.slane %v14887_v10, 5  ;;  %v1910_v4 = vld [vmem:[#allocation2 + $0xb4] sm:$0xe]  ;;  %v14106_v13 = vld [vmem:[%s18104_s1 + $0x98] sm:$0xff]  }
  0xcf   : > { %12792 = vmatprep.subr.bf16.mxu0 %v14100_v57  ;;  %v11481_v41 = vcombine.low %v15003_v12, %v15019_v50  ;;  %v1897_v10 = vld [vmem:[#allocation2 + $0x18] sm:$0xe]  ;;  %v14127_v50 = vld [vmem:[#allocation2 + $0xc] sm:$0xff]  }
  0xd0   : > { %v15039_v5 = vsel %vm14992_vm13, %v11452_v31, %v2032_v58  ;;  %v2034_v6 = vrot.slane %v2032_v58, 4  ;;  %v2049_v31 = vrot.slane %v14939_v24, 5  ;;  %v14109_v58 = vld [vmem:[%s18104_s1 + $0xa0] sm:$0xff]  }
  0xd2   : > { %12793 = vmatpush3.bf16.msra.mxu0 %v14100_v57  ;;  %v11454_v57 = vrot.slane %v1909_v28, 9  ;;  %v15055_v15 = vsel %vm14992_vm13, %v2034_v6, %v2035_v3  ;;  %v2048_v28 = vrot.slane %v2046_v22, 4  ;;  %v2053_v3 = vrot.slane %v14966_v63, 5 }
  0xd3   : > { %12794 = vmatprep.subr.bf16.mxu0 %v14103_v29  ;;  %v11484_v36 = vcombine.low %v15039_v5, %v15055_v15  ;;  %v2056_v6 = vrot.slane %v14964_v60, 5  ;;  %v11421_v60 = vcombine.low %v14329_v8, %v15089_v37  ;;  %v14333_v8 = vld [vmem:[#allocation2 + $0x54] sm:$0xf]  ;;  %v14138_v15 = vld [vmem:[%s18104_s1 + $0x118] sm:$0xff]  }
  0xd4   : > { %v15065_v30 = vsel %vm14992_vm13, %v11454_v57, %v2046_v22  ;;  %v15081_v24 = vsel %vm14992_vm13, %v2048_v28, %v2049_v31  ;;  %v14112_v57 = vld [vmem:[%s18104_s1 + $0xa8] sm:$0xff]   ;;  %v14131_v5 = vld [vmem:[#allocation2 + $0x30] sm:$0xff]  }
  0xd5   : > { %12763 = vmatmul.mubr.bf16.gmra.mrb[4].mxu0 %v11419_v9  ;;  %v11455_v9 = vrot.slane %v1910_v4, 9  ;;  %v2055_v4 = vrot.slane %v2053_v3, 4  ;;  %v14331_v22 = vld [vmem:[#allocation2 + $0x48] sm:$0xf]  ;;  %v18226_v12 = vcombine.low %v15065_v30, %v15081_v24  ;;  %v14141_v30 = vld [vmem:[%s18104_s1 + $0x120] sm:$0xff]   ;;  %v2815_v24 = vshrl.u32 %v2766_v33, 16 }
  0xd6   : > { %12766 = vmatprep.mubr.bf16.mxu0 %v11420_v17  ;;  %12795 = vmatpush3.bf16.msra.mxu0 %v14103_v29  ;;  %v11422_v28 = vcombine.low %v14331_v22, %v15095_v35  ;;  %v15107_v17 = vld [vmem:[#allocation2 + $0x58] sm:$0xf]  ;;  %v15119_v22 = vld [vmem:[%s18104_s1 + $0xc0] sm:$0xff]  }
  0xd7   : > { %12796 = vmatprep.subr.bf16.mxu0 %v14106_v13  ;;  %v15087_v29 = vsel %vm14992_vm13, %v11455_v9, %v2053_v3  ;;  %v15100_v31 = vsel %vm14992_vm13, %v2055_v4, %v2056_v6  ;;  %v14115_v3 = vld [vmem:[%s18104_s1 + $0xb0] sm:$0xff]   ;;  %v14118_v6 = vld [vmem:[%s18104_s1 + $0xb8] sm:$0xff]   ;;  %v14335_v4 = vld [vmem:[#allocation2 + $0x60] sm:$0xf] }
  0xd8   : > { %v14337_v9 = vld [vmem:[#allocation2 + $0x8] sm:$0x1] }
  0xd9   : > { %v1951_v25 = vrot.slane %v14337_v9, 5 }
  0xda   : > { %12797 = vmatpush3.bf16.msra.mxu0 %v14106_v13  ;;  %v11423_v13 = vcombine.low %v14333_v8, %v15107_v17 }
  0xdb   : > { %12798 = vmatprep.subr.bf16.mxu0 %v14109_v58 }
  0xdd   : > { %12767 = vmatmul.mubr.bf16.gmra.mrb[8].mxu0 %v11421_v60  ;;  %v15113_v60 = vld [vmem:[#allocation2 + $0x64] sm:$0xf] }
  0xde   : > { %12770 = vmatprep.mubr.bf16.mxu0 %v11422_v28  ;;  %12799 = vmatpush3.bf16.msra.mxu0 %v14109_v58  ;;  %v11424_v58 = vcombine.low %v14335_v4, %v15113_v60  ;;  %v256_v28 = vld [vmem:[%s14577_s6 + $0xf0] sm:$0xff] }
  0xdf   : > { %12800 = vmatprep.subr.bf16.mxu0 %v14112_v57  ;;  %v12228_v8 = vpack.c.bf16 %v256_v28, %v256_v28 }
  0xe1   : > { %v667_v4 = vshrl.u32 %v12228_v8, 16  ;;  %v670_v27 = vshll.u32 %v12228_v8, 16 }
  0xe2   : > { %12801 = vmatpush3.bf16.msra.mxu0 %v14112_v57  ;;  %v1895_v57 = vld [vmem:[#allocation2] sm:$0xe] }
  0xe3   : > { %12802 = vmatprep.subr.bf16.mxu0 %v14115_v3  ;;  %v11440_v51 = vrot.slane %v1895_v57, 9  ;;  %v669_v14 = vrot.slane %v667_v4, 7  ;;  %v1962_v57 = vrot.slane %v14988_v55, 5  ;;  %v14338_v4 = vld [vmem:[#allocation2 + $0x14] sm:$0x1] }
  0xe5   : > { %12771 = vmatmul.mubr.bf16.gmra.mrb[12].mxu0 %v11423_v13  ;;  %v673_v42 = vrot.slane %v669_v14, 4 }
  0xe6   : > { %12774 = vmatprep.mubr.bf16.mxu0 %v11424_v58  ;;  %12803 = vmatpush3.bf16.msra.mxu0 %v14115_v3  ;;  %v257_v3 = vld [vmem:[%s14577_s6 + $0xf8] sm:$0xff] }
  0xe7   : > { %12804 = vmatprep.subr.bf16.mxu0 %v14118_v6  ;;  %v12229_v13 = vpack.c.bf16 %v257_v3, %v257_v3  ;;  %v672_v3 = vor.u32 %v670_v27, %v669_v14  ;;  %v11442_v14 = vrot.slane %v1897_v10, 9  ;;  %v1964_v27 = vrot.slane %v1962_v57, 4 }
  0xe9   : > { %v675_v58 = vshrl.u32 %v12229_v13, 16 }
  0xea   : > { %12805 = vmatpush3.bf16.msra.mxu0 %v14118_v6  ;;  %v1948_v6 = vrot.slane %v14979_v46, 5 }
  0xeb   : > { %12838 = vmatprep.subr.bf16.mxu0 %v15119_v22 }
  0xec   : > { %v1950_v28 = vrot.slane %v1948_v6, 4  ;;  %v1949_v8 = vsel %vm14992_vm13, %v11440_v51, %v1948_v6  ;;  %v1969_v6 = vrot.slane %v14998_v7, 5  ;;  %v1978_v7 = vrot.slane %v1976_v45, 4 }
  0xed   : > { %12775 = vmatmul.mubr.bf16.gmra.mrb[16].mxu0 %v11425_v39  ;;  %v15137_v39 = vrot.slane %v675_v58, 7  ;;  %v1958_v58 = vrot.slane %v14338_v4, 5  ;;  %v1990_v4 = vrot.slane %v15095_v35, 5 }
  0xee   : > { %12778 = vmatprep.mubr.bf16.mxu0 %v11426_v44  ;;  %v678_v44 = vshll.u32 %v12229_v13, 16  ;;  %v1952_v13 = vsel %vm14992_vm13, %v1950_v28, %v1951_v25  ;;  %v1963_v25 = vsel %vm14992_vm13, %v11442_v14, %v1962_v57  ;;  %v14342_v14 = vld [vmem:[#allocation2 + $0x44] sm:$0x1] }
  0xef   : > { %v11472_v21 = vcombine.low %v1949_v8, %v1952_v13  ;;  %v1900_v13 = vld [vmem:[#allocation2 + $0x3c] sm:$0xe] }
  0xf0   : > { %v680_v11 = vor.u32 %v678_v44, %v15137_v39  ;;  %v14339_v44 = vld [vmem:[#allocation2 + $0x20] sm:$0x1] }
  0xf1   : > { %v1965_v2 = vrot.slane %v14339_v44, 5 }
  0xf2   : > { %v681_v46 = vsel %vm14610_vm10, %v673_v42, %v680_v11  ;;  %v14340_v42 = vld [vmem:[#allocation2 + $0x2c] sm:$0x1] }
  0xf3   : > { %845 = vst [vmem:[#allocation2 + $0xc4] sm:$0xf] %v681_v46  ;;  %v1966_v51 = vsel %vm14992_vm13, %v1964_v27, %v1965_v2  ;;  %v1972_v11 = vrot.slane %v14340_v42, 5  ;;  %v1986_v27 = vrot.slane %v14342_v14, 5  ;;  %v1992_v2 = vrot.slane %v1990_v4, 4  ;;  %v14134_v14 = vld [vmem:[#allocation2 + $0x48] sm:$0xff]  }
  0xf4   : > { %v11474_v28 = vcombine.low %v1963_v25, %v1966_v51  ;;  %v1997_v25 = vrot.slane %v15107_v17, 5 }
  0xf5   : > { %12779 = vmatmul.mubr.bf16.gmra.mrb[20].mxu0 %v11427_v48  ;;  %v842_v48 = vld [vmem:[#allocation2 + $0xc0] sm:$0xf] }
  0xf6   : > { %12782 = vmatprep.mubr.bf16.mxu0 %v11428_v49  ;;  %v843_v9 = vsel %vm14602_vm9, %v672_v3, %v842_v48  ;;  %v1955_v49 = vrot.slane %v14982_v40, 5  ;;  %v1971_v3 = vrot.slane %v1969_v6, 4  ;;  %v14120_v48 = vld [vmem:[%s18104_s1 + $0xc8] sm:$0xff]  }
  0xf7   : > { %844 = vst [vmem:[#allocation2 + $0xc0] sm:$0xf] %v843_v9  ;;  %v14341_v9 = vld [vmem:[#allocation2 + $0x38] sm:$0x1] }
  0xf8   : > { %v1956_v40 = vsel %vm14992_vm13, %v11441_v47, %v1955_v49  ;;  %v1979_v34 = vrot.slane %v14341_v9, 5  ;;  %v1973_v10 = vsel %vm14992_vm13, %v1971_v3, %v1972_v11 }
  0xfa   : > { %v1980_v8 = vsel %vm14992_vm13, %v1978_v7, %v1979_v34  ;;  %v14345_v34 = vld [vmem:[#allocation2 + $0x68] sm:$0x1] }
  0xfd   : > { %12783 = vmatmul.mubr.bf16.gmra.mrb[24].mxu0 %v11429_v52  ;;  %v1957_v52 = vrot.slane %v1955_v49, 4  ;;  %v1983_v49 = vrot.slane %v15089_v37, 5 }
  0xfe   : > { %12786 = vmatprep.mubr.bf16.mxu0 %v11430_v54  ;;  %v1899_v54 = vld [vmem:[#allocation2 + $0x30] sm:$0xe] }
  0xff   : > { %v1959_v55 = vsel %vm14992_vm13, %v1957_v52, %v1958_v58  ;;  %v11444_v46 = vrot.slane %v1899_v54, 9  ;;  %v1901_v58 = vld [vmem:[#allocation2 + $0x48] sm:$0xe]  ;;  %v11445_v52 = vrot.slane %v1900_v13, 9  ;;  %v1985_v37 = vrot.slane %v1983_v49, 4  ;;  %v14125_v13 = vld [vmem:[%s18104_s1 + $0xf0] sm:$0xff]  }
 0x100   : > { %v11473_v63 = vcombine.low %v1956_v40, %v1959_v55  ;;  %v11446_v44 = vrot.slane %v1901_v58, 9  ;;  %v14122_v40 = vld [vmem:[%s18104_s1 + $0xd8] sm:$0xff]  }
 0x101   : > { %v1977_v57 = vsel %vm14992_vm13, %v11444_v46, %v1976_v45  ;;  %v1984_v35 = vsel %vm14992_vm13, %v11445_v52, %v1983_v49  ;;  %v1987_v55 = vsel %vm14992_vm13, %v1985_v37, %v1986_v27  ;;  %v14344_v46 = vld [vmem:[#allocation2 + $0x5c] sm:$0x1]  ;;  %v846_v52 = vld [vmem:[#allocation2 + $0xc8] sm:$0x1] }
 0x102   : > { %v11476_v47 = vcombine.low %v1977_v57, %v1980_v8  ;;  %v1991_v51 = vsel %vm14992_vm13, %v11446_v44, %v1990_v4  ;;  %v11477_v3 = vcombine.low %v1984_v35, %v1987_v55  ;;  %v2000_v17 = vrot.slane %v14344_v46, 5  ;;  %v14126_v58 = vld [vmem:[%s18104_s1 + $0xf8] sm:$0xff]   ;;  %v14144_v35 = vld [vmem:[%s18104_s1 + $0x128] sm:$0xff]  }
 0x105   : > { %12787 = vmatmul.mubr.bf16.gmra.mrb[28].mxu0 %v11431_v56  ;;  %v11443_v56 = vrot.slane %v1898_v23, 9  ;;  %v14343_v23 = vld [vmem:[#allocation2 + $0x50] sm:$0x1] }
 0x106   : > { %12806 = vmatprep.mubr.bf16.mxu0 %v11472_v21  ;;  %v1993_v54 = vrot.slane %v14343_v23, 5 }
 0x107   : > { %v1970_v61 = vsel %vm14992_vm13, %v11443_v56, %v1969_v6  ;;  %v1902_v6 = vld [vmem:[#allocation2 + $0x54] sm:$0xe]  ;;  %v14123_v56 = vld [vmem:[%s18104_s1 + $0xe0] sm:$0xff]  }
 0x108   : > { %v11475_v21 = vcombine.low %v1970_v61, %v1973_v10  ;;  %v1994_v45 = vsel %vm14992_vm13, %v1992_v2, %v1993_v54  ;;  %v11447_v11 = vrot.slane %v1902_v6, 9  ;;  %v2007_v61 = vrot.slane %v14345_v34, 5  ;;  %v14136_v2 = vld [vmem:[#allocation2 + $0x54] sm:$0xff]   ;;  %v15275_v6 = vld [vmem:[#allocation2 + $0x1c] sm:$0xf] }
 0x109   : > { %v11478_v42 = vcombine.low %v1991_v51, %v1994_v45  ;;  %v2769_v54 = vld [vmem:[#allocation2 + $0x18] sm:$0xf]  ;;  %v14147_v45 = vld [vmem:[%s18104_s1 + $0x130] sm:$0xff]  }
 0x10a   : > { %v1998_v10 = vsel %vm14992_vm13, %v11447_v11, %v1997_v25 }
 0x10d   : > { %12807 = vmatmul.mubr.bf16.vlgmr.msra.gmra.mrb[0].mxu0 %v11473_v63  ;;  %v2004_v63 = vrot.slane %v15113_v60, 5  ;;  %v14124_v60 = vld [vmem:[%s18104_s1 + $0xe8] sm:$0xff]  }
 0x10e   : > { %12839 = vmatpush3.bf16.msra.mxu0 %v15119_v22  ;;  %12810 = vmatprep.mubr.bf16.mxu0 %v11474_v28  ;;  %v14121_v22 = vld [vmem:[%s18104_s1 + $0xd0] sm:$0xff]   ;;  %v1903_v28 = vld [vmem:[#allocation2 + $0x60] sm:$0xe] }
 0x10f   : > { %12840 = vmatprep.subr.bf16.mxu0 %v14120_v48  ;;  %v11448_v7 = vrot.slane %v1903_v28, 9  ;;  %v2006_v9 = vrot.slane %v2004_v63, 4  ;;  %v15286_v28 = vld [vmem:[#allocation2 + $0x64] sm:$0xf] }
 0x110   : > { %v3635_v46 = vrot.slane %v15286_v28, 5 }
 0x111   : > { %v2005_v57 = vsel %vm14992_vm13, %v11448_v7, %v2004_v63  ;;  %v2008_v8 = vsel %vm14992_vm13, %v2006_v9, %v2007_v61  ;;  %v2839_v63 = vshrl.u32 %v2769_v54, 16  ;;  %v14137_v7 = vld [vmem:[#allocation2 + $0x60] sm:$0xff]   ;;  %v2848_v9 = vshll.u32 %v15275_v6, 16  ;;  %v14139_v61 = vld [vmem:[#allocation2 + $0x6c] sm:$0xff]  }
 0x112   : > { %12841 = vmatpush3.bf16.msra.mxu0 %v14120_v48  ;;  %v1999_v48 = vrot.slane %v1997_v25, 4  ;;  %v11480_v4 = vcombine.low %v2005_v57, %v2008_v8  ;;  %v14150_v57 = vld [vmem:[%s18104_s1 + $0x138] sm:$0xff]   ;;  %v2772_v8 = vld [vmem:[#allocation2 + $0x24] sm:$0xf] }
 0x113   : > { %12842 = vmatprep.subr.bf16.mxu0 %v14121_v22 }
 0x114   : > { %v2001_v49 = vsel %vm14992_vm13, %v1999_v48, %v2000_v17  ;;  %v3527_v48 = vld [vmem:[#allocation2 + $0x60] sm:$0xe] }
 0x115   : > { %12811 = vmatmul.mubr.bf16.gmra.mrb[4].mxu0 %v11475_v21  ;;  %v14129_v21 = vld [vmem:[%s18104_s1 + $0x100] sm:$0xff]   ;;  %v11583_v34 = vrot.slane %v3527_v48, 9  ;;  %v15349_v48 = vld [vmem:[#allocation2 + $0x2c] sm:$0x1] }
 0x116   : > { %12814 = vmatprep.mubr.bf16.mxu0 %v11476_v47  ;;  %12843 = vmatpush3.bf16.msra.mxu0 %v14121_v22  ;;  %v11479_v22 = vcombine.low %v1998_v10, %v2001_v49  ;;  %v682_v47 = vrot.slane %v15137_v39, 4  ;;  %v3621_v39 = vrot.slane %v15260_v20, 5  ;;  %v2852_v10 = vshrl.u32 %v15275_v6, 16 }
 0x117   : > { %12844 = vmatprep.subr.bf16.mxu0 %v14122_v40  ;;  %v3637_v49 = vrot.slane %v3635_v46, 4 }
 0x118   : > { %v847_v18 = vsel %vm14592_vm8, %v682_v47, %v846_v52  ;;  %v15311_v47 = vld [vmem:[#allocation2 + $0x20] sm:$0x1]  ;;  %v2841_v52 = vrot.slane %v2839_v63, 4 }
 0x119   : > { %848 = vst [vmem:[#allocation2 + $0xc8] sm:$0x1] %v847_v18 }
 0x11a   : > { %12845 = vmatpush3.bf16.msra.mxu0 %v14122_v40  ;;  %v3623_v40 = vrot.slane %v3621_v39, 4 }
 0x11b   : > { %12846 = vmatprep.subr.bf16.mxu0 %v14123_v56 }
 0x11d   : > { %12815 = vmatmul.mubr.bf16.gmra.mrb[8].mxu0 %v11477_v3  ;;  %v15288_v3 = vld [vmem:[#allocation2 + $0x68] sm:$0x1] }
 0x11e   : > { %12818 = vmatprep.mubr.bf16.mxu0 %v11478_v42  ;;  %12847 = vmatpush3.bf16.msra.mxu0 %v14123_v56  ;;  %v2842_v56 = vshll.u32 %v2769_v54, 16  ;;  %v2817_v42 = vrot.slane %v2815_v24, 4  ;;  %v3638_v17 = vrot.slane %v15288_v3, 5 }
 0x11f   : > { %12848 = vmatprep.subr.bf16.mxu0 %v14124_v60 }
 0x120   : > { %v2844_v18 = vrot.slane %v2842_v56, 5  ;;  %v2775_v56 = vld [vmem:[#allocation2 + $0x30] sm:$0xf] }
 0x122   : > { %12849 = vmatpush3.bf16.msra.mxu0 %v14124_v60  ;;  %v15293_v60 = vld [vmem:[#allocation2 + $0x14] sm:$0x1] }
 0x123   : > { %12850 = vmatprep.subr.bf16.mxu0 %v14125_v13 }
 0x125   : > { %12819 = vmatmul.mubr.bf16.gmra.mrb[12].mxu0 %v11479_v22  ;;  %v15305_v22 = vsel %vm14992_vm13, %v3637_v49, %v3638_v17  ;;  %v15352_v17 = vld [vmem:[#allocation2 + $0x34] sm:$0xf]  ;;  %v2887_v49 = vshrl.u32 %v2775_v56, 16 }
 0x126   : > { %12822 = vmatprep.mubr.bf16.mxu0 %v11480_v4  ;;  %12851 = vmatpush3.bf16.msra.mxu0 %v14125_v13  ;;  %v15301_v13 = vsel %vm14992_vm13, %v11583_v34, %v3635_v46  ;;  %18231 = vst [vmem:[#allocation10_spill] sm:$0xff] %v15305_v22  ;;  %v15357_v34 = vld [vmem:[#allocation2 + $0x94] sm:$0xf]  ;;  %v3533_v4 = vld [vmem:[#allocation2 + $0xa8] sm:$0xe] }
 0x127   : > { %12852 = vmatprep.subr.bf16.mxu0 %v14126_v58  ;;  %18230 = vst [vmem:[#allocation9_spill] sm:$0xff] %v15301_v13  ;;  %v2781_v22 = vld [vmem:[#allocation2 + $0x48] sm:$0xf]  ;;  %v14149_v13 = vld [vmem:[#allocation2 + $0xc0] sm:$0xff]  }
 0x12a   : > { %12853 = vmatpush3.bf16.msra.mxu0 %v14126_v58 }
 0x12b   : > { %12886 = vmatprep.subr.bf16.mxu0 %v14129_v21 }
 0x12d   : > { %12823 = vmatmul.mubr.bf16.gmra.mrb[16].mxu0 %v11481_v41  ;;  %v18227_v41 = vcombine.low %v15087_v29, %v15100_v31  ;;  %v2818_v29 = vshll.u32 %v2766_v33, 16  ;;  %v3525_v31 = vld [vmem:[#allocation2 + $0x48] sm:$0xe]  ;;  %v2854_v33 = vrot.slane %v2852_v10, 4 }
 0x12e   : > { %12826 = vmatprep.mubr.bf16.mxu0 %v11482_v62  ;;  %v14130_v62 = vld [vmem:[#allocation2 + $0x24] sm:$0xff]   ;;  %v11581_v44 = vrot.slane %v3525_v31, 9 }
 0x12f   : > { %v2820_v11 = vrot.slane %v2818_v29, 5 }
 0x130   : > { %v15273_v55 = vsel %vm14992_vm13, %v11581_v44, %v3621_v39  ;;  %v14140_v39 = vld [vmem:[#allocation2 + $0x78] sm:$0xff]   ;;  %v14142_v44 = vld [vmem:[#allocation2 + $0x84] sm:$0xff]  }
 0x131   : > { %18228 = vst [vmem:[#allocation7_spill] sm:$0xff] %v15273_v55 }
 0x135   : > { %12827 = vmatmul.mubr.bf16.gmra.mrb[20].mxu0 %v11483_v19  ;;  %v14133_v19 = vld [vmem:[#allocation2 + $0x3c] sm:$0xff]  }
 0x136   : > { %12830 = vmatprep.mubr.bf16.mxu0 %v11484_v36  ;;  %v15255_v36 = vld [vmem:[#allocation2 + $0x10] sm:$0xf] }
 0x137   : > { %v2824_v27 = vshll.u32 %v15255_v36, 16  ;;  %v2828_v23 = vshrl.u32 %v15255_v36, 16 }
 0x139   : > { %v15309_v58 = vrot.slane %v2824_v27, 5 }
 0x13d   : > { %12831 = vmatmul.mubr.bf16.gmra.mrb[24].mxu0 %v11485_v0  ;;  %v15262_v0 = vld [vmem:[#allocation2 + $0x50] sm:$0x1] }
 0x13e   : > { %12834 = vmatprep.mubr.bf16.mxu0 %v18226_v12  ;;  %v3624_v37 = vrot.slane %v15262_v0, 5  ;;  %v2834_v12 = vshll.u32 %v15293_v60, 16 }
 0x140   : > { %v15279_v25 = vsel %vm14992_vm13, %v3623_v40, %v3624_v37  ;;  %v2858_v37 = vshll.u32 %v15311_v47, 16 }
 0x141   : > { %18229 = vst [vmem:[#allocation8_spill] sm:$0xff] %v15279_v25  ;;  %v2944_v25 = vshll.u32 %v15260_v20, 16 }
 0x145   : > { %12835 = vmatmul.mubr.bf16.gmra.mrb[28].mxu0 %v18227_v41  ;;  %v15316_v41 = vld [vmem:[#allocation2 + $0x80] sm:$0x1] }
 0x146   : > { %12854 = vmatprep.mubr.bf16.mxu0 %v14127_v50  ;;  %v15314_v50 = vld [vmem:[#allocation2 + $0x7c] sm:$0xf] }
 0x14d   : > { %12855 = vmatmul.mubr.bf16.vlgmr.msra.gmra.mrb[0].mxu0 %v14128_v53  ;;  %v2863_v53 = vshrl.u32 %v2772_v8, 16 }
 0x14e   : > { %12887 = vmatpush3.bf16.msra.mxu0 %v14129_v21  ;;  %12858 = vmatprep.mubr.bf16.mxu0 %v14130_v62  ;;  %v2830_v21 = vrot.slane %v2828_v23, 4  ;;  %v2866_v62 = vshll.u32 %v2772_v8, 16  ;;  %v3663_v8 = vrot.slane %v15357_v34, 5 }
 0x14f   : > { %12888 = vmatprep.subr.bf16.mxu0 %v14132_v59  ;;  %v2865_v23 = vrot.slane %v2863_v53, 4 }
 0x150   : > { %v2831_v29 = vor.u32 %v2830_v21, %v15309_v58  ;;  %v2868_v54 = vrot.slane %v2866_v62, 5 }
 0x152   : > { %12889 = vmatpush3.bf16.msra.mxu0 %v14132_v59  ;;  %v3529_v59 = vld [vmem:[#allocation2 + $0x78] sm:$0xe]  ;;  %v2869_v10 = vor.u32 %v2868_v54, %v2865_v23  ;;  %v2900_v23 = vshrl.u32 %v15352_v17, 16 }
 0x153   : > { %12890 = vmatprep.subr.bf16.mxu0 %v14135_v16  ;;  %v11585_v24 = vrot.slane %v3529_v59, 9  ;;  %v15370_v59 = vld [vmem:[#allocation2 + $0x38] sm:$0x1] }
 0x155   : > { %12859 = vmatmul.mubr.bf16.gmra.mrb[4].mxu0 %v14131_v5  ;;  %v3649_v5 = vrot.slane %v15314_v50, 5 }
 0x156   : > { %12862 = vmatprep.mubr.bf16.mxu0 %v14133_v19  ;;  %12891 = vmatpush3.bf16.msra.mxu0 %v14135_v16  ;;  %v3652_v16 = vrot.slane %v15316_v41, 5  ;;  %v2821_v19 = vor.u32 %v2820_v11, %v2817_v42  ;;  %v15347_v11 = vrot.slane %v2831_v29, 4  ;;  %v2896_v29 = vshll.u32 %v15352_v17, 16 }
 0x157   : > { %12892 = vmatprep.subr.bf16.mxu0 %v14138_v15  ;;  %v3651_v31 = vrot.slane %v3649_v5, 4  ;;  %v15333_v27 = vsel %vm14992_vm13, %v11585_v24, %v3649_v5  ;;  %v2778_v5 = vld [vmem:[#allocation2 + $0x3c] sm:$0xf]  ;;  %v2890_v24 = vshll.u32 %v2775_v56, 16  ;;  %v15389_v56 = vld [vmem:[#allocation2 + $0x40] sm:$0xf] }
 0x158   : > { %18232 = vst [vmem:[#allocation11_spill] sm:$0xff] %v15333_v27  ;;  %v2920_v32 = vshll.u32 %v15389_v56, 16  ;;  %v15416_v38 = vrot.slane %v2896_v29, 5 }
 0x159   : > { %v15339_v40 = vsel %vm14992_vm13, %v3651_v31, %v3652_v16  ;;  %v3665_v16 = vrot.slane %v3663_v8, 4  ;;  %v2892_v43 = vrot.slane %v2890_v24, 5 }
 0x15a   : > { %12893 = vmatpush3.bf16.msra.mxu0 %v14138_v15  ;;  %v15320_v15 = vrot.slane %v2848_v9, 5  ;;  %18233 = vst [vmem:[#allocation12_spill] sm:$0xff] %v15339_v40 }
 0x15b   : > { %12894 = vmatprep.subr.bf16.mxu0 %v14141_v30 }
 0x15c   : > { %v2855_v63 = vor.u32 %v2854_v33, %v15320_v15 }
 0x15d   : > { %12863 = vmatmul.mubr.bf16.gmra.mrb[8].mxu0 %v14134_v14  ;;  %v15329_v14 = vld [vmem:[#allocation2 + $0x28] sm:$0xf] }
 0x15e   : > { %12866 = vmatprep.mubr.bf16.mxu0 %v14136_v2  ;;  %12895 = vmatpush3.bf16.msra.mxu0 %v14141_v30  ;;  %v15325_v30 = vld [vmem:[%s18104_s1 + $0x140] sm:$0xff]   ;;  %v15335_v2 = vrot.slane %v2834_v12, 5  ;;  %v2872_v46 = vshll.u32 %v15329_v14, 16  ;;  %v2876_v9 = vshrl.u32 %v15329_v14, 16  ;;  %v15365_v12 = vrot.slane %v2855_v63, 4 }
 0x15f   : > { %12896 = vmatprep.subr.bf16.mxu0 %v14144_v35  ;;  %v2906_v63 = vshll.u32 %v15370_v59, 16 }
 0x160   : > { %v15368_v62 = vrot.slane %v2872_v46, 5  ;;  %v2878_v33 = vrot.slane %v2876_v9, 4  ;;  %v2911_v46 = vshrl.u32 %v2778_v5, 16 }
 0x161   : > { %v15432_v24 = vrot.slane %v2906_v63, 5 }
 0x162   : > { %12897 = vmatpush3.bf16.msra.mxu0 %v14144_v35  ;;  %v15341_v35 = vrot.slane %v2821_v19, 4  ;;  %v14143_v19 = vld [vmem:[#allocation2 + $0x90] sm:$0xff]   ;;  %v2913_v29 = vrot.slane %v2911_v46, 4 }
 0x163   : > { %12898 = vmatprep.subr.bf16.mxu0 %v14147_v45 }
 0x165   : > { %12867 = vmatmul.mubr.bf16.gmra.mrb[12].mxu0 %v14137_v7  ;;  %v15354_v7 = vrot.slane %v2858_v37, 5  ;;  %v15377_v37 = vrot.slane %v2869_v10, 4  ;;  %v2827_v10 = vsel %vm14586_vm6, %v15341_v35, %v15309_v58  ;;  %v2914_v35 = vshll.u32 %v2778_v5, 16 }
 0x166   : > { %12870 = vmatprep.mubr.bf16.mxu0 %v14139_v61  ;;  %12899 = vmatpush3.bf16.msra.mxu0 %v14147_v45  ;;  %v2845_v45 = vor.u32 %v2844_v18, %v2841_v52  ;;  %v15359_v61 = vld [vmem:[#allocation2 + $0x98] sm:$0x1]  ;;  %v2882_v18 = vshll.u32 %v15349_v48, 16 }
 0x167   : > { %12900 = vmatprep.subr.bf16.mxu0 %v14150_v57  ;;  %v3666_v21 = vrot.slane %v15359_v61, 5 }
 0x168   : > { %v15363_v52 = vrot.slane %v2845_v45, 4  ;;  %v15386_v45 = vrot.slane %v2882_v18, 5  ;;  %v2879_v18 = vor.u32 %v2878_v33, %v15368_v62  ;;  %v11589_v33 = vrot.slane %v3533_v4, 9  ;;  %v14148_v4 = vld [vmem:[#allocation2 + $0xb4] sm:$0xff]  }
 0x169   : > { %v15384_v54 = vsel %vm14992_vm13, %v3665_v16, %v3666_v21  ;;  %v2837_v21 = vsel %vm14586_vm6, %v15347_v11, %v15335_v2  ;;  %v3532_v16 = vld [vmem:[#allocation2 + $0x9c] sm:$0xe]  ;;  %v2924_v2 = vshrl.u32 %v15389_v56, 16 }
 0x16a   : > { %12901 = vmatpush3.bf16.msra.mxu0 %v14150_v57  ;;  %v3531_v57 = vld [vmem:[#allocation2 + $0x90] sm:$0xe]  ;;  %18235 = vst [vmem:[#allocation14_spill] sm:$0xff] %v15384_v54  ;;  %v11588_v42 = vrot.slane %v3532_v16, 9  ;;  %v15422_v16 = vrot.slane %v2879_v18, 4  ;;  %v2916_v18 = vrot.slane %v2914_v35, 5  ;;  %v11552_v63 = vcombine.low %v2827_v10, %v2837_v21 }
 0x16b   : > { %12934 = vmatprep.subr.bf16.mxu0 %v15325_v30  ;;  %v11587_v53 = vrot.slane %v3531_v57, 9  ;;  %v15399_v57 = vld [vmem:[#allocation2 + $0xa4] sm:$0x1]  ;;  %v2851_v46 = vsel %vm14586_vm6, %v15363_v52, %v15320_v15  ;;  %v15458_v35 = vld [vmem:[#allocation2 + $0xb8] sm:$0xf] }
 0x16c   : > { %v3673_v58 = vrot.slane %v15399_v57, 5  ;;  %v15462_v10 = vld [vmem:[#allocation2 + $0xc4] sm:$0xf]  ;;  %v15466_v52 = vld [vmem:[#allocation2 + $0xc8] sm:$0x1] }
 0x16d   : > { %12871 = vmatmul.mubr.bf16.gmra.mrb[16].mxu0 %v14140_v39  ;;  %v15375_v31 = vsel %vm14992_vm13, %v11587_v53, %v3663_v8  ;;  %v14145_v39 = vld [vmem:[#allocation2 + $0x9c] sm:$0xff]   ;;  %v15401_v8 = vld [vmem:[#allocation2 + $0xac] sm:$0xf]  ;;  %v15408_v53 = vld [vmem:[#allocation2 + $0xb0] sm:$0x1] }
 0x16e   : > { %12874 = vmatprep.mubr.bf16.mxu0 %v14142_v44  ;;  %18234 = vst [vmem:[#allocation13_spill] sm:$0xff] %v15375_v31  ;;  %v15379_v44 = vrot.slane %v2887_v49, 4  ;;  %v15397_v49 = vld [vmem:[#allocation2 + $0xa0] sm:$0xf]  ;;  %v3680_v51 = vrot.slane %v15408_v53, 5  ;;  %v2902_v31 = vrot.slane %v2900_v23, 4 }
 0x16f   : > { %v3670_v9 = vrot.slane %v15397_v49, 5  ;;  %v15440_v23 = vld [vmem:[#allocation2 + $0x44] sm:$0x1] }
 0x170   : > { %18240 = vst [vmem:[#allocation19_spill] sm:$0xff] %v15440_v23  ;;  %v2893_v21 = vor.u32 %v2892_v43, %v15379_v44  ;;  %v2903_v15 = vor.u32 %v2902_v31, %v15416_v38  ;;  %v2930_v43 = vshll.u32 %v15440_v23, 16  ;;  %v2784_v44 = vld [vmem:[#allocation2 + $0x54] sm:$0xf] }
 0x171   : > { %v3672_v11 = vrot.slane %v3670_v9, 4  ;;  %v15420_v54 = vsel %vm14992_vm13, %v11588_v42, %v3670_v9  ;;  %v3694_v42 = vrot.slane %v15466_v52, 5 }
 0x172   : > { %18236 = vst [vmem:[#allocation15_spill] sm:$0xff] %v15420_v54  ;;  %v15474_v54 = vld [vmem:[#allocation2 + $0x58] sm:$0xf]  ;;  %v15496_v55 = vrot.slane %v2893_v21, 4  ;;  %v2932_v21 = vrot.slane %v2930_v43, 5  ;;  %v2996_v43 = vshrl.u32 %v15286_v28, 16 }
 0x173   : > { %v15426_v40 = vsel %vm14992_vm13, %v3672_v11, %v3673_v58  ;;  %v15442_v58 = vrot.slane %v2920_v32, 5  ;;  %v2926_v11 = vrot.slane %v2924_v2, 4  ;;  %v2875_v32 = vsel %vm14586_vm6, %v15377_v37, %v15368_v62  ;;  %v15460_v2 = vld [vmem:[#allocation2 + $0xbc] sm:$0x1]  ;;  %18241 = vst [vmem:[#allocation20_spill] sm:$0xff] %v15474_v54 }
 0x174   : > { %18237 = vst [vmem:[#allocation16_spill] sm:$0xff] %v15426_v40  ;;  %v2935_v62 = vshrl.u32 %v2781_v22, 16  ;;  %v2938_v40 = vshll.u32 %v2781_v22, 16  ;;  %v2959_v22 = vshrl.u32 %v2784_v44, 16 }
 0x175   : > { %12875 = vmatmul.mubr.bf16.gmra.mrb[20].mxu0 %v14143_v19  ;;  %v3677_v19 = vrot.slane %v15401_v8, 5 }
 0x176   : > { %12878 = vmatprep.mubr.bf16.mxu0 %v14145_v39  ;;  %v14146_v39 = vld [vmem:[#allocation2 + $0xa8] sm:$0xff]  }
 0x177   : > { %v3679_v5 = vrot.slane %v3677_v19, 4  ;;  %v15430_v27 = vsel %vm14992_vm13, %v11589_v33, %v3677_v19  ;;  %v3534_v33 = vld [vmem:[#allocation2 + $0xb4] sm:$0xe]  ;;  %v3691_v19 = vrot.slane %v15462_v10, 5 }
 0x178   : > { %18238 = vst [vmem:[#allocation17_spill] sm:$0xff] %v15430_v27  ;;  %v11590_v37 = vrot.slane %v3534_v33, 9  ;;  %v2927_v27 = vor.u32 %v2926_v11, %v15442_v58 }
 0x179   : > { %v15438_v9 = vsel %vm14992_vm13, %v3679_v5, %v3680_v51  ;;  %v2861_v51 = vsel %vm14586_vm6, %v15365_v12, %v15354_v7  ;;  %v3684_v7 = vrot.slane %v15458_v35, 5  ;;  %v3687_v12 = vrot.slane %v15460_v2, 5  ;;  %v3535_v5 = vld [vmem:[#allocation2 + $0xc0] sm:$0xe] }
 0x17a   : > { %18239 = vst [vmem:[#allocation18_spill] sm:$0xff] %v15438_v9  ;;  %v11591_v9 = vrot.slane %v3535_v5, 9  ;;  %v3693_v33 = vrot.slane %v3691_v19, 4  ;;  %v2962_v5 = vshll.u32 %v2784_v44, 16  ;;  %v11553_v23 = vcombine.low %v2851_v46, %v2861_v51 }
 0x17b   : > { %v3686_v31 = vrot.slane %v3684_v7, 4 }
 0x17c   : > { %v15488_v11 = vsel %vm14992_vm13, %v11591_v9, %v3691_v19  ;;  %v2885_v9 = vsel %vm14586_vm6, %v15422_v16, %v15386_v45  ;;  %v15506_v19 = vrot.slane %v2903_v15, 4  ;;  %v15513_v16 = vld [vmem:[#allocation2 + $0x5c] sm:$0x1] }
 0x17d   : > { %12879 = vmatmul.mubr.bf16.gmra.mrb[24].mxu0 %v14146_v39  ;;  %v2917_v39 = vor.u32 %v2916_v18, %v2913_v29  ;;  %v2948_v29 = vshrl.u32 %v15260_v20, 16  ;;  %v15484_v18 = vsel %vm14992_vm13, %v3686_v31, %v3687_v12  ;;  %18244 = vst [vmem:[#allocation23_spill] sm:$0xff] %v15488_v11  ;;  %v2968_v20 = vshll.u32 %v15474_v54, 16 }
 0x17e   : > { %12882 = vmatprep.mubr.bf16.mxu0 %v14148_v4  ;;  %v15478_v4 = vsel %vm14992_vm13, %v11590_v37, %v3684_v7  ;;  %18243 = vst [vmem:[#allocation22_spill] sm:$0xff] %v15484_v18  ;;  %v15494_v37 = vsel %vm14992_vm13, %v3693_v33, %v3694_v42  ;;  %v2972_v12 = vshrl.u32 %v15474_v54, 16  ;;  %v2937_v42 = vrot.slane %v2935_v62, 4 }
 0x17f   : > { %18242 = vst [vmem:[#allocation21_spill] sm:$0xff] %v15478_v4  ;;  %18245 = vst [vmem:[#allocation24_spill] sm:$0xff] %v15494_v37  ;;  %v15508_v44 = vrot.slane %v2917_v39, 4  ;;  %v2940_v33 = vrot.slane %v2938_v40, 5  ;;  %v15510_v7 = vrot.slane %v2944_v25, 5  ;;  %v2950_v18 = vrot.slane %v2948_v29, 4 }
 0x180   : > { %v2787_v4 = vld [vmem:[#allocation2 + $0x60] sm:$0xf]  ;;  %v2928_v54 = vrot.slane %v2927_v27, 4  ;;  %v2954_v31 = vshll.u32 %v15262_v0, 16  ;;  %v2961_v37 = vrot.slane %v2959_v22, 4  ;;  %v2964_v11 = vrot.slane %v2962_v5, 5 }
 0x181   : > { %v11554_v45 = vcombine.low %v2875_v32, %v2885_v9  ;;  %v15515_v15 = vrot.slane %v2968_v20, 5  ;;  %v2974_v62 = vrot.slane %v2972_v12, 4  ;;  %v2983_v39 = vshrl.u32 %v2787_v4, 16  ;;  %v14152_v22 = vld [vmem:[%s18104_s1 + $0x148] sm:$0xff]   ;;  %v2793_v12 = vld [vmem:[#allocation2 + $0x78] sm:$0xf] }
 0x182   : > { %v2986_v40 = vshll.u32 %v2787_v4, 16  ;;  %v2992_v25 = vshll.u32 %v15286_v28, 16  ;;  %v2899_v0 = vsel %vm14586_vm6, %v15496_v55, %v15416_v38  ;;  %v2909_v27 = vsel %vm14586_vm6, %v15506_v19, %v15432_v24  ;;  %v15529_v4 = vld [vmem:[#allocation2 + $0x70] sm:$0xf] }
 0x183   : > { %v2951_v46 = vor.u32 %v2950_v18, %v15510_v7  ;;  %v2965_v51 = vor.u32 %v2964_v11, %v2961_v37  ;;  %v2978_v32 = vshll.u32 %v15513_v16, 16  ;;  %v2923_v38 = vsel %vm14586_vm6, %v15508_v44, %v15442_v58 }
 0x184   : > { %v2933_v55 = vsel %vm14586_vm6, %v2928_v54, %v2932_v21  ;;  %v15540_v24 = vrot.slane %v2954_v31, 5  ;;  %v2975_v18 = vor.u32 %v2974_v62, %v15515_v15  ;;  %v2985_v11 = vrot.slane %v2983_v39, 4 }
 0x185   : > { %12883 = vmatmul.mubr.bf16.gmra.mrb[28].mxu0 %v14149_v13  ;;  %v2790_v13 = vld [vmem:[#allocation2 + $0x6c] sm:$0xf]  ;;  %v2988_v5 = vrot.slane %v2986_v40, 5  ;;  %v15543_v37 = vrot.slane %v2992_v25, 5  ;;  %v2998_v20 = vrot.slane %v2996_v43, 4  ;;  %v2952_v19 = vrot.slane %v2951_v46, 4 }
 0x186   : > { %12902 = vmatprep.mubr.bf16.mxu0 %v11552_v63  ;;  %v2941_v63 = vor.u32 %v2940_v33, %v2937_v42  ;;  %v3007_v29 = vshrl.u32 %v2790_v13, 16  ;;  %v3010_v28 = vshll.u32 %v2790_v13, 16  ;;  %v3016_v42 = vshll.u32 %v15529_v4, 16  ;;  %v14153_v33 = vld [vmem:[%s18104_s1 + $0x150] sm:$0xff]  }
 0x187   : > { %v3020_v58 = vshrl.u32 %v15529_v4, 16  ;;  %v2966_v54 = vrot.slane %v2965_v51, 4  ;;  %v2980_v31 = vrot.slane %v2978_v32, 5  ;;  %v3031_v62 = vshrl.u32 %v2793_v12, 16 }
 0x188   : > { %v2942_v9 = vrot.slane %v2941_v63, 4  ;;  %v3009_v44 = vrot.slane %v3007_v29, 4  ;;  %v3012_v21 = vrot.slane %v3010_v28, 5  ;;  %v3040_v13 = vshll.u32 %v15314_v50, 16  ;;  %v2796_v28 = vld [vmem:[#allocation2 + $0x84] sm:$0xf] }
 0x189   : > { %v3044_v39 = vshrl.u32 %v15314_v50, 16  ;;  %v2976_v40 = vrot.slane %v2975_v18, 4  ;;  %v2989_v25 = vor.u32 %v2988_v5, %v2985_v11  ;;  %v11555_v43 = vcombine.low %v2899_v0, %v2909_v27  ;;  %v15569_v0 = vld [vmem:[#allocation2 + $0x74] sm:$0x1]  ;;  %v15573_v18 = vld [vmem:[#allocation2 + $0x88] sm:$0xf] }
 0x18a   : > { %v11556_v63 = vcombine.low %v2923_v38, %v2933_v55  ;;  %v15555_v46 = vrot.slane %v3016_v42, 5  ;;  %v3022_v51 = vrot.slane %v3020_v58, 4  ;;  %v2947_v32 = vsel %vm14586_vm6, %v2942_v9, %v15510_v7 }
 0x18b   : > { %v2957_v50 = vsel %vm14586_vm6, %v2952_v19, %v15540_v24  ;;  %v2971_v29 = vsel %vm14586_vm6, %v2966_v54, %v15515_v15  ;;  %v3013_v27 = vor.u32 %v3012_v21, %v3009_v44  ;;  %v15571_v7 = vrot.slane %v3040_v13, 5 }
 0x18c   : > { %v3046_v55 = vrot.slane %v3044_v39, 4  ;;  %v2981_v24 = vsel %vm14586_vm6, %v2976_v40, %v2980_v31  ;;  %v2990_v15 = vrot.slane %v2989_v25, 4  ;;  %v3055_v9 = vshrl.u32 %v2796_v28, 16 }
 0x18d   : > { %12903 = vmatmul.mubr.bf16.vlgmr.msra.gmra.mrb[0].mxu0 %v11553_v23  ;;  %v3034_v23 = vshll.u32 %v2793_v12, 16  ;;  %v3026_v12 = vshll.u32 %v15569_v0, 16  ;;  %v3058_v19 = vshll.u32 %v2796_v28, 16  ;;  %v3064_v42 = vshll.u32 %v15573_v18, 16 }
 0x18e   : > { %12935 = vmatpush3.bf16.msra.mxu0 %v15325_v30  ;;  %12906 = vmatprep.mubr.bf16.mxu0 %v11554_v45  ;;  %v2999_v30 = vor.u32 %v2998_v20, %v15543_v37  ;;  %v3002_v45 = vshll.u32 %v15288_v3, 16  ;;  %v14154_v3 = vld [vmem:[%s18104_s1 + $0x158] sm:$0xff]   ;;  %v3023_v20 = vor.u32 %v3022_v51, %v15555_v46  ;;  %v3068_v58 = vshrl.u32 %v15573_v18, 16 }
 0x18f   : > { %12936 = vmatprep.subr.bf16.mxu0 %v14152_v22  ;;  %v3036_v38 = vrot.slane %v3034_v23, 5  ;;  %v3014_v54 = vrot.slane %v3013_v27, 4  ;;  %v3047_v31 = vor.u32 %v3046_v55, %v15571_v7  ;;  %v3050_v21 = vshll.u32 %v15316_v41, 16  ;;  %v2799_v23 = vld [vmem:[#allocation2 + $0x90] sm:$0xf] }
 0x190   : > { %v3000_v11 = vrot.slane %v2999_v30, 4  ;;  %v3004_v5 = vrot.slane %v3002_v45, 5  ;;  %v11557_v13 = vcombine.low %v2947_v32, %v2957_v50  ;;  %v11558_v39 = vcombine.low %v2971_v29, %v2981_v24  ;;  %v15591_v41 = vld [vmem:[#allocation2 + $0x8c] sm:$0x1] }
 0x191   : > { %v3024_v25 = vrot.slane %v3023_v20, 4  ;;  %v3028_v30 = vrot.slane %v3026_v12, 5  ;;  %v3057_v45 = vrot.slane %v3055_v9, 4  ;;  %v15593_v51 = vrot.slane %v3064_v42, 5 }
 0x192   : > { %12937 = vmatpush3.bf16.msra.mxu0 %v14152_v22  ;;  %v3033_v22 = vrot.slane %v3031_v62, 4  ;;  %v14155_v62 = vld [vmem:[%s18104_s1 + $0x160] sm:$0xff]   ;;  %v3005_v40 = vsel %vm14586_vm6, %v3000_v11, %v3004_v5  ;;  %v3070_v27 = vrot.slane %v3068_v58, 4  ;;  %v3079_v32 = vshrl.u32 %v2799_v23, 16 }
 0x193   : > { %12938 = vmatprep.subr.bf16.mxu0 %v14153_v33  ;;  %v3082_v50 = vshll.u32 %v2799_v23, 16  ;;  %v3048_v28 = vrot.slane %v3047_v31, 4  ;;  %v3092_v55 = vshrl.u32 %v15357_v34, 16  ;;  %v3029_v11 = vsel %vm14586_vm6, %v3024_v25, %v3028_v30 }
 0x194   : > { %v3037_v44 = vor.u32 %v3036_v38, %v3033_v22  ;;  %v3052_v22 = vrot.slane %v3050_v21, 5  ;;  %v14156_v38 = vld [vmem:[%s18104_s1 + $0x168] sm:$0xff]   ;;  %v3112_v5 = vshll.u32 %v15397_v49, 16  ;;  %v3116_v20 = vshrl.u32 %v15397_v49, 16  ;;  %v14157_v49 = vld [vmem:[%s18104_s1 + $0x170] sm:$0xff]  }
 0x195   : > { %12907 = vmatmul.mubr.bf16.gmra.mrb[4].mxu0 %v11555_v43  ;;  %v3060_v43 = vrot.slane %v3058_v19, 5  ;;  %v3071_v9 = vor.u32 %v3070_v27, %v15593_v51  ;;  %v3081_v19 = vrot.slane %v3079_v32, 4  ;;  %v3084_v42 = vrot.slane %v3082_v50, 5 }
 0x196   : > { %12910 = vmatprep.mubr.bf16.mxu0 %v11556_v63  ;;  %12939 = vmatpush3.bf16.msra.mxu0 %v14153_v33  ;;  %v2995_v33 = vsel %vm14586_vm6, %v2990_v15, %v15543_v37  ;;  %v2802_v63 = vld [vmem:[#allocation2 + $0x9c] sm:$0xf]  ;;  %v3019_v37 = vsel %vm14586_vm6, %v3014_v54, %v15555_v46  ;;  %v3038_v29 = vrot.slane %v3037_v44, 4  ;;  %v3074_v46 = vshll.u32 %v15591_v41, 16 }
 0x197   : > { %12940 = vmatprep.subr.bf16.mxu0 %v14154_v3  ;;  %v3103_v24 = vshrl.u32 %v2802_v63, 16  ;;  %v3106_v15 = vshll.u32 %v2802_v63, 16  ;;  %v3061_v12 = vor.u32 %v3060_v43, %v3057_v45  ;;  %v3053_v54 = vsel %vm14586_vm6, %v3048_v28, %v3052_v22  ;;  %v14158_v63 = vld [vmem:[%s18104_s1 + $0x178] sm:$0xff]  }
 0x198   : > { %v3043_v58 = vsel %vm14586_vm6, %v3038_v29, %v15571_v7  ;;  %v3094_v31 = vrot.slane %v3092_v55, 4  ;;  %v11560_v23 = vcombine.low %v3019_v37, %v3029_v11  ;;  %v3072_v25 = vrot.slane %v3071_v9, 4  ;;  %v2808_v29 = vld [vmem:[#allocation2 + $0xb4] sm:$0xf] }
 0x199   : > { %v3105_v21 = vrot.slane %v3103_v24, 4  ;;  %v3062_v7 = vrot.slane %v3061_v12, 4  ;;  %v3085_v30 = vor.u32 %v3084_v42, %v3081_v19  ;;  %v3098_v45 = vshll.u32 %v15359_v61, 16 }
 0x19a   : > { %12941 = vmatpush3.bf16.msra.mxu0 %v14154_v3  ;;  %v3088_v3 = vshll.u32 %v15357_v34, 16  ;;  %v11559_v34 = vcombine.low %v2995_v33, %v3005_v40  ;;  %v3118_v33 = vrot.slane %v3116_v20, 4  ;;  %v2805_v40 = vld [vmem:[#allocation2 + $0xa8] sm:$0xf]  ;;  %v11561_v43 = vcombine.low %v3043_v58, %v3053_v54 }
 0x19b   : > { %12942 = vmatprep.subr.bf16.mxu0 %v14155_v62  ;;  %v3122_v50 = vshll.u32 %v15399_v57, 16  ;;  %v3127_v37 = vshrl.u32 %v2805_v40, 16  ;;  %v3130_v22 = vshll.u32 %v2805_v40, 16  ;;  %v3136_v61 = vshll.u32 %v15401_v8, 16 }
 0x19c   : > { %v15617_v44 = vrot.slane %v3088_v3, 5  ;;  %v3067_v3 = vsel %vm14586_vm6, %v3062_v7, %v15593_v51  ;;  %v3086_v24 = vrot.slane %v3085_v30, 4  ;;  %v3100_v57 = vrot.slane %v3098_v45, 5 }
 0x19d   : > { %12911 = vmatmul.mubr.bf16.gmra.mrb[8].mxu0 %v11557_v13  ;;  %v3076_v13 = vrot.slane %v3074_v46, 5  ;;  %v3154_v11 = vshll.u32 %v2808_v29, 16  ;;  %v3160_v46 = vshll.u32 %v15458_v35, 16  ;;  %v3124_v12 = vrot.slane %v3122_v50, 5 }
 0x19e   : > { %12914 = vmatprep.mubr.bf16.mxu0 %v11558_v39  ;;  %12943 = vmatpush3.bf16.msra.mxu0 %v14155_v62  ;;  %v3108_v62 = vrot.slane %v3106_v15, 5  ;;  %v15619_v39 = vrot.slane %v3112_v5, 5  ;;  %v3095_v27 = vor.u32 %v3094_v31, %v15617_v44  ;;  %v3151_v15 = vshrl.u32 %v2808_v29, 16 }
 0x19f   : > { %12944 = vmatprep.subr.bf16.mxu0 %v14156_v38  ;;  %v3077_v55 = vsel %vm14586_vm6, %v3072_v25, %v3076_v13  ;;  %v3164_v5 = vshrl.u32 %v15458_v35, 16  ;;  %v3129_v9 = vrot.slane %v3127_v37, 4  ;;  %v3132_v42 = vrot.slane %v3130_v22, 5 }
 0x1a0   : > { %v3109_v32 = vor.u32 %v3108_v62, %v3105_v21  ;;  %v3119_v28 = vor.u32 %v3118_v33, %v15619_v39  ;;  %v3096_v20 = vrot.slane %v3095_v27, 4  ;;  %v11562_v54 = vcombine.low %v3067_v3, %v3077_v55  ;;  %v2811_v62 = vld [vmem:[#allocation2 + $0xc0] sm:$0xf] }
 0x1a1   : > { %v3156_v31 = vrot.slane %v3154_v11, 5  ;;  %v3162_v21 = vrot.slane %v3160_v46, 5  ;;  %v3166_v35 = vrot.slane %v3164_v5, 4  ;;  %v3146_v33 = vshll.u32 %v15408_v53, 16 }
 0x1a2   : > { %12945 = vmatpush3.bf16.msra.mxu0 %v14156_v38  ;;  %v3140_v38 = vshrl.u32 %v15401_v8, 16  ;;  %v15640_v8 = vld [vmem:[%s18104_s1 + $0x180] sm:$0xff]   ;;  %v3110_v51 = vrot.slane %v3109_v32, 4  ;;  %v3120_v19 = vrot.slane %v3119_v28, 4  ;;  %v3101_v13 = vsel %vm14586_vm6, %v3096_v20, %v3100_v57 }
 0x1a3   : > { %12946 = vmatprep.subr.bf16.mxu0 %v14157_v49  ;;  %v3133_v25 = vor.u32 %v3132_v42, %v3129_v9  ;;  %v3175_v45 = vshrl.u32 %v2811_v62, 16  ;;  %v3188_v27 = vshrl.u32 %v15462_v10, 16  ;;  %v3167_v50 = vor.u32 %v3166_v35, %v3162_v21 }
 0x1a4   : > { %v3142_v58 = vrot.slane %v3140_v38, 4  ;;  %v3115_v40 = vsel %vm14586_vm6, %v3110_v51, %v15619_v39  ;;  %v3125_v7 = vsel %vm14586_vm6, %v3120_v19, %v3124_v12  ;;  %v3170_v53 = vshll.u32 %v15460_v2, 16  ;;  %v3520_v12 = vld [vmem:[#allocation2 + $0xc] sm:$0xe] }
 0x1a5   : > { %12915 = vmatmul.mubr.bf16.gmra.mrb[12].mxu0 %v11559_v34  ;;  %v3138_v34 = vrot.slane %v3136_v61, 5  ;;  %v11564_v37 = vcombine.low %v3115_v40, %v3125_v7  ;;  %v3134_v29 = vrot.slane %v3133_v25, 4  ;;  %v3148_v28 = vrot.slane %v3146_v33, 5 }
 0x1a6   : > { %12918 = vmatprep.mubr.bf16.mxu0 %v11560_v23  ;;  %12947 = vmatpush3.bf16.msra.mxu0 %v14157_v49  ;;  %v3153_v49 = vrot.slane %v3151_v15, 4  ;;  %v3091_v23 = vsel %vm14586_vm6, %v3086_v24, %v15617_v44  ;;  %v3184_v44 = vshll.u32 %v15462_v10, 16  ;;  %v3177_v22 = vrot.slane %v3175_v45, 4 }
 0x1a7   : > { %12948 = vmatprep.subr.bf16.mxu0 %v14158_v63  ;;  %v3143_v30 = vor.u32 %v3142_v58, %v3138_v34  ;;  %v3190_v3 = vrot.slane %v3188_v27, 4  ;;  %v3168_v24 = vrot.slane %v3167_v50, 4  ;;  %v3172_v57 = vrot.slane %v3170_v53, 5  ;;  %v3523_v50 = vld [vmem:[#allocation2 + $0x30] sm:$0xe] }
 0x1a8   : > { %v3157_v32 = vor.u32 %v3156_v31, %v3153_v49  ;;  %v3186_v38 = vrot.slane %v3184_v44, 5  ;;  %v3139_v10 = vsel %vm14586_vm6, %v3134_v29, %v3138_v34  ;;  %v3194_v46 = vshll.u32 %v15466_v52, 16 }
 0x1a9   : > { %v3144_v39 = vrot.slane %v3143_v30, 4  ;;  %v3173_v20 = vsel %vm14586_vm6, %v3168_v24, %v3172_v57  ;;  %v3586_v51 = vrot.slane %v15255_v36, 5  ;;  %v3589_v31 = vrot.slane %v15293_v60, 5  ;;  %v3522_v60 = vld [vmem:[#allocation2 + $0x24] sm:$0xe]  ;;  %v14161_v57 = vld [vmem:[%s18104_s1 + $0x190] sm:$0xff]  }
 0x1aa   : > { %12949 = vmatpush3.bf16.msra.mxu0 %v14158_v63  ;;  %v3178_v63 = vshll.u32 %v2811_v62, 16  ;;  %v3158_v55 = vrot.slane %v3157_v32, 4  ;;  %v3191_v11 = vor.u32 %v3190_v3, %v3186_v38  ;;  %v3196_v58 = vrot.slane %v3194_v46, 5 }
 0x1ab   : > { %12982 = vmatprep.subr.bf16.mxu0 %v15640_v8  ;;  %v3149_v2 = vsel %vm14586_vm6, %v3144_v39, %v3148_v28  ;;  %v3588_v49 = vrot.slane %v3586_v51, 4  ;;  %v3593_v36 = vrot.slane %v15275_v6, 5  ;;  %v3596_v30 = vrot.slane %v15311_v47, 5 }
 0x1ac   : > { %v3180_v61 = vrot.slane %v3178_v63, 5  ;;  %v3163_v5 = vsel %vm14586_vm6, %v3158_v55, %v3162_v21  ;;  %v11565_v9 = vcombine.low %v3139_v10, %v3149_v2  ;;  %v3192_v34 = vrot.slane %v3191_v11, 4  ;;  %v18247_v10 = vld [vmem:[#allocation20_spill] sm:$0xff] }
 0x1ad   : > { %12919 = vmatmul.mubr.bf16.gmra.mrb[16].mxu0 %v11561_v43  ;;  %v11563_v43 = vcombine.low %v3091_v23, %v3101_v13  ;;  %v11566_v19 = vcombine.low %v3163_v5, %v3173_v20  ;;  %v3590_v62 = vsel %vm14992_vm13, %v3588_v49, %v3589_v31  ;;  %v3521_v23 = vld [vmem:[#allocation2 + $0x18] sm:$0xe]  ;;  %v3600_v13 = vrot.slane %v15329_v14, 5  ;;  %v3526_v2 = vld [vmem:[#allocation2 + $0x54] sm:$0xe]  ;;  %v14164_v31 = vld [vmem:[%s18104_s1 + $0x1a8] sm:$0xff]  }
 0x1ae   : > { %12922 = vmatprep.mubr.bf16.mxu0 %v11562_v54  ;;  %v3181_v15 = vor.u32 %v3180_v61, %v3177_v22  ;;  %v11576_v54 = vrot.slane %v3520_v12, 9  ;;  %v3197_v21 = vsel %vm14586_vm6, %v3192_v34, %v3196_v58  ;;  %v11577_v7 = vrot.slane %v3521_v23, 9  ;;  %v3530_v23 = vld [vmem:[#allocation2 + $0x84] sm:$0xe] }
 0x1af   : > { %v3595_v25 = vrot.slane %v3593_v36, 4  ;;  %v11578_v45 = vrot.slane %v3522_v60, 9  ;;  %v3602_v63 = vrot.slane %v3600_v13, 4  ;;  %v3603_v6 = vrot.slane %v15349_v48, 5  ;;  %v3524_v48 = vld [vmem:[#allocation2 + $0x3c] sm:$0xe] }
 0x1b0   : > { %v3182_v42 = vrot.slane %v3181_v15, 4  ;;  %v3587_v35 = vsel %vm14992_vm13, %v11576_v54, %v3586_v51  ;;  %v3594_v44 = vsel %vm14992_vm13, %v11577_v7, %v3593_v36  ;;  %v3607_v14 = vrot.slane %v15352_v17, 5  ;;  %v14160_v17 = vld [vmem:[%s18104_s1 + $0x188] sm:$0xff]   ;;  %v14162_v51 = vld [vmem:[%s18104_s1 + $0x198] sm:$0xff]  }
 0x1b1   : > { %v11608_v40 = vcombine.low %v3587_v35, %v3590_v62  ;;  %v3597_v27 = vsel %vm14992_vm13, %v3595_v25, %v3596_v30  ;;  %v3601_v32 = vsel %vm14992_vm13, %v11578_v45, %v3600_v13  ;;  %v3604_v47 = vsel %vm14992_vm13, %v3602_v63, %v3603_v6  ;;  %v14166_v7 = vld [vmem:[%s18104_s1 + $0x1b8] sm:$0xff]   ;;  %v18252_v30 = vld [vmem:[#allocation10_spill] sm:$0xff] }
 0x1b2   : > { %v3187_v52 = vsel %vm14586_vm6, %v3182_v42, %v3186_v38  ;;  %v3614_v53 = vrot.slane %v15389_v56, 5  ;;  %v11579_v29 = vrot.slane %v3523_v50, 9  ;;  %v3609_v39 = vrot.slane %v3607_v14, 4  ;;  %v18246_v38 = vld [vmem:[#allocation19_spill] sm:$0xff]  ;;  %v18251_v25 = vld [vmem:[#allocation9_spill] sm:$0xff] }
 0x1b3   : > { %v11567_v33 = vcombine.low %v3187_v52, %v3197_v21  ;;  %v3610_v28 = vrot.slane %v15370_v59, 5  ;;  %v11580_v22 = vrot.slane %v3524_v48, 9  ;;  %v3617_v3 = vrot.slane %v18246_v38, 5  ;;  %v3528_v42 = vld [vmem:[#allocation2 + $0x6c] sm:$0xe]  ;;  %v18249_v21 = vld [vmem:[#allocation8_spill] sm:$0xff] }
 0x1b4   : > { %v3616_v61 = vrot.slane %v3614_v53, 4  ;;  %v3608_v56 = vsel %vm14992_vm13, %v11579_v29, %v3607_v14  ;;  %v11582_v46 = vrot.slane %v3526_v2, 9  ;;  %v3631_v20 = vrot.slane %v15513_v16, 5  ;;  %v14163_v16 = vld [vmem:[%s18104_s1 + $0x1a0] sm:$0xff]   ;;  %v18248_v52 = vld [vmem:[#allocation7_spill] sm:$0xff]  ;;  %v18261_v48 = vld [vmem:[#allocation16_spill] sm:$0xff] }
 0x1b5   : > { %12923 = vmatmul.mubr.bf16.gmra.mrb[20].mxu0 %v11563_v43  ;;  %v11609_v43 = vcombine.low %v3594_v44, %v3597_v27  ;;  %v3611_v55 = vsel %vm14992_vm13, %v3609_v39, %v3610_v28  ;;  %v3615_v59 = vsel %vm14992_vm13, %v11580_v22, %v3614_v53  ;;  %v11584_v58 = vrot.slane %v3528_v42, 9  ;;  %v18254_v44 = vld [vmem:[#allocation11_spill] sm:$0xff]  ;;  %v18255_v27 = vld [vmem:[#allocation12_spill] sm:$0xff]  ;;  %v18264_v29 = vld [vmem:[#allocation18_spill] sm:$0xff] }
 0x1b6   : > { %12926 = vmatprep.mubr.bf16.mxu0 %v11564_v37  ;;  %v11610_v37 = vcombine.low %v3601_v32, %v3604_v47  ;;  %v3618_v24 = vsel %vm14992_vm13, %v3616_v61, %v3617_v3  ;;  %v11611_v15 = vcombine.low %v3608_v56, %v3611_v55  ;;  %v3645_v49 = vrot.slane %v15569_v0, 5  ;;  %v14165_v0 = vld [vmem:[%s18104_s1 + $0x1b0] sm:$0xff]   ;;  %v18257_v32 = vld [vmem:[#allocation13_spill] sm:$0xff]  ;;  %v18258_v47 = vld [vmem:[#allocation14_spill] sm:$0xff] }
 0x1b7   : > { %v11612_v11 = vcombine.low %v3615_v59, %v3618_v24  ;;  %v18250_v36 = vcombine.low %v18248_v52, %v18249_v21  ;;  %v3656_v62 = vrot.slane %v15573_v18, 5  ;;  %v11586_v60 = vrot.slane %v3530_v23, 9  ;;  %v18260_v53 = vld [vmem:[#allocation15_spill] sm:$0xff]  ;;  %v18266_v28 = vld [vmem:[#allocation21_spill] sm:$0xff]  ;;  %v18270_v3 = vld [vmem:[#allocation24_spill] sm:$0xff] }
 0x1b8   : > { %v18253_v18 = vcombine.low %v18251_v25, %v18252_v30  ;;  %v18256_v14 = vcombine.low %v18254_v44, %v18255_v27  ;;  %v18259_v50 = vcombine.low %v18257_v32, %v18258_v47  ;;  %v14167_v61 = vld [vmem:[#allocation2 + $0x18] sm:$0xff]   ;;  %v18269_v38 = vld [vmem:[#allocation23_spill] sm:$0xff]  ;;  %v14170_v59 = vld [vmem:[#allocation2 + $0x30] sm:$0xff]  }
 0x1b9   : > { %v3657_v45 = vsel %vm14992_vm13, %v11586_v60, %v3656_v62  ;;  %v18271_v56 = vcombine.low %v18269_v38, %v18270_v3  ;;  %v14168_v55 = vld [vmem:[#allocation2 + $0x24] sm:$0xff]   ;;  %v14178_v2 = vld [vmem:[%s18104_s1 + $0x1d8] sm:$0xff]   ;;  %v15806_v60 = vld [vmem:[#allocation2 + $0x74] sm:$0x1] }
 0x1ba   : > { %v14172_v24 = vld [vmem:[%s18104_s1 + $0x1c8] sm:$0xff]   ;;  %v15785_v42 = vld [vmem:[#allocation2 + $0x1c] sm:$0xf]  ;;  %v5277_v30 = vrot.slane %v15806_v60, 5  ;;  %v15817_v32 = vld [vmem:[#allocation2 + $0x20] sm:$0x1] }
 0x1bb   : > { %v15798_v21 = vld [vmem:[#allocation2 + $0x28] sm:$0xf]  ;;  %v4473_v3 = vshll.u32 %v15817_v32, 16 }
 0x1bd   : > { %12927 = vmatmul.mubr.bf16.gmra.mrb[24].mxu0 %v11565_v9 }
 0x1be   : > { %12930 = vmatprep.mubr.bf16.mxu0 %v11566_v19  ;;  %v3642_v19 = vrot.slane %v15529_v4, 5 }
 0x1c0   : > { %v3644_v54 = vrot.slane %v3642_v19, 4  ;;  %v3643_v4 = vsel %vm14992_vm13, %v11584_v58, %v3642_v19  ;;  %v14176_v58 = vld [vmem:[#allocation2 + $0x60] sm:$0xff]  }
 0x1c2   : > { %v3646_v35 = vsel %vm14992_vm13, %v3644_v54, %v3645_v49  ;;  %v4408_v54 = vld [vmem:[#allocation2 + $0x24] sm:$0xf] }
 0x1c3   : > { %v11616_v13 = vcombine.low %v3643_v4, %v3646_v35  ;;  %v4463_v35 = vshll.u32 %v15785_v42, 16  ;;  %v4481_v23 = vshll.u32 %v4408_v54, 16 }
 0x1c5   : > { %12931 = vmatmul.mubr.bf16.gmra.mrb[28].mxu0 %v11567_v33  ;;  %v3658_v33 = vrot.slane %v3656_v62, 4  ;;  %v4467_v62 = vshrl.u32 %v15785_v42, 16 }
 0x1c6   : > { %12950 = vmatprep.mubr.bf16.mxu0 %v11608_v40  ;;  %v3659_v40 = vrot.slane %v15591_v41, 5  ;;  %v14169_v41 = vld [vmem:[%s18104_s1 + $0x1c0] sm:$0xff]  }
 0x1c7   : > { %v4469_v44 = vrot.slane %v4467_v62, 4  ;;  %v14182_v62 = vld [vmem:[#allocation2 + $0x90] sm:$0xff]  }
 0x1c8   : > { %v3660_v63 = vsel %vm14992_vm13, %v3658_v33, %v3659_v40  ;;  %v4487_v33 = vshll.u32 %v15798_v21, 16  ;;  %v4491_v40 = vshrl.u32 %v15798_v21, 16 }
 0x1c9   : > { %v11618_v6 = vcombine.low %v3657_v45, %v3660_v63 }
 0x1cd   : > { %12951 = vmatmul.mubr.bf16.vlgmr.msra.gmra.mrb[0].mxu0 %v11609_v43  ;;  %v18262_v43 = vcombine.low %v18260_v53, %v18261_v48  ;;  %v14179_v48 = vld [vmem:[#allocation2 + $0x78] sm:$0xff]  }
 0x1ce   : > { %12983 = vmatpush3.bf16.msra.mxu0 %v15640_v8  ;;  %12954 = vmatprep.mubr.bf16.mxu0 %v11610_v37  ;;  %v3628_v8 = vrot.slane %v18247_v10, 5  ;;  %v18263_v37 = vld [vmem:[#allocation17_spill] sm:$0xff] }
 0x1cf   : > { %12984 = vmatprep.subr.bf16.mxu0 %v14160_v17  ;;  %v18265_v39 = vcombine.low %v18263_v37, %v18264_v29  ;;  %v14171_v10 = vld [vmem:[#allocation2 + $0x3c] sm:$0xff]   ;;  %v15825_v37 = vrot.slane %v4487_v33, 5  ;;  %v4493_v29 = vrot.slane %v4491_v40, 4 }
 0x1d0   : > { %v3630_v5 = vrot.slane %v3628_v8, 4  ;;  %v3629_v12 = vsel %vm14992_vm13, %v11582_v46, %v3628_v8  ;;  %v14173_v8 = vld [vmem:[#allocation2 + $0x48] sm:$0xff]   ;;  %v5164_v46 = vld [vmem:[#allocation2 + $0x54] sm:$0xe] }
 0x1d2   : > { %12985 = vmatpush3.bf16.msra.mxu0 %v14160_v17  ;;  %v3632_v9 = vsel %vm14992_vm13, %v3630_v5, %v3631_v20  ;;  %v18267_v17 = vld [vmem:[#allocation22_spill] sm:$0xff] }
 0x1d3   : > { %12986 = vmatprep.subr.bf16.mxu0 %v14161_v57  ;;  %v11614_v34 = vcombine.low %v3629_v12, %v3632_v9  ;;  %v18268_v22 = vcombine.low %v18266_v28, %v18267_v17  ;;  %v11717_v12 = vrot.slane %v5164_v46, 9  ;;  %v4405_v9 = vld [vmem:[#allocation2 + $0x18] sm:$0xf]  ;;  %v4411_v17 = vld [vmem:[#allocation2 + $0x30] sm:$0xf] }
 0x1d4   : > { %v4454_v52 = vshrl.u32 %v4405_v9, 16  ;;  %v4457_v4 = vshll.u32 %v4405_v9, 16  ;;  %v14190_v28 = vld [vmem:[%s18104_s1 + $0x1f8] sm:$0xff]  }
 0x1d5   : > { %12955 = vmatmul.mubr.bf16.gmra.mrb[4].mxu0 %v11611_v15  ;;  %v15776_v15 = vld [vmem:[#allocation2 + $0x58] sm:$0xf] }
 0x1d6   : > { %12958 = vmatprep.mubr.bf16.mxu0 %v11612_v11  ;;  %12987 = vmatpush3.bf16.msra.mxu0 %v14161_v57  ;;  %v14175_v57 = vld [vmem:[%s18104_s1 + $0x1d0] sm:$0xff]   ;;  %v15778_v11 = vld [vmem:[#allocation2 + $0x5c] sm:$0x1]  ;;  %v5260_v5 = vrot.slane %v15776_v15, 5  ;;  %v4456_v45 = vrot.slane %v4454_v52, 4 }
 0x1d7   : > { %12988 = vmatprep.subr.bf16.mxu0 %v14162_v51  ;;  %v5263_v20 = vrot.slane %v15778_v11, 5 }
 0x1d8   : > { %v5262_v19 = vrot.slane %v5260_v5, 4 }
 0x1da   : > { %12989 = vmatpush3.bf16.msra.mxu0 %v14162_v51  ;;  %v14181_v51 = vld [vmem:[%s18104_s1 + $0x1e0] sm:$0xff]   ;;  %v15793_v49 = vsel %vm14992_vm13, %v5262_v19, %v5263_v20  ;;  %v15851_v20 = vld [vmem:[#allocation2 + $0x34] sm:$0xf]  ;;  %v15857_v19 = vrot.slane %v4473_v3, 5 }
 0x1db   : > { %12990 = vmatprep.subr.bf16.mxu0 %v14163_v16  ;;  %18273 = vst [vmem:[#allocation20_spill] sm:$0xff] %v15793_v49  ;;  %v4511_v33 = vshll.u32 %v15851_v20, 16  ;;  %v4420_v49 = vld [vmem:[#allocation2 + $0x54] sm:$0xf] }
 0x1dd   : > { %12959 = vmatmul.mubr.bf16.gmra.mrb[8].mxu0 %v18250_v36  ;;  %v5172_v36 = vld [vmem:[#allocation2 + $0xb4] sm:$0xe] }
 0x1de   : > { %12962 = vmatprep.mubr.bf16.mxu0 %v11614_v34  ;;  %12991 = vmatpush3.bf16.msra.mxu0 %v14163_v16  ;;  %v14174_v16 = vld [vmem:[#allocation2 + $0x54] sm:$0xff]   ;;  %v15789_v34 = vsel %vm14992_vm13, %v11717_v12, %v5260_v5  ;;  %v15849_v5 = vld [vmem:[%s18104_s1 + $0x200] sm:$0xff]  }
 0x1df   : > { %12992 = vmatprep.subr.bf16.mxu0 %v14164_v31  ;;  %18272 = vst [vmem:[#allocation19_spill] sm:$0xff] %v15789_v34  ;;  %v14189_v34 = vld [vmem:[#allocation2 + $0xcc] sm:$0xff]  }
 0x1e2   : > { %12993 = vmatpush3.bf16.msra.mxu0 %v14164_v31  ;;  %v14184_v31 = vld [vmem:[%s18104_s1 + $0x1e8] sm:$0xff]  }
 0x1e3   : > { %12994 = vmatprep.subr.bf16.mxu0 %v14165_v0 }
 0x1e5   : > { %12963 = vmatmul.mubr.bf16.gmra.mrb[12].mxu0 %v18253_v18  ;;  %v14187_v18 = vld [vmem:[%s18104_s1 + $0x1f0] sm:$0xff]  }
 0x1e6   : > { %12966 = vmatprep.mubr.bf16.mxu0 %v11616_v13  ;;  %12995 = vmatpush3.bf16.msra.mxu0 %v14165_v0  ;;  %v4478_v0 = vshrl.u32 %v4408_v54, 16  ;;  %v15804_v13 = vld [vmem:[#allocation2 + $0x70] sm:$0xf]  ;;  %v14180_v54 = vld [vmem:[#allocation2 + $0x84] sm:$0xff]  }
 0x1e7   : > { %12996 = vmatprep.subr.bf16.mxu0 %v14166_v7  ;;  %v5274_v25 = vrot.slane %v15804_v13, 5 }
 0x1e8   : > { %v4480_v47 = vrot.slane %v4478_v0, 4 }
 0x1e9   : > { %v5276_v27 = vrot.slane %v5274_v25, 4 }
 0x1ea   : > { %12997 = vmatpush3.bf16.msra.mxu0 %v14166_v7  ;;  %v5166_v7 = vld [vmem:[#allocation2 + $0x6c] sm:$0xe] }
 0x1eb   : > { %13030 = vmatprep.subr.bf16.mxu0 %v14169_v41  ;;  %v11719_v63 = vrot.slane %v5166_v7, 9  ;;  %v4515_v7 = vshrl.u32 %v15851_v20, 16 }
 0x1ed   : > { %12967 = vmatmul.mubr.bf16.gmra.mrb[16].mxu0 %v18256_v14  ;;  %v14177_v14 = vld [vmem:[#allocation2 + $0x6c] sm:$0xff]   ;;  %v15821_v53 = vsel %vm14992_vm13, %v11719_v63, %v5274_v25  ;;  %v15878_v25 = vld [vmem:[#allocation2 + $0x40] sm:$0xf]  ;;  %v15882_v63 = vld [vmem:[#allocation2 + $0x38] sm:$0x1] }
 0x1ee   : > { %12970 = vmatprep.mubr.bf16.mxu0 %v11618_v6  ;;  %v15815_v6 = vrot.slane %v4463_v35, 5  ;;  %18274 = vst [vmem:[#allocation7_spill] sm:$0xff] %v15821_v53 }
 0x1f0   : > { %v4470_v38 = vor.u32 %v4469_v44, %v15815_v6  ;;  %v15886_v44 = vld [vmem:[#allocation2 + $0x98] sm:$0x1] }
 0x1f2   : > { %v15855_v9 = vrot.slane %v4470_v38, 4 }
 0x1f5   : > { %12971 = vmatmul.mubr.bf16.gmra.mrb[20].mxu0 %v18259_v50  ;;  %v4483_v50 = vrot.slane %v4481_v23, 5 }
 0x1f6   : > { %12974 = vmatprep.mubr.bf16.mxu0 %v18262_v43  ;;  %v15823_v43 = vld [vmem:[#allocation2 + $0x2c] sm:$0x1] }
 0x1fd   : > { %12975 = vmatmul.mubr.bf16.gmra.mrb[24].mxu0 %v18265_v39  ;;  %v15829_v39 = vsel %vm14992_vm13, %v5276_v27, %v5277_v30  ;;  %v15888_v27 = vld [vmem:[#allocation2 + $0xa0] sm:$0xf] }
 0x1fe   : > { %12978 = vmatprep.mubr.bf16.mxu0 %v18268_v22  ;;  %18275 = vst [vmem:[#allocation8_spill] sm:$0xff] %v15829_v39  ;;  %v5171_v22 = vld [vmem:[#allocation2 + $0xa8] sm:$0xe] }
 0x205   : > { %12979 = vmatmul.mubr.bf16.gmra.mrb[28].mxu0 %v18271_v56  ;;  %v4484_v56 = vor.u32 %v4483_v50, %v4480_v47  ;;  %v5169_v47 = vld [vmem:[#allocation2 + $0x90] sm:$0xe] }
 0x206   : > { %12998 = vmatprep.mubr.bf16.mxu0 %v14167_v61 }
 0x20d   : > { %12999 = vmatmul.mubr.bf16.vlgmr.msra.gmra.mrb[0].mxu0 %v14168_v55  ;;  %v4497_v55 = vshll.u32 %v15823_v43, 16 }
 0x20e   : > { %13031 = vmatpush3.bf16.msra.mxu0 %v14169_v41  ;;  %13002 = vmatprep.mubr.bf16.mxu0 %v14170_v59  ;;  %v4459_v41 = vrot.slane %v4457_v4, 5  ;;  %v15839_v59 = vld [vmem:[#allocation2 + $0x88] sm:$0xf]  ;;  %v4505_v4 = vshll.u32 %v4411_v17, 16 }
 0x20f   : > { %13032 = vmatprep.subr.bf16.mxu0 %v14172_v24  ;;  %v15861_v52 = vrot.slane %v4497_v55, 5 }
 0x210   : > { %v4460_v61 = vor.u32 %v4459_v41, %v4456_v45  ;;  %v15884_v41 = vld [vmem:[#allocation2 + $0x94] sm:$0xf]  ;;  %v4507_v3 = vrot.slane %v4505_v4, 5  ;;  %v15948_v45 = vld [vmem:[#allocation2 + $0xbc] sm:$0x1] }
 0x211   : > { %v5295_v50 = vrot.slane %v15884_v41, 5 }
 0x212   : > { %13033 = vmatpush3.bf16.msra.mxu0 %v14172_v24  ;;  %v15841_v24 = vld [vmem:[#allocation2 + $0x8c] sm:$0x1]  ;;  %v15853_v12 = vrot.slane %v4460_v61, 4  ;;  %v5302_v61 = vrot.slane %v15888_v27, 5 }
 0x213   : > { %13034 = vmatprep.subr.bf16.mxu0 %v14175_v57  ;;  %v5291_v46 = vrot.slane %v15841_v24, 5  ;;  %v5297_v55 = vrot.slane %v5295_v50, 4 }
 0x215   : > { %13003 = vmatmul.mubr.bf16.gmra.mrb[4].mxu0 %v14171_v10  ;;  %v4502_v10 = vshrl.u32 %v4411_v17, 16  ;;  %v5170_v17 = vld [vmem:[#allocation2 + $0x9c] sm:$0xe] }
 0x216   : > { %13006 = vmatprep.mubr.bf16.mxu0 %v14173_v8  ;;  %13035 = vmatpush3.bf16.msra.mxu0 %v14175_v57  ;;  %v4494_v57 = vor.u32 %v4493_v29, %v15825_v37  ;;  %v5168_v8 = vld [vmem:[#allocation2 + $0x84] sm:$0xe]  ;;  %v4535_v29 = vshll.u32 %v15878_v25, 16 }
 0x217   : > { %13036 = vmatprep.subr.bf16.mxu0 %v14178_v2  ;;  %v15869_v23 = vrot.slane %v4502_v10, 4  ;;  %v4517_v10 = vrot.slane %v4515_v7, 4 }
 0x218   : > { %v15867_v0 = vrot.slane %v4494_v57, 4  ;;  %v11723_v57 = vrot.slane %v5170_v17, 9  ;;  %v15928_v17 = vld [vmem:[#allocation2 + $0x4c] sm:$0xf] }
 0x219   : > { %18283 = vst [vmem:[#allocation16_spill] sm:$0xff] %v15928_v17 }
 0x21a   : > { %13037 = vmatpush3.bf16.msra.mxu0 %v14178_v2  ;;  %v5288_v2 = vrot.slane %v15839_v59, 5 }
 0x21b   : > { %13038 = vmatprep.subr.bf16.mxu0 %v14181_v51 }
 0x21d   : > { %13007 = vmatmul.mubr.bf16.gmra.mrb[8].mxu0 %v14174_v16  ;;  %v4414_v16 = vld [vmem:[#allocation2 + $0x3c] sm:$0xf] }
 0x21e   : > { %13010 = vmatprep.mubr.bf16.mxu0 %v14176_v58  ;;  %13039 = vmatpush3.bf16.msra.mxu0 %v14181_v51  ;;  %v11721_v51 = vrot.slane %v5168_v8, 9  ;;  %v5290_v58 = vrot.slane %v5288_v2, 4  ;;  %v4526_v30 = vshrl.u32 %v4414_v16, 16  ;;  %v15899_v8 = vld [vmem:[#allocation2 + $0x44] sm:$0x1] }
 0x21f   : > { %13040 = vmatprep.subr.bf16.mxu0 %v14184_v31  ;;  %18278 = vst [vmem:[#allocation11_spill] sm:$0xff] %v15899_v8 }
 0x220   : > { %v15865_v35 = vsel %vm14992_vm13, %v11721_v51, %v5288_v2  ;;  %v15874_v40 = vsel %vm14992_vm13, %v5290_v58, %v5291_v46  ;;  %v4417_v2 = vld [vmem:[#allocation2 + $0x48] sm:$0xf]  ;;  %v5304_v51 = vrot.slane %v5302_v61, 4  ;;  %v4521_v58 = vshll.u32 %v15882_v63, 16 }
 0x221   : > { %18276 = vst [vmem:[#allocation9_spill] sm:$0xff] %v15865_v35  ;;  %18277 = vst [vmem:[#allocation10_spill] sm:$0xff] %v15874_v40 }
 0x222   : > { %13041 = vmatpush3.bf16.msra.mxu0 %v14184_v31  ;;  %v15859_v31 = vrot.slane %v4484_v56, 4  ;;  %v15897_v56 = vrot.slane %v4511_v33, 5  ;;  %v14185_v33 = vld [vmem:[#allocation2 + $0xa8] sm:$0xff]  }
 0x223   : > { %13042 = vmatprep.subr.bf16.mxu0 %v14187_v18 }
 0x225   : > { %13011 = vmatmul.mubr.bf16.gmra.mrb[12].mxu0 %v14177_v14  ;;  %v15890_v14 = vld [vmem:[#allocation2 + $0xa4] sm:$0x1] }
 0x226   : > { %13014 = vmatprep.mubr.bf16.mxu0 %v14179_v48  ;;  %13043 = vmatpush3.bf16.msra.mxu0 %v14187_v18  ;;  %v4529_v18 = vshll.u32 %v4414_v16, 16  ;;  %v5298_v48 = vrot.slane %v15886_v44, 5  ;;  %v5305_v38 = vrot.slane %v15890_v14, 5  ;;  %v14183_v16 = vld [vmem:[#allocation2 + $0x9c] sm:$0xff]  }
 0x227   : > { %13044 = vmatprep.subr.bf16.mxu0 %v14190_v28 }
 0x228   : > { %v15910_v4 = vsel %vm14992_vm13, %v5297_v55, %v5298_v48  ;;  %v15916_v7 = vrot.slane %v4529_v18, 5  ;;  %v4545_v48 = vshll.u32 %v15899_v8, 16  ;;  %v4508_v55 = vor.u32 %v4507_v3, %v15869_v23 }
 0x229   : > { %18280 = vst [vmem:[#allocation13_spill] sm:$0xff] %v15910_v4  ;;  %v4518_v18 = vor.u32 %v4517_v10, %v15897_v56  ;;  %v4553_v23 = vshll.u32 %v4417_v2, 16  ;;  %v11724_v3 = vrot.slane %v5171_v22, 9  ;;  %v11725_v10 = vrot.slane %v5172_v36, 9 }
 0x22a   : > { %13045 = vmatpush3.bf16.msra.mxu0 %v14190_v28  ;;  %v11722_v28 = vrot.slane %v5169_v47, 9  ;;  %v15918_v47 = vrot.slane %v4535_v29, 5  ;;  %v4466_v29 = vsel %vm14586_vm6, %v15853_v12, %v15815_v6  ;;  %v15956_v4 = vrot.slane %v4508_v55, 4  ;;  %v14188_v55 = vld [vmem:[#allocation2 + $0xc0] sm:$0xff]  }
 0x22b   : > { %13078 = vmatprep.subr.bf16.mxu0 %v15849_v5  ;;  %v15964_v40 = vrot.slane %v4518_v18, 4  ;;  %v4583_v8 = vshll.u32 %v15776_v15, 16 }
 0x22c   : > { %v15903_v46 = vsel %vm14992_vm13, %v11722_v28, %v5295_v50  ;;  %v4539_v28 = vshrl.u32 %v15878_v25, 16  ;;  %v4476_v50 = vsel %vm14586_vm6, %v15855_v9, %v15857_v19  ;;  %v4563_v9 = vshrl.u32 %v15928_v17, 16 }
 0x22d   : > { %13015 = vmatmul.mubr.bf16.gmra.mrb[16].mxu0 %v14180_v54  ;;  %18279 = vst [vmem:[#allocation12_spill] sm:$0xff] %v15903_v46  ;;  %v15906_v54 = vrot.slane %v4526_v30, 4  ;;  %v15924_v30 = vsel %vm14992_vm13, %v5304_v51, %v5305_v38  ;;  %v15939_v38 = vld [vmem:[#allocation2 + $0xb0] sm:$0x1]  ;;  %v15941_v51 = vld [vmem:[#allocation2 + $0xb8] sm:$0xf] }
 0x22e   : > { %13018 = vmatprep.mubr.bf16.mxu0 %v14182_v62  ;;  %v15914_v62 = vsel %vm14992_vm13, %v11723_v57, %v5302_v61  ;;  %18282 = vst [vmem:[#allocation15_spill] sm:$0xff] %v15924_v30  ;;  %v4550_v61 = vshrl.u32 %v4417_v2, 16  ;;  %v15937_v57 = vld [vmem:[#allocation2 + $0xac] sm:$0xf]  ;;  %v5312_v12 = vrot.slane %v15939_v38, 5  ;;  %v5319_v30 = vrot.slane %v15948_v45, 5 }
 0x22f   : > { %18281 = vst [vmem:[#allocation14_spill] sm:$0xff] %v15914_v62  ;;  %v5309_v6 = vrot.slane %v15937_v57, 5  ;;  %v4559_v62 = vshll.u32 %v15928_v17, 16  ;;  %v15958_v46 = vrot.slane %v4521_v58, 5  ;;  %v14186_v2 = vld [vmem:[#allocation2 + $0xb4] sm:$0xff]   ;;  %v4541_v35 = vrot.slane %v4539_v28, 4 }
 0x230   : > { %v15974_v58 = vrot.slane %v4545_v48, 5  ;;  %v4552_v53 = vrot.slane %v4550_v61, 4  ;;  %v15982_v28 = vld [vmem:[#allocation2 + $0x50] sm:$0x1]  ;;  %v11688_v48 = vcombine.low %v4466_v29, %v4476_v50  ;;  %v4490_v61 = vsel %vm14586_vm6, %v15859_v31, %v15825_v37  ;;  %v16009_v50 = vld [vmem:[#allocation2 + $0xd4] sm:$0x1] }
 0x231   : > { %v5311_v19 = vrot.slane %v5309_v6, 4  ;;  %18288 = vst [vmem:[#allocation23_spill] sm:$0xff] %v15982_v28  ;;  %v4514_v37 = vsel %vm14586_vm6, %v15956_v4, %v15897_v56  ;;  %v4542_v31 = vor.u32 %v4541_v35, %v15918_v47  ;;  %v4569_v56 = vshll.u32 %v15982_v28, 16  ;;  %v4423_v4 = vld [vmem:[#allocation2 + $0x60] sm:$0xf] }
 0x232   : > { %v16053_v28 = vrot.slane %v4583_v8, 5  ;;  %v4635_v8 = vshrl.u32 %v15804_v13, 16 }
 0x233   : > { %v15968_v39 = vsel %vm14992_vm13, %v5311_v19, %v5312_v12  ;;  %v4555_v12 = vrot.slane %v4553_v23, 5  ;;  %v4565_v19 = vrot.slane %v4563_v9, 4  ;;  %v4532_v23 = vor.u32 %v15916_v7, %v15906_v54  ;;  %v16000_v9 = vld [vmem:[#allocation2 + $0xc8] sm:$0x1] }
 0x234   : > { %18285 = vst [vmem:[#allocation18_spill] sm:$0xff] %v15968_v39  ;;  %v5326_v54 = vrot.slane %v16000_v9, 5  ;;  %v4574_v7 = vshrl.u32 %v4420_v49, 16  ;;  %v4577_v39 = vshll.u32 %v4420_v49, 16  ;;  %v4598_v49 = vshrl.u32 %v4423_v4, 16 }
 0x235   : > { %13019 = vmatmul.mubr.bf16.gmra.mrb[20].mxu0 %v14183_v16  ;;  %v5316_v16 = vrot.slane %v15941_v51, 5 }
 0x236   : > { %13022 = vmatprep.mubr.bf16.mxu0 %v14185_v33  ;;  %v15962_v33 = vsel %vm14992_vm13, %v11724_v3, %v5309_v6  ;;  %v15984_v3 = vrot.slane %v4559_v62, 5  ;;  %v15998_v62 = vld [vmem:[#allocation2 + $0xc4] sm:$0xf]  ;;  %v4556_v6 = vor.u32 %v4555_v12, %v4552_v53  ;;  %v4587_v53 = vshrl.u32 %v15776_v15, 16 }
 0x237   : > { %18284 = vst [vmem:[#allocation17_spill] sm:$0xff] %v15962_v33  ;;  %v5318_v22 = vrot.slane %v5316_v16, 4  ;;  %v15972_v36 = vsel %vm14992_vm13, %v11725_v10, %v5316_v16  ;;  %v16002_v10 = vld [vmem:[#allocation2 + $0xd0] sm:$0xf]  ;;  %v5333_v16 = vrot.slane %v16009_v50, 5  ;;  %v4524_v15 = vsel %vm14586_vm6, %v15964_v40, %v15958_v46 }
 0x238   : > { %18286 = vst [vmem:[#allocation21_spill] sm:$0xff] %v15972_v36  ;;  %v4566_v36 = vor.u32 %v4565_v19, %v15984_v3  ;;  %v16017_v33 = vld [vmem:[#allocation2 + $0x64] sm:$0xf]  ;;  %v4589_v40 = vrot.slane %v4587_v53, 4  ;;  %v4600_v17 = vrot.slane %v4598_v49, 4 }
 0x239   : > { %v15980_v18 = vsel %vm14992_vm13, %v5318_v22, %v5319_v30  ;;  %v4500_v30 = vsel %vm14586_vm6, %v15867_v0, %v15861_v52  ;;  %v5173_v52 = vld [vmem:[#allocation2 + $0xc0] sm:$0xe]  ;;  %v5323_v0 = vrot.slane %v15998_v62, 5  ;;  %v5174_v22 = vld [vmem:[#allocation2 + $0xcc] sm:$0xe]  ;;  %18289 = vst [vmem:[#allocation24_spill] sm:$0xff] %v16017_v33 }
 0x23a   : > { %18287 = vst [vmem:[#allocation22_spill] sm:$0xff] %v15980_v18  ;;  %v11726_v29 = vrot.slane %v5173_v52, 9  ;;  %v11727_v18 = vrot.slane %v5174_v22, 9  ;;  %v4601_v22 = vshll.u32 %v4423_v4, 16  ;;  %v16050_v4 = vrot.slane %v4569_v56, 5 }
 0x23b   : > { %v5325_v35 = vrot.slane %v5323_v0, 4  ;;  %v4567_v46 = vrot.slane %v4566_v36, 4  ;;  %v16056_v56 = vld [vmem:[#allocation2 + $0x68] sm:$0x1]  ;;  %v16072_v53 = vld [vmem:[#allocation2 + $0x7c] sm:$0xf] }
 0x23d   : > { %13023 = vmatmul.mubr.bf16.gmra.mrb[24].mxu0 %v14186_v2  ;;  %v5330_v2 = vrot.slane %v16002_v10, 5  ;;  %v16027_v12 = vsel %vm14992_vm13, %v5325_v35, %v5326_v54  ;;  %v16043_v54 = vrot.slane %v4532_v23, 4  ;;  %v4607_v35 = vshll.u32 %v16017_v33, 16 }
 0x23e   : > { %13026 = vmatprep.mubr.bf16.mxu0 %v14188_v55  ;;  %v16021_v55 = vsel %vm14992_vm13, %v11726_v29, %v5323_v0  ;;  %18291 = vst [vmem:[#allocation26_spill] sm:$0xff] %v16027_v12  ;;  %v4576_v0 = vrot.slane %v4574_v7, 4  ;;  %v4557_v12 = vrot.slane %v4556_v6, 4  ;;  %v4593_v23 = vshll.u32 %v15778_v11, 16 }
 0x23f   : > { %18290 = vst [vmem:[#allocation25_spill] sm:$0xff] %v16021_v55  ;;  %v5332_v52 = vrot.slane %v5330_v2, 4  ;;  %v16031_v19 = vsel %vm14992_vm13, %v11727_v18, %v5330_v2  ;;  %v16048_v2 = vrot.slane %v4542_v31, 4  ;;  %v4579_v55 = vrot.slane %v4577_v39, 5 }
 0x240   : > { %18292 = vst [vmem:[#allocation27_spill] sm:$0xff] %v16031_v19  ;;  %v4603_v18 = vrot.slane %v4601_v22, 5  ;;  %v11689_v31 = vcombine.low %v4490_v61, %v4500_v30  ;;  %v16058_v7 = vrot.slane %v4607_v35, 5  ;;  %v4631_v39 = vshll.u32 %v15804_v13, 16  ;;  %v14192_v22 = vld [vmem:[%s18104_s1 + $0x208] sm:$0xff]  }
 0x241   : > { %v16037_v29 = vsel %vm14992_vm13, %v5332_v52, %v5333_v16  ;;  %v4611_v16 = vshrl.u32 %v16017_v33, 16  ;;  %v4426_v52 = vld [vmem:[#allocation2 + $0x6c] sm:$0xf]  ;;  %v4429_v33 = vld [vmem:[#allocation2 + $0x78] sm:$0xf]  ;;  %v4538_v11 = vsel %vm14586_vm6, %v16043_v54, %v15918_v47  ;;  %v4548_v36 = vsel %vm14586_vm6, %v16048_v2, %v15974_v58 }
 0x242   : > { %18293 = vst [vmem:[#allocation28_spill] sm:$0xff] %v16037_v29  ;;  %v11690_v29 = vcombine.low %v4514_v37, %v4524_v15  ;;  %v4622_v19 = vshrl.u32 %v4426_v52, 16  ;;  %v4625_v6 = vshll.u32 %v4426_v52, 16  ;;  %v4590_v61 = vor.u32 %v4589_v40, %v16053_v28  ;;  %v4432_v35 = vld [vmem:[#allocation2 + $0x84] sm:$0xf]  ;;  %v14193_v40 = vld [vmem:[%s18104_s1 + $0x210] sm:$0xff]  }
 0x243   : > { %v4604_v30 = vor.u32 %v4603_v18, %v4600_v17  ;;  %v4617_v37 = vshll.u32 %v16056_v56, 16  ;;  %v4646_v49 = vshrl.u32 %v4429_v33, 16  ;;  %v4649_v13 = vshll.u32 %v4429_v33, 16 }
 0x244   : > { %v4562_v47 = vsel %vm14586_vm6, %v4557_v12, %v15984_v3  ;;  %v4572_v58 = vsel %vm14586_vm6, %v4567_v46, %v16050_v4  ;;  %v4624_v17 = vrot.slane %v4622_v19, 4  ;;  %v4627_v15 = vrot.slane %v4625_v6, 5 }
 0x245   : > { %13027 = vmatmul.mubr.bf16.gmra.mrb[28].mxu0 %v14189_v34  ;;  %v4613_v34 = vrot.slane %v4611_v16, 4  ;;  %v16086_v54 = vrot.slane %v4631_v39, 5  ;;  %v4637_v33 = vrot.slane %v4635_v8, 4  ;;  %v4591_v2 = vrot.slane %v4590_v61, 4 }
 0x246   : > { %13046 = vmatprep.mubr.bf16.mxu0 %v11688_v48  ;;  %v4580_v48 = vor.u32 %v4579_v55, %v4576_v0  ;;  %v16083_v55 = vrot.slane %v4593_v23, 5  ;;  %v4655_v16 = vshll.u32 %v16072_v53, 16  ;;  %v4659_v3 = vshrl.u32 %v16072_v53, 16 }
 0x247   : > { %v4614_v0 = vor.u32 %v4613_v34, %v16058_v7  ;;  %v4605_v12 = vrot.slane %v4604_v30, 4  ;;  %v4619_v4 = vrot.slane %v4617_v37, 5  ;;  %v4648_v19 = vrot.slane %v4646_v49, 4 }
 0x248   : > { %v4581_v18 = vrot.slane %v4580_v48, 4  ;;  %v4651_v52 = vrot.slane %v4649_v13, 5  ;;  %v4670_v46 = vshrl.u32 %v4432_v35, 16  ;;  %v4673_v23 = vshll.u32 %v4432_v35, 16  ;;  %v16109_v13 = vld [vmem:[#allocation2 + $0x80] sm:$0x1] }
 0x249   : > { %v4683_v34 = vshrl.u32 %v15839_v59, 16  ;;  %v4615_v6 = vrot.slane %v4614_v0, 4  ;;  %v4628_v39 = vor.u32 %v4627_v15, %v4624_v17  ;;  %v11691_v8 = vcombine.low %v4538_v11, %v4548_v36  ;;  %v4435_v11 = vld [vmem:[#allocation2 + $0x90] sm:$0xf]  ;;  %v14194_v36 = vld [vmem:[%s18104_s1 + $0x218] sm:$0xff]  }
 0x24a   : > { %v11692_v48 = vcombine.low %v4562_v47, %v4572_v58  ;;  %v16098_v61 = vrot.slane %v4655_v16, 5  ;;  %v4661_v30 = vrot.slane %v4659_v3, 4  ;;  %v4586_v37 = vsel %vm14586_vm6, %v4581_v18, %v16053_v28 }
 0x24b   : > { %v4610_v49 = vsel %vm14586_vm6, %v4605_v12, %v16058_v7  ;;  %v4675_v47 = vrot.slane %v4673_v23, 5  ;;  %v4685_v58 = vrot.slane %v4683_v34, 4  ;;  %v4629_v17 = vrot.slane %v4628_v39, 4 }
 0x24c   : > { %v4662_v15 = vor.u32 %v4661_v30, %v16098_v61  ;;  %v4694_v35 = vshrl.u32 %v4435_v11, 16  ;;  %v4697_v18 = vshll.u32 %v4435_v11, 16  ;;  %v4707_v16 = vshrl.u32 %v15884_v41, 16 }
 0x24d   : > { %13047 = vmatmul.mubr.bf16.vlgmr.msra.gmra.mrb[0].mxu0 %v11689_v31  ;;  %v4679_v31 = vshll.u32 %v15839_v59, 16  ;;  %v4596_v59 = vsel %vm14586_vm6, %v4591_v2, %v16083_v55  ;;  %v4620_v55 = vsel %vm14586_vm6, %v4615_v6, %v4619_v4  ;;  %v4703_v2 = vshll.u32 %v15884_v41, 16 }
 0x24e   : > { %13079 = vmatpush3.bf16.msra.mxu0 %v15849_v5  ;;  %13050 = vmatprep.mubr.bf16.mxu0 %v11690_v29  ;;  %v4638_v5 = vor.u32 %v4637_v33, %v16086_v54  ;;  %v4641_v29 = vshll.u32 %v15806_v60, 16  ;;  %v4652_v60 = vor.u32 %v4651_v52, %v4648_v19  ;;  %v4665_v33 = vshll.u32 %v16109_v13, 16  ;;  %v14195_v52 = vld [vmem:[%s18104_s1 + $0x220] sm:$0xff]  }
 0x24f   : > { %13080 = vmatprep.subr.bf16.mxu0 %v14192_v22  ;;  %v16114_v28 = vrot.slane %v4679_v31, 5  ;;  %v4689_v19 = vshll.u32 %v15841_v24, 16  ;;  %v11693_v23 = vcombine.low %v4586_v37, %v4596_v59  ;;  %v11694_v31 = vcombine.low %v4610_v49, %v4620_v55 }
 0x250   : > { %v4639_v0 = vrot.slane %v4638_v5, 4  ;;  %v4643_v7 = vrot.slane %v4641_v29, 5  ;;  %v4653_v3 = vrot.slane %v4652_v60, 4  ;;  %v4663_v34 = vrot.slane %v4662_v15, 4  ;;  %v4441_v29 = vld [vmem:[#allocation2 + $0xa8] sm:$0xf] }
 0x251   : > { %v4686_v4 = vor.u32 %v4685_v58, %v16114_v28  ;;  %v4667_v6 = vrot.slane %v4665_v33, 5  ;;  %v4696_v39 = vrot.slane %v4694_v35, 4  ;;  %v4699_v5 = vrot.slane %v4697_v18, 5  ;;  %v14196_v60 = vld [vmem:[%s18104_s1 + $0x228] sm:$0xff]  }
 0x252   : > { %13081 = vmatpush3.bf16.msra.mxu0 %v14192_v22  ;;  %v4672_v22 = vrot.slane %v4670_v46, 4  ;;  %v4438_v46 = vld [vmem:[#allocation2 + $0x9c] sm:$0xf]  ;;  %v4644_v41 = vsel %vm14586_vm6, %v4639_v0, %v4643_v7  ;;  %v16132_v24 = vrot.slane %v4703_v2, 5  ;;  %v4658_v37 = vsel %vm14586_vm6, %v4653_v3, %v16098_v61 }
 0x253   : > { %13082 = vmatprep.subr.bf16.mxu0 %v14193_v40  ;;  %v4721_v30 = vshll.u32 %v4438_v46, 16  ;;  %v4691_v49 = vrot.slane %v4689_v19, 5  ;;  %v4727_v11 = vshll.u32 %v15888_v27, 16  ;;  %v4668_v58 = vsel %vm14586_vm6, %v4663_v34, %v4667_v6  ;;  %v14198_v34 = vld [vmem:[%s18104_s1 + $0x238] sm:$0xff]  }
 0x254   : > { %v4676_v12 = vor.u32 %v4675_v47, %v4672_v22  ;;  %v4742_v22 = vshrl.u32 %v4441_v29, 16  ;;  %v4745_v47 = vshll.u32 %v4441_v29, 16  ;;  %v4713_v61 = vshll.u32 %v15886_v44, 16  ;;  %v14197_v44 = vld [vmem:[%s18104_s1 + $0x230] sm:$0xff]  }
 0x255   : > { %13051 = vmatmul.mubr.bf16.gmra.mrb[4].mxu0 %v11691_v8  ;;  %v4709_v8 = vrot.slane %v4707_v16, 4  ;;  %v4751_v55 = vshll.u32 %v15937_v57, 16  ;;  %v4700_v0 = vor.u32 %v4699_v5, %v4696_v39  ;;  %v4723_v33 = vrot.slane %v4721_v30, 5 }
 0x256   : > { %13054 = vmatprep.mubr.bf16.mxu0 %v11692_v48  ;;  %13083 = vmatpush3.bf16.msra.mxu0 %v14193_v40  ;;  %v4634_v40 = vsel %vm14586_vm6, %v4629_v17, %v16086_v54  ;;  %v4718_v48 = vshrl.u32 %v4438_v46, 16  ;;  %v4677_v59 = vrot.slane %v4676_v12, 4  ;;  %v4687_v54 = vrot.slane %v4686_v4, 4  ;;  %v4444_v46 = vld [vmem:[#allocation2 + $0xb4] sm:$0xf] }
 0x257   : > { %13084 = vmatprep.subr.bf16.mxu0 %v14194_v36  ;;  %v4755_v17 = vshrl.u32 %v15937_v57, 16  ;;  %v4710_v7 = vor.u32 %v4709_v8, %v16132_v24  ;;  %v16156_v57 = vrot.slane %v4727_v11, 5  ;;  %v4744_v16 = vrot.slane %v4742_v22, 4  ;;  %v4447_v8 = vld [vmem:[#allocation2 + $0xc0] sm:$0xf] }
 0x258   : > { %v4720_v15 = vrot.slane %v4718_v48, 4  ;;  %v4682_v35 = vsel %vm14586_vm6, %v4677_v59, %v16114_v28  ;;  %v4692_v18 = vsel %vm14586_vm6, %v4687_v54, %v4691_v49  ;;  %v4747_v3 = vrot.slane %v4745_v47, 5 }
 0x259   : > { %v11696_v12 = vcombine.low %v4658_v37, %v4668_v58  ;;  %v4715_v4 = vrot.slane %v4713_v61, 5  ;;  %v16158_v19 = vrot.slane %v4751_v55, 5  ;;  %v4701_v28 = vrot.slane %v4700_v0, 4 }
 0x25a   : > { %13085 = vmatpush3.bf16.msra.mxu0 %v14194_v36  ;;  %v4731_v36 = vshrl.u32 %v15888_v27, 16  ;;  %v11695_v27 = vcombine.low %v4634_v40, %v4644_v41  ;;  %v4737_v40 = vshll.u32 %v15890_v14, 16  ;;  %v11697_v41 = vcombine.low %v4682_v35, %v4692_v18  ;;  %v4450_v18 = vld [vmem:[#allocation2 + $0xcc] sm:$0xf] }
 0x25b   : > { %13086 = vmatprep.subr.bf16.mxu0 %v14195_v52  ;;  %v4748_v39 = vor.u32 %v4747_v3, %v4744_v16  ;;  %v4761_v5 = vshll.u32 %v15939_v38, 16  ;;  %v4766_v29 = vshrl.u32 %v4444_v46, 16  ;;  %v4769_v30 = vshll.u32 %v4444_v46, 16 }
 0x25c   : > { %v4733_v2 = vrot.slane %v4731_v36, 4  ;;  %v4775_v14 = vshll.u32 %v15941_v51, 16  ;;  %v4779_v37 = vshrl.u32 %v15941_v51, 16  ;;  %v4706_v59 = vsel %vm14586_vm6, %v4701_v28, %v16132_v24 }
 0x25d   : > { %13055 = vmatmul.mubr.bf16.gmra.mrb[8].mxu0 %v11693_v23  ;;  %v4711_v23 = vrot.slane %v4710_v7, 4  ;;  %v4739_v38 = vrot.slane %v4737_v40, 5  ;;  %v4793_v11 = vshll.u32 %v4447_v8, 16  ;;  %v4799_v36 = vshll.u32 %v15998_v62, 16 }
 0x25e   : > { %13058 = vmatprep.mubr.bf16.mxu0 %v11694_v31  ;;  %13087 = vmatpush3.bf16.msra.mxu0 %v14195_v52  ;;  %v4757_v52 = vrot.slane %v4755_v17, 4  ;;  %v4724_v31 = vor.u32 %v4723_v33, %v4720_v15  ;;  %v4734_v6 = vor.u32 %v4733_v2, %v16156_v57  ;;  %v4803_v22 = vshrl.u32 %v15998_v62, 16 }
 0x25f   : > { %13088 = vmatprep.subr.bf16.mxu0 %v14196_v60  ;;  %v4716_v54 = vsel %vm14586_vm6, %v4711_v23, %v4715_v4  ;;  %v4749_v51 = vrot.slane %v4748_v39, 4  ;;  %v4763_v58 = vrot.slane %v4761_v5, 5  ;;  %v4768_v61 = vrot.slane %v4766_v29, 4 }
 0x260   : > { %v4758_v48 = vor.u32 %v4757_v52, %v16158_v19  ;;  %v4725_v49 = vrot.slane %v4724_v31, 4  ;;  %v4735_v47 = vrot.slane %v4734_v6, 4  ;;  %v4771_v17 = vrot.slane %v4769_v30, 5 }
 0x261   : > { %v4777_v24 = vrot.slane %v4775_v14, 5  ;;  %v4781_v0 = vrot.slane %v4779_v37, 4  ;;  %v11698_v7 = vcombine.low %v4706_v59, %v4716_v54  ;;  %v4795_v33 = vrot.slane %v4793_v11, 5  ;;  %v5159_v11 = vld [vmem:[#allocation2 + $0x18] sm:$0xe] }
 0x262   : > { %13089 = vmatpush3.bf16.msra.mxu0 %v14196_v60  ;;  %v4790_v60 = vshrl.u32 %v4447_v8, 16  ;;  %v4759_v55 = vrot.slane %v4758_v48, 4  ;;  %v4805_v35 = vrot.slane %v4803_v22, 4  ;;  %v4730_v62 = vsel %vm14586_vm6, %v4725_v49, %v16156_v57 }
 0x263   : > { %13090 = vmatprep.subr.bf16.mxu0 %v14197_v44  ;;  %v4785_v2 = vshll.u32 %v15948_v45, 16  ;;  %v4754_v16 = vsel %vm14586_vm6, %v4749_v51, %v16158_v19  ;;  %v4782_v4 = vor.u32 %v4781_v0, %v4777_v24  ;;  %v4814_v52 = vshrl.u32 %v4450_v18, 16 }
 0x264   : > { %v4792_v15 = vrot.slane %v4790_v60, 4  ;;  %v4764_v3 = vsel %vm14586_vm6, %v4759_v55, %v4763_v58  ;;  %v4817_v46 = vshll.u32 %v4450_v18, 16  ;;  %v4823_v57 = vshll.u32 %v16002_v10, 16 }
 0x265   : > { %13059 = vmatmul.mubr.bf16.gmra.mrb[12].mxu0 %v11695_v27  ;;  %v4801_v27 = vrot.slane %v4799_v36, 5  ;;  %v4827_v28 = vshrl.u32 %v16002_v10, 16  ;;  %v4809_v45 = vshll.u32 %v16000_v9, 16  ;;  %v4783_v19 = vrot.slane %v4782_v4, 4 }
 0x266   : > { %13062 = vmatprep.mubr.bf16.mxu0 %v11696_v12  ;;  %13091 = vmatpush3.bf16.msra.mxu0 %v14197_v44  ;;  %v4740_v44 = vsel %vm14586_vm6, %v4735_v47, %v4739_v38  ;;  %v4772_v12 = vor.u32 %v4771_v17, %v4768_v61  ;;  %v4796_v23 = vor.u32 %v4795_v33, %v4792_v15  ;;  %v4787_v6 = vrot.slane %v4785_v2, 5  ;;  %v5160_v15 = vld [vmem:[#allocation2 + $0x24] sm:$0xe] }
 0x267   : > { %13092 = vmatprep.subr.bf16.mxu0 %v14198_v34  ;;  %v4806_v31 = vor.u32 %v4805_v35, %v4801_v27  ;;  %v11699_v40 = vcombine.low %v4730_v62, %v4740_v44  ;;  %v4816_v39 = vrot.slane %v4814_v52, 4  ;;  %v4819_v5 = vrot.slane %v4817_v46, 5  ;;  %v5162_v52 = vld [vmem:[#allocation2 + $0x3c] sm:$0xe]  ;;  %v18294_v46 = vld [vmem:[#allocation16_spill] sm:$0xff] }
 0x268   : > { %v4825_v29 = vrot.slane %v4823_v57, 5  ;;  %v4829_v8 = vrot.slane %v4827_v28, 4  ;;  %v4797_v48 = vrot.slane %v4796_v23, 4  ;;  %v4811_v14 = vrot.slane %v4809_v45, 5 }
 0x269   : > { %v4807_v30 = vrot.slane %v4806_v31, 4  ;;  %v4788_v9 = vsel %vm14586_vm6, %v4783_v19, %v4787_v6  ;;  %v4820_v37 = vor.u32 %v4819_v5, %v4816_v39  ;;  %v4833_v54 = vshll.u32 %v16009_v50, 16  ;;  %v18296_v6 = vld [vmem:[#allocation23_spill] sm:$0xff] }
 0x26a   : > { %13093 = vmatpush3.bf16.msra.mxu0 %v14198_v34  ;;  %v4773_v34 = vrot.slane %v4772_v12, 4  ;;  %v4830_v59 = vor.u32 %v4829_v8, %v4825_v29  ;;  %v4802_v49 = vsel %vm14586_vm6, %v4797_v48, %v4801_v27  ;;  %v5225_v60 = vrot.slane %v15785_v42, 5  ;;  %v18297_v48 = vld [vmem:[#allocation24_spill] sm:$0xff] }
 0x26b   : > { %v4812_v38 = vsel %vm14586_vm6, %v4807_v30, %v4811_v14  ;;  %v4821_v47 = vrot.slane %v4820_v37, 4  ;;  %v4835_v58 = vrot.slane %v4833_v54, 5  ;;  %v11712_v61 = vrot.slane %v5159_v11, 9  ;;  %v5165_v14 = vld [vmem:[#allocation2 + $0x60] sm:$0xe] }
 0x26c   : > { %v4778_v10 = vsel %vm14586_vm6, %v4773_v34, %v4777_v24  ;;  %v11702_v22 = vcombine.low %v4802_v49, %v4812_v38  ;;  %v4831_v51 = vrot.slane %v4830_v59, 4  ;;  %v5227_v55 = vrot.slane %v5225_v60, 4  ;;  %v5167_v11 = vld [vmem:[#allocation2 + $0x78] sm:$0xe] }
 0x26d   : > { %13063 = vmatmul.mubr.bf16.gmra.mrb[16].mxu0 %v11697_v41  ;;  %v11700_v41 = vcombine.low %v4754_v16, %v4764_v3  ;;  %v11701_v36 = vcombine.low %v4778_v10, %v4788_v9  ;;  %v5228_v17 = vrot.slane %v15817_v32, 5  ;;  %v4826_v50 = vsel %vm14586_vm6, %v4821_v47, %v4825_v29  ;;  %v5161_v32 = vld [vmem:[#allocation2 + $0x30] sm:$0xe] }
 0x26e   : > { %13066 = vmatprep.mubr.bf16.mxu0 %v11698_v7  ;;  %v4836_v24 = vsel %vm14586_vm6, %v4831_v51, %v4835_v58  ;;  %v5232_v42 = vrot.slane %v15798_v21, 5  ;;  %v5226_v0 = vsel %vm14992_vm13, %v11712_v61, %v5225_v60  ;;  %v5239_v33 = vrot.slane %v15851_v20, 5  ;;  %v18298_v58 = vld [vmem:[#allocation19_spill] sm:$0xff]  ;;  %v18299_v61 = vld [vmem:[#allocation20_spill] sm:$0xff] }
 0x26f   : > { %v5229_v7 = vsel %vm14992_vm13, %v5227_v55, %v5228_v17  ;;  %v11703_v27 = vcombine.low %v4826_v50, %v4836_v24  ;;  %v11713_v18 = vrot.slane %v5160_v15, 9  ;;  %v5235_v44 = vrot.slane %v15823_v43, 5  ;;  %v18301_v24 = vld [vmem:[#allocation7_spill] sm:$0xff]  ;;  %v18307_v15 = vld [vmem:[#allocation12_spill] sm:$0xff] }
 0x270   : > { %v11744_v35 = vcombine.low %v5226_v0, %v5229_v7  ;;  %v5234_v62 = vrot.slane %v5232_v42, 4  ;;  %v11714_v2 = vrot.slane %v5161_v32, 9  ;;  %v5241_v16 = vrot.slane %v5239_v33, 4  ;;  %v18304_v0 = vld [vmem:[#allocation9_spill] sm:$0xff]  ;;  %v18305_v7 = vld [vmem:[#allocation10_spill] sm:$0xff] }
 0x271   : > { %v5242_v21 = vrot.slane %v15882_v63, 5  ;;  %v5233_v3 = vsel %vm14992_vm13, %v11713_v18, %v5232_v42  ;;  %v5246_v20 = vrot.slane %v15878_v25, 5  ;;  %v5253_v57 = vrot.slane %v18294_v46, 5  ;;  %v5163_v63 = vld [vmem:[#allocation2 + $0x48] sm:$0xe] }
 0x272   : > { %v5236_v12 = vsel %vm14992_vm13, %v5234_v62, %v5235_v44  ;;  %v5240_v4 = vsel %vm14992_vm13, %v11714_v2, %v5239_v33  ;;  %v11715_v31 = vrot.slane %v5162_v52, 9  ;;  %v11716_v34 = vrot.slane %v5163_v63, 9  ;;  %v18308_v33 = vld [vmem:[#allocation13_spill] sm:$0xff]  ;;  %v18314_v44 = vld [vmem:[#allocation18_spill] sm:$0xff]  ;;  %v18323_v52 = vld [vmem:[#allocation28_spill] sm:$0xff] }
 0x273   : > { %v5243_v43 = vsel %vm14992_vm13, %v5241_v16, %v5242_v21  ;;  %v11745_v28 = vcombine.low %v5233_v3, %v5236_v12  ;;  %v5248_v45 = vrot.slane %v5246_v20, 4  ;;  %v5255_v19 = vrot.slane %v5253_v57, 4  ;;  %v18313_v62 = vld [vmem:[#allocation17_spill] sm:$0xff]  ;;  %v18317_v21 = vld [vmem:[#allocation22_spill] sm:$0xff]  ;;  %v14200_v63 = vld [vmem:[%s18106_s3 + $0x48] sm:$0xff]  }
 0x274   : > { %v11746_v23 = vcombine.low %v5240_v4, %v5243_v43  ;;  %v5256_v25 = vrot.slane %v18296_v6, 5  ;;  %v5247_v39 = vsel %vm14992_vm13, %v11715_v31, %v5246_v20  ;;  %v5254_v29 = vsel %vm14992_vm13, %v11716_v34, %v5253_v57  ;;  %v18316_v16 = vld [vmem:[#allocation21_spill] sm:$0xff]  ;;  %v18320_v20 = vld [vmem:[#allocation26_spill] sm:$0xff]  ;;  %v18322_v43 = vld [vmem:[#allocation27_spill] sm:$0xff] }
 0x275   : > { %13067 = vmatmul.mubr.bf16.gmra.mrb[20].mxu0 %v11699_v40  ;;  %v18295_v40 = vld [vmem:[#allocation11_spill] sm:$0xff]  ;;  %v5267_v30 = vrot.slane %v18297_v48, 5  ;;  %v11718_v37 = vrot.slane %v5165_v14, 9  ;;  %v5270_v54 = vrot.slane %v16056_v56, 5  ;;  %v5281_v60 = vrot.slane %v16072_v53, 5  ;;  %v18302_v53 = vld [vmem:[#allocation8_spill] sm:$0xff] }
 0x276   : > { %13070 = vmatprep.mubr.bf16.mxu0 %v11700_v41  ;;  %v5249_v41 = vrot.slane %v18295_v40, 5  ;;  %v5257_v8 = vsel %vm14992_vm13, %v5255_v19, %v5256_v25  ;;  %v5284_v51 = vrot.slane %v16109_v13, 5  ;;  %v18300_v55 = vcombine.low %v18298_v58, %v18299_v61  ;;  %v18319_v12 = vld [vmem:[#allocation25_spill] sm:$0xff]  ;;  %v14199_v57 = vld [vmem:[%s18106_s3 + $0x40] sm:$0xff]   ;;  %v14205_v40 = vld [vmem:[%s18106_s3 + $0x70] sm:$0xff]  }
 0x277   : > { %v11748_v9 = vcombine.low %v5254_v29, %v5257_v8  ;;  %v5269_v59 = vrot.slane %v5267_v30, 4  ;;  %v5268_v49 = vsel %vm14992_vm13, %v11718_v37, %v5267_v30  ;;  %v5283_v47 = vrot.slane %v5281_v60, 4  ;;  %13126 = vmatprep.subr.bf16.mxu1 %v14199_v57  ;;  %v14203_v31 = vld [vmem:[%s18106_s3 + $0x60] sm:$0xff]   ;;  %v6312_v34 = vld [vmem:[#allocation3 + $0x4] sm:$0xf] }
 0x278   : > { %v5250_v5 = vsel %vm14992_vm13, %v5248_v45, %v5249_v41  ;;  %v18303_v42 = vcombine.low %v18301_v24, %v18302_v53  ;;  %v18306_v13 = vcombine.low %v18304_v0, %v18305_v7  ;;  %v18309_v32 = vcombine.low %v18307_v15, %v18308_v33  ;;  %13127 = vmatpush3.bf16.msra.mxu1 %v14199_v57  ;;  %v14204_v45 = vld [vmem:[%s18106_s3 + $0x68] sm:$0xff]   ;;  %v6311_v41 = vld [vmem:[#allocation3] sm:$0xf]  ;;  %v6359_v30 = vld [vmem:[#allocation3 + $0x8] sm:$0x1] }
 0x279   : > { %v11747_v10 = vcombine.low %v5247_v39, %v5250_v5  ;;  %v5271_v38 = vsel %vm14992_vm13, %v5269_v59, %v5270_v54  ;;  %v5285_v17 = vsel %vm14992_vm13, %v5283_v47, %v5284_v51  ;;  %v18315_v2 = vcombine.low %v18313_v62, %v18314_v44  ;;  %13128 = vmatprep.subr.bf16.mxu1 %v14200_v63  ;;  %v14206_v5 = vld [vmem:[%s18106_s3 + $0x78] sm:$0xff]  }
 0x27a   : > { %v18318_v3 = vcombine.low %v18316_v16, %v18317_v21  ;;  %v18321_v4 = vcombine.low %v18319_v12, %v18320_v20  ;;  %v18324_v46 = vcombine.low %v18322_v43, %v18323_v52  ;;  %v6376_v19 = vshrl.u32 %v6311_v41, 16  ;;  %v6206_v12 = vld [vmem:[#allocation3 + $0x18] sm:$0xf] }
 0x27b   : > { %v6379_v6 = vshll.u32 %v6311_v41, 16  ;;  %v6385_v25 = vshll.u32 %v6312_v34, 16  ;;  %v6389_v39 = vshrl.u32 %v6312_v34, 16  ;;  %v6210_v34 = vld [vmem:[#allocation3 + $0x20] sm:$0x1] }
 0x27c   : > { %13129 = vmatpush3.bf16.msra.mxu1 %v14200_v63  ;;  %v6378_v29 = vrot.slane %v6376_v19, 4 }
 0x27d   : > { %13071 = vmatmul.mubr.bf16.gmra.mrb[24].mxu0 %v11701_v36  ;;  %v11750_v36 = vcombine.low %v5268_v49, %v5271_v38  ;;  %v6381_v8 = vrot.slane %v6379_v6, 5  ;;  %v6387_v48 = vrot.slane %v6385_v25, 5  ;;  %v6391_v14 = vrot.slane %v6389_v39, 4 }
 0x27e   : > { %13074 = vmatprep.mubr.bf16.mxu0 %v11702_v22  ;;  %v11720_v22 = vrot.slane %v5167_v11, 9 }
 0x27f   : > { %v6392_v37 = vor.u32 %v6391_v14, %v6387_v48 }
 0x280   : > { %v5282_v56 = vsel %vm14992_vm13, %v11720_v22, %v5281_v60  ;;  %v16309_v22 = vld [vmem:[%s18105_s2] ss:$0 sm:$0xff] }
 0x281   : > { %v11752_v50 = vcombine.low %v5282_v56, %v5285_v17  ;;  %v6393_v49 = vrot.slane %v6392_v37, 4 }
 0x285   : > { %13075 = vmatmul.mubr.bf16.gmra.mrb[28].mxu0 %v11703_v27  ;;  %v18310_v27 = vld [vmem:[#allocation14_spill] sm:$0xff] }
 0x286   : > { %13094 = vmatprep.mubr.bf16.mxu0 %v11744_v35  ;;  %v18311_v35 = vld [vmem:[#allocation15_spill] sm:$0xff] }
 0x287   : > { %v18312_v18 = vcombine.low %v18310_v27, %v18311_v35 }
 0x28d   : > { %13095 = vmatmul.mubr.bf16.vlgmr.msra.gmra.mrb[0].mxu0 %v11745_v28  ;;  %v14201_v28 = vld [vmem:[%s18106_s3 + $0x50] sm:$0xff]  }
 0x28e   : > { %13098 = vmatprep.mubr.bf16.mxu0 %v11746_v23  ;;  %13130 = vmatprep.subr.bf16.mxu1 %v14201_v28  ;;  %v14202_v23 = vld [vmem:[%s18106_s3 + $0x58] sm:$0xff]  }
 0x28f   : > { %13131 = vmatpush3.bf16.msra.mxu1 %v14201_v28  ;;  %v6199_v28 = vld [vmem:[#allocation3 + $0xc] sm:$0xf] }
 0x290   : > { %13132 = vmatprep.subr.bf16.mxu1 %v14202_v23 }
 0x293   : > { %13133 = vmatpush3.bf16.msra.mxu1 %v14202_v23 }
 0x294   : > { %13134 = vmatprep.subr.bf16.mxu1 %v14203_v31 }
 0x295   : > { %13099 = vmatmul.mubr.bf16.gmra.mrb[4].mxu0 %v11747_v10  ;;  %v6382_v10 = vor.u32 %v6381_v8, %v6378_v29  ;;  %v6203_v8 = vld [vmem:[#allocation3 + $0x14] sm:$0x1] }
 0x296   : > { %13102 = vmatprep.mubr.bf16.mxu0 %v11748_v9  ;;  %v6395_v9 = vshll.u32 %v6359_v30, 16 }
 0x297   : > { %13135 = vmatpush3.bf16.msra.mxu1 %v14203_v31  ;;  %v6383_v59 = vrot.slane %v6382_v10, 4 }
 0x298   : > { %13136 = vmatprep.subr.bf16.mxu1 %v14204_v45  ;;  %v6397_v54 = vrot.slane %v6395_v9, 5 }
 0x299   : > { %v6388_v38 = vsel %vm14586_vm6, %v6383_v59, %v6387_v48 }
 0x29a   : > { %v6398_v60 = vsel %vm14586_vm6, %v6393_v49, %v6397_v54 }
 0x29b   : > { %13137 = vmatpush3.bf16.msra.mxu1 %v14204_v45  ;;  %v11817_v11 = vcombine.low %v6388_v38, %v6398_v60 }
 0x29c   : > { %13138 = vmatprep.subr.bf16.mxu1 %v14205_v40 }
 0x29d   : > { %13103 = vmatmul.mubr.bf16.gmra.mrb[8].mxu0 %v18300_v55  ;;  %13142 = vmatprep.mubr.bf16.mxu1 %v11817_v11 }
 0x29e   : > { %13106 = vmatprep.mubr.bf16.mxu0 %v11750_v36  ;;  %v16303_v36 = vld [vmem:[%s18106_s3] sm:$0xff]  }
 0x29f   : > { %13139 = vmatpush3.bf16.msra.mxu1 %v14205_v40 }
 0x2a0   : > { %13140 = vmatprep.subr.bf16.mxu1 %v14206_v5 }
 0x2a3   : > { %13141 = vmatpush3.bf16.msra.mxu1 %v14206_v5 }
 0x2a4   : > { %13174 = vmatprep.subr.bf16.mxu1 %v16303_v36 }
 0x2a5   : > { %13107 = vmatmul.mubr.bf16.gmra.mrb[12].mxu0 %v18303_v42 }
 0x2a6   : > { %13110 = vmatprep.mubr.bf16.mxu0 %v11752_v50 }
 0x2ad   : > { %13111 = vmatmul.mubr.bf16.gmra.mrb[16].mxu0 %v18306_v13 }
 0x2ae   : > { %13114 = vmatprep.mubr.bf16.mxu0 %v18309_v32 }
 0x2b5   : > { %13115 = vmatmul.mubr.bf16.gmra.mrb[20].mxu0 %v18312_v18 }
 0x2b6   : > { %13118 = vmatprep.mubr.bf16.mxu0 %v18315_v2 }
 0x2bd   : > { %13119 = vmatmul.mubr.bf16.gmra.mrb[24].mxu0 %v18318_v3 }
 0x2be   : > { %13122 = vmatprep.mubr.bf16.mxu0 %v18321_v4 }
 0x2c5   : > { %13123 = vmatmul.mubr.bf16.gmra.mrb[28].mxu0 %v18324_v46 }
 0x360   : > { %v13096_v47 = vpop.f32.mrb[0].mxu0 }
 0x361   : > { %v5666_v51 = vadd.f32 %v13096_v47, %v16309_v22  ;;  %v5498_v58 = vpop.f32.mrb[1].mxu0 }
 0x362   : > { %v5664_v61 = vadd.f32 %v16309_v22, %v5498_v58  ;;  %v13097_v55 = vpop.f32.mrb[2].mxu0 }
 0x363   : > { %v5698_v56 = vmax.f32 %v5666_v51, 0.0  ;;  %v5667_v17 = vadd.f32 %v13097_v55, %v16309_v22  ;;  %v5501_v50 = vpop.f32.mrb[3].mxu0 }
 0x364   : > { %v5696_v24 = vmax.f32 %v5664_v61, 0.0  ;;  %v5665_v53 = vadd.f32 %v16309_v22, %v5501_v50 }
 0x365   : > { %v12232_v42 = vpack.c.bf16 %v5698_v56, %v5698_v56  ;;  %v5699_v0 = vmax.f32 %v5667_v17, 0.0 }
 0x366   : > { %v12230_v7 = vpack.c.bf16 %v5696_v24, %v5696_v24  ;;  %v5697_v13 = vmax.f32 %v5665_v53, 0.0  ;;  %v6220_v24 = vld [vmem:[#allocation3 + $0x30] sm:$0xf] }
 0x367   : > { %v5896_v15 = vshrl.u32 %v12232_v42, 16  ;;  %v12233_v33 = vpack.c.bf16 %v5699_v0, %v5699_v0  ;;  %v5899_v32 = vshll.u32 %v12232_v42, 16 }
 0x368   : > { %v5879_v27 = vshrl.u32 %v12230_v7, 16  ;;  %v5882_v35 = vshll.u32 %v12230_v7, 16  ;;  %v12231_v18 = vpack.c.bf16 %v5697_v13, %v5697_v13  ;;  %v13100_v62 = vpop.f32.mrb[4].mxu0 }
 0x369   : > { %v5898_v44 = vrot.slane %v5896_v15, 7  ;;  %v5904_v2 = vshrl.u32 %v12233_v33, 16  ;;  %v5907_v16 = vshll.u32 %v12233_v33, 16  ;;  %v5670_v21 = vadd.f32 %v13100_v62, %v16309_v22  ;;  %v5514_v3 = vpop.f32.mrb[5].mxu0  ;;  %v6213_v33 = vld [vmem:[#allocation3 + $0x24] sm:$0xf] }
 0x36a   : > { %v5881_v20 = vrot.slane %v5879_v27, 7  ;;  %v5887_v4 = vshrl.u32 %v12231_v18, 16  ;;  %v5890_v43 = vshll.u32 %v12231_v18, 16  ;;  %v5668_v52 = vadd.f32 %v16309_v22, %v5514_v3  ;;  %v13101_v46 = vpop.f32.mrb[6].mxu0 }
 0x36b   : > { %v5901_v57 = vor.u32 %v5899_v32, %v5898_v44  ;;  %v5902_v63 = vrot.slane %v5898_v44, 4  ;;  %v5906_v23 = vrot.slane %v5904_v2, 7  ;;  %v5702_v31 = vmax.f32 %v5670_v21, 0.0  ;;  %v5517_v45 = vpop.f32.mrb[7].mxu0 }
 0x36c   : > { %v5884_v40 = vor.u32 %v5882_v35, %v5881_v20  ;;  %v5885_v41 = vrot.slane %v5881_v20, 4  ;;  %v5889_v19 = vrot.slane %v5887_v4, 7  ;;  %v5700_v6 = vmax.f32 %v5668_v52, 0.0 }
 0x36d   : > { %v6207_v39 = vsel %vm14602_vm9, %v5901_v57, %v6206_v12  ;;  %v5909_v5 = vor.u32 %v5907_v16, %v5906_v23  ;;  %v5911_v29 = vrot.slane %v5906_v23, 4  ;;  %v12236_v48 = vpack.c.bf16 %v5702_v31, %v5702_v31  ;;  %v6224_v23 = vld [vmem:[#allocation3 + $0x38] sm:$0x1]  ;;  %v6217_v31 = vld [vmem:[#allocation3 + $0x2c] sm:$0x1] }
 0x36e   : > { %6208 = vst [vmem:[#allocation3 + $0x18] sm:$0xf] %v6207_v39  ;;  %v6200_v30 = vsel %vm14602_vm9, %v5884_v40, %v6199_v28  ;;  %v5892_v14 = vor.u32 %v5890_v43, %v5889_v19  ;;  %v5894_v10 = vrot.slane %v5889_v19, 4  ;;  %v12234_v9 = vpack.c.bf16 %v5700_v6, %v5700_v6 }
 0x36f   : > { %6201 = vst [vmem:[#allocation3 + $0xc] sm:$0xf] %v6200_v30  ;;  %v5910_v59 = vsel %vm14610_vm10, %v5902_v63, %v5909_v5  ;;  %v6211_v49 = vsel %vm14592_vm8, %v5911_v29, %v6210_v34  ;;  %v5930_v38 = vshrl.u32 %v12236_v48, 16  ;;  %v5933_v47 = vshll.u32 %v12236_v48, 16  ;;  %v6234_v30 = vld [vmem:[#allocation3 + $0x48] sm:$0xf] }
 0x370   : > { %6209 = vst [vmem:[#allocation3 + $0x1c] sm:$0xf] %v5910_v59  ;;  %6212 = vst [vmem:[#allocation3 + $0x20] sm:$0x1] %v6211_v49  ;;  %v5893_v60 = vsel %vm14610_vm10, %v5885_v41, %v5892_v14  ;;  %v6204_v11 = vsel %vm14592_vm8, %v5894_v10, %v6203_v8  ;;  %v5913_v51 = vshrl.u32 %v12234_v9, 16  ;;  %v13104_v58 = vpop.f32.mrb[8].mxu0  ;;  %v5671_v55 = vadd.f32 %v13101_v46, %v16309_v22 }
 0x371   : > { %6202 = vst [vmem:[#allocation3 + $0x10] sm:$0xf] %v5893_v60  ;;  %6205 = vst [vmem:[#allocation3 + $0x14] sm:$0x1] %v6204_v11  ;;  %v16329_v61 = vrot.slane %v5930_v38, 7  ;;  %v5669_v56 = vadd.f32 %v16309_v22, %v5517_v45  ;;  %v5674_v17 = vadd.f32 %v13104_v58, %v16309_v22  ;;  %v5530_v50 = vpop.f32.mrb[9].mxu0 }
 0x372   : > { %v5915_v53 = vrot.slane %v5913_v51, 7  ;;  %v5916_v42 = vshll.u32 %v12234_v9, 16  ;;  %v5672_v0 = vadd.f32 %v16309_v22, %v5530_v50  ;;  %v13105_v7 = vpop.f32.mrb[10].mxu0  ;;  %v5703_v32 = vmax.f32 %v5671_v55, 0.0 }
 0x373   : > { %v5935_v13 = vor.u32 %v5933_v47, %v16329_v61  ;;  %v5936_v15 = vrot.slane %v16329_v61, 4  ;;  %v5701_v27 = vmax.f32 %v5669_v56, 0.0  ;;  %v5533_v35 = vpop.f32.mrb[11].mxu0  ;;  %v5706_v44 = vmax.f32 %v5674_v17, 0.0  ;;  %v6227_v47 = vld [vmem:[#allocation3 + $0x3c] sm:$0xf] }
 0x374   : > { %v5918_v18 = vor.u32 %v5916_v42, %v5915_v53  ;;  %v5919_v62 = vrot.slane %v5915_v53, 4  ;;  %v5704_v2 = vmax.f32 %v5672_v0, 0.0  ;;  %v12237_v21 = vpack.c.bf16 %v5703_v32, %v5703_v32 }
 0x375   : > { %v6221_v16 = vsel %vm14602_vm9, %v5935_v13, %v6220_v24  ;;  %v12235_v3 = vpack.c.bf16 %v5701_v27, %v5701_v27  ;;  %v5675_v12 = vadd.f32 %v13105_v7, %v16309_v22  ;;  %v12240_v4 = vpack.c.bf16 %v5706_v44, %v5706_v44 }
 0x376   : > { %6222 = vst [vmem:[#allocation3 + $0x30] sm:$0xf] %v6221_v16  ;;  %v6214_v20 = vsel %vm14602_vm9, %v5918_v18, %v6213_v33  ;;  %v12238_v43 = vpack.c.bf16 %v5704_v2, %v5704_v2  ;;  %v5673_v52 = vadd.f32 %v16309_v22, %v5533_v35  ;;  %v5938_v46 = vshrl.u32 %v12237_v21, 16  ;;  %v6238_v16 = vld [vmem:[#allocation3 + $0x50] sm:$0x1] }
 0x377   : > { %6215 = vst [vmem:[#allocation3 + $0x24] sm:$0xf] %v6214_v20  ;;  %v5941_v57 = vshll.u32 %v12237_v21, 16  ;;  %v5921_v63 = vshrl.u32 %v12235_v3, 16  ;;  %v5924_v28 = vshll.u32 %v12235_v3, 16  ;;  %v5964_v45 = vshrl.u32 %v12240_v4, 16 }
 0x378   : > { %v5967_v40 = vshll.u32 %v12240_v4, 16  ;;  %v5947_v41 = vshrl.u32 %v12238_v43, 16  ;;  %v5950_v34 = vshll.u32 %v12238_v43, 16  ;;  %v13108_v19 = vpop.f32.mrb[12].mxu0  ;;  %v5940_v6 = vrot.slane %v5938_v46, 7 }
 0x379   : > { %v5923_v39 = vrot.slane %v5921_v63, 7  ;;  %v5707_v5 = vmax.f32 %v5675_v12, 0.0  ;;  %v5705_v29 = vmax.f32 %v5673_v52, 0.0  ;;  %v5546_v8 = vpop.f32.mrb[13].mxu0  ;;  %v16343_v48 = vrot.slane %v5964_v45, 7 }
 0x37a   : > { %v16345_v14 = vrot.slane %v5947_v41, 7  ;;  %v5678_v10 = vadd.f32 %v13108_v19, %v16309_v22  ;;  %v5676_v9 = vadd.f32 %v16309_v22, %v5546_v8  ;;  %v13109_v59 = vpop.f32.mrb[14].mxu0  ;;  %v5943_v49 = vor.u32 %v5941_v57, %v5940_v6  ;;  %v6231_v46 = vld [vmem:[#allocation3 + $0x44] sm:$0x1] }
 0x37b   : > { %v5945_v38 = vrot.slane %v5940_v6, 4  ;;  %v5926_v60 = vor.u32 %v5924_v28, %v5923_v39  ;;  %v5928_v11 = vrot.slane %v5923_v39, 4  ;;  %v5549_v51 = vpop.f32.mrb[15].mxu0  ;;  %v5969_v58 = vor.u32 %v5967_v40, %v16343_v48 }
 0x37c   : > { %v5970_v61 = vrot.slane %v16343_v48, 4  ;;  %v5952_v55 = vor.u32 %v5950_v34, %v16345_v14  ;;  %v5953_v56 = vrot.slane %v16345_v14, 4  ;;  %v5944_v17 = vsel %vm14610_vm10, %v5936_v15, %v5943_v49  ;;  %v6241_v49 = vld [vmem:[#allocation3 + $0x54] sm:$0xf] }
 0x37d   : > { %v6225_v50 = vsel %vm14592_vm8, %v5945_v38, %v6224_v23  ;;  %v5927_v24 = vsel %vm14610_vm10, %v5919_v62, %v5926_v60  ;;  %v6218_v53 = vsel %vm14592_vm8, %v5928_v11, %v6217_v31  ;;  %6223 = vst [vmem:[#allocation3 + $0x34] sm:$0xf] %v5944_v17  ;;  %v6235_v42 = vsel %vm14602_vm9, %v5969_v58, %v6234_v30 }
 0x37e   : > { %6226 = vst [vmem:[#allocation3 + $0x38] sm:$0x1] %v6225_v50  ;;  %6216 = vst [vmem:[#allocation3 + $0x28] sm:$0xf] %v5927_v24  ;;  %v6228_v0 = vsel %vm14602_vm9, %v5952_v55, %v6227_v47  ;;  %v12241_v7 = vpack.c.bf16 %v5707_v5, %v5707_v5  ;;  %v12239_v13 = vpack.c.bf16 %v5705_v29, %v5705_v29  ;;  %v5710_v15 = vmax.f32 %v5678_v10, 0.0 }
 0x37f   : > { %6219 = vst [vmem:[#allocation3 + $0x2c] sm:$0x1] %v6218_v53  ;;  %6236 = vst [vmem:[#allocation3 + $0x48] sm:$0xf] %v6235_v42  ;;  %v5708_v33 = vmax.f32 %v5676_v9, 0.0  ;;  %v5679_v32 = vadd.f32 %v13109_v59, %v16309_v22  ;;  %v5677_v27 = vadd.f32 %v16309_v22, %v5549_v51 }
 0x380   : > { %6229 = vst [vmem:[#allocation3 + $0x3c] sm:$0xf] %v6228_v0  ;;  %v5972_v35 = vshrl.u32 %v12241_v7, 16  ;;  %v5975_v18 = vshll.u32 %v12241_v7, 16  ;;  %v5955_v62 = vshrl.u32 %v12239_v13, 16  ;;  %v5958_v44 = vshll.u32 %v12239_v13, 16 }
 0x381   : > { %v13112_v2 = vpop.f32.mrb[16].mxu0  ;;  %v12244_v21 = vpack.c.bf16 %v5710_v15, %v5710_v15  ;;  %v12242_v3 = vpack.c.bf16 %v5708_v33, %v5708_v33  ;;  %v5711_v12 = vmax.f32 %v5679_v32, 0.0  ;;  %v5709_v20 = vmax.f32 %v5677_v27, 0.0  ;;  %v6248_v59 = vld [vmem:[#allocation3 + $0x60] sm:$0xf] }
 0x382   : > { %v5562_v4 = vpop.f32.mrb[17].mxu0  ;;  %v5974_v43 = vrot.slane %v5972_v35, 7  ;;  %v5957_v52 = vrot.slane %v5955_v62, 7  ;;  %v5682_v57 = vadd.f32 %v13112_v2, %v16309_v22  ;;  %v6313_v51 = vld [vmem:[#allocation3 + $0xc] sm:$0xf] }
 0x383   : > { %v5680_v63 = vadd.f32 %v16309_v22, %v5562_v4  ;;  %v13113_v28 = vpop.f32.mrb[18].mxu0  ;;  %v5998_v23 = vshrl.u32 %v12244_v21, 16  ;;  %v6001_v31 = vshll.u32 %v12244_v21, 16  ;;  %v5981_v45 = vshrl.u32 %v12242_v3, 16  ;;  %v6252_v53 = vld [vmem:[#allocation3 + $0x68] sm:$0x1] }
 0x384   : > { %v5984_v40 = vshll.u32 %v12242_v3, 16  ;;  %v5565_v41 = vpop.f32.mrb[19].mxu0  ;;  %v5977_v34 = vor.u32 %v5975_v18, %v5974_v43  ;;  %v5979_v19 = vrot.slane %v5974_v43, 4  ;;  %v5960_v6 = vor.u32 %v5958_v44, %v5957_v52  ;;  %v6245_v33 = vld [vmem:[#allocation3 + $0x5c] sm:$0x1] }
 0x385   : > { %v5962_v39 = vrot.slane %v5957_v52, 4  ;;  %v6000_v5 = vrot.slane %v5998_v23, 7  ;;  %v5983_v29 = vrot.slane %v5981_v45, 7  ;;  %v12245_v8 = vpack.c.bf16 %v5711_v12, %v5711_v12  ;;  %v6314_v44 = vld [vmem:[#allocation3 + $0x10] sm:$0xf] }
 0x386   : > { %v12243_v48 = vpack.c.bf16 %v5709_v20, %v5709_v20  ;;  %v5978_v30 = vsel %vm14610_vm10, %v5970_v61, %v5977_v34  ;;  %v6239_v14 = vsel %vm14592_vm8, %v5979_v19, %v6238_v16  ;;  %v5961_v10 = vsel %vm14610_vm10, %v5953_v56, %v5960_v6  ;;  %v6262_v45 = vld [vmem:[#allocation3 + $0x78] sm:$0xf] }
 0x387   : > { %v6232_v9 = vsel %vm14592_vm8, %v5962_v39, %v6231_v46  ;;  %6237 = vst [vmem:[#allocation3 + $0x4c] sm:$0xf] %v5978_v30  ;;  %6240 = vst [vmem:[#allocation3 + $0x50] sm:$0x1] %v6239_v14  ;;  %v6003_v38 = vor.u32 %v6001_v31, %v6000_v5  ;;  %v6004_v60 = vrot.slane %v6000_v5, 4  ;;  %v5986_v11 = vor.u32 %v5984_v40, %v5983_v29 }
 0x388   : > { %6230 = vst [vmem:[#allocation3 + $0x40] sm:$0xf] %v5961_v10  ;;  %6233 = vst [vmem:[#allocation3 + $0x44] sm:$0x1] %v6232_v9  ;;  %v5987_v47 = vrot.slane %v5983_v29, 4  ;;  %v6006_v58 = vshrl.u32 %v12245_v8, 16  ;;  %v5683_v32 = vadd.f32 %v13113_v28, %v16309_v22  ;;  %v5681_v27 = vadd.f32 %v16309_v22, %v5565_v41 }
 0x389   : > { %v6009_v61 = vshll.u32 %v12245_v8, 16  ;;  %v5989_v55 = vshrl.u32 %v12243_v48, 16  ;;  %v5992_v17 = vshll.u32 %v12243_v48, 16  ;;  %v16377_v50 = vpop.f32.mrb[20].mxu0  ;;  %v6249_v56 = vsel %vm14602_vm9, %v6003_v38, %v6248_v59  ;;  %v6255_v40 = vld [vmem:[#allocation3 + $0x6c] sm:$0xf] }
 0x38a   : > { %v6242_v24 = vsel %vm14602_vm9, %v5986_v11, %v6241_v49  ;;  %v5714_v42 = vmax.f32 %v5682_v57, 0.0  ;;  %v5712_v0 = vmax.f32 %v5680_v63, 0.0  ;;  %v16383_v7 = vpop.f32.mrb[21].mxu0  ;;  %6250 = vst [vmem:[#allocation3 + $0x60] sm:$0xf] %v6249_v56  ;;  %v6008_v13 = vrot.slane %v6006_v58, 7 }
 0x38b   : > { %6243 = vst [vmem:[#allocation3 + $0x54] sm:$0xf] %v6242_v24  ;;  %v5991_v15 = vrot.slane %v5989_v55, 7  ;;  %v16387_v35 = vpop.f32.mrb[22].mxu0  ;;  %v6400_v2 = vshrl.u32 %v6313_v51, 16  ;;  %v6403_v16 = vshll.u32 %v6313_v51, 16 }
 0x38c   : > { %v12248_v18 = vpack.c.bf16 %v5714_v42, %v5714_v42  ;;  %v12246_v62 = vpack.c.bf16 %v5712_v0, %v5712_v0  ;;  %v16389_v21 = vpop.f32.mrb[23].mxu0  ;;  %v6011_v3 = vor.u32 %v6009_v61, %v6008_v13  ;;  %v6013_v12 = vrot.slane %v6008_v13, 4  ;;  %v6360_v39 = vld [vmem:[#allocation3 + $0x14] sm:$0x1]  ;;  %v6316_v56 = vld [vmem:[#allocation3 + $0x1c] sm:$0xf] }
 0x38d   : > { %v5994_v20 = vor.u32 %v5992_v17, %v5991_v15  ;;  %v5996_v4 = vrot.slane %v5991_v15, 4  ;;  %v5715_v19 = vmax.f32 %v5683_v32, 0.0  ;;  %v5713_v6 = vmax.f32 %v5681_v27, 0.0 }
 0x38e   : > { %v6032_v43 = vshrl.u32 %v12248_v18, 16  ;;  %v6035_v52 = vshll.u32 %v12248_v18, 16  ;;  %v6015_v46 = vshrl.u32 %v12246_v62, 16  ;;  %v6018_v57 = vshll.u32 %v12246_v62, 16  ;;  %v6266_v62 = vld [vmem:[#allocation3 + $0x80] sm:$0x1] }
 0x38f   : > { %v6012_v63 = vsel %vm14610_vm10, %v6004_v60, %v6011_v3  ;;  %v6253_v28 = vsel %vm14592_vm8, %v6013_v12, %v6252_v53  ;;  %v5995_v23 = vsel %vm14610_vm10, %v5987_v47, %v5994_v20  ;;  %v6246_v31 = vsel %vm14592_vm8, %v5996_v4, %v6245_v33  ;;  %v6315_v47 = vld [vmem:[#allocation3 + $0x18] sm:$0xf]  ;;  %v6259_v3 = vld [vmem:[#allocation3 + $0x74] sm:$0x1] }
 0x390   : > { %6251 = vst [vmem:[#allocation3 + $0x64] sm:$0xf] %v6012_v63  ;;  %6254 = vst [vmem:[#allocation3 + $0x68] sm:$0x1] %v6253_v28  ;;  %v6034_v41 = vrot.slane %v6032_v43, 7  ;;  %v6017_v34 = vrot.slane %v6015_v46, 7  ;;  %v12249_v49 = vpack.c.bf16 %v5715_v19, %v5715_v19  ;;  %v12247_v38 = vpack.c.bf16 %v5713_v6, %v5713_v6 }
 0x391   : > { %6244 = vst [vmem:[#allocation3 + $0x58] sm:$0xf] %v5995_v23  ;;  %6247 = vst [vmem:[#allocation3 + $0x5c] sm:$0x1] %v6246_v31  ;;  %v6402_v5 = vrot.slane %v6400_v2, 4  ;;  %v6405_v29 = vrot.slane %v6403_v16, 5 }
 0x392   : > { %v6409_v8 = vshll.u32 %v6314_v44, 16  ;;  %v6413_v48 = vshrl.u32 %v6314_v44, 16  ;;  %v16399_v30 = vpop.f32.mrb[24].mxu0  ;;  %v6037_v14 = vor.u32 %v6035_v52, %v6034_v41  ;;  %v6038_v10 = vrot.slane %v6034_v41, 4  ;;  %v6361_v28 = vld [vmem:[#allocation3 + $0x20] sm:$0x1] }
 0x393   : > { %v6020_v9 = vor.u32 %v6018_v57, %v6017_v34  ;;  %v16401_v59 = vpop.f32.mrb[25].mxu0  ;;  %v6406_v60 = vor.u32 %v6405_v29, %v6402_v5  ;;  %v6419_v17 = vshll.u32 %v6360_v39, 16  ;;  %v6021_v53 = vrot.slane %v6017_v34, 4  ;;  %v6317_v34 = vld [vmem:[#allocation3 + $0x24] sm:$0xf] }
 0x394   : > { %v6411_v11 = vrot.slane %v6409_v8, 5  ;;  %v16403_v51 = vpop.f32.mrb[26].mxu0  ;;  %v6263_v58 = vsel %vm14602_vm9, %v6037_v14, %v6262_v45  ;;  %v6415_v55 = vrot.slane %v6413_v48, 4  ;;  %v6040_v42 = vshrl.u32 %v12249_v49, 16 }
 0x395   : > { %v6256_v61 = vsel %vm14602_vm9, %v6020_v9, %v6255_v40  ;;  %v16409_v24 = vpop.f32.mrb[27].mxu0  ;;  %6264 = vst [vmem:[#allocation3 + $0x78] sm:$0xf] %v6263_v58  ;;  %v6043_v0 = vshll.u32 %v12249_v49, 16  ;;  %v6023_v13 = vshrl.u32 %v12247_v38, 16  ;;  %v6026_v15 = vshll.u32 %v12247_v38, 16 }
 0x396   : > { %6257 = vst [vmem:[#allocation3 + $0x6c] sm:$0xf] %v6256_v61  ;;  %v6407_v33 = vrot.slane %v6406_v60, 4  ;;  %v6416_v32 = vor.u32 %v6415_v55, %v6411_v11  ;;  %v6421_v27 = vrot.slane %v6419_v17, 5  ;;  %v6042_v18 = vrot.slane %v6040_v42, 7 }
 0x397   : > { %v6025_v44 = vrot.slane %v6023_v13, 7  ;;  %v6424_v2 = vshrl.u32 %v6315_v47, 16  ;;  %v6427_v16 = vshll.u32 %v6315_v47, 16  ;;  %v6433_v4 = vshll.u32 %v6316_v56, 16  ;;  %v6318_v61 = vld [vmem:[#allocation3 + $0x28] sm:$0xf] }
 0x398   : > { %v6412_v12 = vsel %vm14586_vm6, %v6407_v33, %v6411_v11  ;;  %v6417_v20 = vrot.slane %v6416_v32, 4  ;;  %v6437_v43 = vshrl.u32 %v6316_v56, 16  ;;  %v6045_v52 = vor.u32 %v6043_v0, %v6042_v18  ;;  %v16413_v23 = vpop.f32.mrb[28].mxu0 }
 0x399   : > { %v6047_v46 = vrot.slane %v6042_v18, 4  ;;  %v6028_v57 = vor.u32 %v6026_v15, %v6025_v44  ;;  %v6030_v63 = vrot.slane %v6025_v44, 4  ;;  %v6426_v45 = vrot.slane %v6424_v2, 4  ;;  %v16417_v19 = vpop.f32.mrb[29].mxu0 }
 0x39a   : > { %v6422_v31 = vsel %vm14586_vm6, %v6417_v20, %v6421_v27  ;;  %v6429_v40 = vrot.slane %v6427_v16, 5  ;;  %v6435_v41 = vrot.slane %v6433_v4, 5  ;;  %v6046_v6 = vsel %vm14610_vm10, %v6038_v10, %v6045_v52  ;;  %v16427_v8 = vpop.f32.mrb[30].mxu0  ;;  %v14208_v10 = vld [vmem:[%s18106_s3 + $0x8] sm:$0xff]  }
 0x39b   : > { %v6267_v39 = vsel %vm14592_vm8, %v6047_v46, %v6266_v62  ;;  %v6029_v5 = vsel %vm14610_vm10, %v6021_v53, %v6028_v57  ;;  %v6260_v29 = vsel %vm14592_vm8, %v6030_v63, %v6259_v3  ;;  %6265 = vst [vmem:[#allocation3 + $0x7c] sm:$0xf] %v6046_v6  ;;  %v11818_v48 = vcombine.low %v6412_v12, %v6422_v31  ;;  %v16432_v38 = vpop.f32.mrb[31].mxu0  ;;  %v6269_v46 = vld [vmem:[#allocation3 + $0x84] sm:$0xf] }
 0x39c   : > { %6268 = vst [vmem:[#allocation3 + $0x80] sm:$0x1] %v6267_v39  ;;  %6258 = vst [vmem:[#allocation3 + $0x70] sm:$0xf] %v6029_v5  ;;  %v6430_v14 = vor.u32 %v6429_v40, %v6426_v45  ;;  %v6439_v9 = vrot.slane %v6437_v43, 4  ;;  %v6443_v49 = vshll.u32 %v6361_v28, 16  ;;  %v5686_v60 = vadd.f32 %v16377_v50, %v16309_v22 }
 0x39d   : > { %6261 = vst [vmem:[#allocation3 + $0x74] sm:$0x1] %v6260_v29  ;;  %v5684_v11 = vadd.f32 %v16309_v22, %v16383_v7  ;;  %v5687_v47 = vadd.f32 %v16387_v35, %v16309_v22  ;;  %v5685_v58 = vadd.f32 %v16309_v22, %v16389_v21  ;;  %13143 = vmatmul.mubr.bf16.vlgmr.msra.gmra.mrb[0].mxu1 %v11818_v48  ;;  %v6448_v53 = vshrl.u32 %v6317_v34, 16  ;;  %v14209_v21 = vld [vmem:[%s18106_s3 + $0x10] sm:$0xff]   ;;  %v6276_v43 = vld [vmem:[#allocation3 + $0x90] sm:$0xf] }
 0x39e   : > { %v6431_v55 = vrot.slane %v6430_v14, 4  ;;  %v6440_v17 = vor.u32 %v6439_v9, %v6435_v41  ;;  %v6445_v56 = vrot.slane %v6443_v49, 5  ;;  %13175 = vmatpush3.bf16.msra.mxu1 %v16303_v36  ;;  %v5718_v42 = vmax.f32 %v5686_v60, 0.0  ;;  %v14210_v31 = vld [vmem:[%s18106_s3 + $0x18] sm:$0xff]   ;;  %v6273_v6 = vld [vmem:[#allocation3 + $0x8c] sm:$0x1] }
 0x39f   : > { %v5716_v0 = vmax.f32 %v5684_v11, 0.0  ;;  %v5719_v50 = vmax.f32 %v5687_v47, 0.0  ;;  %v5717_v13 = vmax.f32 %v5685_v58, 0.0  ;;  %v6450_v35 = vrot.slane %v6448_v53, 4  ;;  %13176 = vmatprep.subr.bf16.mxu1 %v14208_v10  ;;  %v14211_v9 = vld [vmem:[%s18106_s3 + $0x20] sm:$0xff]  }
 0x3a0   : > { %v6436_v7 = vsel %vm14586_vm6, %v6431_v55, %v6435_v41  ;;  %v6441_v15 = vrot.slane %v6440_v17, 4  ;;  %v6451_v33 = vshll.u32 %v6317_v34, 16  ;;  %v12252_v32 = vpack.c.bf16 %v5718_v42, %v5718_v42  ;;  %v6280_v41 = vld [vmem:[#allocation3 + $0x98] sm:$0x1]  ;;  %v6362_v17 = vld [vmem:[#allocation3 + $0x2c] sm:$0x1] }
 0x3a1   : > { %v12250_v27 = vpack.c.bf16 %v5716_v0, %v5716_v0  ;;  %v12253_v18 = vpack.c.bf16 %v5719_v50, %v5719_v50  ;;  %v12251_v62 = vpack.c.bf16 %v5717_v13, %v5717_v13  ;;  %v6457_v2 = vshll.u32 %v6318_v61, 16  ;;  %v16462_v13 = vld [vmem:[#allocation3 + $0x34] sm:$0xf] }
 0x3a2   : > { %v6446_v36 = vsel %vm14586_vm6, %v6441_v15, %v6445_v56  ;;  %v6453_v44 = vrot.slane %v6451_v33, 5  ;;  %v6461_v16 = vshrl.u32 %v6318_v61, 16  ;;  %v6066_v12 = vshrl.u32 %v12252_v32, 16  ;;  %13177 = vmatpush3.bf16.msra.mxu1 %v14208_v10  ;;  %v16456_v56 = vld [vmem:[#allocation3 + $0x30] sm:$0xf] }
 0x3a3   : > { %v11819_v3 = vcombine.low %v6436_v7, %v6446_v36  ;;  %v6069_v20 = vshll.u32 %v12252_v32, 16  ;;  %v6049_v4 = vshrl.u32 %v12250_v27, 16  ;;  %v6052_v52 = vshll.u32 %v12250_v27, 16  ;;  %13178 = vmatprep.subr.bf16.mxu1 %v14209_v21  ;;  %v6363_v7 = vld [vmem:[#allocation3 + $0x38] sm:$0x1] }
 0x3a4   : > { %v6074_v57 = vshrl.u32 %v12253_v18, 16  ;;  %v6077_v63 = vshll.u32 %v12253_v18, 16  ;;  %v6057_v28 = vshrl.u32 %v12251_v62, 16  ;;  %v6068_v45 = vrot.slane %v6066_v12, 7 }
 0x3a5   : > { %13146 = vmatprep.mubr.bf16.mxu1 %v11819_v3  ;;  %v6051_v40 = vrot.slane %v6049_v4, 7  ;;  %v6060_v34 = vshll.u32 %v12251_v62, 16  ;;  %v6454_v39 = vor.u32 %v6453_v44, %v6450_v35  ;;  %v6459_v48 = vrot.slane %v6457_v2, 5  ;;  %v14212_v3 = vld [vmem:[%s18106_s3 + $0x28] sm:$0xff]  }
 0x3a6   : > { %v6076_v5 = vrot.slane %v6074_v57, 7  ;;  %v6059_v29 = vrot.slane %v6057_v28, 7  ;;  %v6463_v14 = vrot.slane %v6461_v16, 4  ;;  %v6071_v49 = vor.u32 %v6069_v20, %v6068_v45  ;;  %13179 = vmatpush3.bf16.msra.mxu1 %v14209_v21  ;;  %v16485_v28 = vld [vmem:[#allocation3 + $0x3c] sm:$0xf] }
 0x3a7   : > { %v6072_v10 = vrot.slane %v6068_v45, 4  ;;  %v6054_v60 = vor.u32 %v6052_v52, %v6051_v40  ;;  %v6055_v11 = vrot.slane %v6051_v40, 4  ;;  %13180 = vmatprep.subr.bf16.mxu1 %v14210_v31  ;;  %v6455_v0 = vrot.slane %v6454_v39, 4  ;;  %v14213_v39 = vld [vmem:[%s18106_s3 + $0x30] sm:$0xff]  }
 0x3a8   : > { %v6079_v47 = vor.u32 %v6077_v63, %v6076_v5  ;;  %v6081_v58 = vrot.slane %v6076_v5, 4  ;;  %v6062_v61 = vor.u32 %v6060_v34, %v6059_v29  ;;  %v6064_v55 = vrot.slane %v6059_v29, 4 }
 0x3a9   : > { %v6277_v53 = vsel %vm14602_vm9, %v6071_v49, %v6276_v43  ;;  %v6270_v42 = vsel %vm14602_vm9, %v6054_v60, %v6269_v46  ;;  %v6464_v50 = vor.u32 %v6463_v14, %v6459_v48  ;;  %v6460_v32 = vsel %vm14586_vm6, %v6455_v0, %v6459_v48  ;;  %v14214_v0 = vld [vmem:[%s18106_s3 + $0x38] sm:$0xff]  }
 0x3aa   : > { %6278 = vst [vmem:[#allocation3 + $0x90] sm:$0xf] %v6277_v53  ;;  %6271 = vst [vmem:[#allocation3 + $0x84] sm:$0xf] %v6270_v42  ;;  %v6080_v15 = vsel %vm14610_vm10, %v6072_v10, %v6079_v47  ;;  %v6281_v35 = vsel %vm14592_vm8, %v6081_v58, %v6280_v41  ;;  %v6063_v33 = vsel %vm14610_vm10, %v6055_v11, %v6062_v61  ;;  %v6467_v18 = vshll.u32 %v6362_v17, 16 }
 0x3ab   : > { %v6274_v21 = vsel %vm14592_vm8, %v6064_v55, %v6273_v6  ;;  %6279 = vst [vmem:[#allocation3 + $0x94] sm:$0xf] %v6080_v15  ;;  %6282 = vst [vmem:[#allocation3 + $0x98] sm:$0x1] %v6281_v35  ;;  %v6465_v27 = vrot.slane %v6464_v50, 4  ;;  %v6472_v62 = vshrl.u32 %v16456_v56, 16  ;;  %13181 = vmatpush3.bf16.msra.mxu1 %v14210_v31  ;;  %v5690_v4 = vadd.f32 %v16399_v30, %v16309_v22 }
 0x3ac   : > { %6272 = vst [vmem:[#allocation3 + $0x88] sm:$0xf] %v6063_v33  ;;  %6275 = vst [vmem:[#allocation3 + $0x8c] sm:$0x1] %v6274_v21  ;;  %v6475_v36 = vshll.u32 %v16456_v56, 16  ;;  %v6481_v44 = vshll.u32 %v16462_v13, 16  ;;  %13182 = vmatprep.subr.bf16.mxu1 %v14211_v9  ;;  %v5688_v43 = vadd.f32 %v16309_v22, %v16401_v59  ;;  %v5691_v41 = vadd.f32 %v16403_v51, %v16309_v22 }
 0x3ad   : > { %v6485_v2 = vshrl.u32 %v16462_v13, 16  ;;  %v6491_v16 = vshll.u32 %v6363_v7, 16  ;;  %v6469_v12 = vrot.slane %v6467_v18, 5  ;;  %v6474_v20 = vrot.slane %v6472_v62, 4  ;;  %v6290_v61 = vld [vmem:[#allocation3 + $0xa8] sm:$0xf] }
 0x3ae   : > { %v6477_v52 = vrot.slane %v6475_v36, 5  ;;  %v6483_v46 = vrot.slane %v6481_v44, 5  ;;  %v5722_v45 = vmax.f32 %v5690_v4, 0.0  ;;  %v5720_v40 = vmax.f32 %v5688_v43, 0.0  ;;  %v6283_v55 = vld [vmem:[#allocation3 + $0x9c] sm:$0xf] }
 0x3af   : > { %v6487_v57 = vrot.slane %v6485_v2, 4  ;;  %v6493_v63 = vrot.slane %v6491_v16, 5  ;;  %v6470_v31 = vsel %vm14586_vm6, %v6465_v27, %v6469_v12  ;;  %13183 = vmatpush3.bf16.msra.mxu1 %v14211_v9  ;;  %v5689_v59 = vadd.f32 %v16309_v22, %v16409_v24  ;;  %v16502_v42 = vld [vmem:[#allocation3 + $0x40] sm:$0xf]  ;;  %v6364_v35 = vld [vmem:[#allocation3 + $0x44] sm:$0x1] }
 0x3b0   : > { %v11820_v34 = vcombine.low %v6460_v32, %v6470_v31  ;;  %v6478_v30 = vor.u32 %v6477_v52, %v6474_v20  ;;  %13184 = vmatprep.subr.bf16.mxu1 %v14212_v3  ;;  %v12256_v5 = vpack.c.bf16 %v5722_v45, %v5722_v45  ;;  %v12254_v29 = vpack.c.bf16 %v5720_v40, %v5720_v40  ;;  %v6294_v16 = vld [vmem:[#allocation3 + $0xb0] sm:$0x1]  ;;  %v16511_v43 = vld [vmem:[%s18106_s3 + $0x80] sm:$0xff]  }
 0x3b1   : > { %v6488_v6 = vor.u32 %v6487_v57, %v6483_v46  ;;  %v5723_v48 = vmax.f32 %v5691_v41, 0.0  ;;  %v6496_v14 = vshrl.u32 %v16485_v28, 16  ;;  %v5721_v9 = vmax.f32 %v5689_v59, 0.0  ;;  %v6287_v57 = vld [vmem:[#allocation3 + $0xa4] sm:$0x1] }
 0x3b2   : > { %13147 = vmatmul.mubr.bf16.gmra.mrb[4].mxu1 %v11820_v34  ;;  %v6479_v49 = vrot.slane %v6478_v30, 4  ;;  %v6499_v10 = vshll.u32 %v16485_v28, 16  ;;  %v6100_v60 = vshrl.u32 %v12256_v5, 16  ;;  %v6103_v11 = vshll.u32 %v12256_v5, 16  ;;  %v16518_v30 = vld [vmem:[#allocation3 + $0x48] sm:$0xf] }
 0x3b3   : > { %v6489_v51 = vrot.slane %v6488_v6, 4  ;;  %v6083_v47 = vshrl.u32 %v12254_v29, 16  ;;  %v6086_v22 = vshll.u32 %v12254_v29, 16  ;;  %13185 = vmatpush3.bf16.msra.mxu1 %v14212_v3  ;;  %v12257_v17 = vpack.c.bf16 %v5723_v48, %v5723_v48  ;;  %v16520_v6 = vld [vmem:[#allocation3 + $0x4c] sm:$0xf] }
 0x3b4   : > { %v6484_v24 = vsel %vm14586_vm6, %v6479_v49, %v6483_v46  ;;  %v12255_v53 = vpack.c.bf16 %v5721_v9, %v5721_v9  ;;  %13186 = vmatprep.subr.bf16.mxu1 %v14213_v39  ;;  %v6102_v7 = vrot.slane %v6100_v60, 7  ;;  %v6498_v33 = vrot.slane %v6496_v14, 4  ;;  %v16522_v48 = vld [vmem:[#allocation3 + $0x50] sm:$0x1] }
 0x3b5   : > { %v6494_v58 = vsel %vm14586_vm6, %v6489_v51, %v6493_v63  ;;  %v6085_v15 = vrot.slane %v6083_v47, 7  ;;  %v6108_v21 = vshrl.u32 %v12257_v17, 16  ;;  %v6111_v32 = vshll.u32 %v12257_v17, 16 }
 0x3b6   : > { %v11821_v50 = vcombine.low %v6484_v24, %v6494_v58  ;;  %v6091_v27 = vshrl.u32 %v12255_v53, 16  ;;  %v6094_v18 = vshll.u32 %v12255_v53, 16  ;;  %v6105_v62 = vor.u32 %v6103_v11, %v6102_v7 }
 0x3b7   : > { %v6106_v36 = vrot.slane %v6102_v7, 4  ;;  %v6088_v44 = vor.u32 %v6086_v22, %v6085_v15  ;;  %v6089_v2 = vrot.slane %v6085_v15, 4  ;;  %13187 = vmatpush3.bf16.msra.mxu1 %v14213_v39  ;;  %v6110_v3 = vrot.slane %v6108_v21, 7  ;;  %v16544_v21 = vld [vmem:[#allocation3 + $0x54] sm:$0xf] }
 0x3b8   : > { %13150 = vmatprep.mubr.bf16.mxu1 %v11821_v50  ;;  %v6093_v12 = vrot.slane %v6091_v27, 7  ;;  %v6501_v20 = vrot.slane %v6499_v10, 5  ;;  %v6505_v4 = vshll.u32 %v16502_v42, 16  ;;  %13188 = vmatprep.subr.bf16.mxu1 %v14214_v0  ;;  %v6291_v52 = vsel %vm14602_vm9, %v6105_v62, %v6290_v61  ;;  %v14346_v61 = vld [vmem:[%s18105_s2] ss:$0 sm:$0xff] }
 0x3b9   : > { %v6284_v46 = vsel %vm14602_vm9, %v6088_v44, %v6283_v55  ;;  %v6509_v63 = vshrl.u32 %v16502_v42, 16  ;;  %v6515_v31 = vshll.u32 %v6364_v35, 16  ;;  %6292 = vst [vmem:[#allocation3 + $0xa8] sm:$0xf] %v6291_v52  ;;  %v6113_v45 = vor.u32 %v6111_v32, %v6110_v3 }
 0x3ba   : > { %6285 = vst [vmem:[#allocation3 + $0x9c] sm:$0xf] %v6284_v46  ;;  %v6115_v40 = vrot.slane %v6110_v3, 4  ;;  %v6096_v41 = vor.u32 %v6094_v18, %v6093_v12  ;;  %v6098_v34 = vrot.slane %v6093_v12, 4  ;;  %v6502_v59 = vor.u32 %v6501_v20, %v6498_v33 }
 0x3bb   : > { %v6507_v39 = vrot.slane %v6505_v4, 5  ;;  %v6511_v5 = vrot.slane %v6509_v63, 4  ;;  %v6517_v29 = vrot.slane %v6515_v31, 5  ;;  %13189 = vmatpush3.bf16.msra.mxu1 %v14214_v0  ;;  %v6114_v14 = vsel %vm14610_vm10, %v6106_v36, %v6113_v45  ;;  %v6304_v63 = vld [vmem:[#allocation3 + $0xc0] sm:$0xf] }
 0x3bc   : > { %v6295_v49 = vsel %vm14592_vm8, %v6115_v40, %v6294_v16  ;;  %v6097_v51 = vsel %vm14610_vm10, %v6089_v2, %v6096_v41  ;;  %v6288_v9 = vsel %vm14592_vm8, %v6098_v34, %v6287_v57  ;;  %13222 = vmatprep.subr.bf16.mxu1 %v16511_v43  ;;  %6293 = vst [vmem:[#allocation3 + $0xac] sm:$0xf] %v6114_v14  ;;  %v6503_v10 = vrot.slane %v6502_v59, 4  ;;  %v16556_v34 = vld [vmem:[#allocation3 + $0x58] sm:$0xf] }
 0x3bd   : > { %6296 = vst [vmem:[#allocation3 + $0xb0] sm:$0x1] %v6295_v49  ;;  %6286 = vst [vmem:[#allocation3 + $0xa0] sm:$0xf] %v6097_v51  ;;  %v6512_v60 = vor.u32 %v6511_v5, %v6507_v39  ;;  %v6520_v11 = vshrl.u32 %v16518_v30, 16  ;;  %v6523_v47 = vshll.u32 %v16518_v30, 16  ;;  %v5694_v55 = vadd.f32 %v14346_v61, %v16413_v23 }
 0x3be   : > { %6289 = vst [vmem:[#allocation3 + $0xa4] sm:$0x1] %v6288_v9  ;;  %v6529_v22 = vshll.u32 %v16520_v6, 16  ;;  %v6533_v24 = vshrl.u32 %v16520_v6, 16  ;;  %v6539_v58 = vshll.u32 %v16522_v48, 16  ;;  %v6508_v17 = vsel %vm14586_vm6, %v6503_v10, %v6507_v39 }
 0x3bf   : > { %v6513_v53 = vrot.slane %v6512_v60, 4  ;;  %v6522_v0 = vrot.slane %v6520_v11, 4  ;;  %v6525_v50 = vrot.slane %v6523_v47, 5  ;;  %v5726_v33 = vmax.f32 %v5694_v55, 0.0  ;;  %v6297_v11 = vld [vmem:[#allocation3 + $0xb4] sm:$0xf] }
 0x3c0   : > { %v6531_v7 = vrot.slane %v6529_v22, 5  ;;  %v6535_v15 = vrot.slane %v6533_v24, 4  ;;  %v6541_v35 = vrot.slane %v6539_v58, 5  ;;  %v5692_v18 = vadd.f32 %v14346_v61, %v16417_v19 }
 0x3c1   : > { %v6518_v32 = vsel %vm14586_vm6, %v6513_v53, %v6517_v29  ;;  %v6526_v27 = vor.u32 %v6525_v50, %v6522_v0  ;;  %v5695_v23 = vadd.f32 %v14346_v61, %v16427_v8  ;;  %v12260_v44 = vpack.c.bf16 %v5726_v33, %v5726_v33  ;;  %v16563_v33 = vld [vmem:[#allocation3 + $0x5c] sm:$0x1] }
 0x3c2   : > { %v11822_v62 = vcombine.low %v6508_v17, %v6518_v32  ;;  %v6536_v36 = vor.u32 %v6535_v15, %v6531_v7  ;;  %v5693_v2 = vadd.f32 %v14346_v61, %v16432_v38  ;;  %v5724_v3 = vmax.f32 %v5692_v18, 0.0  ;;  %v6308_v61 = vld [vmem:[#allocation3 + $0xc8] sm:$0x1] }
 0x3c3   : > { %v6527_v16 = vrot.slane %v6526_v27, 4  ;;  %v5727_v12 = vmax.f32 %v5695_v23, 0.0  ;;  %v6544_v20 = vshrl.u32 %v16544_v21, 16  ;;  %v6134_v52 = vshrl.u32 %v12260_v44, 16 }
 0x3c4   : > { %13151 = vmatmul.mubr.bf16.gmra.mrb[8].mxu1 %v11822_v62  ;;  %v6537_v4 = vrot.slane %v6536_v36, 4  ;;  %v6137_v46 = vshll.u32 %v12260_v44, 16  ;;  %v5725_v57 = vmax.f32 %v5693_v2, 0.0  ;;  %v12258_v8 = vpack.c.bf16 %v5724_v3, %v5724_v3  ;;  %v16565_v62 = vld [vmem:[#allocation3 + $0x60] sm:$0xf] }
 0x3c5   : > { %v6532_v19 = vsel %vm14586_vm6, %v6527_v16, %v6531_v7  ;;  %v12261_v31 = vpack.c.bf16 %v5727_v12, %v5727_v12  ;;  %v6546_v45 = vrot.slane %v6544_v20, 4  ;;  %v6136_v40 = vrot.slane %v6134_v52, 7  ;;  %v16567_v36 = vld [vmem:[#allocation3 + $0x64] sm:$0xf]  ;;  %v16575_v12 = vld [vmem:[#allocation3 + $0x68] sm:$0x1] }
 0x3c6   : > { %v6542_v38 = vsel %vm14586_vm6, %v6537_v4, %v6541_v35  ;;  %v12259_v41 = vpack.c.bf16 %v5725_v57, %v5725_v57  ;;  %v6547_v59 = vshll.u32 %v16544_v21, 16  ;;  %v6117_v5 = vshrl.u32 %v12258_v8, 16  ;;  %v6301_v35 = vld [vmem:[#allocation3 + $0xbc] sm:$0x1] }
 0x3c7   : > { %v11823_v39 = vcombine.low %v6532_v19, %v6542_v38  ;;  %v6120_v29 = vshll.u32 %v12258_v8, 16  ;;  %v6142_v14 = vshrl.u32 %v12261_v31, 16  ;;  %v6139_v49 = vor.u32 %v6137_v46, %v6136_v40  ;;  %v16582_v46 = vld [vmem:[#allocation3 + $0x6c] sm:$0xf] }
 0x3c8   : > { %v6140_v51 = vrot.slane %v6136_v40, 4  ;;  %v6145_v9 = vshll.u32 %v12261_v31, 16  ;;  %v6125_v10 = vshrl.u32 %v12259_v41, 16  ;;  %v6119_v60 = vrot.slane %v6117_v5, 7  ;;  %v16587_v31 = vld [vmem:[#allocation3 + $0x70] sm:$0xf] }
 0x3c9   : > { %13154 = vmatprep.mubr.bf16.mxu1 %v11823_v39  ;;  %v6144_v47 = vrot.slane %v6142_v14, 7  ;;  %v6128_v22 = vshll.u32 %v12259_v41, 16  ;;  %v6549_v24 = vrot.slane %v6547_v59, 5  ;;  %v6305_v58 = vsel %vm14602_vm9, %v6139_v49, %v6304_v63  ;;  %v16593_v5 = vld [vmem:[#allocation3 + $0x74] sm:$0x1] }
 0x3ca   : > { %v6127_v55 = vrot.slane %v6125_v10, 7  ;;  %v6553_v17 = vshll.u32 %v16556_v34, 16  ;;  %v6557_v53 = vshrl.u32 %v16556_v34, 16  ;;  %6306 = vst [vmem:[#allocation3 + $0xc0] sm:$0xf] %v6305_v58  ;;  %v6122_v0 = vor.u32 %v6120_v29, %v6119_v60 }
 0x3cb   : > { %v6123_v50 = vrot.slane %v6119_v60, 4  ;;  %v6147_v7 = vor.u32 %v6145_v9, %v6144_v47  ;;  %v6149_v15 = vrot.slane %v6144_v47, 4  ;;  %v6550_v18 = vor.u32 %v6549_v24, %v6546_v45  ;;  %v16595_v29 = vld [vmem:[#allocation3 + $0x78] sm:$0xf] }
 0x3cc   : > { %v6130_v32 = vor.u32 %v6128_v22, %v6127_v55  ;;  %v6132_v27 = vrot.slane %v6127_v55, 4  ;;  %v6555_v23 = vrot.slane %v6553_v17, 5  ;;  %v6298_v44 = vsel %vm14602_vm9, %v6122_v0, %v6297_v11  ;;  %v16603_v22 = vld [vmem:[#allocation3 + $0x7c] sm:$0xf] }
 0x3cd   : > { %v6148_v2 = vsel %vm14610_vm10, %v6140_v51, %v6147_v7  ;;  %v6309_v16 = vsel %vm14592_vm8, %v6149_v15, %v6308_v61  ;;  %v6559_v3 = vrot.slane %v6557_v53, 4  ;;  %6299 = vst [vmem:[#allocation3 + $0xb4] sm:$0xf] %v6298_v44  ;;  %v6551_v25 = vrot.slane %v6550_v18, 4 }
 0x3ce   : > { %6307 = vst [vmem:[#allocation3 + $0xc4] sm:$0xf] %v6148_v2  ;;  %6310 = vst [vmem:[#allocation3 + $0xc8] sm:$0x1] %v6309_v16  ;;  %v6131_v20 = vsel %vm14610_vm10, %v6123_v50, %v6130_v32  ;;  %v6302_v4 = vsel %vm14592_vm8, %v6132_v27, %v6301_v35  ;;  %v6563_v52 = vshll.u32 %v16563_v33, 16  ;;  %v6568_v19 = vshrl.u32 %v16565_v62, 16 }
 0x3cf   : > { %6300 = vst [vmem:[#allocation3 + $0xb8] sm:$0xf] %v6131_v20  ;;  %6303 = vst [vmem:[#allocation3 + $0xbc] sm:$0x1] %v6302_v4  ;;  %v6560_v57 = vor.u32 %v6559_v3, %v6555_v23  ;;  %v6571_v63 = vshll.u32 %v16565_v62, 16  ;;  %v6577_v8 = vshll.u32 %v16567_v36, 16  ;;  %v6556_v37 = vsel %vm14586_vm6, %v6551_v25, %v6555_v23 }
 0x3d0   : > { %v6565_v54 = vrot.slane %v6563_v52, 5  ;;  %v6581_v45 = vshrl.u32 %v16567_v36, 16  ;;  %v6587_v38 = vshll.u32 %v16575_v12, 16  ;;  %v6570_v41 = vrot.slane %v6568_v19, 4  ;;  %v16606_v35 = vld [vmem:[#allocation3 + $0x80] sm:$0x1] }
 0x3d1   : > { %v6561_v40 = vrot.slane %v6560_v57, 4  ;;  %v6573_v59 = vrot.slane %v6571_v63, 5  ;;  %v6579_v39 = vrot.slane %v6577_v8, 5  ;;  %v6592_v51 = vshrl.u32 %v16582_v46, 16  ;;  %v16613_v16 = vld [vmem:[#allocation3 + $0x84] sm:$0xf] }
 0x3d2   : > { %v6583_v14 = vrot.slane %v6581_v45, 4  ;;  %v6589_v49 = vrot.slane %v6587_v38, 5  ;;  %v6595_v9 = vshll.u32 %v16582_v46, 16  ;;  %v6601_v11 = vshll.u32 %v16587_v31, 16  ;;  %v16615_v3 = vld [vmem:[#allocation3 + $0x88] sm:$0xf] }
 0x3d3   : > { %v6566_v10 = vsel %vm14586_vm6, %v6561_v40, %v6565_v54  ;;  %v6574_v60 = vor.u32 %v6573_v59, %v6570_v41  ;;  %v6605_v47 = vshrl.u32 %v16587_v31, 16  ;;  %v6594_v61 = vrot.slane %v6592_v51, 4  ;;  %v16624_v40 = vld [vmem:[#allocation3 + $0x90] sm:$0xf] }
 0x3d4   : > { %v11824_v24 = vcombine.low %v6556_v37, %v6566_v10  ;;  %v6584_v58 = vor.u32 %v6583_v14, %v6579_v39  ;;  %v6597_v55 = vrot.slane %v6595_v9, 5  ;;  %v6603_v53 = vrot.slane %v6601_v11, 5  ;;  %v16632_v11 = vld [vmem:[#allocation3 + $0x94] sm:$0xf] }
 0x3d5   : > { %v6575_v17 = vrot.slane %v6574_v60, 4  ;;  %v6607_v0 = vrot.slane %v6605_v47, 4  ;;  %v6611_v50 = vshll.u32 %v16593_v5, 16  ;;  %v6616_v32 = vshrl.u32 %v16595_v29, 16 }
 0x3d6   : > { %13155 = vmatmul.mubr.bf16.gmra.mrb[12].mxu1 %v11824_v24  ;;  %v6585_v7 = vrot.slane %v6584_v58, 4  ;;  %v6598_v15 = vor.u32 %v6597_v55, %v6594_v61  ;;  %v6619_v27 = vshll.u32 %v16595_v29, 16  ;;  %v6625_v2 = vshll.u32 %v16603_v22, 16 }
 0x3d7   : > { %v6580_v18 = vsel %vm14586_vm6, %v6575_v17, %v6579_v39  ;;  %v6608_v23 = vor.u32 %v6607_v0, %v6603_v53  ;;  %v6613_v44 = vrot.slane %v6611_v50, 5  ;;  %v6618_v25 = vrot.slane %v6616_v32, 4  ;;  %v16628_v39 = vld [vmem:[#allocation3 + $0x8c] sm:$0x1]  ;;  %v16640_v32 = vld [vmem:[#allocation3 + $0x98] sm:$0x1] }
 0x3d8   : > { %v6590_v20 = vsel %vm14586_vm6, %v6585_v7, %v6589_v49  ;;  %v6599_v4 = vrot.slane %v6598_v15, 4  ;;  %v6621_v52 = vrot.slane %v6619_v27, 5  ;;  %v6627_v63 = vrot.slane %v6625_v2, 5 }
 0x3d9   : > { %v11825_v57 = vcombine.low %v6580_v18, %v6590_v20  ;;  %v6609_v19 = vrot.slane %v6608_v23, 4  ;;  %v6629_v8 = vshrl.u32 %v16603_v22, 16  ;;  %v6635_v45 = vshll.u32 %v16606_v35, 16  ;;  %v16644_v20 = vld [vmem:[#allocation3 + $0x9c] sm:$0xf] }
 0x3da   : > { %v6604_v37 = vsel %vm14586_vm6, %v6599_v4, %v6603_v53  ;;  %v6622_v54 = vor.u32 %v6621_v52, %v6618_v25  ;;  %v6640_v38 = vshrl.u32 %v16613_v16, 16  ;;  %v6643_v14 = vshll.u32 %v16613_v16, 16 }
 0x3db   : > { %13158 = vmatprep.mubr.bf16.mxu1 %v11825_v57  ;;  %v6614_v41 = vsel %vm14586_vm6, %v6609_v19, %v6613_v44  ;;  %v6631_v59 = vrot.slane %v6629_v8, 4  ;;  %v6649_v49 = vshll.u32 %v16615_v3, 16  ;;  %v6637_v10 = vrot.slane %v6635_v45, 5  ;;  %v16648_v19 = vld [vmem:[#allocation3 + $0xa0] sm:$0xf] }
 0x3dc   : > { %v11826_v51 = vcombine.low %v6604_v37, %v6614_v41  ;;  %v6623_v9 = vrot.slane %v6622_v54, 4  ;;  %v6642_v60 = vrot.slane %v6640_v38, 4  ;;  %v6645_v24 = vrot.slane %v6643_v14, 5  ;;  %v16651_v45 = vld [vmem:[#allocation3 + $0xa8] sm:$0xf] }
 0x3dd   : > { %v6632_v47 = vor.u32 %v6631_v59, %v6627_v63  ;;  %v6651_v58 = vrot.slane %v6649_v49, 5  ;;  %v6653_v61 = vshrl.u32 %v16615_v3, 16  ;;  %v6659_v17 = vshll.u32 %v16628_v39, 16 }
 0x3de   : > { %13159 = vmatmul.mubr.bf16.gmra.mrb[16].mxu1 %v11826_v51  ;;  %v6628_v55 = vsel %vm14586_vm6, %v6623_v9, %v6627_v63  ;;  %v6664_v53 = vshrl.u32 %v16624_v40, 16  ;;  %v6667_v0 = vshll.u32 %v16624_v40, 16  ;;  %v6646_v7 = vor.u32 %v6645_v24, %v6642_v60 }
 0x3df   : > { %v6633_v50 = vrot.slane %v6632_v47, 4  ;;  %v6655_v15 = vrot.slane %v6653_v61, 4  ;;  %v6673_v27 = vshll.u32 %v16632_v11, 16  ;;  %v6661_v18 = vrot.slane %v6659_v17, 5 }
 0x3e0   : > { %v6666_v23 = vrot.slane %v6664_v53, 4  ;;  %v6669_v44 = vrot.slane %v6667_v0, 5  ;;  %v6677_v2 = vshrl.u32 %v16632_v11, 16  ;;  %v6647_v25 = vrot.slane %v6646_v7, 4  ;;  %v16667_v7 = vld [vmem:[#allocation3 + $0xb0] sm:$0x1] }
 0x3e1   : > { %v6638_v4 = vsel %vm14586_vm6, %v6633_v50, %v6637_v10  ;;  %v6656_v52 = vor.u32 %v6655_v15, %v6651_v58  ;;  %v6675_v57 = vrot.slane %v6673_v27, 5  ;;  %v6683_v54 = vshll.u32 %v16640_v32, 16  ;;  %v16657_v10 = vld [vmem:[#allocation3 + $0xa4] sm:$0x1]  ;;  %v16669_v15 = vld [vmem:[#allocation3 + $0xb4] sm:$0xf] }
 0x3e2   : > { %v11827_v63 = vcombine.low %v6628_v55, %v6638_v4  ;;  %v6670_v8 = vor.u32 %v6669_v44, %v6666_v23  ;;  %v6679_v37 = vrot.slane %v6677_v2, 4  ;;  %v6652_v38 = vsel %vm14586_vm6, %v6647_v25, %v6651_v58  ;;  %v16663_v55 = vld [vmem:[#allocation3 + $0xac] sm:$0xf]  ;;  %v16673_v2 = vld [vmem:[#allocation3 + $0xb8] sm:$0xf] }
 0x3e3   : > { %v6657_v41 = vrot.slane %v6656_v52, 4  ;;  %v6688_v59 = vshrl.u32 %v16644_v20, 16  ;;  %v6691_v14 = vshll.u32 %v16644_v20, 16  ;;  %v6685_v9 = vrot.slane %v6683_v54, 5 }
 0x3e4   : > { %13162 = vmatprep.mubr.bf16.mxu1 %v11827_v63  ;;  %v6671_v49 = vrot.slane %v6670_v8, 4  ;;  %v6680_v51 = vor.u32 %v6679_v37, %v6675_v57  ;;  %v6697_v60 = vshll.u32 %v16648_v19, 16  ;;  %v6701_v58 = vshrl.u32 %v16648_v19, 16 }
 0x3e5   : > { %v6662_v47 = vsel %vm14586_vm6, %v6657_v41, %v6661_v18  ;;  %v6690_v24 = vrot.slane %v6688_v59, 4  ;;  %v6693_v61 = vrot.slane %v6691_v14, 5  ;;  %v6707_v18 = vshll.u32 %v16657_v10, 16 }
 0x3e6   : > { %v11828_v17 = vcombine.low %v6652_v38, %v6662_v47  ;;  %v6676_v53 = vsel %vm14586_vm6, %v6671_v49, %v6675_v57  ;;  %v6681_v0 = vrot.slane %v6680_v51, 4  ;;  %v6699_v50 = vrot.slane %v6697_v60, 5 }
 0x3e7   : > { %v6694_v27 = vor.u32 %v6693_v61, %v6690_v24  ;;  %v6703_v23 = vrot.slane %v6701_v58, 4  ;;  %v6712_v44 = vshrl.u32 %v16651_v45, 16  ;;  %v6715_v25 = vshll.u32 %v16651_v45, 16  ;;  %v16684_v61 = vld [vmem:[#allocation3 + $0xbc] sm:$0x1] }
 0x3e8   : > { %13163 = vmatmul.mubr.bf16.gmra.mrb[20].mxu1 %v11828_v17  ;;  %v6686_v4 = vsel %vm14586_vm6, %v6681_v0, %v6685_v9  ;;  %v6721_v52 = vshll.u32 %v16663_v55, 16  ;;  %v6725_v57 = vshrl.u32 %v16663_v55, 16  ;;  %v6709_v54 = vrot.slane %v6707_v18, 5 }
 0x3e9   : > { %v11829_v63 = vcombine.low %v6676_v53, %v6686_v4  ;;  %v6695_v8 = vrot.slane %v6694_v27, 4  ;;  %v6704_v37 = vor.u32 %v6703_v23, %v6699_v50  ;;  %v6714_v38 = vrot.slane %v6712_v44, 4 }
 0x3ea   : > { %v6717_v41 = vrot.slane %v6715_v25, 5  ;;  %v6723_v59 = vrot.slane %v6721_v52, 5  ;;  %v6727_v14 = vrot.slane %v6725_v57, 4  ;;  %v6731_v9 = vshll.u32 %v16667_v7, 16 }
 0x3eb   : > { %13166 = vmatprep.mubr.bf16.mxu1 %v11829_v63  ;;  %v6700_v49 = vsel %vm14586_vm6, %v6695_v8, %v6699_v50  ;;  %v6705_v51 = vrot.slane %v6704_v37, 4  ;;  %v6736_v60 = vshrl.u32 %v16669_v15, 16  ;;  %v6739_v58 = vshll.u32 %v16669_v15, 16 }
 0x3ec   : > { %v6718_v47 = vor.u32 %v6717_v41, %v6714_v38  ;;  %v6728_v24 = vor.u32 %v6727_v14, %v6723_v59  ;;  %v6745_v17 = vshll.u32 %v16673_v2, 16  ;;  %v6733_v0 = vrot.slane %v6731_v9, 5  ;;  %v14347_v14 = vld [vmem:[#allocation3] sm:$0xf] }
 0x3ed   : > { %v6710_v53 = vsel %vm14586_vm6, %v6705_v51, %v6709_v54  ;;  %v6738_v27 = vrot.slane %v6736_v60, 4  ;;  %v6749_v50 = vshrl.u32 %v16673_v2, 16  ;;  %v6741_v4 = vrot.slane %v6739_v58, 5 }
 0x3ee   : > { %v11830_v23 = vcombine.low %v6700_v49, %v6710_v53  ;;  %v6719_v18 = vrot.slane %v6718_v47, 4  ;;  %v6729_v44 = vrot.slane %v6728_v24, 4  ;;  %v6747_v25 = vrot.slane %v6745_v17, 5  ;;  %v16696_v49 = vld [vmem:[#allocation3 + $0x4] sm:$0xf] }
 0x3ef   : > { %v6751_v52 = vrot.slane %v6749_v50, 4  ;;  %v6755_v57 = vshll.u32 %v16684_v61, 16  ;;  %v6742_v37 = vor.u32 %v6741_v4, %v6738_v27  ;;  %v11841_v51 = vcombine.low %v14347_v14, %v16696_v49  ;;  %v14349_v4 = vld [vmem:[#allocation3 + $0xc] sm:$0xf]  ;;  %v14223_v14 = vld [vmem:[%s18106_s3 + $0x90] sm:$0xff]  }
 0x3f0   : > { %13167 = vmatmul.mubr.bf16.gmra.mrb[24].mxu1 %v11830_v23  ;;  %v6724_v63 = vsel %vm14586_vm6, %v6719_v18, %v6723_v59  ;;  %v6734_v8 = vsel %vm14586_vm6, %v6729_v44, %v6733_v0  ;;  %v11848_v47 = vcombine.low %v16544_v21, %v16556_v34  ;;  %v11849_v59 = vcombine.low %v16565_v62, %v16567_v36  ;;  %v7364_v23 = vld [vmem:[#allocation3 + $0x78] sm:$0xe]  ;;  %v7354_v62 = vld [vmem:[#allocation3] sm:$0xe] }
 0x3f1   : > { %v11831_v54 = vcombine.low %v6724_v63, %v6734_v8  ;;  %v6752_v38 = vor.u32 %v6751_v52, %v6747_v25  ;;  %v6743_v41 = vrot.slane %v6742_v37, 4  ;;  %v6757_v60 = vrot.slane %v6755_v57, 5  ;;  %v14220_v57 = vld [vmem:[%s18106_s3 + $0x88] sm:$0xff]   ;;  %v14351_v63 = vld [vmem:[#allocation3 + $0x18] sm:$0xf] }
 0x3f2   : > { %v11850_v58 = vcombine.low %v16582_v46, %v16587_v31  ;;  %v11851_v17 = vcombine.low %v16595_v29, %v16603_v22  ;;  %v11852_v53 = vcombine.low %v16613_v16, %v16615_v3  ;;  %v16727_v8 = vld [vmem:[#allocation3 + $0x1c] sm:$0xf]  ;;  %v7463_v44 = vrot.slane %v16575_v12, 5 }
 0x3f3   : > { %13170 = vmatprep.mubr.bf16.mxu1 %v11831_v54  ;;  %v6753_v9 = vrot.slane %v6752_v38, 4  ;;  %v6748_v24 = vsel %vm14586_vm6, %v6743_v41, %v6747_v25  ;;  %v16721_v25 = vld [vmem:[#allocation3 + $0x10] sm:$0xf]  ;;  %v11843_v37 = vcombine.low %v14351_v63, %v16727_v8  ;;  %v7361_v54 = vld [vmem:[#allocation3 + $0x54] sm:$0xe]  ;;  %v7453_v41 = vrot.slane %v16556_v34, 5 }
 0x3f4   : > { %v11842_v52 = vcombine.low %v14349_v4, %v16721_v25  ;;  %v7362_v38 = vld [vmem:[#allocation3 + $0x60] sm:$0xe]  ;;  %v11845_v63 = vcombine.low %v16456_v56, %v16462_v13  ;;  %v7467_v56 = vrot.slane %v16587_v31, 5  ;;  %v7365_v13 = vld [vmem:[#allocation3 + $0x84] sm:$0xe]  ;;  %v18328_v21 = vcombine.low %v16624_v40, %v16632_v11 }
 0x3f5   : > { %v6758_v0 = vsel %vm14586_vm6, %v6753_v9, %v6757_v60  ;;  %v7460_v9 = vrot.slane %v16567_v36, 5  ;;  %v7363_v60 = vld [vmem:[#allocation3 + $0x6c] sm:$0xe]  ;;  %v7455_v4 = vrot.slane %v7453_v41, 4  ;;  %v7404_v34 = vrot.slane %v16696_v49, 5 }
 0x3f6   : > { %v11832_v18 = vcombine.low %v6748_v24, %v6758_v0  ;;  %v14353_v24 = vld [vmem:[#allocation3 + $0x24] sm:$0xf]  ;;  %v16736_v0 = vld [vmem:[#allocation3 + $0x28] sm:$0xf]  ;;  %v18329_v31 = vcombine.low %v16644_v20, %v16648_v19  ;;  %v18330_v29 = vcombine.low %v16651_v45, %v16663_v55  ;;  %v7418_v40 = vrot.slane %v16727_v8, 5 }
 0x3f7   : > { %v14355_v36 = vld [vmem:[#allocation3 + $0x8] sm:$0x1]  ;;  %v7406_v46 = vrot.slane %v7404_v34, 4  ;;  %v18331_v20 = vcombine.low %v16669_v15, %v16673_v2  ;;  %v14356_v45 = vld [vmem:[#allocation3 + $0x14] sm:$0x1]  ;;  %v7425_v8 = vrot.slane %v16736_v0, 5 }
 0x3f8   : > { %13171 = vmatmul.mubr.bf16.gmra.mrb[28].mxu1 %v11832_v18  ;;  %v11844_v18 = vcombine.low %v14353_v24, %v16736_v0  ;;  %v7469_v24 = vrot.slane %v7467_v56, 4  ;;  %v14358_v15 = vld [vmem:[#allocation3 + $0x34] sm:$0xf]  ;;  %v7357_v0 = vld [vmem:[#allocation3 + $0x24] sm:$0xe] }
 0x3f9   : > { %13190 = vmatprep.mubr.bf16.mxu1 %v11841_v51  ;;  %v11872_v51 = vrot.slane %v7361_v54, 9  ;;  %v7462_v54 = vrot.slane %v7460_v9, 4 }
 0x400   : > { %13191 = vmatmul.mubr.bf16.vlgmr.msra.gmra.mrb[0].mxu1 %v11842_v52  ;;  %v7456_v52 = vrot.slane %v16563_v33, 5 }
 0x401   : > { %13194 = vmatprep.mubr.bf16.mxu1 %v11843_v37  ;;  %13223 = vmatpush3.bf16.msra.mxu1 %v16511_v43  ;;  %v11873_v43 = vrot.slane %v7362_v38, 9  ;;  %v16744_v37 = vsel %vm14992_vm13, %v11872_v51, %v7453_v41  ;;  %v11874_v38 = vrot.slane %v7363_v60, 9  ;;  %v14226_v41 = vld [vmem:[%s18106_s3 + $0x98] sm:$0xff]   ;;  %v7470_v51 = vrot.slane %v16593_v5, 5  ;;  %v7368_v60 = vld [vmem:[#allocation3 + $0xa8] sm:$0xe] }
 0x402   : > { %13224 = vmatprep.subr.bf16.mxu1 %v14220_v57  ;;  %v16749_v50 = vsel %vm14992_vm13, %v7455_v4, %v7456_v52  ;;  %v11875_v4 = vrot.slane %v7364_v23, 9  ;;  %v7477_v52 = vrot.slane %v16606_v35, 5  ;;  %v7484_v35 = vrot.slane %v16628_v39, 5 }
 0x403   : > { %v16753_v33 = vsel %vm14992_vm13, %v11873_v43, %v7460_v9  ;;  %v7474_v9 = vrot.slane %v16603_v22, 5  ;;  %v7366_v43 = vld [vmem:[#allocation3 + $0x90] sm:$0xe]  ;;  %v16772_v12 = vsel %vm14992_vm13, %v11874_v38, %v7467_v56  ;;  %v16777_v5 = vsel %vm14992_vm13, %v7469_v24, %v7470_v51  ;;  %v14229_v38 = vld [vmem:[%s18106_s3 + $0xa0] sm:$0xff]   ;;  %v7367_v51 = vld [vmem:[#allocation3 + $0x9c] sm:$0xe] }
 0x404   : > { %v11846_v39 = vcombine.low %v16485_v28, %v16502_v42  ;;  %v7495_v28 = vrot.slane %v16648_v19, 5  ;;  %v7509_v42 = vrot.slane %v16673_v2, 5  ;;  %v7355_v19 = vld [vmem:[#allocation3 + $0xc] sm:$0xe]  ;;  %v7432_v2 = vrot.slane %v14358_v15, 5 }
 0x405   : > { %13225 = vmatpush3.bf16.msra.mxu1 %v14220_v57  ;;  %v16763_v57 = vsel %vm14992_vm13, %v7462_v54, %v7463_v44  ;;  %v7476_v27 = vrot.slane %v7474_v9, 4  ;;  %v11876_v44 = vrot.slane %v7365_v13, 9  ;;  %v7481_v54 = vrot.slane %v16615_v3, 5 }
 0x406   : > { %13226 = vmatprep.subr.bf16.mxu1 %v14223_v14  ;;  %v16781_v23 = vsel %vm14992_vm13, %v11875_v4, %v7474_v9  ;;  %v11877_v13 = vrot.slane %v7366_v43, 9  ;;  %v7491_v4 = vrot.slane %v16640_v32, 5  ;;  %v11878_v43 = vrot.slane %v7367_v51, 9 }
 0x407   : > { %v7483_v56 = vrot.slane %v7481_v54, 4  ;;  %v7505_v51 = vrot.slane %v16667_v7, 5  ;;  %v7411_v3 = vrot.slane %v16721_v25, 5 }
 0x408   : > { %13195 = vmatmul.mubr.bf16.gmra.mrb[4].mxu1 %v11844_v18  ;;  %v7488_v18 = vrot.slane %v16632_v11, 5  ;;  %v16831_v9 = vsel %vm14992_vm13, %v11878_v43, %v7495_v28  ;;  %v14235_v43 = vld [vmem:[%s18106_s3 + $0xb0] sm:$0xff]  }
 0x409   : > { %13198 = vmatprep.mubr.bf16.mxu1 %v11845_v63  ;;  %13227 = vmatpush3.bf16.msra.mxu1 %v14223_v14  ;;  %v16792_v63 = vsel %vm14992_vm13, %v7476_v27, %v7477_v52  ;;  %v16801_v14 = vsel %vm14992_vm13, %v11876_v44, %v7481_v54  ;;  %v16805_v27 = vsel %vm14992_vm13, %v7483_v56, %v7484_v35  ;;  %v7502_v44 = vrot.slane %v16663_v55, 5  ;;  %v7369_v54 = vld [vmem:[#allocation3 + $0xb4] sm:$0xe] }
 0x40a   : > { %13228 = vmatprep.subr.bf16.mxu1 %v14226_v41  ;;  %v7490_v24 = vrot.slane %v7488_v18, 4  ;;  %v16809_v52 = vsel %vm14992_vm13, %v11877_v13, %v7488_v18  ;;  %v14232_v35 = vld [vmem:[%s18106_s3 + $0xa8] sm:$0xff]   ;;  %v7498_v56 = vrot.slane %v16657_v10, 5  ;;  %v11879_v13 = vrot.slane %v7368_v60, 9 }
 0x40b   : > { %v11880_v60 = vrot.slane %v7369_v54, 9  ;;  %v7413_v49 = vrot.slane %v7411_v3, 4  ;;  %v7414_v55 = vrot.slane %v14356_v45, 5  ;;  %v7359_v45 = vld [vmem:[#allocation3 + $0x3c] sm:$0xe] }
 0x40c   : > { %v16816_v32 = vsel %vm14992_vm13, %v7490_v24, %v7491_v4  ;;  %v11847_v24 = vcombine.low %v16518_v30, %v16520_v6  ;;  %v7504_v4 = vrot.slane %v7502_v44, 4  ;;  %v16839_v10 = vsel %vm14992_vm13, %v11879_v13, %v7502_v44 }
 0x40d   : > { %13229 = vmatpush3.bf16.msra.mxu1 %v14226_v41  ;;  %v7497_v41 = vrot.slane %v7495_v28, 4  ;;  %v7512_v28 = vrot.slane %v16684_v61, 5  ;;  %v14238_v61 = vld [vmem:[%s18106_s3 + $0xb8] sm:$0xff]   ;;  %v7415_v25 = vsel %vm14992_vm13, %v7413_v49, %v7414_v55  ;;  %v18345_v44 = vcombine.low %v16801_v14, %v16805_v27  ;;  %v8990_v14 = vld [vmem:[#allocation3 + $0xb4] sm:$0xe] }
 0x40e   : > { %13230 = vmatprep.subr.bf16.mxu1 %v14229_v38  ;;  %v16845_v7 = vsel %vm14992_vm13, %v7504_v4, %v7505_v51 }
 0x40f   : > { %v16835_v18 = vsel %vm14992_vm13, %v7497_v41, %v7498_v56  ;;  %v11866_v56 = vrot.slane %v7355_v19, 9 }
 0x410   : > { %13199 = vmatmul.mubr.bf16.gmra.mrb[8].mxu1 %v11846_v39  ;;  %v7511_v39 = vrot.slane %v7509_v42, 4 }
 0x411   : > { %13202 = vmatprep.mubr.bf16.mxu1 %v11847_v24  ;;  %13231 = vmatpush3.bf16.msra.mxu1 %v14229_v38  ;;  %v16855_v38 = vsel %vm14992_vm13, %v11880_v60, %v7509_v42  ;;  %v14239_v42 = vld [vmem:[%s18106_s3 + $0xc0] sm:$0xff]   ;;  %v7412_v4 = vsel %vm14992_vm13, %v11866_v56, %v7411_v3  ;;  %v7446_v3 = vrot.slane %v16520_v6, 5  ;;  %v14362_v6 = vld [vmem:[#allocation3 + $0x44] sm:$0x1] }
 0x412   : > { %13232 = vmatprep.subr.bf16.mxu1 %v14232_v35  ;;  %v16859_v54 = vsel %vm14992_vm13, %v7511_v39, %v7512_v28  ;;  %v11898_v51 = vcombine.low %v7412_v4, %v7415_v25  ;;  %v14240_v39 = vld [vmem:[%s18106_s3 + $0xc8] sm:$0xff]   ;;  %v14243_v56 = vld [vmem:[%s18106_s3 + $0xe0] sm:$0xff]   ;;  %v11870_v25 = vrot.slane %v7359_v45, 9 }
 0x413   : > { %v7448_v55 = vrot.slane %v7446_v3, 4  ;;  %v14244_v4 = vld [vmem:[%s18106_s3 + $0xe8] sm:$0xff]  }
 0x415   : > { %13233 = vmatpush3.bf16.msra.mxu1 %v14232_v35 }
 0x416   : > { %13234 = vmatprep.subr.bf16.mxu1 %v14235_v43 }
 0x418   : > { %13203 = vmatmul.mubr.bf16.gmra.mrb[12].mxu1 %v11848_v47  ;;  %v7407_v47 = vrot.slane %v14355_v36, 5  ;;  %v14360_v36 = vld [vmem:[#allocation3 + $0x38] sm:$0x1] }
 0x419   : > { %13206 = vmatprep.mubr.bf16.mxu1 %v11849_v59  ;;  %13235 = vmatpush3.bf16.msra.mxu1 %v14235_v43  ;;  %v11865_v59 = vrot.slane %v7354_v62, 9  ;;  %v7427_v43 = vrot.slane %v7425_v8, 4  ;;  %v7358_v62 = vld [vmem:[#allocation3 + $0x30] sm:$0xe] }
 0x41a   : > { %13236 = vmatprep.subr.bf16.mxu1 %v14238_v61  ;;  %v7408_v16 = vsel %vm14992_vm13, %v7406_v46, %v7407_v47  ;;  %v7435_v47 = vrot.slane %v14360_v36, 5  ;;  %v11868_v46 = vrot.slane %v7357_v0, 9  ;;  %v16955_v0 = vld [vmem:[#allocation3 + $0x34] sm:$0xf]  ;;  %v18332_v36 = vcombine.low %v16744_v37, %v16749_v50  ;;  %v16976_v50 = vld [vmem:[%s18106_s3 + $0x100] sm:$0xff]  }
 0x41b   : > { %v7405_v22 = vsel %vm14992_vm13, %v11865_v59, %v7404_v34  ;;  %v14241_v59 = vld [vmem:[%s18106_s3 + $0xd0] sm:$0xff]   ;;  %v16978_v37 = vld [vmem:[#allocation3 + $0x50] sm:$0x1] }
 0x41c   : > { %v11897_v11 = vcombine.low %v7405_v22, %v7408_v16  ;;  %v11869_v16 = vrot.slane %v7358_v62, 9 }
 0x41d   : > { %13237 = vmatpush3.bf16.msra.mxu1 %v14238_v61  ;;  %v7434_v61 = vrot.slane %v7432_v2, 4 }
 0x41e   : > { %13270 = vmatprep.subr.bf16.mxu1 %v14239_v42  ;;  %v7433_v49 = vsel %vm14992_vm13, %v11869_v16, %v7432_v2 }
 0x420   : > { %13207 = vmatmul.mubr.bf16.gmra.mrb[16].mxu1 %v11850_v58  ;;  %v7420_v58 = vrot.slane %v7418_v40, 4 }
 0x421   : > { %13210 = vmatprep.mubr.bf16.mxu1 %v11851_v17  ;;  %v7356_v17 = vld [vmem:[#allocation3 + $0x18] sm:$0xe] }
 0x422   : > { %v11867_v13 = vrot.slane %v7356_v17, 9  ;;  %v7442_v17 = vrot.slane %v14362_v6, 5 }
 0x424   : > { %v7419_v60 = vsel %vm14992_vm13, %v11867_v13, %v7418_v40  ;;  %v7426_v40 = vsel %vm14992_vm13, %v11868_v46, %v7425_v8  ;;  %v8979_v46 = vld [vmem:[#allocation3 + $0x30] sm:$0xe] }
 0x428   : > { %13211 = vmatmul.mubr.bf16.gmra.mrb[20].mxu1 %v11852_v53  ;;  %v14357_v53 = vld [vmem:[#allocation3 + $0x20] sm:$0x1] }
 0x429   : > { %13214 = vmatprep.mubr.bf16.mxu1 %v18328_v21  ;;  %v7421_v35 = vrot.slane %v14357_v53, 5  ;;  %v14359_v21 = vld [vmem:[#allocation3 + $0x2c] sm:$0x1]  ;;  %v7360_v53 = vld [vmem:[#allocation3 + $0x48] sm:$0xe] }
 0x42a   : > { %v7428_v34 = vrot.slane %v14359_v21, 5  ;;  %v11871_v13 = vrot.slane %v7360_v53, 9  ;;  %v16957_v21 = vld [vmem:[#allocation3 + $0x38] sm:$0x1]  ;;  %v16997_v53 = vld [vmem:[#allocation3 + $0x64] sm:$0xf] }
 0x42b   : > { %v7422_v24 = vsel %vm14992_vm13, %v7420_v58, %v7421_v35  ;;  %v7449_v35 = vrot.slane %v16522_v48, 5 }
 0x42c   : > { %v11899_v28 = vcombine.low %v7419_v60, %v7422_v24  ;;  %v7447_v48 = vsel %vm14992_vm13, %v11871_v13, %v7446_v3  ;;  %v14245_v60 = vld [vmem:[%s18106_s3 + $0xf0] sm:$0xff]   ;;  %v9063_v3 = vrot.slane %v16955_v0, 5 }
 0x42d   : > { %v7450_v24 = vsel %vm14992_vm13, %v7448_v55, %v7449_v35 }
 0x42e   : > { %v9065_v45 = vrot.slane %v9063_v3, 4 }
 0x430   : > { %13215 = vmatmul.mubr.bf16.gmra.mrb[24].mxu1 %v18329_v31  ;;  %v7429_v31 = vsel %vm14992_vm13, %v7427_v43, %v7428_v34  ;;  %v14246_v43 = vld [vmem:[%s18106_s3 + $0xf8] sm:$0xff]  }
 0x431   : > { %13218 = vmatprep.mubr.bf16.mxu1 %v18330_v29  ;;  %v14361_v29 = vld [vmem:[#allocation3 + $0x40] sm:$0xf] }
 0x432   : > { %v7439_v22 = vrot.slane %v14361_v29, 5  ;;  %v16959_v34 = vld [vmem:[#allocation3 + $0x40] sm:$0xf] }
 0x433   : > { %v9070_v6 = vrot.slane %v16959_v34, 5 }
 0x434   : > { %v7441_v58 = vrot.slane %v7439_v22, 4  ;;  %v7440_v15 = vsel %vm14992_vm13, %v11870_v25, %v7439_v22 }
 0x436   : > { %v7443_v8 = vsel %vm14992_vm13, %v7441_v58, %v7442_v17  ;;  %v8982_v17 = vld [vmem:[#allocation3 + $0x54] sm:$0xe] }
 0x437   : > { %v11902_v2 = vcombine.low %v7440_v15, %v7443_v8  ;;  %v9072_v15 = vrot.slane %v9070_v6, 4 }
 0x438   : > { %13219 = vmatmul.mubr.bf16.gmra.mrb[28].mxu1 %v18331_v20  ;;  %v14242_v20 = vld [vmem:[%s18106_s3 + $0xd8] sm:$0xff]  }
 0x439   : > { %13238 = vmatprep.mubr.bf16.mxu1 %v11897_v11  ;;  %v11900_v11 = vcombine.low %v7426_v40, %v7429_v31  ;;  %v18333_v31 = vcombine.low %v16753_v33, %v16763_v57  ;;  %v8981_v40 = vld [vmem:[#allocation3 + $0x48] sm:$0xe]  ;;  %v16983_v33 = vld [vmem:[#allocation3 + $0x5c] sm:$0x1] }
 0x43a   : > { %v12006_v25 = vrot.slane %v8981_v40, 9 }
 0x440   : > { %13239 = vmatmul.mubr.bf16.vlgmr.msra.gmra.mrb[0].mxu1 %v11898_v51  ;;  %v11903_v51 = vcombine.low %v7447_v48, %v7450_v24  ;;  %v8983_v48 = vld [vmem:[#allocation3 + $0x60] sm:$0xe] }
 0x441   : > { %13242 = vmatprep.mubr.bf16.mxu1 %v11899_v28  ;;  %13271 = vmatpush3.bf16.msra.mxu1 %v14239_v42  ;;  %v7436_v42 = vsel %vm14992_vm13, %v7434_v61, %v7435_v47  ;;  %v16950_v28 = vld [vmem:[#allocation3 + $0x2c] sm:$0x1]  ;;  %v8978_v61 = vld [vmem:[#allocation3 + $0x24] sm:$0xe]  ;;  %v16965_v47 = vld [vmem:[#allocation3 + $0x44] sm:$0x1] }
 0x442   : > { %13272 = vmatprep.subr.bf16.mxu1 %v14240_v39  ;;  %v11901_v19 = vcombine.low %v7433_v49, %v7436_v42  ;;  %v12003_v29 = vrot.slane %v8978_v61, 9  ;;  %v9059_v16 = vrot.slane %v16950_v28, 5  ;;  %v8980_v42 = vld [vmem:[#allocation3 + $0x3c] sm:$0xe] }
 0x443   : > { %v12005_v55 = vrot.slane %v8980_v42, 9  ;;  %v18336_v42 = vcombine.low %v16781_v23, %v16792_v63 }
 0x445   : > { %13273 = vmatpush3.bf16.msra.mxu1 %v14240_v39  ;;  %v16948_v39 = vld [vmem:[#allocation3 + $0x28] sm:$0xf]  ;;  %v17012_v24 = vsel %vm14992_vm13, %v12005_v55, %v9070_v6  ;;  %v17048_v55 = vld [vmem:[#allocation3 + $0x80] sm:$0x1] }
 0x446   : > { %13274 = vmatprep.subr.bf16.mxu1 %v14241_v59  ;;  %v9056_v62 = vrot.slane %v16948_v39, 5 }
 0x448   : > { %13243 = vmatmul.mubr.bf16.gmra.mrb[4].mxu1 %v11900_v11  ;;  %v9058_v22 = vrot.slane %v9056_v62, 4  ;;  %v16981_v11 = vld [vmem:[#allocation3 + $0x58] sm:$0xf]  ;;  %v16987_v57 = vsel %vm14992_vm13, %v12003_v29, %v9056_v62  ;;  %v18334_v62 = vcombine.low %v16772_v12, %v16777_v5  ;;  %v9087_v29 = vrot.slane %v16983_v33, 5  ;;  %v17038_v12 = vld [vmem:[#allocation3 + $0x7c] sm:$0xf] }
 0x449   : > { %13246 = vmatprep.mubr.bf16.mxu1 %v11901_v19  ;;  %13275 = vmatpush3.bf16.msra.mxu1 %v14241_v59  ;;  %v16967_v59 = vld [vmem:[#allocation3 + $0x4c] sm:$0xf]  ;;  %v9066_v19 = vrot.slane %v16957_v21, 5  ;;  %v9084_v61 = vrot.slane %v16981_v11, 5  ;;  %v17084_v5 = vld [vmem:[#allocation3 + $0xa0] sm:$0xf] }
 0x44a   : > { %13276 = vmatprep.subr.bf16.mxu1 %v14242_v20  ;;  %v16991_v49 = vsel %vm14992_vm13, %v9058_v22, %v9059_v16  ;;  %v9077_v8 = vrot.slane %v16967_v59, 5  ;;  %v9091_v22 = vrot.slane %v16997_v53, 5  ;;  %v8984_v16 = vld [vmem:[#allocation3 + $0x6c] sm:$0xe] }
 0x44b   : > { %v17008_v13 = vsel %vm14992_vm13, %v9065_v45, %v9066_v19  ;;  %v9086_v40 = vrot.slane %v9084_v61, 4  ;;  %v8985_v19 = vld [vmem:[#allocation3 + $0x78] sm:$0xe]  ;;  %v17046_v45 = vld [vmem:[#allocation3 + $0x74] sm:$0x1] }
 0x44c   : > { %v9093_v6 = vrot.slane %v9091_v22, 4  ;;  %v9101_v23 = vrot.slane %v17046_v45, 5 }
 0x44d   : > { %13277 = vmatpush3.bf16.msra.mxu1 %v14242_v20  ;;  %v12004_v20 = vrot.slane %v8979_v46, 9 }
 0x44e   : > { %13278 = vmatprep.subr.bf16.mxu1 %v14243_v56 }
 0x44f   : > { %v17001_v35 = vsel %vm14992_vm13, %v12004_v20, %v9063_v3  ;;  %v12008_v20 = vrot.slane %v8983_v48, 9 }
 0x450   : > { %13247 = vmatmul.mubr.bf16.gmra.mrb[8].mxu1 %v11902_v2  ;;  %v9080_v2 = vrot.slane %v16978_v37, 5 }
 0x451   : > { %13250 = vmatprep.mubr.bf16.mxu1 %v11903_v51  ;;  %13279 = vmatpush3.bf16.msra.mxu1 %v14243_v56  ;;  %v9073_v56 = vrot.slane %v16965_v47, 5 }
 0x452   : > { %13280 = vmatprep.subr.bf16.mxu1 %v14244_v4 }
 0x453   : > { %v17027_v46 = vsel %vm14992_vm13, %v9072_v15, %v9073_v56  ;;  %v17057_v56 = vld [vmem:[#allocation3 + $0x88] sm:$0xf]  ;;  %v17065_v15 = vsel %vm14992_vm13, %v12008_v20, %v9091_v22  ;;  %v8260_v22 = vld [vmem:[#allocation3 + $0xa4] sm:$0x1] }
 0x454   : > { %18340 = vst [vmem:[#allocation19_spill] sm:$0xff] %v17065_v15  ;;  %v9112_v51 = vrot.slane %v17057_v56, 5 }
 0x455   : > { %13281 = vmatpush3.bf16.msra.mxu1 %v14244_v4  ;;  %v17015_v4 = vld [vmem:[#allocation3 + $0x68] sm:$0x1] }
 0x456   : > { %13282 = vmatprep.subr.bf16.mxu1 %v14245_v60 }
 0x458   : > { %13251 = vmatmul.mubr.bf16.gmra.mrb[12].mxu1 %v18332_v36  ;;  %v17023_v36 = vld [vmem:[#allocation3 + $0x70] sm:$0xf] }
 0x459   : > { %13254 = vmatprep.mubr.bf16.mxu1 %v18333_v31  ;;  %13283 = vmatpush3.bf16.msra.mxu1 %v14245_v60  ;;  %v9079_v60 = vrot.slane %v9077_v8, 4  ;;  %v17031_v31 = vsel %vm14992_vm13, %v12006_v25, %v9077_v8  ;;  %v8254_v25 = vld [vmem:[#allocation3 + $0x8c] sm:$0x1]  ;;  %v17061_v8 = vsel %vm14992_vm13, %v9086_v40, %v9087_v29  ;;  %v9098_v48 = vrot.slane %v17023_v36, 5  ;;  %v8257_v40 = vld [vmem:[#allocation3 + $0x98] sm:$0x1] }
 0x45a   : > { %13284 = vmatprep.subr.bf16.mxu1 %v14246_v43  ;;  %18335 = vst [vmem:[#allocation16_spill] sm:$0xff] %v17031_v31  ;;  %18339 = vst [vmem:[#allocation24_spill] sm:$0xff] %v17061_v8  ;;  %v9105_v29 = vrot.slane %v17038_v12, 5  ;;  %v9115_v58 = vrot.slane %v8254_v25, 5  ;;  %v18347_v25 = vcombine.low %v16809_v52, %v16816_v32  ;;  %v17111_v8 = vld [vmem:[#allocation3 + $0xb8] sm:$0xf] }
 0x45b   : > { %v17044_v3 = vsel %vm14992_vm13, %v9079_v60, %v9080_v2  ;;  %v12009_v2 = vrot.slane %v8984_v16, 9  ;;  %v17068_v60 = vld [vmem:[#allocation3 + $0x94] sm:$0xf]  ;;  %v9100_v20 = vrot.slane %v9098_v48, 4  ;;  %v9126_v32 = vrot.slane %v17084_v5, 5 }
 0x45c   : > { %18337 = vst [vmem:[#allocation11_spill] sm:$0xff] %v17044_v3  ;;  %v9119_v41 = vrot.slane %v17068_v60, 5 }
 0x45d   : > { %13285 = vmatpush3.bf16.msra.mxu1 %v14246_v43  ;;  %v12007_v43 = vrot.slane %v8982_v17, 9  ;;  %v9094_v17 = vrot.slane %v17015_v4, 5  ;;  %v17081_v16 = vsel %vm14992_vm13, %v12009_v2, %v9098_v48  ;;  %v17094_v2 = vsel %vm14992_vm13, %v9100_v20, %v9101_v23  ;;  %v8988_v23 = vld [vmem:[#allocation3 + $0x9c] sm:$0xe]  ;;  %v8989_v20 = vld [vmem:[#allocation3 + $0xa8] sm:$0xe] }
 0x45e   : > { %13318 = vmatprep.subr.bf16.mxu1 %v16976_v50  ;;  %18342 = vst [vmem:[#allocation7_spill] sm:$0xff] %v17081_v16  ;;  %18344 = vst [vmem:[#allocation9_spill] sm:$0xff] %v17094_v2  ;;  %v9121_v27 = vrot.slane %v9119_v41, 4 }
 0x45f   : > { %v17054_v63 = vsel %vm14992_vm13, %v12007_v43, %v9084_v61  ;;  %v17074_v61 = vsel %vm14992_vm13, %v9093_v6, %v9094_v17  ;;  %v8987_v43 = vld [vmem:[#allocation3 + $0x90] sm:$0xe]  ;;  %v9107_v6 = vrot.slane %v9105_v29, 4  ;;  %v9108_v17 = vrot.slane %v17048_v55, 5 }
 0x460   : > { %13255 = vmatmul.mubr.bf16.gmra.mrb[16].mxu1 %v18334_v62  ;;  %18338 = vst [vmem:[#allocation23_spill] sm:$0xff] %v17054_v63  ;;  %18341 = vst [vmem:[#allocation20_spill] sm:$0xff] %v17074_v61  ;;  %v12010_v62 = vrot.slane %v8985_v19, 9  ;;  %v9114_v61 = vrot.slane %v9112_v51, 4  ;;  %v12012_v15 = vrot.slane %v8987_v43, 9 }
 0x461   : > { %13258 = vmatprep.mubr.bf16.mxu1 %v18336_v42  ;;  %v8986_v42 = vld [vmem:[#allocation3 + $0x84] sm:$0xe]  ;;  %v17104_v30 = vsel %vm14992_vm13, %v9107_v6, %v9108_v17  ;;  %v8246_v63 = vld [vmem:[#allocation3 + $0x6c] sm:$0xf] }
 0x462   : > { %v17088_v19 = vsel %vm14992_vm13, %v12010_v62, %v9105_v29  ;;  %v12011_v48 = vrot.slane %v8986_v42, 9  ;;  %v8262_v62 = vld [vmem:[#allocation3 + $0xac] sm:$0xf]  ;;  %18346 = vst [vmem:[#allocation10_spill] sm:$0xff] %v17104_v30  ;;  %v8263_v42 = vld [vmem:[#allocation3 + $0xb0] sm:$0x1]  ;;  %v17119_v43 = vsel %vm14992_vm13, %v9114_v61, %v9115_v58  ;;  %v17123_v52 = vsel %vm14992_vm13, %v12012_v15, %v9119_v41 }
 0x463   : > { %18343 = vst [vmem:[#allocation8_spill] sm:$0xff] %v17088_v19  ;;  %v8266_v29 = vld [vmem:[#allocation3 + $0xbc] sm:$0x1]  ;;  %18349 = vst [vmem:[#allocation13_spill] sm:$0xff] %v17119_v43  ;;  %v8268_v17 = vld [vmem:[#allocation3 + $0xc4] sm:$0xf]  ;;  %v18356_v58 = vcombine.low %v16831_v9, %v16835_v18 }
 0x464   : > { %v17115_v6 = vsel %vm14992_vm13, %v12011_v48, %v9112_v51  ;;  %18350 = vst [vmem:[#allocation14_spill] sm:$0xff] %v17123_v52  ;;  %v12013_v51 = vrot.slane %v8988_v23, 9  ;;  %v9133_v48 = vrot.slane %v8262_v62, 5  ;;  %v8269_v30 = vld [vmem:[#allocation3 + $0xc8] sm:$0x1]  ;;  %v9128_v61 = vrot.slane %v9126_v32, 4 }
 0x465   : > { %18348 = vst [vmem:[#allocation12_spill] sm:$0xff] %v17115_v6  ;;  %v9129_v41 = vrot.slane %v8260_v22, 5  ;;  %v12014_v15 = vrot.slane %v8989_v20, 9  ;;  %v9140_v43 = vrot.slane %v17111_v8, 5  ;;  %v9147_v22 = vrot.slane %v8268_v17, 5  ;;  %v14260_v6 = vld [vmem:[#allocation3 + $0x78] sm:$0xff]  }
 0x466   : > { %v17136_v19 = vsel %vm14992_vm13, %v12013_v51, %v9126_v32  ;;  %v9135_v2 = vrot.slane %v9133_v48, 4  ;;  %v9143_v51 = vrot.slane %v8266_v29, 5  ;;  %v18357_v17 = vcombine.low %v16839_v10, %v16845_v7  ;;  %v14247_v7 = vld [vmem:[#allocation3 + $0xc] sm:$0xff]  }
 0x467   : > { %18352 = vst [vmem:[#allocation17_spill] sm:$0xff] %v17136_v19  ;;  %v17141_v62 = vsel %vm14992_vm13, %v9128_v61, %v9129_v41  ;;  %v17145_v23 = vsel %vm14992_vm13, %v12014_v15, %v9133_v48  ;;  %v9149_v41 = vrot.slane %v9147_v22, 4  ;;  %v14250_v15 = vld [vmem:[#allocation3 + $0x24] sm:$0xff]   ;;  %v17197_v61 = vld [vmem:[#allocation3 + $0x14] sm:$0x1] }
 0x468   : > { %13259 = vmatmul.mubr.bf16.gmra.mrb[20].mxu1 %v18345_v44  ;;  %v9122_v44 = vrot.slane %v8257_v40, 5  ;;  %v9136_v40 = vrot.slane %v8263_v42, 5  ;;  %18353 = vst [vmem:[#allocation18_spill] sm:$0xff] %v17141_v62  ;;  %18354 = vst [vmem:[#allocation21_spill] sm:$0xff] %v17145_v23  ;;  %v9142_v42 = vrot.slane %v9140_v43, 4  ;;  %v8352_v62 = vshll.u32 %v16955_v0, 16 }
 0x469   : > { %13262 = vmatprep.mubr.bf16.mxu1 %v18347_v25 }
 0x46a   : > { %v17130_v25 = vsel %vm14992_vm13, %v9121_v27, %v9122_v44  ;;  %v8991_v27 = vld [vmem:[#allocation3 + $0xc0] sm:$0xe]  ;;  %v12015_v44 = vrot.slane %v8990_v14, 9  ;;  %v17151_v32 = vsel %vm14992_vm13, %v9135_v2, %v9136_v40  ;;  %v9150_v14 = vrot.slane %v8269_v30, 5  ;;  %v14248_v40 = vld [vmem:[#allocation3 + $0x18] sm:$0xff]  }
 0x46b   : > { %18351 = vst [vmem:[#allocation15_spill] sm:$0xff] %v17130_v25  ;;  %18355 = vst [vmem:[#allocation22_spill] sm:$0xff] %v17151_v32  ;;  %v12016_v48 = vrot.slane %v8991_v27, 9  ;;  %v17167_v29 = vsel %vm14992_vm13, %v9142_v42, %v9143_v51  ;;  %v14255_v27 = vld [vmem:[%s18106_s3 + $0x110] sm:$0xff]  }
 0x46c   : > { %v17163_v2 = vsel %vm14992_vm13, %v12015_v44, %v9140_v43  ;;  %18359 = vst [vmem:[#allocation26_spill] sm:$0xff] %v17167_v29  ;;  %v17177_v30 = vsel %vm14992_vm13, %v9149_v41, %v9150_v14  ;;  %v18362_v43 = vcombine.low %v16855_v38, %v16859_v54  ;;  %v8222_v44 = vld [vmem:[#allocation3 + $0xc] sm:$0xf]  ;;  %v14251_v41 = vld [vmem:[#allocation3 + $0x30] sm:$0xff]   ;;  %v14258_v14 = vld [vmem:[%s18106_s3 + $0x118] sm:$0xff]   ;;  %v8328_v29 = vshll.u32 %v16948_v39, 16 }
 0x46d   : > { %18358 = vst [vmem:[#allocation25_spill] sm:$0xff] %v17163_v2  ;;  %v17173_v18 = vsel %vm14992_vm13, %v12016_v48, %v9147_v22  ;;  %18361 = vst [vmem:[#allocation28_spill] sm:$0xff] %v17177_v30  ;;  %v8223_v22 = vld [vmem:[#allocation3 + $0x10] sm:$0xf]  ;;  %v8271_v38 = vshrl.u32 %v8222_v44, 16  ;;  %v8274_v54 = vshll.u32 %v8222_v44, 16 }
 0x46e   : > { %18360 = vst [vmem:[#allocation27_spill] sm:$0xff] %v17173_v18  ;;  %v8280_v42 = vshll.u32 %v8223_v22, 16  ;;  %v8284_v51 = vshrl.u32 %v8223_v22, 16  ;;  %v8225_v48 = vld [vmem:[#allocation3 + $0x18] sm:$0xf]  ;;  %v14261_v22 = vld [vmem:[%s18106_s3 + $0x120] sm:$0xff]  }
 0x46f   : > { %v17205_v18 = vld [vmem:[#allocation3 + $0x20] sm:$0x1] }
 0x470   : > { %13263 = vmatmul.mubr.bf16.gmra.mrb[24].mxu1 %v18356_v58  ;;  %v14252_v58 = vld [vmem:[%s18106_s3 + $0x108] sm:$0xff]   ;;  %v8286_v44 = vrot.slane %v8284_v51, 4 }
 0x471   : > { %13266 = vmatprep.mubr.bf16.mxu1 %v18357_v17  ;;  %v8226_v17 = vld [vmem:[#allocation3 + $0x1c] sm:$0xf]  ;;  %v14256_v51 = vld [vmem:[#allocation3 + $0x54] sm:$0xff]  }
 0x472   : > { %v8304_v10 = vshll.u32 %v8226_v17, 16  ;;  %v8308_v9 = vshrl.u32 %v8226_v17, 16  ;;  %v8290_v17 = vshll.u32 %v17197_v61, 16 }
 0x474   : > { %v8292_v2 = vrot.slane %v8290_v17, 5 }
 0x478   : > { %13267 = vmatmul.mubr.bf16.gmra.mrb[28].mxu1 %v18362_v43  ;;  %v8298_v43 = vshll.u32 %v8225_v48, 16 }
 0x479   : > { %13286 = vmatprep.mubr.bf16.mxu1 %v14247_v7  ;;  %v8295_v7 = vshrl.u32 %v8225_v48, 16 }
 0x47a   : > { %v8300_v30 = vrot.slane %v8298_v43, 5 }
 0x47b   : > { %v8297_v20 = vrot.slane %v8295_v7, 4 }
 0x480   : > { %13287 = vmatmul.mubr.bf16.vlgmr.msra.gmra.mrb[0].mxu1 %v14248_v40  ;;  %v8273_v40 = vrot.slane %v8271_v38, 4  ;;  %v14264_v38 = vld [vmem:[%s18106_s3 + $0x128] sm:$0xff]  }
 0x481   : > { %13290 = vmatprep.mubr.bf16.mxu1 %v14250_v15  ;;  %13319 = vmatpush3.bf16.msra.mxu1 %v16976_v50  ;;  %v14253_v50 = vld [vmem:[#allocation3 + $0x3c] sm:$0xff]   ;;  %v8282_v15 = vrot.slane %v8280_v42, 5  ;;  %v8310_v42 = vrot.slane %v8308_v9, 4 }
 0x482   : > { %13320 = vmatprep.subr.bf16.mxu1 %v14252_v58 }
 0x485   : > { %13321 = vmatpush3.bf16.msra.mxu1 %v14252_v58  ;;  %v8276_v58 = vrot.slane %v8274_v54, 5  ;;  %v17202_v54 = vrot.slane %v8304_v10, 5  ;;  %v14267_v10 = vld [vmem:[%s18106_s3 + $0x130] sm:$0xff]  }
 0x486   : > { %13322 = vmatprep.subr.bf16.mxu1 %v14255_v27 }
 0x487   : > { %v8277_v48 = vor.u32 %v8276_v58, %v8273_v40  ;;  %v8311_v9 = vor.u32 %v8310_v42, %v17202_v54  ;;  %v14257_v42 = vld [vmem:[#allocation3 + $0x60] sm:$0xff]  }
 0x488   : > { %13291 = vmatmul.mubr.bf16.gmra.mrb[4].mxu1 %v14251_v41  ;;  %v8228_v41 = vld [vmem:[#allocation3 + $0x24] sm:$0xf] }
 0x489   : > { %13294 = vmatprep.mubr.bf16.mxu1 %v14253_v50  ;;  %13323 = vmatpush3.bf16.msra.mxu1 %v14255_v27  ;;  %v8287_v50 = vor.u32 %v8286_v44, %v8282_v15  ;;  %v14254_v27 = vld [vmem:[#allocation3 + $0x48] sm:$0xff]   ;;  %v8319_v7 = vshrl.u32 %v8228_v41, 16  ;;  %v8322_v43 = vshll.u32 %v8228_v41, 16  ;;  %v8278_v40 = vrot.slane %v8277_v48, 4 }
 0x48a   : > { %13324 = vmatprep.subr.bf16.mxu1 %v14258_v14  ;;  %v8314_v44 = vshll.u32 %v17205_v18, 16  ;;  %v8312_v17 = vrot.slane %v8311_v9, 4  ;;  %v8356_v9 = vshrl.u32 %v16955_v0, 16  ;;  %v8400_v0 = vshll.u32 %v16967_v59, 16 }
 0x48b   : > { %v8288_v58 = vrot.slane %v8287_v50, 4  ;;  %v8321_v32 = vrot.slane %v8319_v7, 4  ;;  %v8324_v41 = vrot.slane %v8322_v43, 5  ;;  %v8283_v48 = vsel %vm14586_vm6, %v8278_v40, %v8282_v15 }
 0x48c   : > { %v8316_v7 = vrot.slane %v8314_v44, 5  ;;  %v17221_v43 = vrot.slane %v8328_v29, 5  ;;  %v8380_v44 = vshrl.u32 %v16959_v34, 16 }
 0x48d   : > { %13325 = vmatpush3.bf16.msra.mxu1 %v14258_v14  ;;  %v8301_v14 = vor.u32 %v8300_v30, %v8297_v20  ;;  %v8332_v20 = vshrl.u32 %v16948_v39, 16  ;;  %v8293_v50 = vsel %vm14586_vm6, %v8288_v58, %v8292_v2  ;;  %v8338_v39 = vshll.u32 %v16950_v28, 16 }
 0x48e   : > { %13326 = vmatprep.subr.bf16.mxu1 %v14261_v22  ;;  %v17224_v2 = vcombine.low %v8283_v48, %v8293_v50  ;;  %v8382_v52 = vrot.slane %v8380_v44, 4 }
 0x48f   : > { %v8302_v30 = vrot.slane %v8301_v14, 4  ;;  %v8325_v14 = vor.u32 %v8324_v41, %v8321_v32  ;;  %v8334_v23 = vrot.slane %v8332_v20, 4  ;;  %v8376_v32 = vshll.u32 %v16959_v34, 16  ;;  %v8237_v41 = vld [vmem:[#allocation3 + $0x48] sm:$0xf] }
 0x490   : > { %13295 = vmatmul.mubr.bf16.gmra.mrb[8].mxu1 %v14254_v27  ;;  %v8234_v27 = vld [vmem:[#allocation3 + $0x3c] sm:$0xf]  ;;  %v8317_v20 = vsel %vm14586_vm6, %v8312_v17, %v8316_v7  ;;  %v8358_v17 = vrot.slane %v8356_v9, 4  ;;  %v8391_v7 = vshrl.u32 %v8237_v41, 16  ;;  %v8424_v9 = vshll.u32 %v16981_v11, 16 }
 0x491   : > { %13298 = vmatprep.mubr.bf16.mxu1 %v14256_v51  ;;  %13327 = vmatpush3.bf16.msra.mxu1 %v14261_v22  ;;  %v8231_v22 = vld [vmem:[#allocation3 + $0x30] sm:$0xf]  ;;  %v14270_v51 = vld [vmem:[%s18106_s3 + $0x138] sm:$0xff]   ;;  %v8307_v58 = vsel %vm14586_vm6, %v8302_v30, %v17202_v54  ;;  %v8367_v29 = vshrl.u32 %v8234_v27, 16  ;;  %v8370_v28 = vshll.u32 %v8234_v27, 16  ;;  %v17238_v54 = vld [vmem:[%s18106_s3 + $0x140] sm:$0xff]   ;;  %v8335_v34 = vor.u32 %v8334_v23, %v17221_v43 }
 0x492   : > { %13328 = vmatprep.subr.bf16.mxu1 %v14264_v38  ;;  %v8343_v15 = vshrl.u32 %v8231_v22, 16  ;;  %v8346_v40 = vshll.u32 %v8231_v22, 16  ;;  %v17240_v30 = vrot.slane %v8338_v39, 5  ;;  %v17244_v22 = vrot.slane %v8325_v14, 4  ;;  %v8240_v27 = vld [vmem:[#allocation3 + $0x54] sm:$0xf] }
 0x493   : > { %v8369_v19 = vrot.slane %v8367_v29, 4  ;;  %v8372_v39 = vrot.slane %v8370_v28, 5  ;;  %v17249_v25 = vrot.slane %v8376_v32, 5  ;;  %v8415_v14 = vshrl.u32 %v8240_v27, 16 }
 0x494   : > { %v8345_v48 = vrot.slane %v8343_v15, 4  ;;  %v8348_v50 = vrot.slane %v8346_v40, 5  ;;  %v8418_v15 = vshll.u32 %v8240_v27, 16  ;;  %v14262_v40 = vld [vmem:[#allocation3 + $0x84] sm:$0xff]   ;;  %v8428_v29 = vshrl.u32 %v16981_v11, 16 }
 0x495   : > { %13329 = vmatpush3.bf16.msra.mxu1 %v14264_v38  ;;  %v14259_v38 = vld [vmem:[#allocation3 + $0x6c] sm:$0xff]   ;;  %v8336_v28 = vrot.slane %v8335_v34, 4  ;;  %v8362_v32 = vshll.u32 %v16957_v21, 16  ;;  %v8393_v44 = vrot.slane %v8391_v7, 4  ;;  %v8386_v27 = vshll.u32 %v16965_v47, 16 }
 0x496   : > { %13330 = vmatprep.subr.bf16.mxu1 %v14267_v10  ;;  %v8417_v16 = vrot.slane %v8415_v14, 4  ;;  %v8420_v11 = vrot.slane %v8418_v15, 5  ;;  %v8430_v34 = vrot.slane %v8428_v29, 4  ;;  %v14265_v29 = vld [vmem:[#allocation3 + $0x9c] sm:$0xff]  }
 0x497   : > { %v8341_v47 = vsel %vm14586_vm6, %v8336_v28, %v17240_v30  ;;  %v8388_v14 = vrot.slane %v8386_v27, 5  ;;  %v8463_v27 = vshrl.u32 %v8246_v63, 16 }
 0x498   : > { %13299 = vmatmul.mubr.bf16.gmra.mrb[12].mxu1 %v14257_v42  ;;  %v17247_v42 = vrot.slane %v8352_v62, 5  ;;  %v17254_v62 = vcombine.low %v8307_v58, %v8317_v20  ;;  %v8383_v20 = vor.u32 %v8382_v52, %v17249_v25  ;;  %v8364_v52 = vrot.slane %v8362_v32, 5 }
 0x499   : > { %13302 = vmatprep.mubr.bf16.mxu1 %v14259_v38  ;;  %13331 = vmatpush3.bf16.msra.mxu1 %v14267_v10  ;;  %v8404_v10 = vshrl.u32 %v16967_v59, 16  ;;  %v8394_v38 = vshll.u32 %v8237_v41, 16  ;;  %v17252_v59 = vrot.slane %v8400_v0, 5  ;;  %v8243_v0 = vld [vmem:[#allocation3 + $0x60] sm:$0xf] }
 0x49a   : > { %13332 = vmatprep.subr.bf16.mxu1 %v14270_v51  ;;  %v8359_v58 = vor.u32 %v8358_v17, %v17247_v42  ;;  %v8439_v21 = vshrl.u32 %v8243_v0, 16  ;;  %v8442_v7 = vshll.u32 %v8243_v0, 16  ;;  %v8384_v17 = vrot.slane %v8383_v20, 4 }
 0x49b   : > { %v8406_v23 = vrot.slane %v8404_v10, 4  ;;  %v8396_v41 = vrot.slane %v8394_v38, 5  ;;  %v8349_v10 = vor.u32 %v8348_v50, %v8345_v48  ;;  %v8448_v48 = vshll.u32 %v16997_v53, 16 }
 0x49c   : > { %v8452_v50 = vshrl.u32 %v16997_v53, 16  ;;  %v8444_v0 = vrot.slane %v8442_v7, 5  ;;  %v17304_v7 = vld [vmem:[#allocation3 + $0x78] sm:$0xf] }
 0x49d   : > { %13333 = vmatpush3.bf16.msra.mxu1 %v14270_v51  ;;  %v8331_v51 = vsel %vm14586_vm6, %v17244_v22, %v17221_v43  ;;  %v8373_v43 = vor.u32 %v8372_v39, %v8369_v19  ;;  %v8407_v22 = vor.u32 %v8406_v23, %v17252_v59  ;;  %v8397_v38 = vor.u32 %v8396_v41, %v8393_v44  ;;  %v14263_v39 = vld [vmem:[#allocation3 + $0x90] sm:$0xff]  }
 0x49e   : > { %13366 = vmatprep.subr.bf16.mxu1 %v17238_v54  ;;  %v8360_v19 = vrot.slane %v8359_v58, 4  ;;  %v8350_v23 = vrot.slane %v8349_v10, 4  ;;  %v8441_v41 = vrot.slane %v8439_v21, 4  ;;  %v17276_v31 = vrot.slane %v8448_v48, 5 }
 0x49f   : > { %v8408_v15 = vrot.slane %v8407_v22, 4  ;;  %v8374_v44 = vrot.slane %v8373_v43, 4  ;;  %v8398_v53 = vrot.slane %v8397_v38, 4  ;;  %v8454_v30 = vrot.slane %v8452_v50, 4 }
 0x4a0   : > { %13303 = vmatmul.mubr.bf16.gmra.mrb[16].mxu1 %v14260_v6  ;;  %v17267_v6 = vrot.slane %v8424_v9, 5  ;;  %v8421_v9 = vor.u32 %v8420_v11, %v8417_v16  ;;  %v17278_v28 = vcombine.low %v8331_v51, %v8341_v47  ;;  %v8365_v32 = vsel %vm14586_vm6, %v8360_v19, %v8364_v52  ;;  %v17315_v47 = vld [vmem:[#allocation3 + $0x20] sm:$0x1]  ;;  %v14266_v19 = vld [vmem:[#allocation3 + $0xa8] sm:$0xff]  }
 0x4a1   : > { %13306 = vmatprep.mubr.bf16.mxu1 %v14262_v40  ;;  %v8410_v40 = vshll.u32 %v16978_v37, 16  ;;  %v8389_v16 = vsel %vm14586_vm6, %v8384_v17, %v8388_v14  ;;  %v8434_v10 = vshll.u32 %v16983_v33, 16  ;;  %v8466_v43 = vshll.u32 %v8246_v63, 16  ;;  %18363 = vst [vmem:[#allocation5_spill] sm:$0xff] %v17315_v47  ;;  %v14268_v14 = vld [vmem:[#allocation3 + $0xb4] sm:$0xff]  }
 0x4a2   : > { %v8431_v37 = vor.u32 %v8430_v34, %v17267_v6  ;;  %v17287_v20 = vrot.slane %v8421_v9, 4  ;;  %v8355_v51 = vsel %vm14586_vm6, %v8350_v23, %v17247_v42  ;;  %v8445_v11 = vor.u32 %v8444_v0, %v8441_v41  ;;  %v17306_v42 = vld [vmem:[#allocation3 + $0x1c] sm:$0xf]  ;;  %v10615_v23 = vld [vmem:[#allocation3 + $0x18] sm:$0xe] }
 0x4a3   : > { %v8412_v3 = vrot.slane %v8410_v40, 5  ;;  %v8472_v34 = vshll.u32 %v17023_v36, 16  ;;  %v17295_v21 = vcombine.low %v8355_v51, %v8365_v32  ;;  %v8379_v33 = vsel %vm14586_vm6, %v8374_v44, %v17249_v25  ;;  %v17317_v25 = vld [vmem:[#allocation3 + $0x28] sm:$0xf]  ;;  %v17336_v44 = vld [vmem:[#allocation3 + $0x34] sm:$0xf] }
 0x4a4   : > { %v17292_v22 = vrot.slane %v8431_v37, 4  ;;  %v8455_v63 = vor.u32 %v8454_v30, %v17276_v31  ;;  %v17308_v38 = vcombine.low %v8379_v33, %v8389_v16  ;;  %v17312_v48 = vrot.slane %v8434_v10, 5  ;;  %18364 = vst [vmem:[#allocation6_spill] sm:$0xff] %v17317_v25  ;;  %18365 = vst [vmem:[#allocation4_spill] sm:$0xff] %v17336_v44  ;;  %v10616_v41 = vld [vmem:[#allocation3 + $0x24] sm:$0xe] }
 0x4a5   : > { %v8413_v58 = vsel %vm14586_vm6, %v8408_v15, %v8412_v3  ;;  %v8403_v3 = vsel %vm14586_vm6, %v8398_v53, %v17252_v59  ;;  %v17323_v52 = vrot.slane %v8463_v27, 4  ;;  %v17325_v17 = vrot.slane %v8466_v43, 5  ;;  %v17344_v32 = vld [vmem:[#allocation3 + $0x2c] sm:$0x1]  ;;  %v17346_v16 = vld [vmem:[#allocation3 + $0x38] sm:$0x1] }
 0x4a6   : > { %v17310_v40 = vcombine.low %v8403_v3, %v8413_v58  ;;  %v17332_v9 = vrot.slane %v8445_v11, 4  ;;  %v10681_v37 = vrot.slane %v17306_v42, 5  ;;  %v17339_v0 = vrot.slane %v8455_v63, 4  ;;  %18366 = vst [vmem:[#allocation29_spill] sm:$0xff] %v17344_v32  ;;  %18367 = vst [vmem:[#allocation30_spill] sm:$0xff] %v17346_v16  ;;  %v14269_v33 = vld [vmem:[#allocation3 + $0xc0] sm:$0xff]  }
 0x4a7   : > { %v8487_v53 = vshrl.u32 %v17304_v7, 16  ;;  %v17348_v10 = vld [vmem:[#allocation3 + $0x40] sm:$0xf]  ;;  %v12137_v58 = vrot.slane %v10615_v23, 9  ;;  %v10684_v43 = vrot.slane %v17315_v47, 5  ;;  %v10688_v51 = vrot.slane %v17317_v25, 5 }
 0x4a8   : > { %13307 = vmatmul.mubr.bf16.gmra.mrb[20].mxu1 %v14263_v39  ;;  %v8476_v39 = vshrl.u32 %v17023_v36, 16  ;;  %18368 = vst [vmem:[#allocation31_spill] sm:$0xff] %v17348_v10  ;;  %v10683_v27 = vrot.slane %v10681_v37, 4  ;;  %v12138_v3 = vrot.slane %v10616_v41, 9  ;;  %v10617_v63 = vld [vmem:[#allocation3 + $0x30] sm:$0xe] }
 0x4a9   : > { %13310 = vmatprep.mubr.bf16.mxu1 %v14265_v29  ;;  %v17334_v29 = vrot.slane %v8472_v34, 5  ;;  %v10690_v36 = vrot.slane %v10688_v51, 4  ;;  %v10691_v50 = vrot.slane %v17344_v32, 5  ;;  %v10618_v59 = vld [vmem:[#allocation3 + $0x3c] sm:$0xe]  ;;  %v10702_v30 = vrot.slane %v17348_v10, 5 }
 0x4aa   : > { %v17354_v34 = vrot.slane %v8476_v39, 4  ;;  %v17365_v23 = vsel %vm14992_vm13, %v10683_v27, %v10684_v43  ;;  %v17368_v39 = vrot.slane %v8487_v53, 4  ;;  %v17371_v41 = vld [vmem:[#allocation3 + $0x44] sm:$0x1]  ;;  %v17378_v27 = vsel %vm14992_vm13, %v12138_v3, %v10688_v51  ;;  %v10619_v15 = vld [vmem:[#allocation3 + $0x48] sm:$0xe] }
 0x4ab   : > { %18371 = vst [vmem:[#allocation34_spill] sm:$0xff] %v17365_v23  ;;  %18372 = vst [vmem:[#allocation35_spill] sm:$0xff] %v17371_v41  ;;  %v17382_v43 = vsel %vm14992_vm13, %v10690_v36, %v10691_v50  ;;  %v12139_v53 = vrot.slane %v10617_v63, 9  ;;  %v17385_v32 = vld [vmem:[#allocation3 + $0x58] sm:$0xf]  ;;  %v10704_v36 = vrot.slane %v10702_v30, 4 }
 0x4ac   : > { %18373 = vst [vmem:[#allocation36_spill] sm:$0xff] %v17378_v27  ;;  %18374 = vst [vmem:[#allocation37_spill] sm:$0xff] %v17382_v43  ;;  %v17392_v3 = vld [vmem:[#allocation3 + $0x5c] sm:$0x1]  ;;  %v10705_v63 = vrot.slane %v17371_v41, 5  ;;  %v12141_v51 = vrot.slane %v10619_v15, 9 }
 0x4ad   : > { %18375 = vst [vmem:[#allocation38_spill] sm:$0xff] %v17385_v32  ;;  %18376 = vst [vmem:[#allocation39_spill] sm:$0xff] %v17392_v3  ;;  %v10620_v10 = vld [vmem:[#allocation3 + $0x54] sm:$0xe]  ;;  %v17399_v47 = vld [vmem:[#allocation3 + $0x64] sm:$0xf] }
 0x4ae   : > { %18378 = vst [vmem:[#allocation41_spill] sm:$0xff] %v17399_v47  ;;  %v17411_v27 = vld [vmem:[#allocation3 + $0x70] sm:$0xf]  ;;  %v9884_v25 = vld [vmem:[#allocation3 + $0x74] sm:$0x1] }
 0x4af   : > { %18381 = vst [vmem:[#allocation44_spill] sm:$0xff] %v17411_v27 }
 0x4b0   : > { %13311 = vmatmul.mubr.bf16.gmra.mrb[24].mxu1 %v14266_v19  ;;  %v17357_v19 = vld [vmem:[#allocation3 + $0x4c] sm:$0xf] }
 0x4b1   : > { %13314 = vmatprep.mubr.bf16.mxu1 %v14268_v14  ;;  %18369 = vst [vmem:[#allocation32_spill] sm:$0xff] %v17357_v19  ;;  %v17361_v14 = vsel %vm14992_vm13, %v12137_v58, %v10681_v37  ;;  %v10695_v37 = vrot.slane %v17336_v44, 5  ;;  %v9875_v58 = vld [vmem:[#allocation3 + $0x50] sm:$0x1]  ;;  %v12140_v44 = vrot.slane %v10618_v59, 9  ;;  %v10709_v43 = vrot.slane %v17357_v19, 5 }
 0x4b2   : > { %18370 = vst [vmem:[#allocation33_spill] sm:$0xff] %v17361_v14  ;;  %v10698_v14 = vrot.slane %v17346_v16, 5  ;;  %v12142_v19 = vrot.slane %v10620_v10, 9  ;;  %v10622_v16 = vld [vmem:[#allocation3 + $0x6c] sm:$0xe] }
 0x4b3   : > { %v10697_v23 = vrot.slane %v10695_v37, 4  ;;  %v17396_v50 = vsel %vm14992_vm13, %v12139_v53, %v10695_v37  ;;  %v17407_v59 = vsel %vm14992_vm13, %v12140_v44, %v10702_v30  ;;  %v10621_v37 = vld [vmem:[#allocation3 + $0x60] sm:$0xe]  ;;  %v9881_v53 = vld [vmem:[#allocation3 + $0x68] sm:$0x1]  ;;  %v10716_v44 = vrot.slane %v17385_v32, 5 }
 0x4b4   : > { %18377 = vst [vmem:[#allocation40_spill] sm:$0xff] %v17396_v50  ;;  %18380 = vst [vmem:[#allocation43_spill] sm:$0xff] %v17407_v59  ;;  %v9886_v30 = vld [vmem:[#allocation3 + $0x7c] sm:$0xf]  ;;  %v10711_v41 = vrot.slane %v10709_v43, 4  ;;  %v10726_v15 = vrot.slane %v9881_v53, 5 }
 0x4b5   : > { %v17403_v11 = vsel %vm14992_vm13, %v10697_v23, %v10698_v14  ;;  %v17417_v14 = vsel %vm14992_vm13, %v10704_v36, %v10705_v63  ;;  %v10712_v23 = vrot.slane %v9875_v58, 5  ;;  %v12143_v36 = vrot.slane %v10621_v37, 9  ;;  %v9887_v63 = vld [vmem:[#allocation3 + $0x80] sm:$0x1]  ;;  %v10623_v59 = vld [vmem:[#allocation3 + $0x78] sm:$0xe] }
 0x4b6   : > { %18379 = vst [vmem:[#allocation42_spill] sm:$0xff] %v17403_v11  ;;  %18382 = vst [vmem:[#allocation45_spill] sm:$0xff] %v17417_v14  ;;  %v10718_v11 = vrot.slane %v10716_v44, 4  ;;  %v10723_v58 = vrot.slane %v17399_v47, 5  ;;  %v17434_v10 = vsel %vm14992_vm13, %v12142_v19, %v10716_v44  ;;  %v10730_v14 = vrot.slane %v17411_v27, 5  ;;  %v14272_v19 = vld [vmem:[%s18106_s3 + $0x148] sm:$0xff]  }
 0x4b7   : > { %v17430_v50 = vsel %vm14992_vm13, %v10711_v41, %v10712_v23  ;;  %v12144_v41 = vrot.slane %v10622_v16, 9  ;;  %v10733_v27 = vrot.slane %v9884_v25, 5  ;;  %v10625_v32 = vld [vmem:[#allocation3 + $0x90] sm:$0xe]  ;;  %v9893_v53 = vld [vmem:[#allocation3 + $0x98] sm:$0x1] }
 0x4b8   : > { %13315 = vmatmul.mubr.bf16.gmra.mrb[28].mxu1 %v14269_v33  ;;  %v17425_v33 = vsel %vm14992_vm13, %v12141_v51, %v10709_v43  ;;  %18384 = vst [vmem:[#allocation47_spill] sm:$0xff] %v17430_v50  ;;  %v9890_v43 = vld [vmem:[#allocation3 + $0x8c] sm:$0x1]  ;;  %v10725_v47 = vrot.slane %v10723_v58, 4  ;;  %v17450_v23 = vsel %vm14992_vm13, %v12143_v36, %v10723_v58  ;;  %v10732_v44 = vrot.slane %v10730_v14, 4  ;;  %v14273_v25 = vld [vmem:[%s18106_s3 + $0x150] sm:$0xff]  }
 0x4b9   : > { %13334 = vmatprep.mubr.bf16.mxu1 %v17224_v2  ;;  %v10719_v2 = vrot.slane %v17392_v3, 5  ;;  %18383 = vst [vmem:[#allocation46_spill] sm:$0xff] %v17425_v33  ;;  %v9889_v3 = vld [vmem:[#allocation3 + $0x88] sm:$0xf]  ;;  %18385 = vst [vmem:[#allocation48_spill] sm:$0xff] %v17450_v23  ;;  %v17458_v16 = vsel %vm14992_vm13, %v12144_v41, %v10730_v14  ;;  %v10737_v33 = vrot.slane %v9886_v30, 5 }
 0x4ba   : > { %v10624_v51 = vld [vmem:[#allocation3 + $0x84] sm:$0xe]  ;;  %v9892_v50 = vld [vmem:[#allocation3 + $0x94] sm:$0xf]  ;;  %18387 = vst [vmem:[#allocation50_spill] sm:$0xff] %v17458_v16  ;;  %v17465_v58 = vsel %vm14992_vm13, %v10732_v44, %v10733_v27  ;;  %v10747_v30 = vrot.slane %v9890_v43, 5 }
 0x4bb   : > { %v17441_v37 = vsel %vm14992_vm13, %v10718_v11, %v10719_v2  ;;  %v17454_v11 = vsel %vm14992_vm13, %v10725_v47, %v10726_v15  ;;  %v12145_v2 = vrot.slane %v10623_v59, 9  ;;  %v9895_v36 = vld [vmem:[#allocation3 + $0xa0] sm:$0xf]  ;;  %18388 = vst [vmem:[#allocation51_spill] sm:$0xff] %v17465_v58  ;;  %v10740_v47 = vrot.slane %v9887_v63, 5 }
 0x4bc   : > { %18386 = vst [vmem:[#allocation49_spill] sm:$0xff] %v17454_v11  ;;  %v10744_v15 = vrot.slane %v9889_v3, 5  ;;  %v10739_v14 = vrot.slane %v10737_v33, 4  ;;  %v10626_v41 = vld [vmem:[#allocation3 + $0x9c] sm:$0xe]  ;;  %v12147_v63 = vrot.slane %v10625_v32, 9 }
 0x4bd   : > { %v9896_v27 = vld [vmem:[#allocation3 + $0xa4] sm:$0x1]  ;;  %v17476_v3 = vsel %vm14992_vm13, %v12145_v2, %v10737_v33  ;;  %v9898_v44 = vld [vmem:[#allocation3 + $0xac] sm:$0xf]  ;;  %v9899_v11 = vld [vmem:[#allocation3 + $0xb0] sm:$0x1] }
 0x4be   : > { %v10754_v59 = vrot.slane %v9893_v53, 5  ;;  %v10758_v58 = vrot.slane %v9895_v36, 5  ;;  %v9901_v16 = vld [vmem:[#allocation3 + $0xb8] sm:$0xf]  ;;  %v12148_v2 = vrot.slane %v10626_v41, 9 }
 0x4bf   : > { %v10627_v23 = vld [vmem:[#allocation3 + $0xa8] sm:$0xe]  ;;  %v9904_v33 = vld [vmem:[#allocation3 + $0xc4] sm:$0xf] }
 0x4c0   : > { %13335 = vmatmul.mubr.bf16.vlgmr.msra.gmra.mrb[0].mxu1 %v17254_v62  ;;  %v12146_v62 = vrot.slane %v10624_v51, 9  ;;  %v17480_v51 = vsel %vm14992_vm13, %v10739_v14, %v10740_v47  ;;  %v18392_v47 = vshll.u32 %v17038_v12, 16  ;;  %v10760_v36 = vrot.slane %v10758_v58, 4  ;;  %v18461_v26 = vld [vmem:[#allocation46_spill] sm:$0xff] }
 0x4c1   : > { %13338 = vmatprep.mubr.bf16.mxu1 %v17278_v28  ;;  %13367 = vmatpush3.bf16.msra.mxu1 %v17238_v54  ;;  %v10746_v28 = vrot.slane %v10744_v15, 4  ;;  %v10751_v54 = vrot.slane %v9892_v50, 5  ;;  %18389 = vst [vmem:[#allocation52_spill] sm:$0xff] %v17480_v51  ;;  %v10772_v51 = vrot.slane %v9901_v16, 5  ;;  %v8252_v16 = vld [vmem:[#allocation3 + $0x84] sm:$0xf] }
 0x4c2   : > { %13368 = vmatprep.subr.bf16.mxu1 %v14272_v19  ;;  %v17484_v43 = vsel %vm14992_vm13, %v12146_v62, %v10744_v15  ;;  %v17494_v14 = vrot.slane %v18392_v47, 5  ;;  %v10761_v15 = vrot.slane %v9896_v27, 5  ;;  %v10628_v62 = vld [vmem:[#allocation3 + $0xb4] sm:$0xe]  ;;  %v17511_v47 = vsel %vm14992_vm13, %v12148_v2, %v10758_v58 }
 0x4c3   : > { %18390 = vst [vmem:[#allocation53_spill] sm:$0xff] %v17484_v43  ;;  %v17490_v32 = vsel %vm14992_vm13, %v10746_v28, %v10747_v30  ;;  %v10753_v50 = vrot.slane %v10751_v54, 4  ;;  %v14274_v30 = vld [vmem:[%s18106_s3 + $0x158] sm:$0xff]   ;;  %v9902_v28 = vld [vmem:[#allocation3 + $0xbc] sm:$0x1]  ;;  %v10765_v27 = vrot.slane %v9898_v44, 5 }
 0x4c4   : > { %18391 = vst [vmem:[#allocation54_spill] sm:$0xff] %v17490_v32  ;;  %v17517_v32 = vsel %vm14992_vm13, %v10760_v36, %v10761_v15  ;;  %v12149_v43 = vrot.slane %v10627_v23, 9  ;;  %v10768_v58 = vrot.slane %v9899_v11, 5  ;;  %v12150_v2 = vrot.slane %v10628_v62, 9 }
 0x4c5   : > { %13369 = vmatpush3.bf16.msra.mxu1 %v14272_v19  ;;  %v17503_v19 = vsel %vm14992_vm13, %v12147_v63, %v10751_v54  ;;  %v17507_v41 = vsel %vm14992_vm13, %v10753_v50, %v10754_v59  ;;  %v10629_v63 = vld [vmem:[#allocation3 + $0xc0] sm:$0xe]  ;;  %v9905_v54 = vld [vmem:[#allocation3 + $0xc8] sm:$0x1]  ;;  %v10767_v50 = vrot.slane %v10765_v27, 4  ;;  %v18393_v44 = vshrl.u32 %v17038_v12, 16 }
 0x4c6   : > { %13370 = vmatprep.subr.bf16.mxu1 %v14273_v25  ;;  %v10774_v36 = vrot.slane %v10772_v51, 4  ;;  %v10775_v15 = vrot.slane %v9902_v28, 5  ;;  %v10779_v23 = vrot.slane %v9904_v33, 5  ;;  %v17530_v59 = vsel %vm14992_vm13, %v12149_v43, %v10765_v27 }
 0x4c7   : > { %v8502_v53 = vrot.slane %v18393_v44, 4  ;;  %v17538_v12 = vsel %vm14992_vm13, %v12150_v2, %v10772_v51  ;;  %v12151_v11 = vrot.slane %v10629_v63, 9  ;;  %v10782_v28 = vrot.slane %v9905_v54, 5 }
 0x4c8   : > { %13339 = vmatmul.mubr.bf16.gmra.mrb[4].mxu1 %v17295_v21  ;;  %v14275_v21 = vld [vmem:[%s18106_s3 + $0x160] sm:$0xff]   ;;  %v17544_v33 = vsel %vm14992_vm13, %v10774_v36, %v10775_v15  ;;  %v10781_v62 = vrot.slane %v10779_v23, 4  ;;  %v18394_v43 = vshll.u32 %v17304_v7, 16  ;;  %v8511_v63 = vshrl.u32 %v8252_v16, 16 }
 0x4c9   : > { %13342 = vmatprep.mubr.bf16.mxu1 %v17308_v38  ;;  %13371 = vmatpush3.bf16.msra.mxu1 %v14273_v25  ;;  %v17534_v38 = vsel %vm14992_vm13, %v10767_v50, %v10768_v58  ;;  %v8520_v50 = vshll.u32 %v17057_v56, 16  ;;  %v8524_v58 = vshrl.u32 %v17057_v56, 16  ;;  %v12182_v51 = vcombine.low %v17538_v12, %v17544_v33 }
 0x4ca   : > { %13372 = vmatprep.subr.bf16.mxu1 %v14274_v30  ;;  %v12181_v25 = vcombine.low %v17530_v59, %v17534_v38  ;;  %v8492_v27 = vrot.slane %v18394_v43, 5  ;;  %v8514_v2 = vshll.u32 %v8252_v16, 16  ;;  %v17554_v44 = vsel %vm14992_vm13, %v12151_v11, %v10779_v23  ;;  %v14276_v23 = vld [vmem:[%s18106_s3 + $0x168] sm:$0xff]   ;;  %v11152_v59 = vld [vmem:[%s14577_s6] sm:$0xff] }
 0x4cb   : > { %v17558_v54 = vsel %vm14992_vm13, %v10781_v62, %v10782_v28  ;;  %v18395_v7 = vor.u32 %v17325_v17, %v17323_v52  ;;  %v18396_v56 = vor.u32 %v17354_v34, %v17334_v29  ;;  %v18397_v52 = vsel %vm14586_vm6, %v17292_v22, %v17312_v48  ;;  %v8255_v22 = vld [vmem:[#allocation3 + $0x90] sm:$0xf] }
 0x4cc   : > { %v12183_v16 = vcombine.low %v17554_v44, %v17558_v54  ;;  %v18398_v17 = vsel %vm14586_vm6, %v17287_v20, %v17267_v6  ;;  %v18400_v62 = vshll.u32 %v17046_v45, 16  ;;  %v8506_v43 = vshll.u32 %v17048_v55, 16  ;;  %v11153_v54 = vld [vmem:[%s14577_s6 + $0x8] sm:$0xff] }
 0x4cd   : > { %13373 = vmatpush3.bf16.msra.mxu1 %v14274_v30  ;;  %v8470_v36 = vrot.slane %v18395_v7, 4  ;;  %v8480_v15 = vrot.slane %v18396_v56, 4  ;;  %v8503_v30 = vor.u32 %v8502_v53, %v17494_v14  ;;  %v11983_v34 = vcombine.low %v18398_v17, %v18397_v52 }
 0x4ce   : > { %13374 = vmatprep.subr.bf16.mxu1 %v14275_v21  ;;  %v18399_v53 = vshll.u32 %v17015_v4, 16  ;;  %v8484_v28 = vrot.slane %v18400_v62, 5  ;;  %v17588_v7 = vrot.slane %v8520_v50, 5  ;;  %v8526_v56 = vrot.slane %v8524_v58, 4  ;;  %v14278_v62 = vld [vmem:[%s18106_s3 + $0x178] sm:$0xff]  }
 0x4cf   : > { %v8451_v6 = vsel %vm14586_vm6, %v17332_v9, %v17276_v31  ;;  %v8493_v4 = vor.u32 %v8492_v27, %v17368_v39  ;;  %v8513_v20 = vrot.slane %v8511_v63, 4  ;;  %v8516_v48 = vrot.slane %v8514_v2, 5  ;;  %v14277_v31 = vld [vmem:[%s18106_s3 + $0x170] sm:$0xff]  }
 0x4d0   : > { %v8460_v11 = vrot.slane %v18399_v53, 5  ;;  %13343 = vmatmul.mubr.bf16.gmra.mrb[8].mxu1 %v17310_v40  ;;  %v8475_v55 = vsel %vm14586_vm6, %v8470_v36, %v17334_v29  ;;  %v8485_v40 = vsel %vm14586_vm6, %v8480_v15, %v8484_v28  ;;  %v8504_v50 = vrot.slane %v8503_v30, 4 }
 0x4d1   : > { %13346 = vmatprep.mubr.bf16.mxu1 %v11983_v34  ;;  %13375 = vmatpush3.bf16.msra.mxu1 %v14275_v21  ;;  %v8535_v9 = vshrl.u32 %v8255_v22, 16  ;;  %v8538_v39 = vshll.u32 %v8255_v22, 16  ;;  %v8544_v21 = vshll.u32 %v17068_v60, 16  ;;  %v8548_v27 = vshrl.u32 %v17068_v60, 16  ;;  %v14363_v34 = vld [vmem:[#allocation3 + $0x8c] sm:$0x1] }
 0x4d2   : > { %v8461_v45 = vsel %vm14586_vm6, %v17339_v0, %v8460_v11  ;;  %13376 = vmatprep.subr.bf16.mxu1 %v14276_v23  ;;  %v8258_v0 = vld [vmem:[#allocation3 + $0x9c] sm:$0xf]  ;;  %v8508_v58 = vrot.slane %v8506_v43, 5  ;;  %v8527_v63 = vor.u32 %v8526_v56, %v17588_v7  ;;  %v8568_v29 = vshll.u32 %v17084_v5, 16 }
 0x4d3   : > { %v8572_v2 = vshrl.u32 %v17084_v5, 16  ;;  %v11984_v36 = vcombine.low %v8451_v6, %v8461_v45  ;;  %v11985_v15 = vcombine.low %v8475_v55, %v8485_v40  ;;  %v8494_v30 = vrot.slane %v8493_v4, 4 }
 0x4d4   : > { %v8517_v52 = vor.u32 %v8516_v48, %v8513_v20  ;;  %v8509_v17 = vsel %vm14586_vm6, %v8504_v50, %v8508_v58  ;;  %v8530_v53 = vshll.u32 %v14363_v34, 16  ;;  %v8559_v11 = vshrl.u32 %v8258_v0, 16  ;;  %v8261_v50 = vld [vmem:[#allocation3 + $0xa8] sm:$0xf] }
 0x4d5   : > { %13377 = vmatpush3.bf16.msra.mxu1 %v14276_v23  ;;  %v8562_v60 = vshll.u32 %v8258_v0, 16  ;;  %v8537_v28 = vrot.slane %v8535_v9, 4  ;;  %v8540_v43 = vrot.slane %v8538_v39, 5  ;;  %v17616_v5 = vrot.slane %v8544_v21, 5  ;;  %v17626_v9 = vld [vmem:[%s18106_s3 + $0x180] sm:$0xff]  }
 0x4d6   : > { %13378 = vmatprep.subr.bf16.mxu1 %v14277_v31  ;;  %v8550_v56 = vrot.slane %v8548_v27, 4  ;;  %v8528_v22 = vrot.slane %v8527_v63, 4  ;;  %v17618_v23 = vrot.slane %v8568_v29, 5  ;;  %v8574_v6 = vrot.slane %v8572_v2, 4  ;;  %v14364_v27 = vld [vmem:[#allocation3 + $0xac] sm:$0xf] }
 0x4d7   : > { %v8499_v4 = vsel %vm14586_vm6, %v8494_v30, %v17494_v14  ;;  %v8518_v20 = vrot.slane %v8517_v52, 4  ;;  %v8532_v45 = vrot.slane %v8530_v53, 5  ;;  %v8561_v55 = vrot.slane %v8559_v11, 4  ;;  %v8264_v14 = vld [vmem:[#allocation3 + $0xb4] sm:$0xf] }
 0x4d8   : > { %13347 = vmatmul.mubr.bf16.gmra.mrb[12].mxu1 %v11984_v36  ;;  %v11986_v48 = vcombine.low %v8499_v4, %v8509_v17  ;;  %v8564_v40 = vrot.slane %v8562_v60, 5  ;;  %v8541_v39 = vor.u32 %v8540_v43, %v8537_v28  ;;  %v8551_v21 = vor.u32 %v8550_v56, %v17616_v5  ;;  %v14366_v53 = vld [vmem:[#allocation3 + $0xa4] sm:$0x1] }
 0x4d9   : > { %13350 = vmatprep.mubr.bf16.mxu1 %v11985_v15  ;;  %13379 = vmatpush3.bf16.msra.mxu1 %v14277_v31  ;;  %v8592_v0 = vshll.u32 %v14364_v27, 16  ;;  %v8596_v58 = vshrl.u32 %v14364_v27, 16  ;;  %v8533_v31 = vsel %vm14586_vm6, %v8528_v22, %v8532_v45  ;;  %v8575_v63 = vor.u32 %v8574_v6, %v17618_v23  ;;  %v14365_v15 = vld [vmem:[#allocation3 + $0x98] sm:$0x1] }
 0x4da   : > { %13380 = vmatprep.subr.bf16.mxu1 %v14278_v62  ;;  %v8616_v29 = vshll.u32 %v17111_v8, 16  ;;  %v8620_v2 = vshrl.u32 %v17111_v8, 16  ;;  %v8523_v36 = vsel %vm14586_vm6, %v8518_v20, %v17588_v7  ;;  %v8554_v30 = vshll.u32 %v14365_v15, 16 }
 0x4db   : > { %v8583_v52 = vshrl.u32 %v8261_v50, 16  ;;  %v8586_v17 = vshll.u32 %v8261_v50, 16  ;;  %v8565_v34 = vor.u32 %v8564_v40, %v8561_v55  ;;  %v8578_v11 = vshll.u32 %v14366_v53, 16 }
 0x4dc   : > { %v8607_v60 = vshrl.u32 %v8264_v14, 16  ;;  %v8610_v28 = vshll.u32 %v8264_v14, 16  ;;  %v11987_v43 = vcombine.low %v8523_v36, %v8533_v31  ;;  %v8552_v56 = vrot.slane %v8551_v21, 4  ;;  %v8267_v14 = vld [vmem:[#allocation3 + $0xc0] sm:$0xf] }
 0x4dd   : > { %13381 = vmatpush3.bf16.msra.mxu1 %v14278_v62  ;;  %v8594_v22 = vrot.slane %v8592_v0, 5  ;;  %v8598_v8 = vrot.slane %v8596_v58, 4  ;;  %v8542_v6 = vrot.slane %v8541_v39, 4  ;;  %v8576_v4 = vrot.slane %v8575_v63, 4  ;;  %v14367_v0 = vld [vmem:[#allocation3 + $0xc4] sm:$0xf] }
 0x4de   : > { %13414 = vmatprep.subr.bf16.mxu1 %v17626_v9  ;;  %v8618_v7 = vrot.slane %v8616_v29, 5  ;;  %v8622_v20 = vrot.slane %v8620_v2, 4  ;;  %v8556_v45 = vrot.slane %v8554_v30, 5  ;;  %v8585_v50 = vrot.slane %v8583_v52, 4  ;;  %v14368_v36 = vld [vmem:[#allocation3 + $0xb0] sm:$0x1] }
 0x4df   : > { %v8588_v62 = vrot.slane %v8586_v17, 5  ;;  %v8566_v55 = vrot.slane %v8565_v34, 4  ;;  %v8580_v40 = vrot.slane %v8578_v11, 5  ;;  %v8609_v27 = vrot.slane %v8607_v60, 4  ;;  %v14369_v60 = vld [vmem:[#allocation3 + $0xbc] sm:$0x1] }
 0x4e0   : > { %13351 = vmatmul.mubr.bf16.gmra.mrb[16].mxu1 %v11986_v48  ;;  %v8612_v15 = vrot.slane %v8610_v28, 5  ;;  %v8557_v31 = vsel %vm14586_vm6, %v8552_v56, %v8556_v45  ;;  %v8599_v21 = vor.u32 %v8598_v8, %v8594_v22  ;;  %v8640_v58 = vshll.u32 %v14367_v0, 16 }
 0x4e1   : > { %13354 = vmatprep.mubr.bf16.mxu1 %v11987_v43  ;;  %v8644_v48 = vshrl.u32 %v14367_v0, 16  ;;  %v8547_v39 = vsel %vm14586_vm6, %v8542_v6, %v17616_v5  ;;  %v8581_v63 = vsel %vm14586_vm6, %v8576_v4, %v8580_v40  ;;  %v8623_v29 = vor.u32 %v8622_v20, %v8618_v7  ;;  %v14371_v0 = vld [vmem:[#allocation3 + $0xc8] sm:$0x1] }
 0x4e2   : > { %v8589_v2 = vor.u32 %v8588_v62, %v8585_v50  ;;  %v8602_v30 = vshll.u32 %v14368_v36, 16  ;;  %v8631_v52 = vshrl.u32 %v8267_v14, 16  ;;  %v8634_v17 = vshll.u32 %v8267_v14, 16 }
 0x4e3   : > { %v11988_v34 = vcombine.low %v8547_v39, %v8557_v31  ;;  %v8571_v53 = vsel %vm14586_vm6, %v8566_v55, %v17618_v23  ;;  %v8613_v11 = vor.u32 %v8612_v15, %v8609_v27  ;;  %v8626_v28 = vshll.u32 %v14369_v60, 16  ;;  %v14370_v27 = vld [vmem:[#allocation3 + $0x10] sm:$0xf] }
 0x4e4   : > { %v11989_v43 = vcombine.low %v8571_v53, %v8581_v63  ;;  %v8600_v56 = vrot.slane %v8599_v21, 4  ;;  %v8642_v5 = vrot.slane %v8640_v58, 5  ;;  %v8646_v8 = vrot.slane %v8644_v48, 4 }
 0x4e5   : > { %v8624_v6 = vrot.slane %v8623_v29, 4  ;;  %v8590_v4 = vrot.slane %v8589_v2, 4  ;;  %v8604_v20 = vrot.slane %v8602_v30, 5  ;;  %v8633_v45 = vrot.slane %v8631_v52, 4  ;;  %v8976_v52 = vld [vmem:[#allocation3 + $0xc] sm:$0xe] }
 0x4e6   : > { %v8636_v50 = vrot.slane %v8634_v17, 5  ;;  %v8614_v62 = vrot.slane %v8613_v11, 4  ;;  %v8628_v40 = vrot.slane %v8626_v28, 5  ;;  %v8647_v23 = vor.u32 %v8646_v8, %v8642_v5 }
 0x4e7   : > { %v8605_v14 = vsel %vm14586_vm6, %v8600_v56, %v8604_v20  ;;  %v9042_v15 = vrot.slane %v14370_v27, 5  ;;  %v8595_v31 = vsel %vm14586_vm6, %v8590_v4, %v8594_v22  ;;  %v8650_v58 = vshll.u32 %v14371_v0, 16  ;;  %v18408_v27 = vld [vmem:[#allocation24_spill] sm:$0xff] }
 0x4e8   : > { %13355 = vmatmul.mubr.bf16.gmra.mrb[20].mxu1 %v11988_v34  ;;  %v8629_v55 = vsel %vm14586_vm6, %v8624_v6, %v8628_v40  ;;  %v8637_v21 = vor.u32 %v8636_v50, %v8633_v45  ;;  %v11990_v48 = vcombine.low %v8595_v31, %v8605_v14  ;;  %v8619_v39 = vsel %vm14586_vm6, %v8614_v62, %v8618_v7  ;;  %v14372_v34 = vld [vmem:[#allocation3 + $0x1c] sm:$0xf]  ;;  %v14282_v40 = vld [vmem:[%s18106_s3 + $0x198] sm:$0xff]   ;;  %v18410_v31 = vld [vmem:[#allocation19_spill] sm:$0xff] }
 0x4e9   : > { %13358 = vmatprep.mubr.bf16.mxu1 %v11989_v43  ;;  %v11991_v63 = vcombine.low %v8619_v39, %v8629_v55  ;;  %v8648_v29 = vrot.slane %v8647_v23, 4  ;;  %v9044_v2 = vrot.slane %v9042_v15, 4  ;;  %v8652_v30 = vrot.slane %v8650_v58, 5  ;;  %v18404_v23 = vld [vmem:[#allocation16_spill] sm:$0xff]  ;;  %v18405_v55 = vld [vmem:[#allocation11_spill] sm:$0xff] }
 0x4ea   : > { %v8638_v36 = vrot.slane %v8637_v21, 4  ;;  %v9045_v17 = vrot.slane %v17197_v61, 5  ;;  %v9049_v53 = vrot.slane %v14372_v34, 5  ;;  %v12001_v11 = vrot.slane %v8976_v52, 9  ;;  %v8977_v61 = vld [vmem:[#allocation3 + $0x18] sm:$0xe] }
 0x4eb   : > { %v8653_v22 = vsel %vm14586_vm6, %v8648_v29, %v8652_v30  ;;  %v9052_v6 = vrot.slane %v17205_v18, 5  ;;  %v12002_v4 = vrot.slane %v8977_v61, 9  ;;  %v18401_v62 = vcombine.low %v16987_v57, %v16991_v49  ;;  %v14281_v18 = vld [vmem:[%s18106_s3 + $0x190] sm:$0xff]   ;;  %v14283_v49 = vld [vmem:[%s18106_s3 + $0x1a0] sm:$0xff]   ;;  %v18413_v58 = vld [vmem:[#allocation7_spill] sm:$0xff] }
 0x4ec   : > { %v9046_v60 = vsel %vm14992_vm13, %v9044_v2, %v9045_v17  ;;  %v8643_v7 = vsel %vm14586_vm6, %v8638_v36, %v8642_v5  ;;  %v9043_v43 = vsel %vm14992_vm13, %v12001_v11, %v9042_v15  ;;  %v9051_v8 = vrot.slane %v9049_v53, 4  ;;  %v14280_v5 = vld [vmem:[%s18106_s3 + $0x188] sm:$0xff]   ;;  %v14286_v15 = vld [vmem:[%s18106_s3 + $0x1b8] sm:$0xff]   ;;  %v18411_v21 = vld [vmem:[#allocation20_spill] sm:$0xff] }
 0x4ed   : > { %v11992_v28 = vcombine.low %v8643_v7, %v8653_v22  ;;  %v12033_v56 = vcombine.low %v9043_v43, %v9046_v60  ;;  %v9050_v45 = vsel %vm14992_vm13, %v12002_v4, %v9049_v53  ;;  %v18402_v14 = vcombine.low %v17001_v35, %v17008_v13  ;;  %v18407_v13 = vld [vmem:[#allocation23_spill] sm:$0xff]  ;;  %v18416_v29 = vld [vmem:[#allocation8_spill] sm:$0xff]  ;;  %v18417_v2 = vld [vmem:[#allocation10_spill] sm:$0xff] }
 0x4ee   : > { %v9053_v20 = vsel %vm14992_vm13, %v9051_v8, %v9052_v6  ;;  %v18403_v57 = vcombine.low %v17012_v24, %v17027_v46  ;;  %v18406_v35 = vcombine.low %v18404_v23, %v18405_v55  ;;  %v18409_v24 = vcombine.low %v18407_v13, %v18408_v27  ;;  %v14285_v46 = vld [vmem:[%s18106_s3 + $0x1b0] sm:$0xff]   ;;  %v18420_v52 = vld [vmem:[#allocation13_spill] sm:$0xff]  ;;  %v18422_v22 = vld [vmem:[#allocation14_spill] sm:$0xff] }
 0x4ef   : > { %v12034_v50 = vcombine.low %v9050_v45, %v9053_v20  ;;  %v18412_v0 = vcombine.low %v18410_v31, %v18411_v21  ;;  %v18418_v36 = vcombine.low %v18416_v29, %v18417_v2  ;;  %v18419_v30 = vld [vmem:[#allocation12_spill] sm:$0xff]  ;;  %v18423_v34 = vld [vmem:[#allocation15_spill] sm:$0xff]  ;;  %v18425_v11 = vld [vmem:[#allocation17_spill] sm:$0xff]  ;;  %v9919_v21 = vshll.u32 %v17306_v42, 16 }
 0x4f0   : > { %13359 = vmatmul.mubr.bf16.gmra.mrb[24].mxu1 %v11990_v48  ;;  %v18414_v48 = vld [vmem:[#allocation9_spill] sm:$0xff]  ;;  %v18421_v17 = vcombine.low %v18419_v30, %v18420_v52  ;;  %v18424_v53 = vcombine.low %v18422_v22, %v18423_v34  ;;  %v18426_v60 = vld [vmem:[#allocation18_spill] sm:$0xff]  ;;  %v14287_v4 = vld [vmem:[#allocation3 + $0x18] sm:$0xff]  }
 0x4f1   : > { %13362 = vmatprep.mubr.bf16.mxu1 %v11991_v63  ;;  %v18415_v39 = vcombine.low %v18413_v58, %v18414_v48  ;;  %v14289_v63 = vld [vmem:[%s18106_s3 + $0x1c0] sm:$0xff]   ;;  %v18427_v7 = vcombine.low %v18425_v11, %v18426_v60  ;;  %v18431_v8 = vld [vmem:[#allocation25_spill] sm:$0xff]  ;;  %v18434_v20 = vld [vmem:[#allocation27_spill] sm:$0xff]  ;;  %v9921_v2 = vrot.slane %v9919_v21, 5 }
 0x4f2   : > { %v18429_v43 = vld [vmem:[#allocation22_spill] sm:$0xff]  ;;  %v18435_v45 = vld [vmem:[#allocation28_spill] sm:$0xff]  ;;  %v14304_v55 = vld [vmem:[%s18106_s3 + $0x1e8] sm:$0xff]  }
 0x4f3   : > { %v18432_v61 = vld [vmem:[#allocation26_spill] sm:$0xff]  ;;  %v14294_v23 = vld [vmem:[#allocation3 + $0x54] sm:$0xff]   ;;  %v9864_v58 = vld [vmem:[#allocation3 + $0x24] sm:$0xf] }
 0x4f4   : > { %v18433_v6 = vcombine.low %v18431_v8, %v18432_v61  ;;  %v14307_v13 = vld [vmem:[%s18106_s3 + $0x1f0] sm:$0xff]   ;;  %v14297_v27 = vld [vmem:[#allocation3 + $0x6c] sm:$0xff]   ;;  %v14300_v48 = vld [vmem:[#allocation3 + $0x84] sm:$0xff]   ;;  %v9934_v30 = vshrl.u32 %v9864_v58, 16  ;;  %v9937_v52 = vshll.u32 %v9864_v58, 16 }
 0x4f5   : > { %v9861_v31 = vld [vmem:[#allocation3 + $0x18] sm:$0xf]  ;;  %v14302_v29 = vld [vmem:[#allocation3 + $0x90] sm:$0xff]   ;;  %v18437_v34 = vld [vmem:[#allocation6_spill] sm:$0xff] }
 0x4f6   : > { %v9939_v60 = vrot.slane %v9937_v52, 5  ;;  %v18438_v8 = vld [vmem:[#allocation5_spill] sm:$0xff] }
 0x4f7   : > { %v9929_v61 = vshll.u32 %v18438_v8, 16 }
 0x4f8   : > { %13363 = vmatmul.mubr.bf16.gmra.mrb[28].mxu1 %v11992_v28  ;;  %v18428_v28 = vld [vmem:[#allocation21_spill] sm:$0xff] }
 0x4f9   : > { %13382 = vmatprep.mubr.bf16.mxu1 %v12033_v56  ;;  %v18430_v56 = vcombine.low %v18428_v28, %v18429_v43  ;;  %v9867_v28 = vld [vmem:[#allocation3 + $0x30] sm:$0xf]  ;;  %v14303_v43 = vld [vmem:[#allocation3 + $0x9c] sm:$0xff]  }
 0x500   : > { %13383 = vmatmul.mubr.bf16.vlgmr.msra.gmra.mrb[0].mxu1 %v12034_v50  ;;  %v18436_v50 = vcombine.low %v18434_v20, %v18435_v45  ;;  %v9958_v20 = vshrl.u32 %v9867_v28, 16 }
 0x501   : > { %13386 = vmatprep.mubr.bf16.mxu1 %v18401_v62  ;;  %13415 = vmatpush3.bf16.msra.mxu1 %v17626_v9  ;;  %v14284_v9 = vld [vmem:[%s18106_s3 + $0x1a8] sm:$0xff]  }
 0x502   : > { %13416 = vmatprep.subr.bf16.mxu1 %v14280_v5  ;;  %v14292_v62 = vld [vmem:[%s18106_s3 + $0x1c8] sm:$0xff]  }
 0x505   : > { %13417 = vmatpush3.bf16.msra.mxu1 %v14280_v5  ;;  %v14288_v5 = vld [vmem:[#allocation3 + $0x24] sm:$0xff]  }
 0x506   : > { %13418 = vmatprep.subr.bf16.mxu1 %v14281_v18 }
 0x508   : > { %13387 = vmatmul.mubr.bf16.gmra.mrb[4].mxu1 %v18402_v14  ;;  %v14291_v14 = vld [vmem:[#allocation3 + $0x3c] sm:$0xff]  }
 0x509   : > { %13390 = vmatprep.mubr.bf16.mxu1 %v18403_v57  ;;  %13419 = vmatpush3.bf16.msra.mxu1 %v14281_v18  ;;  %v14290_v18 = vld [vmem:[#allocation3 + $0x30] sm:$0xff]   ;;  %v14298_v57 = vld [vmem:[%s18106_s3 + $0x1d8] sm:$0xff]  }
 0x50a   : > { %13420 = vmatprep.subr.bf16.mxu1 %v14282_v40 }
 0x50d   : > { %13421 = vmatpush3.bf16.msra.mxu1 %v14282_v40  ;;  %v14295_v40 = vld [vmem:[%s18106_s3 + $0x1d0] sm:$0xff]  }
 0x50e   : > { %13422 = vmatprep.subr.bf16.mxu1 %v14283_v49 }
 0x510   : > { %13391 = vmatmul.mubr.bf16.gmra.mrb[8].mxu1 %v18406_v35  ;;  %v14296_v35 = vld [vmem:[#allocation3 + $0x60] sm:$0xff]  }
 0x511   : > { %13394 = vmatprep.mubr.bf16.mxu1 %v18409_v24  ;;  %13423 = vmatpush3.bf16.msra.mxu1 %v14283_v49  ;;  %v14293_v49 = vld [vmem:[#allocation3 + $0x48] sm:$0xff]   ;;  %v14310_v24 = vld [vmem:[%s18106_s3 + $0x1f8] sm:$0xff]  }
 0x512   : > { %13424 = vmatprep.subr.bf16.mxu1 %v14284_v9 }
 0x515   : > { %13425 = vmatpush3.bf16.msra.mxu1 %v14284_v9  ;;  %v14301_v9 = vld [vmem:[%s18106_s3 + $0x1e0] sm:$0xff]  }
 0x516   : > { %13426 = vmatprep.subr.bf16.mxu1 %v14285_v46 }
 0x518   : > { %13395 = vmatmul.mubr.bf16.gmra.mrb[12].mxu1 %v18412_v0  ;;  %v9923_v0 = vshrl.u32 %v17306_v42, 16  ;;  %v9936_v42 = vrot.slane %v9934_v30, 4 }
 0x519   : > { %13398 = vmatprep.mubr.bf16.mxu1 %v18415_v39  ;;  %13427 = vmatpush3.bf16.msra.mxu1 %v14285_v46  ;;  %v14299_v46 = vld [vmem:[#allocation3 + $0x78] sm:$0xff]   ;;  %v9910_v39 = vshrl.u32 %v9861_v31, 16 }
 0x51a   : > { %13428 = vmatprep.subr.bf16.mxu1 %v14286_v15 }
 0x51d   : > { %13429 = vmatpush3.bf16.msra.mxu1 %v14286_v15  ;;  %v17761_v15 = vld [vmem:[%s18106_s3 + $0x200] sm:$0xff]  }
 0x51e   : > { %13462 = vmatprep.subr.bf16.mxu1 %v14289_v63 }
 0x520   : > { %13399 = vmatmul.mubr.bf16.gmra.mrb[16].mxu1 %v18418_v36  ;;  %v9925_v36 = vrot.slane %v9923_v0, 4  ;;  %v14306_v0 = vld [vmem:[#allocation3 + $0xb4] sm:$0xff]  }
 0x521   : > { %13402 = vmatprep.mubr.bf16.mxu1 %v18421_v17  ;;  %v9912_v17 = vrot.slane %v9910_v39, 4  ;;  %v18441_v39 = vld [vmem:[#allocation30_spill] sm:$0xff] }
 0x522   : > { %v9926_v11 = vor.u32 %v9925_v36, %v9921_v2  ;;  %v14308_v36 = vld [vmem:[#allocation3 + $0xc0] sm:$0xff]  }
 0x524   : > { %v9927_v45 = vrot.slane %v9926_v11, 4 }
 0x528   : > { %13403 = vmatmul.mubr.bf16.gmra.mrb[20].mxu1 %v18424_v53  ;;  %v9943_v53 = vshll.u32 %v18437_v34, 16 }
 0x529   : > { %13406 = vmatprep.mubr.bf16.mxu1 %v18427_v7  ;;  %v9947_v7 = vshrl.u32 %v18437_v34, 16 }
 0x530   : > { %13407 = vmatmul.mubr.bf16.gmra.mrb[24].mxu1 %v18430_v56 }
 0x531   : > { %13410 = vmatprep.mubr.bf16.mxu1 %v18433_v6  ;;  %v14305_v6 = vld [vmem:[#allocation3 + $0xa8] sm:$0xff]  }
 0x538   : > { %13411 = vmatmul.mubr.bf16.gmra.mrb[28].mxu1 %v18436_v50  ;;  %v9940_v50 = vor.u32 %v9939_v60, %v9936_v42  ;;  %v18443_v60 = vld [vmem:[#allocation32_spill] sm:$0xff] }
 0x539   : > { %13430 = vmatprep.mubr.bf16.mxu1 %v14287_v4  ;;  %v17769_v4 = vrot.slane %v9943_v53, 5  ;;  %v9873_v53 = vld [vmem:[#allocation3 + $0x48] sm:$0xf]  ;;  %v10019_v8 = vshrl.u32 %v18443_v60, 16 }
 0x540   : > { %13431 = vmatmul.mubr.bf16.vlgmr.msra.gmra.mrb[0].mxu1 %v14288_v5  ;;  %v9949_v5 = vrot.slane %v9947_v7, 4  ;;  %v10015_v7 = vshll.u32 %v18443_v60, 16 }
 0x541   : > { %13434 = vmatprep.mubr.bf16.mxu1 %v14290_v18  ;;  %13463 = vmatpush3.bf16.msra.mxu1 %v14289_v63  ;;  %v9913_v63 = vshll.u32 %v9861_v31, 16  ;;  %v18439_v18 = vld [vmem:[#allocation4_spill] sm:$0xff] }
 0x542   : > { %13464 = vmatprep.subr.bf16.mxu1 %v14292_v62 }
 0x543   : > { %v9915_v22 = vrot.slane %v9913_v63, 5  ;;  %v9977_v63 = vshll.u32 %v18441_v39, 16 }
 0x545   : > { %13465 = vmatpush3.bf16.msra.mxu1 %v14292_v62  ;;  %v9916_v56 = vor.u32 %v9915_v22, %v9912_v17  ;;  %v9961_v62 = vshll.u32 %v9867_v28, 16  ;;  %v18442_v17 = vld [vmem:[#allocation31_spill] sm:$0xff] }
 0x546   : > { %13466 = vmatprep.subr.bf16.mxu1 %v14295_v40  ;;  %v9991_v22 = vshll.u32 %v18442_v17, 16  ;;  %v9995_v34 = vshrl.u32 %v18442_v17, 16  ;;  %v17793_v28 = vld [vmem:[#allocation3 + $0xd0] sm:$0xf] }
 0x548   : > { %13435 = vmatmul.mubr.bf16.gmra.mrb[4].mxu1 %v14291_v14  ;;  %v9971_v14 = vshrl.u32 %v18439_v18, 16 }
 0x549   : > { %13438 = vmatprep.mubr.bf16.mxu1 %v14293_v49  ;;  %13467 = vmatpush3.bf16.msra.mxu1 %v14295_v40  ;;  %v9967_v40 = vshll.u32 %v18439_v18, 16  ;;  %v9931_v49 = vrot.slane %v9929_v61, 5  ;;  %v10630_v61 = vld [vmem:[#allocation3 + $0xcc] sm:$0xe] }
 0x54a   : > { %13468 = vmatprep.subr.bf16.mxu1 %v14298_v57  ;;  %v9973_v21 = vrot.slane %v9971_v14, 4  ;;  %v12152_v18 = vrot.slane %v10630_v61, 9  ;;  %v17803_v14 = vrot.slane %v9991_v22, 5 }
 0x54b   : > { %v17779_v31 = vrot.slane %v9967_v40, 5 }
 0x54d   : > { %13469 = vmatpush3.bf16.msra.mxu1 %v14298_v57  ;;  %v9917_v57 = vrot.slane %v9916_v56, 4  ;;  %v9974_v56 = vor.u32 %v9973_v21, %v17779_v31 }
 0x54e   : > { %13470 = vmatprep.subr.bf16.mxu1 %v14301_v9 }
 0x54f   : > { %v9922_v58 = vsel %vm14586_vm6, %v9917_v57, %v9921_v2  ;;  %v9997_v57 = vrot.slane %v9995_v34, 4  ;;  %v9975_v22 = vrot.slane %v9974_v56, 4  ;;  %v18445_v34 = vld [vmem:[#allocation35_spill] sm:$0xff] }
 0x550   : > { %13439 = vmatmul.mubr.bf16.gmra.mrb[8].mxu1 %v14294_v23 }
 0x551   : > { %13442 = vmatprep.mubr.bf16.mxu1 %v14296_v35  ;;  %13471 = vmatpush3.bf16.msra.mxu1 %v14301_v9  ;;  %v18440_v9 = vld [vmem:[#allocation29_spill] sm:$0xff]  ;;  %v9870_v35 = vld [vmem:[#allocation3 + $0x3c] sm:$0xf]  ;;  %v9998_v60 = vor.u32 %v9997_v57, %v17803_v14 }
 0x552   : > { %13472 = vmatprep.subr.bf16.mxu1 %v14304_v55  ;;  %v9953_v23 = vshll.u32 %v18440_v9, 16  ;;  %v9985_v52 = vshll.u32 %v9870_v35, 16  ;;  %v14309_v9 = vld [vmem:[#allocation3 + $0xcc] sm:$0xff]  }
 0x554   : > { %v9987_v40 = vrot.slane %v9985_v52, 5 }
 0x555   : > { %13473 = vmatpush3.bf16.msra.mxu1 %v14304_v55  ;;  %v9960_v55 = vrot.slane %v9958_v20, 4 }
 0x556   : > { %13474 = vmatprep.subr.bf16.mxu1 %v14307_v13 }
 0x558   : > { %13443 = vmatmul.mubr.bf16.gmra.mrb[12].mxu1 %v14297_v27  ;;  %v17776_v27 = vrot.slane %v9940_v50, 4  ;;  %v18444_v50 = vld [vmem:[#allocation38_spill] sm:$0xff] }
 0x559   : > { %13446 = vmatprep.mubr.bf16.mxu1 %v14299_v46  ;;  %13475 = vmatpush3.bf16.msra.mxu1 %v14307_v13  ;;  %v9932_v13 = vsel %vm14586_vm6, %v9927_v45, %v9931_v49  ;;  %v9963_v46 = vrot.slane %v9961_v62, 5  ;;  %v10043_v62 = vshrl.u32 %v18444_v50, 16 }
 0x55a   : > { %13476 = vmatprep.subr.bf16.mxu1 %v14310_v24  ;;  %v12113_v30 = vcombine.low %v9922_v58, %v9932_v13  ;;  %v9946_v11 = vsel %vm14586_vm6, %v17776_v27, %v17769_v4  ;;  %v10021_v27 = vrot.slane %v10019_v8, 4 }
 0x55b   : > { %v9964_v42 = vor.u32 %v9963_v46, %v9960_v55  ;;  %v10009_v55 = vshll.u32 %v9873_v53, 16  ;;  %v10045_v39 = vrot.slane %v10043_v62, 4 }
 0x55d   : > { %13477 = vmatpush3.bf16.msra.mxu1 %v14310_v24  ;;  %v9950_v24 = vor.u32 %v9949_v5, %v17769_v4  ;;  %v9876_v4 = vld [vmem:[#allocation3 + $0x54] sm:$0xf]  ;;  %v10039_v5 = vshll.u32 %v18444_v50, 16  ;;  %v9965_v17 = vrot.slane %v9964_v42, 4 }
 0x55e   : > { %13510 = vmatprep.subr.bf16.mxu1 %v17761_v15  ;;  %v10033_v46 = vshll.u32 %v9876_v4, 16 }
 0x55f   : > { %v9951_v2 = vrot.slane %v9950_v24, 4  ;;  %v10030_v24 = vshrl.u32 %v9876_v4, 16  ;;  %v17815_v58 = vrot.slane %v10039_v5, 5  ;;  %v14373_v5 = vld [vmem:[#allocation3 + $0x50] sm:$0x1] }
 0x560   : > { %13447 = vmatmul.mubr.bf16.gmra.mrb[16].mxu1 %v14300_v48  ;;  %v17783_v48 = vrot.slane %v9953_v23, 5  ;;  %v10006_v23 = vshrl.u32 %v9873_v53, 16  ;;  %v10001_v53 = vshll.u32 %v18445_v34, 16  ;;  %v10025_v62 = vshll.u32 %v14373_v5, 16 }
 0x561   : > { %13450 = vmatprep.mubr.bf16.mxu1 %v14302_v29  ;;  %v9982_v29 = vshrl.u32 %v9870_v35, 16  ;;  %v17805_v35 = vrot.slane %v10015_v7, 5  ;;  %v10011_v7 = vrot.slane %v10009_v55, 5  ;;  %v10032_v61 = vrot.slane %v10030_v24, 4 }
 0x562   : > { %v9956_v52 = vsel %vm14586_vm6, %v9951_v2, %v17783_v48  ;;  %v10046_v4 = vor.u32 %v10045_v39, %v17815_v58  ;;  %v18446_v48 = vld [vmem:[#allocation41_spill] sm:$0xff]  ;;  %v10003_v57 = vrot.slane %v10001_v53, 5 }
 0x563   : > { %v9984_v45 = vrot.slane %v9982_v29, 4  ;;  %v9879_v29 = vld [vmem:[#allocation3 + $0x60] sm:$0xf]  ;;  %v10022_v8 = vor.u32 %v10021_v27, %v17805_v35  ;;  %v10063_v2 = vshll.u32 %v18446_v48, 16  ;;  %v10067_v42 = vshrl.u32 %v18446_v48, 16 }
 0x564   : > { %v10057_v50 = vshll.u32 %v9879_v29, 16  ;;  %v12114_v56 = vcombine.low %v9946_v11, %v9956_v52  ;;  %v14312_v11 = vld [vmem:[%s18106_s3 + $0x208] sm:$0xff]  }
 0x565   : > { %v9988_v1 = vor.u32 %v9987_v40, %v9984_v45  ;;  %v9970_v45 = vsel %vm14586_vm6, %v9965_v17, %v17779_v31  ;;  %v9999_v40 = vrot.slane %v9998_v60, 4  ;;  %v10023_v55 = vrot.slane %v10022_v8, 4  ;;  %v9885_v8 = vld [vmem:[#allocation3 + $0x78] sm:$0xf] }
 0x566   : > { %v10047_v31 = vrot.slane %v10046_v4, 4  ;;  %v10059_v39 = vrot.slane %v10057_v50, 5  ;;  %v10027_v17 = vrot.slane %v10025_v62, 5  ;;  %v10105_v5 = vshll.u32 %v9885_v8, 16 }
 0x568   : > { %13451 = vmatmul.mubr.bf16.gmra.mrb[20].mxu1 %v14303_v43  ;;  %v17795_v43 = vld [vmem:[#allocation3 + $0xd4] sm:$0x1] }
 0x569   : > { %13454 = vmatprep.mubr.bf16.mxu1 %v14305_v6  ;;  %v10786_v6 = vrot.slane %v17793_v28, 5  ;;  %v10789_v20 = vrot.slane %v17795_v43, 5 }
 0x56b   : > { %v10788_v49 = vrot.slane %v10786_v6, 4  ;;  %v17809_v13 = vsel %vm14992_vm13, %v12152_v18, %v10786_v6  ;;  %v10035_v6 = vrot.slane %v10033_v46, 5  ;;  %v9989_v18 = vrot.slane %v9988_v1, 4  ;;  %v9882_v46 = vld [vmem:[#allocation3 + $0x6c] sm:$0xf] }
 0x56d   : > { %v17813_v21 = vsel %vm14992_vm13, %v10788_v49, %v10789_v20  ;;  %v10054_v20 = vshrl.u32 %v9879_v29, 16  ;;  %v18447_v49 = vld [vmem:[#allocation39_spill] sm:$0xff]  ;;  %v10036_v27 = vor.u32 %v10035_v6, %v10032_v61  ;;  %v17837_v29 = vrot.slane %v10063_v2, 5 }
 0x56e   : > { %v9994_v1 = vsel %vm14586_vm6, %v9989_v18, %v17803_v14  ;;  %v10004_v61 = vsel %vm14586_vm6, %v9999_v40, %v10003_v57  ;;  %v14313_v14 = vld [vmem:[%s18106_s3 + $0x210] sm:$0xff]  }
 0x56f   : > { %v10056_v24 = vrot.slane %v10054_v20, 4  ;;  %v10028_v20 = vsel %vm14586_vm6, %v10023_v55, %v10027_v17  ;;  %v10037_v4 = vrot.slane %v10036_v27, 4  ;;  %v14375_v40 = vld [vmem:[#allocation3 + $0x7c] sm:$0xf] }
 0x570   : > { %13455 = vmatmul.mubr.bf16.gmra.mrb[24].mxu1 %v14306_v0  ;;  %v9979_v0 = vrot.slane %v9977_v63, 5  ;;  %v10008_v63 = vrot.slane %v10006_v23, 4  ;;  %v10111_v57 = vshll.u32 %v14375_v40, 16 }
 0x571   : > { %13458 = vmatprep.mubr.bf16.mxu1 %v14308_v36  ;;  %v12184_v36 = vcombine.low %v17809_v13, %v17813_v21  ;;  %v10060_v48 = vor.u32 %v10059_v39, %v10056_v24  ;;  %v10042_v55 = vsel %vm14586_vm6, %v10037_v4, %v17815_v58  ;;  %v14314_v39 = vld [vmem:[%s18106_s3 + $0x218] sm:$0xff]  }
 0x572   : > { %v10012_v23 = vor.u32 %v10011_v7, %v10008_v63  ;;  %v10078_v63 = vshrl.u32 %v9882_v46, 16  ;;  %v10081_v7 = vshll.u32 %v9882_v46, 16 }
 0x573   : > { %v10061_v46 = vrot.slane %v10060_v48, 4  ;;  %v14378_v48 = vld [vmem:[#allocation3 + $0x94] sm:$0xf] }
 0x574   : > { %v10013_v6 = vrot.slane %v10012_v23, 4  ;;  %v10080_v62 = vrot.slane %v10078_v63, 4  ;;  %v10083_v18 = vrot.slane %v10081_v7, 5 }
 0x576   : > { %v10018_v23 = vsel %vm14586_vm6, %v10013_v6, %v17805_v35  ;;  %v10107_v35 = vrot.slane %v10105_v5, 5 }
 0x577   : > { %v12117_v27 = vcombine.low %v10018_v23, %v10028_v20  ;;  %v14315_v20 = vld [vmem:[%s18106_s3 + $0x220] sm:$0xff]  }
 0x578   : > { %13459 = vmatmul.mubr.bf16.gmra.mrb[28].mxu1 %v14309_v9  ;;  %v10049_v9 = vshll.u32 %v18447_v49, 16  ;;  %v10115_v49 = vshrl.u32 %v14375_v40, 16  ;;  %v14379_v40 = vld [vmem:[#allocation3 + $0x80] sm:$0x1] }
 0x579   : > { %13478 = vmatprep.mubr.bf16.mxu1 %v12113_v30  ;;  %v9980_v30 = vsel %vm14586_vm6, %v9975_v22, %v9979_v0  ;;  %v10069_v0 = vrot.slane %v10067_v42, 4  ;;  %v18448_v22 = vld [vmem:[#allocation44_spill] sm:$0xff] }
 0x57a   : > { %v12115_v52 = vcombine.low %v9970_v45, %v9980_v30  ;;  %v10087_v34 = vshll.u32 %v18448_v22, 16  ;;  %v10091_v53 = vshrl.u32 %v18448_v22, 16  ;;  %v10051_v60 = vrot.slane %v10049_v9, 5 }
 0x57b   : > { %v10070_v2 = vor.u32 %v10069_v0, %v17837_v29  ;;  %v10102_v30 = vshrl.u32 %v9885_v8, 16  ;;  %v12116_v9 = vcombine.low %v9994_v1, %v10004_v61  ;;  %v9888_v0 = vld [vmem:[#allocation3 + $0x84] sm:$0xf]  ;;  %v17867_v1 = vrot.slane %v10111_v57, 5  ;;  %v14377_v8 = vld [vmem:[#allocation3 + $0x88] sm:$0xf] }
 0x57c   : > { %v10052_v50 = vsel %vm14586_vm6, %v10047_v31, %v10051_v60  ;;  %v10093_v45 = vrot.slane %v10091_v53, 4  ;;  %v14376_v53 = vld [vmem:[#allocation3 + $0x74] sm:$0x1]  ;;  %v10117_v60 = vrot.slane %v10115_v49, 4  ;;  %v10126_v63 = vshrl.u32 %v9888_v0, 16 }
 0x57d   : > { %v12118_v24 = vcombine.low %v10042_v55, %v10052_v50  ;;  %v10104_v22 = vrot.slane %v10102_v30, 4  ;;  %v10097_v58 = vshll.u32 %v14376_v53, 16  ;;  %v10129_v7 = vshll.u32 %v9888_v0, 16 }
 0x57e   : > { %v10135_v61 = vshll.u32 %v14377_v8, 16  ;;  %v10139_v6 = vshrl.u32 %v14377_v8, 16  ;;  %v10121_v57 = vshll.u32 %v14379_v40, 16  ;;  %v10128_v49 = vrot.slane %v10126_v63, 4 }
 0x57f   : > { %v10108_v30 = vor.u32 %v10107_v35, %v10104_v22 }
 0x580   : > { %13479 = vmatmul.mubr.bf16.vlgmr.msra.gmra.mrb[0].mxu1 %v12114_v56  ;;  %v17855_v56 = vrot.slane %v10087_v34, 5  ;;  %v10084_v34 = vor.u32 %v10083_v18, %v10080_v62  ;;  %v10099_v62 = vrot.slane %v10097_v58, 5  ;;  %v10118_v18 = vor.u32 %v10117_v60, %v17867_v1 }
 0x581   : > { %13482 = vmatprep.mubr.bf16.mxu1 %v12115_v52  ;;  %13511 = vmatpush3.bf16.msra.mxu1 %v17761_v15  ;;  %v14374_v15 = vld [vmem:[#allocation3 + $0x68] sm:$0x1]  ;;  %v10071_v52 = vrot.slane %v10070_v2, 4  ;;  %v10159_v2 = vshll.u32 %v14378_v48, 16  ;;  %v17878_v23 = vrot.slane %v10135_v61, 5  ;;  %v10141_v55 = vrot.slane %v10139_v6, 4 }
 0x582   : > { %13512 = vmatprep.subr.bf16.mxu1 %v14312_v11  ;;  %v10073_v42 = vshll.u32 %v14374_v15, 16  ;;  %v10094_v17 = vor.u32 %v10093_v45, %v17855_v56  ;;  %v10163_v15 = vshrl.u32 %v14378_v48, 16  ;;  %v10085_v5 = vrot.slane %v10084_v34, 4  ;;  %v14380_v6 = vld [vmem:[#allocation3 + $0x8c] sm:$0x1] }
 0x583   : > { %v17880_v0 = vrot.slane %v10159_v2, 5  ;;  %v10109_v22 = vrot.slane %v10108_v30, 4  ;;  %v10142_v53 = vor.u32 %v10141_v55, %v17878_v23  ;;  %v9897_v2 = vld [vmem:[#allocation3 + $0xa8] sm:$0xf] }
 0x584   : > { %v10075_v31 = vrot.slane %v10073_v42, 5  ;;  %v10066_v42 = vsel %vm14586_vm6, %v10061_v46, %v17837_v29  ;;  %v10095_v45 = vrot.slane %v10094_v17, 4  ;;  %v10090_v35 = vsel %vm14586_vm6, %v10085_v5, %v17855_v56 }
 0x585   : > { %13513 = vmatpush3.bf16.msra.mxu1 %v14312_v11  ;;  %v9891_v11 = vld [vmem:[#allocation3 + $0x90] sm:$0xf]  ;;  %v10114_v56 = vsel %vm14586_vm6, %v10109_v22, %v17867_v1  ;;  %v10201_v55 = vshll.u32 %v9897_v2, 16 }
 0x586   : > { %13514 = vmatprep.subr.bf16.mxu1 %v14313_v14  ;;  %v10150_v4 = vshrl.u32 %v9891_v11, 16  ;;  %v10153_v50 = vshll.u32 %v9891_v11, 16  ;;  %v10119_v11 = vrot.slane %v10118_v18, 4  ;;  %v10143_v18 = vrot.slane %v10142_v53, 4 }
 0x588   : > { %13483 = vmatmul.mubr.bf16.gmra.mrb[4].mxu1 %v12116_v9  ;;  %v10131_v9 = vrot.slane %v10129_v7, 5  ;;  %v10152_v29 = vrot.slane %v10150_v4, 4  ;;  %v10155_v46 = vrot.slane %v10153_v50, 5  ;;  %v10123_v7 = vrot.slane %v10121_v57, 5  ;;  %v14381_v50 = vld [vmem:[#allocation3 + $0xa0] sm:$0xf] }
 0x589   : > { %13486 = vmatprep.mubr.bf16.mxu1 %v12117_v27  ;;  %13515 = vmatpush3.bf16.msra.mxu1 %v14313_v14  ;;  %v10076_v14 = vsel %vm14586_vm6, %v10071_v52, %v10075_v31  ;;  %v9894_v27 = vld [vmem:[#allocation3 + $0x9c] sm:$0xf]  ;;  %v10165_v31 = vrot.slane %v10163_v15, 4  ;;  %v14316_v52 = vld [vmem:[%s18106_s3 + $0x228] sm:$0xff]   ;;  %v10145_v4 = vshll.u32 %v14380_v6, 16  ;;  %v10187_v48 = vshrl.u32 %v14381_v50, 16 }
 0x58a   : > { %13516 = vmatprep.subr.bf16.mxu1 %v14314_v39  ;;  %v12119_v17 = vcombine.low %v10066_v42, %v10076_v14  ;;  %v10132_v34 = vor.u32 %v10131_v9, %v10128_v49  ;;  %v10174_v58 = vshrl.u32 %v9894_v27, 16  ;;  %v10177_v60 = vshll.u32 %v9894_v27, 16  ;;  %v14382_v42 = vld [vmem:[#allocation3 + $0x98] sm:$0x1]  ;;  %v14318_v27 = vld [vmem:[%s18106_s3 + $0x238] sm:$0xff]  }
 0x58b   : > { %v10156_v8 = vor.u32 %v10155_v46, %v10152_v29  ;;  %v10166_v61 = vor.u32 %v10165_v31, %v17880_v0  ;;  %v10124_v15 = vsel %vm14586_vm6, %v10119_v11, %v10123_v7  ;;  %v10169_v14 = vshll.u32 %v14382_v42, 16  ;;  %v14385_v6 = vld [vmem:[#allocation3 + $0xb8] sm:$0xf] }
 0x58c   : > { %v10176_v40 = vrot.slane %v10174_v58, 4  ;;  %v10179_v57 = vrot.slane %v10177_v60, 5  ;;  %v10198_v9 = vshrl.u32 %v9897_v2, 16  ;;  %v12121_v29 = vcombine.low %v10114_v56, %v10124_v15  ;;  %v14384_v58 = vld [vmem:[#allocation3 + $0xa4] sm:$0x1] }
 0x58d   : > { %13517 = vmatpush3.bf16.msra.mxu1 %v14314_v39  ;;  %v10100_v39 = vsel %vm14586_vm6, %v10095_v45, %v10099_v62  ;;  %v14383_v45 = vld [vmem:[#allocation3 + $0xac] sm:$0xf]  ;;  %v10133_v62 = vrot.slane %v10132_v34, 4  ;;  %v10157_v1 = vrot.slane %v10156_v8, 4  ;;  %v10167_v49 = vrot.slane %v10166_v61, 4 }
 0x58e   : > { %13518 = vmatprep.subr.bf16.mxu1 %v14315_v20  ;;  %v12120_v63 = vcombine.low %v10090_v35, %v10100_v39  ;;  %v10207_v30 = vshll.u32 %v14383_v45, 16  ;;  %v10211_v5 = vshrl.u32 %v14383_v45, 16  ;;  %v10147_v46 = vrot.slane %v10145_v4, 5  ;;  %v14386_v2 = vld [vmem:[#allocation3 + $0xc4] sm:$0xf] }
 0x58f   : > { %v10171_v39 = vrot.slane %v10169_v14, 5  ;;  %v10138_v11 = vsel %vm14586_vm6, %v10133_v62, %v17878_v23  ;;  %v10180_v53 = vor.u32 %v10179_v57, %v10176_v40  ;;  %v10193_v60 = vshll.u32 %v14384_v58, 16  ;;  %v14387_v62 = vld [vmem:[#allocation3 + $0xb0] sm:$0x1] }
 0x590   : > { %13487 = vmatmul.mubr.bf16.gmra.mrb[8].mxu1 %v12118_v24  ;;  %v14317_v24 = vld [vmem:[%s18106_s3 + $0x230] sm:$0xff]   ;;  %v17905_v22 = vrot.slane %v10207_v30, 5  ;;  %v10213_v35 = vrot.slane %v10211_v5, 4  ;;  %v10148_v34 = vsel %vm14586_vm6, %v10143_v18, %v10147_v46  ;;  %v10200_v8 = vrot.slane %v10198_v9, 4 }
 0x591   : > { %13490 = vmatprep.mubr.bf16.mxu1 %v12119_v17  ;;  %13519 = vmatpush3.bf16.msra.mxu1 %v14315_v20  ;;  %v10183_v20 = vshll.u32 %v14381_v50, 16  ;;  %v10189_v17 = vrot.slane %v10187_v48, 4  ;;  %v10172_v7 = vsel %vm14586_vm6, %v10167_v49, %v10171_v39  ;;  %v10203_v61 = vrot.slane %v10201_v55, 5 }
 0x592   : > { %13520 = vmatprep.subr.bf16.mxu1 %v14316_v52  ;;  %v10231_v4 = vshll.u32 %v14385_v6, 16  ;;  %v10235_v50 = vshrl.u32 %v14385_v6, 16  ;;  %v10214_v48 = vor.u32 %v10213_v35, %v17905_v22  ;;  %v10255_v15 = vshll.u32 %v14386_v2, 16  ;;  %v14388_v6 = vld [vmem:[#allocation3 + $0xbc] sm:$0x1] }
 0x593   : > { %v17903_v31 = vrot.slane %v10183_v20, 5  ;;  %v9903_v20 = vld [vmem:[#allocation3 + $0xc0] sm:$0xf]  ;;  %v10259_v42 = vshrl.u32 %v14386_v2, 16  ;;  %v10181_v45 = vrot.slane %v10180_v53, 4  ;;  %v10195_v30 = vrot.slane %v10193_v60, 5 }
 0x594   : > { %v10204_v5 = vor.u32 %v10203_v61, %v10200_v8  ;;  %v10217_v18 = vshll.u32 %v14387_v62, 16  ;;  %v10246_v40 = vshrl.u32 %v9903_v20, 16  ;;  %v10249_v57 = vshll.u32 %v9903_v20, 16 }
 0x595   : > { %13521 = vmatpush3.bf16.msra.mxu1 %v14316_v52  ;;  %v9900_v52 = vld [vmem:[#allocation3 + $0xb4] sm:$0xf]  ;;  %v10190_v56 = vor.u32 %v10189_v17, %v17903_v31  ;;  %v10233_v55 = vrot.slane %v10231_v4, 5  ;;  %v10215_v46 = vrot.slane %v10214_v48, 4  ;;  %v10257_v39 = vrot.slane %v10255_v15, 5 }
 0x596   : > { %13522 = vmatprep.subr.bf16.mxu1 %v14317_v24  ;;  %v10222_v23 = vshrl.u32 %v9900_v52, 16  ;;  %v10261_v35 = vrot.slane %v10259_v42, 4  ;;  %v10205_v53 = vrot.slane %v10204_v5, 4  ;;  %v10219_v58 = vrot.slane %v10217_v18, 5  ;;  %v14389_v42 = vld [vmem:[#allocation3 + $0xc8] sm:$0x1] }
 0x597   : > { %v10191_v49 = vrot.slane %v10190_v56, 4  ;;  %v10248_v60 = vrot.slane %v10246_v40, 4  ;;  %v10241_v4 = vshll.u32 %v14388_v6, 16  ;;  %v18459_v6 = vld [vmem:[#allocation45_spill] sm:$0xff] }
 0x598   : > { %13491 = vmatmul.mubr.bf16.gmra.mrb[12].mxu1 %v12120_v63  ;;  %v10162_v63 = vsel %vm14586_vm6, %v10157_v1, %v17880_v0  ;;  %v12122_v0 = vcombine.low %v10138_v11, %v10148_v34  ;;  %v9906_v1 = vld [vmem:[#allocation3 + $0xcc] sm:$0xf]  ;;  %v10224_v9 = vrot.slane %v10222_v23, 4  ;;  %v10283_v34 = vshrl.u32 %v17793_v28, 16 }
 0x599   : > { %13494 = vmatprep.mubr.bf16.mxu1 %v12121_v29  ;;  %13523 = vmatpush3.bf16.msra.mxu1 %v14317_v24  ;;  %v10225_v24 = vshll.u32 %v9900_v52, 16  ;;  %v12123_v14 = vcombine.low %v10162_v63, %v10172_v7  ;;  %v10237_v29 = vrot.slane %v10235_v50, 4  ;;  %v10270_v52 = vshrl.u32 %v9906_v1, 16 }
 0x59a   : > { %13524 = vmatprep.subr.bf16.mxu1 %v14318_v27  ;;  %v10273_v11 = vshll.u32 %v9906_v1, 16  ;;  %v10251_v63 = vrot.slane %v10249_v57, 5  ;;  %v10186_v7 = vsel %vm14586_vm6, %v10181_v45, %v17903_v31  ;;  %v10196_v8 = vsel %vm14586_vm6, %v10191_v49, %v10195_v30 }
 0x59b   : > { %v10227_v17 = vrot.slane %v10225_v24, 5  ;;  %v10238_v61 = vor.u32 %v10237_v29, %v10233_v55  ;;  %v10220_v56 = vsel %vm14586_vm6, %v10215_v46, %v10219_v58  ;;  %v10262_v50 = vor.u32 %v10261_v35, %v10257_v39  ;;  %v18449_v58 = vld [vmem:[#allocation33_spill] sm:$0xff] }
 0x59c   : > { %v10275_v20 = vrot.slane %v10273_v11, 5  ;;  %v10285_v24 = vrot.slane %v10283_v34, 4  ;;  %v12124_v2 = vcombine.low %v10186_v7, %v10196_v8  ;;  %v10210_v31 = vsel %vm14586_vm6, %v10205_v53, %v17905_v22  ;;  %v18453_v7 = vld [vmem:[#allocation37_spill] sm:$0xff] }
 0x59d   : > { %13525 = vmatpush3.bf16.msra.mxu1 %v14318_v27  ;;  %v10279_v27 = vshll.u32 %v17793_v28, 16  ;;  %v10228_v23 = vor.u32 %v10227_v17, %v10224_v9  ;;  %v10272_v28 = vrot.slane %v10270_v52, 4  ;;  %v10252_v15 = vor.u32 %v10251_v63, %v10248_v60  ;;  %v18452_v63 = vld [vmem:[#allocation36_spill] sm:$0xff] }
 0x59e   : > { %v10239_v45 = vrot.slane %v10238_v61, 4  ;;  %v10243_v30 = vrot.slane %v10241_v4, 5  ;;  %v10263_v5 = vrot.slane %v10262_v50, 4  ;;  %v10289_v57 = vshll.u32 %v17795_v43, 16  ;;  %v18456_v61 = vld [vmem:[#allocation42_spill] sm:$0xff]  ;;  %v18462_v50 = vld [vmem:[#allocation47_spill] sm:$0xff] }
 0x59f   : > { %v10281_v48 = vrot.slane %v10279_v27, 5  ;;  %v10229_v62 = vrot.slane %v10228_v23, 4  ;;  %v10276_v18 = vor.u32 %v10275_v20, %v10272_v28  ;;  %v10253_v1 = vrot.slane %v10252_v15, 4  ;;  %v18458_v23 = vld [vmem:[#allocation43_spill] sm:$0xff] }
 0x5a0   : > { %13495 = vmatmul.mubr.bf16.gmra.mrb[16].mxu1 %v12122_v0  ;;  %v10265_v0 = vshll.u32 %v14389_v42, 16  ;;  %v10244_v9 = vsel %vm14586_vm6, %v10239_v45, %v10243_v30  ;;  %v10291_v35 = vrot.slane %v10289_v57, 5  ;;  %v18454_v8 = vcombine.low %v18452_v63, %v18453_v7  ;;  %v18469_v15 = vld [vmem:[#allocation51_spill] sm:$0xff]  ;;  %v18473_v45 = vld [vmem:[#allocation53_spill] sm:$0xff]  ;;  %v18474_v30 = vld [vmem:[#allocation54_spill] sm:$0xff] }
 0x5a1   : > { %13498 = vmatprep.mubr.bf16.mxu1 %v12123_v14  ;;  %v12125_v14 = vcombine.low %v10210_v31, %v10220_v56  ;;  %v10286_v40 = vor.u32 %v10285_v24, %v10281_v48  ;;  %v10234_v29 = vsel %vm14586_vm6, %v10229_v62, %v10233_v55  ;;  %v10277_v46 = vrot.slane %v10276_v18, 4  ;;  %v18450_v55 = vld [vmem:[#allocation34_spill] sm:$0xff]  ;;  %v18466_v24 = vld [vmem:[#allocation49_spill] sm:$0xff] }
 0x5a2   : > { %v10267_v49 = vrot.slane %v10265_v0, 5  ;;  %v12126_v52 = vcombine.low %v10234_v29, %v10244_v9  ;;  %v10258_v11 = vsel %vm14586_vm6, %v10253_v1, %v10257_v39  ;;  %v18451_v60 = vcombine.low %v18449_v58, %v18450_v55  ;;  %v18455_v39 = vld [vmem:[#allocation40_spill] sm:$0xff]  ;;  %v18468_v31 = vld [vmem:[#allocation50_spill] sm:$0xff] }
 0x5a3   : > { %v10287_v17 = vrot.slane %v10286_v40, 4  ;;  %v10282_v43 = vsel %vm14586_vm6, %v10277_v46, %v10281_v48  ;;  %v18457_v56 = vcombine.low %v18455_v39, %v18456_v61  ;;  %v18460_v4 = vcombine.low %v18458_v23, %v18459_v6  ;;  %v18465_v48 = vld [vmem:[#allocation48_spill] sm:$0xff]  ;;  %v11156_v29 = vld [vmem:[%s14577_s6 + $0x20] sm:$0xff] }
 0x5a4   : > { %v10268_v22 = vsel %vm14586_vm6, %v10263_v5, %v10267_v49  ;;  %v18463_v28 = vcombine.low %v18461_v26, %v18462_v50  ;;  %v18464_v20 = vcombine.low %v17434_v10, %v17441_v37  ;;  %v18470_v42 = vcombine.low %v18468_v31, %v18469_v15  ;;  %v18471_v0 = vld [vmem:[#allocation52_spill] sm:$0xff]  ;;  %v11160_v6 = vld [vmem:[%s14577_s6 + $0x40] sm:$0xff]  ;;  %v11163_v50 = vld [vmem:[%s14577_s6 + $0x58] sm:$0xff] }
 0x5a5   : > { %v12127_v27 = vcombine.low %v10258_v11, %v10268_v22  ;;  %v10292_v34 = vsel %vm14586_vm6, %v10287_v17, %v10291_v35  ;;  %v18475_v5 = vcombine.low %v18473_v45, %v18474_v30  ;;  %v18476_v10 = vcombine.low %v17503_v19, %v17507_v41  ;;  %v11154_v19 = vld [vmem:[%s14577_s6 + $0x10] sm:$0xff]  ;;  %v11159_v35 = vld [vmem:[%s14577_s6 + $0x38] sm:$0xff] }
 0x5a6   : > { %v12128_v53 = vcombine.low %v10282_v43, %v10292_v34  ;;  %v18477_v37 = vcombine.low %v17511_v47, %v17517_v32  ;;  %v11158_v49 = vld [vmem:[%s14577_s6 + $0x30] sm:$0xff]  ;;  %v11157_v43 = vld [vmem:[%s14577_s6 + $0x28] sm:$0xff] }
 0x5a7   : > { %v11162_v61 = vld [vmem:[%s14577_s6 + $0x50] sm:$0xff] }
 0x5a8   : > { %13499 = vmatmul.mubr.bf16.gmra.mrb[20].mxu1 %v12124_v2  ;;  %v18467_v2 = vcombine.low %v18465_v48, %v18466_v24  ;;  %v11161_v24 = vld [vmem:[%s14577_s6 + $0x48] sm:$0xff] }
 0x5a9   : > { %13502 = vmatprep.mubr.bf16.mxu1 %v12125_v14  ;;  %v18472_v14 = vcombine.low %v17476_v3, %v18471_v0  ;;  %v17995_v3 = vld [vmem:[%s18107_s4] ss:$0 sm:$0xff] }
 0x5b0   : > { %13503 = vmatmul.mubr.bf16.gmra.mrb[24].mxu1 %v12126_v52 }
 0x5b1   : > { %13506 = vmatprep.mubr.bf16.mxu1 %v12127_v27 }
 0x5b8   : > { %13507 = vmatmul.mubr.bf16.gmra.mrb[28].mxu1 %v12128_v53 }
 0x5b9   : > { %13526 = vmatprep.mubr.bf16.mxu1 %v18451_v60 }
 0x5c0   : > { %13527 = vmatmul.mubr.bf16.vlgmr.msra.gmra.mrb[0].mxu1 %v18454_v8 }
 0x5c1   : > { %13530 = vmatprep.mubr.bf16.mxu1 %v18457_v56 }
 0x5c8   : > { %13531 = vmatmul.mubr.bf16.gmra.mrb[4].mxu1 %v18460_v4 }
 0x5c9   : > { %13534 = vmatprep.mubr.bf16.mxu1 %v18463_v28 }
 0x5d0   : > { %13535 = vmatmul.mubr.bf16.gmra.mrb[8].mxu1 %v18464_v20 }
 0x5d1   : > { %13538 = vmatprep.mubr.bf16.mxu1 %v18467_v2 }
 0x5d8   : > { %13539 = vmatmul.mubr.bf16.gmra.mrb[12].mxu1 %v18470_v42 }
 0x5d9   : > { %13542 = vmatprep.mubr.bf16.mxu1 %v18472_v14 }
 0x5e0   : > { %13543 = vmatmul.mubr.bf16.gmra.mrb[16].mxu1 %v18475_v5 }
 0x5e1   : > { %13546 = vmatprep.mubr.bf16.mxu1 %v18476_v10  ;;  %v11166_v10 = vld [vmem:[%s14577_s6 + $0x70] sm:$0xff] }
 0x5e8   : > { %13547 = vmatmul.mubr.bf16.gmra.mrb[20].mxu1 %v18477_v37 }
 0x5e9   : > { %13550 = vmatprep.mubr.bf16.mxu1 %v12181_v25  ;;  %v11155_v25 = vld [vmem:[%s14577_s6 + $0x18] sm:$0xff] }
 0x5f0   : > { %13551 = vmatmul.mubr.bf16.gmra.mrb[24].mxu1 %v12182_v51 }
 0x5f1   : > { %13554 = vmatprep.mubr.bf16.mxu1 %v12183_v16 }
 0x5f8   : > { %13555 = vmatmul.mubr.bf16.gmra.mrb[28].mxu1 %v12184_v36 }
 0x693   : > { %v13528_v32 = vpop.f32.mrb[0].mxu1 }
 0x694   : > { %v11122_v41 = vadd.f32 %v13528_v32, %v17995_v3  ;;  %v10954_v47 = vpop.f32.mrb[1].mxu1 }
 0x695   : > { %v11120_v38 = vadd.f32 %v17995_v3, %v10954_v47  ;;  %v13529_v12 = vpop.f32.mrb[2].mxu1 }
 0x696   : > { %v11186_v33 = vadd.f32 %v11154_v19, %v11122_v41  ;;  %v11123_v51 = vadd.f32 %v13529_v12, %v17995_v3  ;;  %v10957_v44 = vpop.f32.mrb[3].mxu1  ;;  %v11164_v19 = vld [vmem:[%s14577_s6 + $0x60] sm:$0xff] }
 0x697   : > { %v11184_v16 = vadd.f32 %v11152_v59, %v11120_v38  ;;  %v11121_v13 = vadd.f32 %v17995_v3, %v10957_v44  ;;  %v11167_v59 = vld [vmem:[%s14577_s6 + $0x78] sm:$0xff] }
 0x698   : > { %v11218_v21 = vmax.f32 %v11186_v33, 0.0  ;;  %v11187_v36 = vadd.f32 %v11155_v25, %v11123_v51  ;;  %v11165_v33 = vld [vmem:[%s14577_s6 + $0x68] sm:$0xff] }
 0x699   : > { %v11216_v62 = vmax.f32 %v11184_v16, 0.0  ;;  %v11185_v18 = vadd.f32 %v11153_v54, %v11121_v13 }
 0x69a   : > { %11250 = vst [vmem:[%s18009_s24 + $0x10] sm:$0xff] %v11218_v21  ;;  %v11219_v40 = vmax.f32 %v11187_v36, 0.0 }
 0x69b   : > { %11248 = vst [vmem:[%s18009_s24] sm:$0xff] %v11216_v62  ;;  %v11217_v57 = vmax.f32 %v11185_v18, 0.0  ;;  %v13532_v1 = vpop.f32.mrb[4].mxu1 }
 0x69c   : > { %11251 = vst [vmem:[%s18009_s24 + $0x18] sm:$0xff] %v11219_v40  ;;  %v11126_v9 = vadd.f32 %v13532_v1, %v17995_v3  ;;  %v10970_v22 = vpop.f32.mrb[5].mxu1  ;;  %v11170_v40 = vld [vmem:[%s14577_s6 + $0x90] sm:$0xff] }
 0x69d   : > { %11249 = vst [vmem:[%s18009_s24 + $0x8] sm:$0xff] %v11217_v57  ;;  %v11124_v46 = vadd.f32 %v17995_v3, %v10970_v22  ;;  %v13533_v17 = vpop.f32.mrb[6].mxu1 }
 0x69e   : > { %v11190_v52 = vadd.f32 %v11158_v49, %v11126_v9  ;;  %v11127_v11 = vadd.f32 %v13533_v17, %v17995_v3  ;;  %v10973_v27 = vpop.f32.mrb[7].mxu1  ;;  %v11168_v49 = vld [vmem:[%s14577_s6 + $0x80] sm:$0xff] }
 0x69f   : > { %v11188_v34 = vadd.f32 %v11156_v29, %v11124_v46  ;;  %v11125_v53 = vadd.f32 %v17995_v3, %v10973_v27  ;;  %v11171_v29 = vld [vmem:[%s14577_s6 + $0x98] sm:$0xff] }
 0x6a0   : > { %v11222_v58 = vmax.f32 %v11190_v52, 0.0  ;;  %v11191_v55 = vadd.f32 %v11159_v35, %v11127_v11  ;;  %v11169_v52 = vld [vmem:[%s14577_s6 + $0x88] sm:$0xff] }
 0x6a1   : > { %v11220_v60 = vmax.f32 %v11188_v34, 0.0  ;;  %v11189_v63 = vadd.f32 %v11157_v43, %v11125_v53 }
 0x6a2   : > { %11254 = vst [vmem:[%s18009_s24 + $0x30] sm:$0xff] %v11222_v58  ;;  %v11223_v7 = vmax.f32 %v11191_v55, 0.0 }
 0x6a3   : > { %11252 = vst [vmem:[%s18009_s24 + $0x20] sm:$0xff] %v11220_v60  ;;  %v11221_v8 = vmax.f32 %v11189_v63, 0.0  ;;  %v13536_v39 = vpop.f32.mrb[8].mxu1 }
 0x6a4   : > { %11255 = vst [vmem:[%s18009_s24 + $0x38] sm:$0xff] %v11223_v7  ;;  %v11130_v56 = vadd.f32 %v13536_v39, %v17995_v3  ;;  %v10986_v23 = vpop.f32.mrb[9].mxu1  ;;  %v11174_v7 = vld [vmem:[%s14577_s6 + $0xb0] sm:$0xff] }
 0x6a5   : > { %11253 = vst [vmem:[%s18009_s24 + $0x28] sm:$0xff] %v11221_v8  ;;  %v11128_v4 = vadd.f32 %v17995_v3, %v10986_v23  ;;  %v13537_v26 = vpop.f32.mrb[10].mxu1 }
 0x6a6   : > { %v11194_v28 = vadd.f32 %v11162_v61, %v11130_v56  ;;  %v11131_v20 = vadd.f32 %v13537_v26, %v17995_v3  ;;  %v10989_v48 = vpop.f32.mrb[11].mxu1  ;;  %v11172_v61 = vld [vmem:[%s14577_s6 + $0xa0] sm:$0xff] }
 0x6a7   : > { %v11192_v2 = vadd.f32 %v11160_v6, %v11128_v4  ;;  %v11129_v31 = vadd.f32 %v17995_v3, %v10989_v48  ;;  %v11175_v6 = vld [vmem:[%s14577_s6 + $0xb8] sm:$0xff] }
 0x6a8   : > { %v11226_v15 = vmax.f32 %v11194_v28, 0.0  ;;  %v11195_v42 = vadd.f32 %v11163_v50, %v11131_v20  ;;  %v11173_v28 = vld [vmem:[%s14577_s6 + $0xa8] sm:$0xff] }
 0x6a9   : > { %v11224_v0 = vmax.f32 %v11192_v2, 0.0  ;;  %v11193_v14 = vadd.f32 %v11161_v24, %v11129_v31 }
 0x6aa   : > { %11258 = vst [vmem:[%s18009_s24 + $0x50] sm:$0xff] %v11226_v15  ;;  %v11227_v45 = vmax.f32 %v11195_v42, 0.0 }
 0x6ab   : > { %11256 = vst [vmem:[%s18009_s24 + $0x40] sm:$0xff] %v11224_v0  ;;  %v11225_v30 = vmax.f32 %v11193_v14, 0.0  ;;  %v13540_v5 = vpop.f32.mrb[12].mxu1 }
 0x6ac   : > { %11259 = vst [vmem:[%s18009_s24 + $0x58] sm:$0xff] %v11227_v45  ;;  %v11134_v37 = vadd.f32 %v13540_v5, %v17995_v3  ;;  %v11002_v32 = vpop.f32.mrb[13].mxu1  ;;  %v11178_v45 = vld [vmem:[%s14577_s6 + $0xd0] sm:$0xff] }
 0x6ad   : > { %11257 = vst [vmem:[%s18009_s24 + $0x48] sm:$0xff] %v11225_v30  ;;  %v11132_v41 = vadd.f32 %v17995_v3, %v11002_v32  ;;  %v13541_v47 = vpop.f32.mrb[14].mxu1 }
 0x6ae   : > { %v11198_v38 = vadd.f32 %v11166_v10, %v11134_v37  ;;  %v11135_v12 = vadd.f32 %v13541_v47, %v17995_v3  ;;  %v11005_v25 = vpop.f32.mrb[15].mxu1  ;;  %v11176_v10 = vld [vmem:[%s14577_s6 + $0xc0] sm:$0xff] }
 0x6af   : > { %v11196_v51 = vadd.f32 %v11164_v19, %v11132_v41  ;;  %v11133_v44 = vadd.f32 %v17995_v3, %v11005_v25  ;;  %v11179_v19 = vld [vmem:[%s14577_s6 + $0xd8] sm:$0xff] }
 0x6b0   : > { %v11230_v54 = vmax.f32 %v11198_v38, 0.0  ;;  %v11199_v16 = vadd.f32 %v11167_v59, %v11135_v12  ;;  %v11177_v38 = vld [vmem:[%s14577_s6 + $0xc8] sm:$0xff] }
 0x6b1   : > { %v11228_v13 = vmax.f32 %v11196_v51, 0.0  ;;  %v11197_v21 = vadd.f32 %v11165_v33, %v11133_v44 }
 0x6b2   : > { %11262 = vst [vmem:[%s18009_s24 + $0x70] sm:$0xff] %v11230_v54  ;;  %v11231_v36 = vmax.f32 %v11199_v16, 0.0 }
 0x6b3   : > { %11260 = vst [vmem:[%s18009_s24 + $0x60] sm:$0xff] %v11228_v13  ;;  %v11229_v62 = vmax.f32 %v11197_v21, 0.0  ;;  %v13544_v18 = vpop.f32.mrb[16].mxu1 }
 0x6b4   : > { %11263 = vst [vmem:[%s18009_s24 + $0x78] sm:$0xff] %v11231_v36  ;;  %v11138_v57 = vadd.f32 %v13544_v18, %v17995_v3  ;;  %v11018_v1 = vpop.f32.mrb[17].mxu1  ;;  %v11182_v36 = vld [vmem:[%s14577_s6 + $0xf0] sm:$0xff] }
 0x6b5   : > { %11261 = vst [vmem:[%s18009_s24 + $0x68] sm:$0xff] %v11229_v62  ;;  %v11136_v9 = vadd.f32 %v17995_v3, %v11018_v1  ;;  %v13545_v22 = vpop.f32.mrb[18].mxu1 }
 0x6b6   : > { %v11202_v46 = vadd.f32 %v11170_v40, %v11138_v57  ;;  %v11139_v17 = vadd.f32 %v13545_v22, %v17995_v3  ;;  %v11021_v35 = vpop.f32.mrb[19].mxu1  ;;  %v11180_v40 = vld [vmem:[%s14577_s6 + $0xe0] sm:$0xff] }
 0x6b7   : > { %v11200_v11 = vadd.f32 %v11168_v49, %v11136_v9  ;;  %v11137_v27 = vadd.f32 %v17995_v3, %v11021_v35  ;;  %v11183_v49 = vld [vmem:[%s14577_s6 + $0xf8] sm:$0xff] }
 0x6b8   : > { %v11234_v43 = vmax.f32 %v11202_v46, 0.0  ;;  %v11203_v34 = vadd.f32 %v11171_v29, %v11139_v17  ;;  %v11181_v46 = vld [vmem:[%s14577_s6 + $0xe8] sm:$0xff] }
 0x6b9   : > { %v11232_v53 = vmax.f32 %v11200_v11, 0.0  ;;  %v11201_v58 = vadd.f32 %v11169_v52, %v11137_v27 }
 0x6ba   : > { %11266 = vst [vmem:[%s18009_s24 + $0x90] sm:$0xff] %v11234_v43  ;;  %v11235_v55 = vmax.f32 %v11203_v34, 0.0 }
 0x6bb   : > { %11264 = vst [vmem:[%s18009_s24 + $0x80] sm:$0xff] %v11232_v53  ;;  %v11233_v60 = vmax.f32 %v11201_v58, 0.0  ;;  %v13548_v63 = vpop.f32.mrb[20].mxu1 }
 0x6bc   : > { %11267 = vst [vmem:[%s18009_s24 + $0x98] sm:$0xff] %v11235_v55  ;;  %v11142_v8 = vadd.f32 %v13548_v63, %v17995_v3  ;;  %v11034_v39 = vpop.f32.mrb[21].mxu1 }
 0x6bd   : > { %11265 = vst [vmem:[%s18009_s24 + $0x88] sm:$0xff] %v11233_v60  ;;  %v11140_v56 = vadd.f32 %v17995_v3, %v11034_v39  ;;  %v13549_v23 = vpop.f32.mrb[22].mxu1 }
 0x6be   : > { %v11206_v4 = vadd.f32 %v11174_v7, %v11142_v8  ;;  %v11143_v26 = vadd.f32 %v13549_v23, %v17995_v3  ;;  %v11037_v50 = vpop.f32.mrb[23].mxu1 }
 0x6bf   : > { %v11204_v20 = vadd.f32 %v11172_v61, %v11140_v56  ;;  %v11141_v48 = vadd.f32 %v17995_v3, %v11037_v50 }
 0x6c0   : > { %v11238_v24 = vmax.f32 %v11206_v4, 0.0  ;;  %v11207_v2 = vadd.f32 %v11175_v6, %v11143_v26 }
 0x6c1   : > { %v11236_v31 = vmax.f32 %v11204_v20, 0.0  ;;  %v11205_v15 = vadd.f32 %v11173_v28, %v11141_v48 }
 0x6c2   : > { %11270 = vst [vmem:[%s18009_s24 + $0xb0] sm:$0xff] %v11238_v24  ;;  %v11239_v42 = vmax.f32 %v11207_v2, 0.0 }
 0x6c3   : > { %11268 = vst [vmem:[%s18009_s24 + $0xa0] sm:$0xff] %v11236_v31  ;;  %v11237_v0 = vmax.f32 %v11205_v15, 0.0  ;;  %v13552_v14 = vpop.f32.mrb[24].mxu1 }
 0x6c4   : > { %11271 = vst [vmem:[%s18009_s24 + $0xb8] sm:$0xff] %v11239_v42  ;;  %v11146_v30 = vadd.f32 %v13552_v14, %v17995_v3  ;;  %v11050_v5 = vpop.f32.mrb[25].mxu1 }
 0x6c5   : > { %11269 = vst [vmem:[%s18009_s24 + $0xa8] sm:$0xff] %v11237_v0  ;;  %v11144_v37 = vadd.f32 %v17995_v3, %v11050_v5  ;;  %v13553_v32 = vpop.f32.mrb[26].mxu1 }
 0x6c6   : > { %v11210_v41 = vadd.f32 %v11178_v45, %v11146_v30  ;;  %v11147_v47 = vadd.f32 %v13553_v32, %v17995_v3  ;;  %v11053_v59 = vpop.f32.mrb[27].mxu1 }
 0x6c7   : > { %v11208_v12 = vadd.f32 %v11176_v10, %v11144_v37  ;;  %v11145_v25 = vadd.f32 %v17995_v3, %v11053_v59 }
 0x6c8   : > { %v11242_v33 = vmax.f32 %v11210_v41, 0.0  ;;  %v11211_v51 = vadd.f32 %v11179_v19, %v11147_v47 }
 0x6c9   : > { %v11240_v44 = vmax.f32 %v11208_v12, 0.0  ;;  %v11209_v54 = vadd.f32 %v11177_v38, %v11145_v25 }
 0x6ca   : > { %11274 = vst [vmem:[%s18009_s24 + $0xd0] sm:$0xff] %v11242_v33  ;;  %v11243_v16 = vmax.f32 %v11211_v51, 0.0 }
 0x6cb   : > { %11272 = vst [vmem:[%s18009_s24 + $0xc0] sm:$0xff] %v11240_v44  ;;  %v11241_v13 = vmax.f32 %v11209_v54, 0.0  ;;  %v13556_v21 = vpop.f32.mrb[28].mxu1 }
 0x6cc   : > { %11275 = vst [vmem:[%s18009_s24 + $0xd8] sm:$0xff] %v11243_v16  ;;  %v11150_v62 = vadd.f32 %v13556_v21, %v17995_v3  ;;  %v11066_v18 = vpop.f32.mrb[29].mxu1 }
 0x6cd   : > { %11273 = vst [vmem:[%s18009_s24 + $0xc8] sm:$0xff] %v11241_v13  ;;  %v11148_v57 = vadd.f32 %v17995_v3, %v11066_v18  ;;  %v13557_v1 = vpop.f32.mrb[30].mxu1 }
 0x6ce   : > { %v11214_v9 = vadd.f32 %v11182_v36, %v11150_v62  ;;  %v11151_v22 = vadd.f32 %v13557_v1, %v17995_v3  ;;  %v11069_v29 = vpop.f32.mrb[31].mxu1 }
 0x6cf   : > { %v11212_v17 = vadd.f32 %v11180_v40, %v11148_v57  ;;  %v11149_v35 = vadd.f32 %v17995_v3, %v11069_v29 }
 0x6d0   : > { %v11246_v52 = vmax.f32 %v11214_v9, 0.0  ;;  %v11215_v11 = vadd.f32 %v11183_v49, %v11151_v22 }
 0x6d1   : > { %v11244_v27 = vmax.f32 %v11212_v17, 0.0  ;;  %v11213_v43 = vadd.f32 %v11181_v46, %v11149_v35 }
 0x6d2   : > { %11278 = vst [vmem:[%s18009_s24 + $0xf0] sm:$0xff] %v11246_v52  ;;  %v11247_v34 = vmax.f32 %v11215_v11, 0.0 }
 0x6d3   : > { %11276 = vst [vmem:[%s18009_s24 + $0xe0] sm:$0xff] %v11244_v27  ;;  %v11245_v53 = vmax.f32 %v11213_v43, 0.0 }
 0x6d4   : > { %11279 = vst [vmem:[%s18009_s24 + $0xf8] sm:$0xff] %v11247_v34 }
 0x6d5   : > { %11277 = vst [vmem:[%s18009_s24 + $0xe8] sm:$0xff] %v11245_v53 }
 0x6d6 PF: > { %s15_s18 = sadd.s32 1, %s14396_s18  }
 0x6d7   : > { %p12_p4 = scmp.ge.s32.totalorder %s15_s18, 4  }
 0x6d9   :  { %14 = sbr.rel (!%p12_p4) target bundleno = 1 (0x1), region = 90 }

</bundles_post_ra>
